<compile_context>
chip_gen: v5e
topology: v5e:2x2
jax: 0.10.0
libtpu: 0.0.40
codegen_flags: <defaults>
</compile_context>

<pallas_src>
import jax
import jax.numpy as jnp
from jax.experimental import pallas as pl
from jax.experimental.pallas import tpu as pltpu

CIN_P = 8    # input channels padded 3 -> 8
CP = 128     # conv channels padded 64 -> 128 (lane-dense)


# =====================================================================
# Fused Pallas kernel: conv1 + LReLU + conv2 + BN + LReLU + pool + head
# =====================================================================

def _disc_fused_kernel(x_ref, w1_ref, b1_ref, w2_ref, bn_scale_ref,
                       bn_shift_ref, pw_ref, wd1_ref, bd1_ref, wd2_ref,
                       bd2_ref, o_ref, y1pad_ref):
    Hp2, Wp2, _ = x_ref.shape          # padded spatial dims (H+2, W+2)
    H, W = Hp2 - 2, Wp2 - 2
    HW = H * W

    # ---- conv1: 3x3, stride 1, pad 1 -> 9 accumulated matmuls over shifts ----
    acc1 = jnp.zeros((HW, CP), jnp.float32)
    for t in range(9):
        dy, dx = t // 3, t % 3
        xs = x_ref[dy:dy + H, dx:dx + W, :]                       # (H, W, 8) bf16
        acc1 = acc1 + jnp.dot(xs.reshape(HW, CIN_P), w1_ref[t],
                              preferred_element_type=jnp.float32)
    a1 = acc1 + b1_ref[...]
    y1 = jnp.maximum(a1, 0.2 * a1)                                # LeakyReLU(0.2)

    # Stash conv1 output in VMEM with a zeroed 1-pixel border (conv2's padding).
    # Zero every grid step so border/odd-tap reads are never uninitialized.
    y1pad_ref[...] = jnp.zeros_like(y1pad_ref)
    y1pad_ref[1:H + 1, 1:W + 1, :] = y1.reshape(H, W, CP).astype(y1pad_ref.dtype)

    # ---- conv2: 3x3, pad 1 (+ folded BN affine + LeakyReLU) -----------------
    # Evaluated at stride 1; the stride-2 subsampling is folded into the pool
    # weights `pw`, so no strided VMEM access is needed.
    acc2 = jnp.zeros((HW, CP), jnp.float32)
    for t in range(9):
        dy, dx = t // 3, t % 3
        ys = y1pad_ref[dy:dy + H, dx:dx + W, :]                   # (H, W, 128) bf16
        acc2 = acc2 + jnp.dot(ys.reshape(HW, CP), w2_ref[t],
                              preferred_element_type=jnp.float32)
    z = acc2 * bn_scale_ref[...] + bn_shift_ref[...]              # conv2 bias folded in
    z = jnp.maximum(z, 0.2 * z)                                   # LeakyReLU(0.2)

    # ---- dense head: masked global-average pool + 1x1 convs + sigmoid -------
    pooled = jnp.sum(z * pw_ref[...], axis=0, keepdims=True)      # (1, 128)
    h = jnp.dot(pooled.astype(jnp.bfloat16), wd1_ref[...],
                preferred_element_type=jnp.float32) + bd1_ref[...]
    h = jnp.maximum(h, 0.2 * h)                                   # LeakyReLU(0.2)
    y = jnp.dot(h.astype(jnp.bfloat16), wd2_ref[...],
                preferred_element_type=jnp.float32)               # (1, 128); col 0 is real
    y0 = y[:, 0:1] + bd2_ref[...]                                 # (1, 1)
    p = pl.reciprocal(1.0 + jnp.exp(-y0), approx=True)            # sigmoid (EUP recip)
    o_ref[...] = jnp.minimum(jnp.maximum(p, 0.0), 1.0)


# =====================================================================
# Deterministic parameter initialization (synthetic, no checkpoint)
# =====================================================================

def init_params(key):
    ks = jax.random.split(key, 10)

    def conv3x3(k, cin, cout):
        fan_in = 3 * 3 * cin
        return jax.random.normal(k, (3, 3, cin, cout), jnp.float32) / jnp.sqrt(float(fan_in))

    p = {}

    # first_block conv1: Conv2d(3, 64, k=3, p=1) -- padded to (9, 8, 128)
    w1 = jnp.zeros((3, 3, CIN_P, CP), jnp.float32)
    w1 = w1.at[:, :, :3, :64].set(conv3x3(ks[0], 3, 64))
    p["w1"] = w1.reshape(9, CIN_P, CP).astype(jnp.bfloat16)
    b1 = jnp.zeros((1, CP), jnp.float32)
    b1 = b1.at[:, :64].set(0.01 * jax.random.normal(ks[1], (1, 64), jnp.float32))
    p["b1"] = b1

    # first_block conv2: Conv2d(64, 64, k=3, s=2, p=1) -- padded to (9, 128, 128)
    w2 = jnp.zeros((3, 3, CP, CP), jnp.float32)
    w2 = w2.at[:, :, :64, :64].set(conv3x3(ks[2], 64, 64))
    p["w2"] = w2.reshape(9, CP, CP).astype(jnp.bfloat16)
    b2 = 0.01 * jax.random.normal(ks[3], (64,), jnp.float32)

    # BatchNorm2d(64): eval-mode running-stats affine, conv2 bias folded in.
    # TODO(synk): a fresh nn.BatchNorm2d runs in train mode (batch statistics);
    # eval-mode folding is implemented here for determinism.
    gamma = 1.0 + 0.1 * jax.random.normal(ks[4], (64,), jnp.float32)
    beta = 0.1 * jax.random.normal(ks[5], (64,), jnp.float32)
    rmean = 0.1 * jax.random.normal(ks[6], (64,), jnp.float32)
    rvar = 1.0 + 0.1 * jnp.abs(jax.random.normal(ks[7], (64,), jnp.float32))
    eps = 1e-5
    scale = gamma / jnp.sqrt(rvar + eps)
    shift = beta - rmean * scale + scale * b2          # BN(conv + bias) folded
    p["bn_scale"] = jnp.zeros((1, CP), jnp.float32).at[:, :64].set(scale)
    p["bn_shift"] = jnp.zeros((1, CP), jnp.float32).at[:, :64].set(shift)

    # dense head (grow=0): Conv2d(64,128,1) -> LeakyReLU -> Conv2d(128,1,1)
    wd1 = jnp.zeros((CP, 128), jnp.float32)
    wd1 = wd1.at[:64, :].set(jax.random.normal(ks[8], (64, 128), jnp.float32) / jnp.sqrt(64.0))
    p["wd1"] = wd1.astype(jnp.bfloat16)
    p["bd1"] = jnp.zeros((1, 128), jnp.float32)
    wd2 = jnp.zeros((128, CP), jnp.float32)              # lane-dense; only col 0 is real
    wd2 = wd2.at[:, 0:1].set(jax.random.normal(ks[9], (128, 1), jnp.float32) / jnp.sqrt(128.0))
    p["wd2"] = wd2.astype(jnp.bfloat16)
    p["bd2"] = jnp.zeros((1, 1), jnp.float32)
    return p


# =====================================================================
# Forward pass wrapper
# =====================================================================

def discriminator_forward(params, x_nchw):
    N, C, H, W = x_nchw.shape
    assert C == 3
    H2, W2 = (H + 1) // 2, (W + 1) // 2          # conv2 (k3, s2, p1) output dims
    HW = H * W

    # NCHW -> NHWC, pad channels 3 -> 8, zero-pad spatially by 1, cast to bf16.
    x = jnp.transpose(x_nchw, (0, 2, 3, 1)).astype(jnp.float32)
    x = jnp.pad(x, ((0, 0), (1, 1), (1, 1), (0, CIN_P - C)))
    x = x.astype(jnp.bfloat16)

    # Pooling weights: average over the stride-2 grid of conv2 outputs only.
    hh = (jnp.arange(H)[:, None] % 2) == 0
    ww = (jnp.arange(W)[None, :] % 2) == 0
    pool_w = ((hh & ww).astype(jnp.float32) / float(H2 * W2)).reshape(HW, 1)

    out = pl.pallas_call(
        _disc_fused_kernel,
        grid=(N,),
        in_specs=[
            pl.BlockSpec((None, H + 2, W + 2, CIN_P), lambda n: (n, 0, 0, 0)),  # x
            pl.BlockSpec((9, CIN_P, CP), lambda n: (0, 0, 0)),                  # w1
            pl.BlockSpec((1, CP), lambda n: (0, 0)),                            # b1
            pl.BlockSpec((9, CP, CP), lambda n: (0, 0, 0)),                     # w2
            pl.BlockSpec((1, CP), lambda n: (0, 0)),                            # bn_scale
            pl.BlockSpec((1, CP), lambda n: (0, 0)),                            # bn_shift
            pl.BlockSpec((HW, 1), lambda n: (0, 0)),                            # pool weights
            pl.BlockSpec((CP, CP), lambda n: (0, 0)),                           # wd1
            pl.BlockSpec((1, CP), lambda n: (0, 0)),                            # bd1
            pl.BlockSpec((CP, CP), lambda n: (0, 0)),                           # wd2
            pl.BlockSpec((1, 1), lambda n: (0, 0)),                             # bd2
        ],
        out_specs=pl.BlockSpec((None, 1, 1), lambda n: (n, 0, 0)),
        out_shape=jax.ShapeDtypeStruct((N, 1, 1), jnp.float32),
        scratch_shapes=[pltpu.VMEM((H + 2, W + 2, CP), jnp.bfloat16)],
        compiler_params=pltpu.CompilerParams(
            dimension_semantics=("parallel",),
            vmem_limit_bytes=32 * 1024 * 1024,
        ),
    )(x, params["w1"], params["b1"], params["w2"], params["bn_scale"],
      params["bn_shift"], pool_w, params["wd1"], params["bd1"],
      params["wd2"], params["bd2"])

    # PyTorch dense head outputs (N, 1, 1, 1)
    return out.reshape(N, 1, 1, 1)


# =====================================================================
# Main
# =====================================================================

if __name__ == "__main__":
    key = jax.random.PRNGKey(0)
    kp, kx = jax.random.split(key)
    params = init_params(kp)

    # Small deterministic input, PyTorch-style NCHW: batch=2, 3 channels, 16x16
    x = jax.random.normal(kx, (2, 3, 16, 16), jnp.float32)

    fwd = jax.jit(discriminator_forward)
    out = jax.block_until_ready(fwd(params, x))

    assert out.shape == (2, 1, 1, 1), out.shape
    assert bool(jnp.all(jnp.isfinite(out)))
    assert bool(jnp.all((out >= 0.0) & (out <= 1.0)))
    print("KERNEL_OK")
</pallas_src>

<mosaic_0001>
module attributes {stable_mosaic.version = 11 : i64} {
  func.func @_disc_fused_kernel(%arg0: i32, %arg1: memref<1x18x18x8xbf16, #tpu.memory_space<vmem>>, %arg2: memref<9x8x128xbf16, #tpu.memory_space<vmem>>, %arg3: memref<1x128xf32, #tpu.memory_space<vmem>>, %arg4: memref<9x128x128xbf16, #tpu.memory_space<vmem>>, %arg5: memref<1x128xf32, #tpu.memory_space<vmem>>, %arg6: memref<1x128xf32, #tpu.memory_space<vmem>>, %arg7: memref<256x1xf32, #tpu.memory_space<vmem>>, %arg8: memref<128x128xbf16, #tpu.memory_space<vmem>>, %arg9: memref<1x128xf32, #tpu.memory_space<vmem>>, %arg10: memref<128x128xbf16, #tpu.memory_space<vmem>>, %arg11: memref<1x1xf32, #tpu.memory_space<vmem>>, %arg12: memref<1x1x1xf32, #tpu.memory_space<vmem>>, %arg13: memref<18x18x128xbf16, #tpu.memory_space<vmem>>) attributes {dimension_semantics = [#tpu.dimension_semantics<parallel>], iteration_bounds = array<i64: 2>, scalar_prefetch = 0 : i64, scratch_operands = 1 : i64, tpu.core_type = #tpu.core_type<tc>, window_params = [{transform_indices = @transform_0, window_bounds = array<i64: 1, 18, 18, 8>}, {pipeline_mode = #tpu.pipeline_mode<synchronous>, transform_indices = @transform_1, window_bounds = array<i64: 9, 8, 128>}, {pipeline_mode = #tpu.pipeline_mode<synchronous>, transform_indices = @transform_2, window_bounds = array<i64: 1, 128>}, {pipeline_mode = #tpu.pipeline_mode<synchronous>, transform_indices = @transform_3, window_bounds = array<i64: 9, 128, 128>}, {pipeline_mode = #tpu.pipeline_mode<synchronous>, transform_indices = @transform_4, window_bounds = array<i64: 1, 128>}, {pipeline_mode = #tpu.pipeline_mode<synchronous>, transform_indices = @transform_5, window_bounds = array<i64: 1, 128>}, {pipeline_mode = #tpu.pipeline_mode<synchronous>, transform_indices = @transform_6, window_bounds = array<i64: 256, 1>}, {pipeline_mode = #tpu.pipeline_mode<synchronous>, transform_indices = @transform_7, window_bounds = array<i64: 128, 128>}, {pipeline_mode = #tpu.pipeline_mode<synchronous>, transform_indices = @transform_8, window_bounds = array<i64: 1, 128>}, {pipeline_mode = #tpu.pipeline_mode<synchronous>, transform_indices = @transform_9, window_bounds = array<i64: 128, 128>}, {pipeline_mode = #tpu.pipeline_mode<synchronous>, transform_indices = @transform_10, window_bounds = array<i64: 1, 1>}, {transform_indices = @transform_11, window_bounds = array<i64: 1, 1, 1>}]} {
    %cst = arith.constant 0.000000e+00 : f32
    %0 = vector.broadcast %cst : f32 to vector<256x128xf32>
    %c0 = arith.constant 0 : index
    %c0_0 = arith.constant 0 : index
    %c0_1 = arith.constant 0 : index
    %c0_2 = arith.constant 0 : index
    %1 = vector.load %arg1[%c0, %c0_0, %c0_1, %c0_2] : memref<1x18x18x8xbf16, #tpu.memory_space<vmem>>, vector<1x16x16x8xbf16>
    %2 = vector.shape_cast %1 : vector<1x16x16x8xbf16> to vector<16x16x8xbf16>
    %3 = vector.shape_cast %2 : vector<16x16x8xbf16> to vector<256x8xbf16>
    %c0_3 = arith.constant 0 : index
    %c0_4 = arith.constant 0 : index
    %c0_5 = arith.constant 0 : index
    %4 = vector.load %arg2[%c0_3, %c0_4, %c0_5] : memref<9x8x128xbf16, #tpu.memory_space<vmem>>, vector<1x8x128xbf16>
    %5 = vector.shape_cast %4 : vector<1x8x128xbf16> to vector<8x128xbf16>
    %cst_6 = arith.constant dense<0.000000e+00> : vector<256x128xf32>
    %6 = tpu.matmul %3, %5, %cst_6 {dimension_numbers = #tpu.dot_dimension_numbers<[1], [0], [0], [1], [0, 0, 1, 1], [], []>} : vector<256x8xbf16>, vector<8x128xbf16>, vector<256x128xf32> -> vector<256x128xf32>
    %7 = arith.addf %0, %6 : vector<256x128xf32>
    %c0_7 = arith.constant 0 : index
    %c0_8 = arith.constant 0 : index
    %c1 = arith.constant 1 : index
    %c0_9 = arith.constant 0 : index
    %8 = vector.load %arg1[%c0_7, %c0_8, %c1, %c0_9] : memref<1x18x18x8xbf16, #tpu.memory_space<vmem>>, vector<1x16x16x8xbf16>
    %9 = vector.shape_cast %8 : vector<1x16x16x8xbf16> to vector<16x16x8xbf16>
    %10 = vector.shape_cast %9 : vector<16x16x8xbf16> to vector<256x8xbf16>
    %c1_10 = arith.constant 1 : index
    %c0_11 = arith.constant 0 : index
    %c0_12 = arith.constant 0 : index
    %11 = vector.load %arg2[%c1_10, %c0_11, %c0_12] : memref<9x8x128xbf16, #tpu.memory_space<vmem>>, vector<1x8x128xbf16>
    %12 = vector.shape_cast %11 : vector<1x8x128xbf16> to vector<8x128xbf16>
    %cst_13 = arith.constant dense<0.000000e+00> : vector<256x128xf32>
    %13 = tpu.matmul %10, %12, %cst_13 {dimension_numbers = #tpu.dot_dimension_numbers<[1], [0], [0], [1], [0, 0, 1, 1], [], []>} : vector<256x8xbf16>, vector<8x128xbf16>, vector<256x128xf32> -> vector<256x128xf32>
    %14 = arith.addf %7, %13 : vector<256x128xf32>
    %c0_14 = arith.constant 0 : index
    %c0_15 = arith.constant 0 : index
    %c2 = arith.constant 2 : index
    %c0_16 = arith.constant 0 : index
    %15 = vector.load %arg1[%c0_14, %c0_15, %c2, %c0_16] : memref<1x18x18x8xbf16, #tpu.memory_space<vmem>>, vector<1x16x16x8xbf16>
    %16 = vector.shape_cast %15 : vector<1x16x16x8xbf16> to vector<16x16x8xbf16>
    %17 = vector.shape_cast %16 : vector<16x16x8xbf16> to vector<256x8xbf16>
    %c2_17 = arith.constant 2 : index
    %c0_18 = arith.constant 0 : index
    %c0_19 = arith.constant 0 : index
    %18 = vector.load %arg2[%c2_17, %c0_18, %c0_19] : memref<9x8x128xbf16, #tpu.memory_space<vmem>>, vector<1x8x128xbf16>
    %19 = vector.shape_cast %18 : vector<1x8x128xbf16> to vector<8x128xbf16>
    %cst_20 = arith.constant dense<0.000000e+00> : vector<256x128xf32>
    %20 = tpu.matmul %17, %19, %cst_20 {dimension_numbers = #tpu.dot_dimension_numbers<[1], [0], [0], [1], [0, 0, 1, 1], [], []>} : vector<256x8xbf16>, vector<8x128xbf16>, vector<256x128xf32> -> vector<256x128xf32>
    %21 = arith.addf %14, %20 : vector<256x128xf32>
    %c0_21 = arith.constant 0 : index
    %c1_22 = arith.constant 1 : index
    %c0_23 = arith.constant 0 : index
    %c0_24 = arith.constant 0 : index
    %22 = vector.load %arg1[%c0_21, %c1_22, %c0_23, %c0_24] : memref<1x18x18x8xbf16, #tpu.memory_space<vmem>>, vector<1x16x16x8xbf16>
    %23 = vector.shape_cast %22 : vector<1x16x16x8xbf16> to vector<16x16x8xbf16>
    %24 = vector.shape_cast %23 : vector<16x16x8xbf16> to vector<256x8xbf16>
    %c3 = arith.constant 3 : index
    %c0_25 = arith.constant 0 : index
    %c0_26 = arith.constant 0 : index
    %25 = vector.load %arg2[%c3, %c0_25, %c0_26] : memref<9x8x128xbf16, #tpu.memory_space<vmem>>, vector<1x8x128xbf16>
    %26 = vector.shape_cast %25 : vector<1x8x128xbf16> to vector<8x128xbf16>
    %cst_27 = arith.constant dense<0.000000e+00> : vector<256x128xf32>
    %27 = tpu.matmul %24, %26, %cst_27 {dimension_numbers = #tpu.dot_dimension_numbers<[1], [0], [0], [1], [0, 0, 1, 1], [], []>} : vector<256x8xbf16>, vector<8x128xbf16>, vector<256x128xf32> -> vector<256x128xf32>
    %28 = arith.addf %21, %27 : vector<256x128xf32>
    %c0_28 = arith.constant 0 : index
    %c1_29 = arith.constant 1 : index
    %c1_30 = arith.constant 1 : index
    %c0_31 = arith.constant 0 : index
    %29 = vector.load %arg1[%c0_28, %c1_29, %c1_30, %c0_31] : memref<1x18x18x8xbf16, #tpu.memory_space<vmem>>, vector<1x16x16x8xbf16>
    %30 = vector.shape_cast %29 : vector<1x16x16x8xbf16> to vector<16x16x8xbf16>
    %31 = vector.shape_cast %30 : vector<16x16x8xbf16> to vector<256x8xbf16>
    %c4 = arith.constant 4 : index
    %c0_32 = arith.constant 0 : index
    %c0_33 = arith.constant 0 : index
    %32 = vector.load %arg2[%c4, %c0_32, %c0_33] : memref<9x8x128xbf16, #tpu.memory_space<vmem>>, vector<1x8x128xbf16>
    %33 = vector.shape_cast %32 : vector<1x8x128xbf16> to vector<8x128xbf16>
    %cst_34 = arith.constant dense<0.000000e+00> : vector<256x128xf32>
    %34 = tpu.matmul %31, %33, %cst_34 {dimension_numbers = #tpu.dot_dimension_numbers<[1], [0], [0], [1], [0, 0, 1, 1], [], []>} : vector<256x8xbf16>, vector<8x128xbf16>, vector<256x128xf32> -> vector<256x128xf32>
    %35 = arith.addf %28, %34 : vector<256x128xf32>
    %c0_35 = arith.constant 0 : index
    %c1_36 = arith.constant 1 : index
    %c2_37 = arith.constant 2 : index
    %c0_38 = arith.constant 0 : index
    %36 = vector.load %arg1[%c0_35, %c1_36, %c2_37, %c0_38] : memref<1x18x18x8xbf16, #tpu.memory_space<vmem>>, vector<1x16x16x8xbf16>
    %37 = vector.shape_cast %36 : vector<1x16x16x8xbf16> to vector<16x16x8xbf16>
    %38 = vector.shape_cast %37 : vector<16x16x8xbf16> to vector<256x8xbf16>
    %c5 = arith.constant 5 : index
    %c0_39 = arith.constant 0 : index
    %c0_40 = arith.constant 0 : index
    %39 = vector.load %arg2[%c5, %c0_39, %c0_40] : memref<9x8x128xbf16, #tpu.memory_space<vmem>>, vector<1x8x128xbf16>
    %40 = vector.shape_cast %39 : vector<1x8x128xbf16> to vector<8x128xbf16>
    %cst_41 = arith.constant dense<0.000000e+00> : vector<256x128xf32>
    %41 = tpu.matmul %38, %40, %cst_41 {dimension_numbers = #tpu.dot_dimension_numbers<[1], [0], [0], [1], [0, 0, 1, 1], [], []>} : vector<256x8xbf16>, vector<8x128xbf16>, vector<256x128xf32> -> vector<256x128xf32>
    %42 = arith.addf %35, %41 : vector<256x128xf32>
    %c0_42 = arith.constant 0 : index
    %c2_43 = arith.constant 2 : index
    %c0_44 = arith.constant 0 : index
    %c0_45 = arith.constant 0 : index
    %43 = vector.load %arg1[%c0_42, %c2_43, %c0_44, %c0_45] : memref<1x18x18x8xbf16, #tpu.memory_space<vmem>>, vector<1x16x16x8xbf16>
    %44 = vector.shape_cast %43 : vector<1x16x16x8xbf16> to vector<16x16x8xbf16>
    %45 = vector.shape_cast %44 : vector<16x16x8xbf16> to vector<256x8xbf16>
    %c6 = arith.constant 6 : index
    %c0_46 = arith.constant 0 : index
    %c0_47 = arith.constant 0 : index
    %46 = vector.load %arg2[%c6, %c0_46, %c0_47] : memref<9x8x128xbf16, #tpu.memory_space<vmem>>, vector<1x8x128xbf16>
    %47 = vector.shape_cast %46 : vector<1x8x128xbf16> to vector<8x128xbf16>
    %cst_48 = arith.constant dense<0.000000e+00> : vector<256x128xf32>
    %48 = tpu.matmul %45, %47, %cst_48 {dimension_numbers = #tpu.dot_dimension_numbers<[1], [0], [0], [1], [0, 0, 1, 1], [], []>} : vector<256x8xbf16>, vector<8x128xbf16>, vector<256x128xf32> -> vector<256x128xf32>
    %49 = arith.addf %42, %48 : vector<256x128xf32>
    %c0_49 = arith.constant 0 : index
    %c2_50 = arith.constant 2 : index
    %c1_51 = arith.constant 1 : index
    %c0_52 = arith.constant 0 : index
    %50 = vector.load %arg1[%c0_49, %c2_50, %c1_51, %c0_52] : memref<1x18x18x8xbf16, #tpu.memory_space<vmem>>, vector<1x16x16x8xbf16>
    %51 = vector.shape_cast %50 : vector<1x16x16x8xbf16> to vector<16x16x8xbf16>
    %52 = vector.shape_cast %51 : vector<16x16x8xbf16> to vector<256x8xbf16>
    %c7 = arith.constant 7 : index
    %c0_53 = arith.constant 0 : index
    %c0_54 = arith.constant 0 : index
    %53 = vector.load %arg2[%c7, %c0_53, %c0_54] : memref<9x8x128xbf16, #tpu.memory_space<vmem>>, vector<1x8x128xbf16>
    %54 = vector.shape_cast %53 : vector<1x8x128xbf16> to vector<8x128xbf16>
    %cst_55 = arith.constant dense<0.000000e+00> : vector<256x128xf32>
    %55 = tpu.matmul %52, %54, %cst_55 {dimension_numbers = #tpu.dot_dimension_numbers<[1], [0], [0], [1], [0, 0, 1, 1], [], []>} : vector<256x8xbf16>, vector<8x128xbf16>, vector<256x128xf32> -> vector<256x128xf32>
    %56 = arith.addf %49, %55 : vector<256x128xf32>
    %c0_56 = arith.constant 0 : index
    %c2_57 = arith.constant 2 : index
    %c2_58 = arith.constant 2 : index
    %c0_59 = arith.constant 0 : index
    %57 = vector.load %arg1[%c0_56, %c2_57, %c2_58, %c0_59] : memref<1x18x18x8xbf16, #tpu.memory_space<vmem>>, vector<1x16x16x8xbf16>
    %58 = vector.shape_cast %57 : vector<1x16x16x8xbf16> to vector<16x16x8xbf16>
    %59 = vector.shape_cast %58 : vector<16x16x8xbf16> to vector<256x8xbf16>
    %c8 = arith.constant 8 : index
    %c0_60 = arith.constant 0 : index
    %c0_61 = arith.constant 0 : index
    %60 = vector.load %arg2[%c8, %c0_60, %c0_61] : memref<9x8x128xbf16, #tpu.memory_space<vmem>>, vector<1x8x128xbf16>
    %61 = vector.shape_cast %60 : vector<1x8x128xbf16> to vector<8x128xbf16>
    %cst_62 = arith.constant dense<0.000000e+00> : vector<256x128xf32>
    %62 = tpu.matmul %59, %61, %cst_62 {dimension_numbers = #tpu.dot_dimension_numbers<[1], [0], [0], [1], [0, 0, 1, 1], [], []>} : vector<256x8xbf16>, vector<8x128xbf16>, vector<256x128xf32> -> vector<256x128xf32>
    %63 = arith.addf %56, %62 : vector<256x128xf32>
    %c0_63 = arith.constant 0 : index
    %c0_64 = arith.constant 0 : index
    %64 = vector.load %arg3[%c0_63, %c0_64] : memref<1x128xf32, #tpu.memory_space<vmem>>, vector<1x128xf32>
    %65 = vector.broadcast %64 : vector<1x128xf32> to vector<256x128xf32>
    %66 = arith.addf %63, %65 : vector<256x128xf32>
    %cst_65 = arith.constant 2.000000e-01 : f32
    %67 = vector.broadcast %cst_65 : f32 to vector<256x128xf32>
    %68 = arith.mulf %67, %66 : vector<256x128xf32>
    %69 = arith.maximumf %66, %68 : vector<256x128xf32>
    %cst_66 = arith.constant 0.000000e+00 : bf16
    %70 = vector.broadcast %cst_66 : bf16 to vector<18x18x128xbf16>
    %c0_67 = arith.constant 0 : index
    %c0_68 = arith.constant 0 : index
    %c0_69 = arith.constant 0 : index
    %71 = vector.load %arg13[%c0_67, %c0_68, %c0_69] : memref<18x18x128xbf16, #tpu.memory_space<vmem>>, vector<18x18x128xbf16>
    tpu.vector_store %arg13[%c0_67, %c0_68, %c0_69], %70 {strides = array<i32>} : memref<18x18x128xbf16, #tpu.memory_space<vmem>>, vector<18x18x128xbf16>,
    %72 = vector.shape_cast %69 : vector<256x128xf32> to vector<16x16x128xf32>
    %73 = arith.truncf %72 : vector<16x16x128xf32> to vector<16x16x128xbf16>
    %c1_70 = arith.constant 1 : index
    %c1_71 = arith.constant 1 : index
    %c0_72 = arith.constant 0 : index
    %74 = vector.load %arg13[%c1_70, %c1_71, %c0_72] : memref<18x18x128xbf16, #tpu.memory_space<vmem>>, vector<16x16x128xbf16>
    tpu.vector_store %arg13[%c1_70, %c1_71, %c0_72], %73 {strides = array<i32>} : memref<18x18x128xbf16, #tpu.memory_space<vmem>>, vector<16x16x128xbf16>,
    %cst_73 = arith.constant 0.000000e+00 : f32
    %75 = vector.broadcast %cst_73 : f32 to vector<256x128xf32>
    %c0_74 = arith.constant 0 : index
    %c0_75 = arith.constant 0 : index
    %c0_76 = arith.constant 0 : index
    %76 = vector.load %arg13[%c0_74, %c0_75, %c0_76] : memref<18x18x128xbf16, #tpu.memory_space<vmem>>, vector<16x16x128xbf16>
    %77 = vector.shape_cast %76 : vector<16x16x128xbf16> to vector<256x128xbf16>
    %c0_77 = arith.constant 0 : index
    %c0_78 = arith.constant 0 : index
    %c0_79 = arith.constant 0 : index
    %78 = vector.load %arg4[%c0_77, %c0_78, %c0_79] : memref<9x128x128xbf16, #tpu.memory_space<vmem>>, vector<1x128x128xbf16>
    %79 = vector.shape_cast %78 : vector<1x128x128xbf16> to vector<128x128xbf16>
    %cst_80 = arith.constant dense<0.000000e+00> : vector<256x128xf32>
    %80 = tpu.matmul %77, %79, %cst_80 {dimension_numbers = #tpu.dot_dimension_numbers<[1], [0], [0], [1], [0, 0, 1, 1], [], []>} : vector<256x128xbf16>, vector<128x128xbf16>, vector<256x128xf32> -> vector<256x128xf32>
    %81 = arith.addf %75, %80 : vector<256x128xf32>
    %c0_81 = arith.constant 0 : index
    %c1_82 = arith.constant 1 : index
    %c0_83 = arith.constant 0 : index
    %82 = vector.load %arg13[%c0_81, %c1_82, %c0_83] : memref<18x18x128xbf16, #tpu.memory_space<vmem>>, vector<16x16x128xbf16>
    %83 = vector.shape_cast %82 : vector<16x16x128xbf16> to vector<256x128xbf16>
    %c1_84 = arith.constant 1 : index
    %c0_85 = arith.constant 0 : index
    %c0_86 = arith.constant 0 : index
    %84 = vector.load %arg4[%c1_84, %c0_85, %c0_86] : memref<9x128x128xbf16, #tpu.memory_space<vmem>>, vector<1x128x128xbf16>
    %85 = vector.shape_cast %84 : vector<1x128x128xbf16> to vector<128x128xbf16>
    %cst_87 = arith.constant dense<0.000000e+00> : vector<256x128xf32>
    %86 = tpu.matmul %83, %85, %cst_87 {dimension_numbers = #tpu.dot_dimension_numbers<[1], [0], [0], [1], [0, 0, 1, 1], [], []>} : vector<256x128xbf16>, vector<128x128xbf16>, vector<256x128xf32> -> vector<256x128xf32>
    %87 = arith.addf %81, %86 : vector<256x128xf32>
    %c0_88 = arith.constant 0 : index
    %c2_89 = arith.constant 2 : index
    %c0_90 = arith.constant 0 : index
    %88 = vector.load %arg13[%c0_88, %c2_89, %c0_90] : memref<18x18x128xbf16, #tpu.memory_space<vmem>>, vector<16x16x128xbf16>
    %89 = vector.shape_cast %88 : vector<16x16x128xbf16> to vector<256x128xbf16>
    %c2_91 = arith.constant 2 : index
    %c0_92 = arith.constant 0 : index
    %c0_93 = arith.constant 0 : index
    %90 = vector.load %arg4[%c2_91, %c0_92, %c0_93] : memref<9x128x128xbf16, #tpu.memory_space<vmem>>, vector<1x128x128xbf16>
    %91 = vector.shape_cast %90 : vector<1x128x128xbf16> to vector<128x128xbf16>
    %cst_94 = arith.constant dense<0.000000e+00> : vector<256x128xf32>
    %92 = tpu.matmul %89, %91, %cst_94 {dimension_numbers = #tpu.dot_dimension_numbers<[1], [0], [0], [1], [0, 0, 1, 1], [], []>} : vector<256x128xbf16>, vector<128x128xbf16>, vector<256x128xf32> -> vector<256x128xf32>
    %93 = arith.addf %87, %92 : vector<256x128xf32>
    %c1_95 = arith.constant 1 : index
    %c0_96 = arith.constant 0 : index
    %c0_97 = arith.constant 0 : index
    %94 = vector.load %arg13[%c1_95, %c0_96, %c0_97] : memref<18x18x128xbf16, #tpu.memory_space<vmem>>, vector<16x16x128xbf16>
    %95 = vector.shape_cast %94 : vector<16x16x128xbf16> to vector<256x128xbf16>
    %c3_98 = arith.constant 3 : index
    %c0_99 = arith.constant 0 : index
    %c0_100 = arith.constant 0 : index
    %96 = vector.load %arg4[%c3_98, %c0_99, %c0_100] : memref<9x128x128xbf16, #tpu.memory_space<vmem>>, vector<1x128x128xbf16>
    %97 = vector.shape_cast %96 : vector<1x128x128xbf16> to vector<128x128xbf16>
    %cst_101 = arith.constant dense<0.000000e+00> : vector<256x128xf32>
    %98 = tpu.matmul %95, %97, %cst_101 {dimension_numbers = #tpu.dot_dimension_numbers<[1], [0], [0], [1], [0, 0, 1, 1], [], []>} : vector<256x128xbf16>, vector<128x128xbf16>, vector<256x128xf32> -> vector<256x128xf32>
    %99 = arith.addf %93, %98 : vector<256x128xf32>
    %c1_102 = arith.constant 1 : index
    %c1_103 = arith.constant 1 : index
    %c0_104 = arith.constant 0 : index
    %100 = vector.load %arg13[%c1_102, %c1_103, %c0_104] : memref<18x18x128xbf16, #tpu.memory_space<vmem>>, vector<16x16x128xbf16>
    %101 = vector.shape_cast %100 : vector<16x16x128xbf16> to vector<256x128xbf16>
    %c4_105 = arith.constant 4 : index
    %c0_106 = arith.constant 0 : index
    %c0_107 = arith.constant 0 : index
    %102 = vector.load %arg4[%c4_105, %c0_106, %c0_107] : memref<9x128x128xbf16, #tpu.memory_space<vmem>>, vector<1x128x128xbf16>
    %103 = vector.shape_cast %102 : vector<1x128x128xbf16> to vector<128x128xbf16>
    %cst_108 = arith.constant dense<0.000000e+00> : vector<256x128xf32>
    %104 = tpu.matmul %101, %103, %cst_108 {dimension_numbers = #tpu.dot_dimension_numbers<[1], [0], [0], [1], [0, 0, 1, 1], [], []>} : vector<256x128xbf16>, vector<128x128xbf16>, vector<256x128xf32> -> vector<256x128xf32>
    %105 = arith.addf %99, %104 : vector<256x128xf32>
    %c1_109 = arith.constant 1 : index
    %c2_110 = arith.constant 2 : index
    %c0_111 = arith.constant 0 : index
    %106 = vector.load %arg13[%c1_109, %c2_110, %c0_111] : memref<18x18x128xbf16, #tpu.memory_space<vmem>>, vector<16x16x128xbf16>
    %107 = vector.shape_cast %106 : vector<16x16x128xbf16> to vector<256x128xbf16>
    %c5_112 = arith.constant 5 : index
    %c0_113 = arith.constant 0 : index
    %c0_114 = arith.constant 0 : index
    %108 = vector.load %arg4[%c5_112, %c0_113, %c0_114] : memref<9x128x128xbf16, #tpu.memory_space<vmem>>, vector<1x128x128xbf16>
    %109 = vector.shape_cast %108 : vector<1x128x128xbf16> to vector<128x128xbf16>
    %cst_115 = arith.constant dense<0.000000e+00> : vector<256x128xf32>
    %110 = tpu.matmul %107, %109, %cst_115 {dimension_numbers = #tpu.dot_dimension_numbers<[1], [0], [0], [1], [0, 0, 1, 1], [], []>} : vector<256x128xbf16>, vector<128x128xbf16>, vector<256x128xf32> -> vector<256x128xf32>
    %111 = arith.addf %105, %110 : vector<256x128xf32>
    %c2_116 = arith.constant 2 : index
    %c0_117 = arith.constant 0 : index
    %c0_118 = arith.constant 0 : index
    %112 = vector.load %arg13[%c2_116, %c0_117, %c0_118] : memref<18x18x128xbf16, #tpu.memory_space<vmem>>, vector<16x16x128xbf16>
    %113 = vector.shape_cast %112 : vector<16x16x128xbf16> to vector<256x128xbf16>
    %c6_119 = arith.constant 6 : index
    %c0_120 = arith.constant 0 : index
    %c0_121 = arith.constant 0 : index
    %114 = vector.load %arg4[%c6_119, %c0_120, %c0_121] : memref<9x128x128xbf16, #tpu.memory_space<vmem>>, vector<1x128x128xbf16>
    %115 = vector.shape_cast %114 : vector<1x128x128xbf16> to vector<128x128xbf16>
    %cst_122 = arith.constant dense<0.000000e+00> : vector<256x128xf32>
    %116 = tpu.matmul %113, %115, %cst_122 {dimension_numbers = #tpu.dot_dimension_numbers<[1], [0], [0], [1], [0, 0, 1, 1], [], []>} : vector<256x128xbf16>, vector<128x128xbf16>, vector<256x128xf32> -> vector<256x128xf32>
    %117 = arith.addf %111, %116 : vector<256x128xf32>
    %c2_123 = arith.constant 2 : index
    %c1_124 = arith.constant 1 : index
    %c0_125 = arith.constant 0 : index
    %118 = vector.load %arg13[%c2_123, %c1_124, %c0_125] : memref<18x18x128xbf16, #tpu.memory_space<vmem>>, vector<16x16x128xbf16>
    %119 = vector.shape_cast %118 : vector<16x16x128xbf16> to vector<256x128xbf16>
    %c7_126 = arith.constant 7 : index
    %c0_127 = arith.constant 0 : index
    %c0_128 = arith.constant 0 : index
    %120 = vector.load %arg4[%c7_126, %c0_127, %c0_128] : memref<9x128x128xbf16, #tpu.memory_space<vmem>>, vector<1x128x128xbf16>
    %121 = vector.shape_cast %120 : vector<1x128x128xbf16> to vector<128x128xbf16>
    %cst_129 = arith.constant dense<0.000000e+00> : vector<256x128xf32>
    %122 = tpu.matmul %119, %121, %cst_129 {dimension_numbers = #tpu.dot_dimension_numbers<[1], [0], [0], [1], [0, 0, 1, 1], [], []>} : vector<256x128xbf16>, vector<128x128xbf16>, vector<256x128xf32> -> vector<256x128xf32>
    %123 = arith.addf %117, %122 : vector<256x128xf32>
    %c2_130 = arith.constant 2 : index
    %c2_131 = arith.constant 2 : index
    %c0_132 = arith.constant 0 : index
    %124 = vector.load %arg13[%c2_130, %c2_131, %c0_132] : memref<18x18x128xbf16, #tpu.memory_space<vmem>>, vector<16x16x128xbf16>
    %125 = vector.shape_cast %124 : vector<16x16x128xbf16> to vector<256x128xbf16>
    %c8_133 = arith.constant 8 : index
    %c0_134 = arith.constant 0 : index
    %c0_135 = arith.constant 0 : index
    %126 = vector.load %arg4[%c8_133, %c0_134, %c0_135] : memref<9x128x128xbf16, #tpu.memory_space<vmem>>, vector<1x128x128xbf16>
    %127 = vector.shape_cast %126 : vector<1x128x128xbf16> to vector<128x128xbf16>
    %cst_136 = arith.constant dense<0.000000e+00> : vector<256x128xf32>
    %128 = tpu.matmul %125, %127, %cst_136 {dimension_numbers = #tpu.dot_dimension_numbers<[1], [0], [0], [1], [0, 0, 1, 1], [], []>} : vector<256x128xbf16>, vector<128x128xbf16>, vector<256x128xf32> -> vector<256x128xf32>
    %129 = arith.addf %123, %128 : vector<256x128xf32>
    %c0_137 = arith.constant 0 : index
    %c0_138 = arith.constant 0 : index
    %130 = vector.load %arg5[%c0_137, %c0_138] : memref<1x128xf32, #tpu.memory_space<vmem>>, vector<1x128xf32>
    %131 = vector.broadcast %130 : vector<1x128xf32> to vector<256x128xf32>
    %132 = arith.mulf %129, %131 : vector<256x128xf32>
    %c0_139 = arith.constant 0 : index
    %c0_140 = arith.constant 0 : index
    %133 = vector.load %arg6[%c0_139, %c0_140] : memref<1x128xf32, #tpu.memory_space<vmem>>, vector<1x128xf32>
    %134 = vector.broadcast %133 : vector<1x128xf32> to vector<256x128xf32>
    %135 = arith.addf %132, %134 : vector<256x128xf32>
    %cst_141 = arith.constant 2.000000e-01 : f32
    %136 = vector.broadcast %cst_141 : f32 to vector<256x128xf32>
    %137 = arith.mulf %136, %135 : vector<256x128xf32>
    %138 = arith.maximumf %135, %137 : vector<256x128xf32>
    %c0_142 = arith.constant 0 : index
    %c0_143 = arith.constant 0 : index
    %139 = vector.load %arg7[%c0_142, %c0_143] : memref<256x1xf32, #tpu.memory_space<vmem>>, vector<256x1xf32>
    %140 = vector.broadcast %139 : vector<256x1xf32> to vector<256x128xf32>
    %141 = arith.mulf %138, %140 : vector<256x128xf32>
    %cst_144 = arith.constant dense<0.000000e+00> : vector<128xf32>
    %142 = vector.multi_reduction <add>, %141, %cst_144 [0] : vector<256x128xf32> to vector<128xf32>
    %143 = vector.shape_cast %142 : vector<128xf32> to vector<1x128xf32>
    %144 = arith.truncf %143 : vector<1x128xf32> to vector<1x128xbf16>
    %c0_145 = arith.constant 0 : index
    %c0_146 = arith.constant 0 : index
    %145 = vector.load %arg8[%c0_145, %c0_146] : memref<128x128xbf16, #tpu.memory_space<vmem>>, vector<128x128xbf16>
    %cst_147 = arith.constant dense<0.000000e+00> : vector<1x128xf32>
    %146 = tpu.matmul %144, %145, %cst_147 {dimension_numbers = #tpu.dot_dimension_numbers<[1], [0], [0], [1], [0, 0, 1, 1], [], []>} : vector<1x128xbf16>, vector<128x128xbf16>, vector<1x128xf32> -> vector<1x128xf32>
    %c0_148 = arith.constant 0 : index
    %c0_149 = arith.constant 0 : index
    %147 = vector.load %arg9[%c0_148, %c0_149] : memref<1x128xf32, #tpu.memory_space<vmem>>, vector<1x128xf32>
    %148 = arith.addf %146, %147 : vector<1x128xf32>
    %cst_150 = arith.constant 2.000000e-01 : f32
    %149 = vector.broadcast %cst_150 : f32 to vector<1x128xf32>
    %150 = arith.mulf %149, %148 : vector<1x128xf32>
    %151 = arith.maximumf %148, %150 : vector<1x128xf32>
    %152 = arith.truncf %151 : vector<1x128xf32> to vector<1x128xbf16>
    %c0_151 = arith.constant 0 : index
    %c0_152 = arith.constant 0 : index
    %153 = vector.load %arg10[%c0_151, %c0_152] : memref<128x128xbf16, #tpu.memory_space<vmem>>, vector<128x128xbf16>
    %cst_153 = arith.constant dense<0.000000e+00> : vector<1x128xf32>
    %154 = tpu.matmul %152, %153, %cst_153 {dimension_numbers = #tpu.dot_dimension_numbers<[1], [0], [0], [1], [0, 0, 1, 1], [], []>} : vector<1x128xbf16>, vector<128x128xbf16>, vector<1x128xf32> -> vector<1x128xf32>
    %155 = vector.extract_strided_slice %154 {offsets = [0, 0], sizes = [1, 1], strides = [1, 1]} : vector<1x128xf32> to vector<1x1xf32>
    %c0_154 = arith.constant 0 : index
    %c0_155 = arith.constant 0 : index
    %156 = vector.load %arg11[%c0_154, %c0_155] : memref<1x1xf32, #tpu.memory_space<vmem>>, vector<1x1xf32>
    %157 = arith.addf %155, %156 : vector<1x1xf32>
    %cst_156 = arith.constant 0.000000e+00 : f32
    %158 = vector.broadcast %cst_156 : f32 to vector<1x1xf32>
    %159 = arith.subf %158, %157 : vector<1x1xf32>
    %160 = math.exp %159 : vector<1x1xf32>
    %cst_157 = arith.constant 1.000000e+00 : f32
    %161 = vector.broadcast %cst_157 : f32 to vector<1x1xf32>
    %162 = arith.addf %161, %160 : vector<1x1xf32>
    %163 = tpu.reciprocal %162 {approx = true} : vector<1x1xf32> -> vector<1x1xf32>
    %cst_158 = arith.constant 0.000000e+00 : f32
    %164 = vector.broadcast %cst_158 : f32 to vector<1x1xf32>
    %165 = arith.maximumf %163, %164 : vector<1x1xf32>
    %cst_159 = arith.constant 1.000000e+00 : f32
    %166 = vector.broadcast %cst_159 : f32 to vector<1x1xf32>
    %167 = arith.minimumf %165, %166 : vector<1x1xf32>
    %c0_160 = arith.constant 0 : index
    %c0_161 = arith.constant 0 : index
    %c0_162 = arith.constant 0 : index
    %168 = vector.load %arg12[%c0_160, %c0_161, %c0_162] : memref<1x1x1xf32, #tpu.memory_space<vmem>>, vector<1x1x1xf32>
    %169 = vector.shape_cast %168 : vector<1x1x1xf32> to vector<1x1xf32>
    %170 = vector.shape_cast %167 : vector<1x1xf32> to vector<1x1x1xf32>
    tpu.vector_store %arg12[%c0_160, %c0_161, %c0_162], %170 {strides = array<i32>} : memref<1x1x1xf32, #tpu.memory_space<vmem>>, vector<1x1x1xf32>,
    return
  }
  func.func @transform_0(%arg0: i32) -> (i32, i32, i32, i32) {
    %c0_i32 = arith.constant 0 : i32
    %c0_i32_0 = arith.constant 0 : i32
    %c0_i32_1 = arith.constant 0 : i32
    %c0_i32_2 = arith.constant 0 : i32
    return %arg0, %c0_i32, %c0_i32_0, %c0_i32_1 : i32, i32, i32, i32
  }
  func.func @transform_1(%arg0: i32) -> (i32, i32, i32) {
    %c0_i32 = arith.constant 0 : i32
    %c0_i32_0 = arith.constant 0 : i32
    %c0_i32_1 = arith.constant 0 : i32
    %c0_i32_2 = arith.constant 0 : i32
    return %c0_i32, %c0_i32_0, %c0_i32_1 : i32, i32, i32
  }
  func.func @transform_2(%arg0: i32) -> (i32, i32) {
    %c0_i32 = arith.constant 0 : i32
    %c0_i32_0 = arith.constant 0 : i32
    %c0_i32_1 = arith.constant 0 : i32
    return %c0_i32, %c0_i32_0 : i32, i32
  }
  func.func @transform_3(%arg0: i32) -> (i32, i32, i32) {
    %c0_i32 = arith.constant 0 : i32
    %c0_i32_0 = arith.constant 0 : i32
    %c0_i32_1 = arith.constant 0 : i32
    %c0_i32_2 = arith.constant 0 : i32
    return %c0_i32, %c0_i32_0, %c0_i32_1 : i32, i32, i32
  }
  func.func @transform_4(%arg0: i32) -> (i32, i32) {
    %c0_i32 = arith.constant 0 : i32
    %c0_i32_0 = arith.constant 0 : i32
    %c0_i32_1 = arith.constant 0 : i32
    return %c0_i32, %c0_i32_0 : i32, i32
  }
  func.func @transform_5(%arg0: i32) -> (i32, i32) {
    %c0_i32 = arith.constant 0 : i32
    %c0_i32_0 = arith.constant 0 : i32
    %c0_i32_1 = arith.constant 0 : i32
    return %c0_i32, %c0_i32_0 : i32, i32
  }
  func.func @transform_6(%arg0: i32) -> (i32, i32) {
    %c0_i32 = arith.constant 0 : i32
    %c0_i32_0 = arith.constant 0 : i32
    %c0_i32_1 = arith.constant 0 : i32
    return %c0_i32, %c0_i32_0 : i32, i32
  }
  func.func @transform_7(%arg0: i32) -> (i32, i32) {
    %c0_i32 = arith.constant 0 : i32
    %c0_i32_0 = arith.constant 0 : i32
    %c0_i32_1 = arith.constant 0 : i32
    return %c0_i32, %c0_i32_0 : i32, i32
  }
  func.func @transform_8(%arg0: i32) -> (i32, i32) {
    %c0_i32 = arith.constant 0 : i32
    %c0_i32_0 = arith.constant 0 : i32
    %c0_i32_1 = arith.constant 0 : i32
    return %c0_i32, %c0_i32_0 : i32, i32
  }
  func.func @transform_9(%arg0: i32) -> (i32, i32) {
    %c0_i32 = arith.constant 0 : i32
    %c0_i32_0 = arith.constant 0 : i32
    %c0_i32_1 = arith.constant 0 : i32
    return %c0_i32, %c0_i32_0 : i32, i32
  }
  func.func @transform_10(%arg0: i32) -> (i32, i32) {
    %c0_i32 = arith.constant 0 : i32
    %c0_i32_0 = arith.constant 0 : i32
    %c0_i32_1 = arith.constant 0 : i32
    return %c0_i32, %c0_i32_0 : i32, i32
  }
  func.func @transform_11(%arg0: i32) -> (i32, i32, i32) {
    %c0_i32 = arith.constant 0 : i32
    %c0_i32_0 = arith.constant 0 : i32
    %c0_i32_1 = arith.constant 0 : i32
    return %arg0, %c0_i32, %c0_i32_0 : i32, i32, i32
  }
}

</mosaic_0001>

<bundles_post_ra>
// kernel: discriminator_forward.1
= control target key start
LH: loop header
LB: loop body
LE: loop exit
PB: predicated region body
PF: predicated region fallthrough
CT: control target
= control target key end

     0   :  { %s11299_s19 = smov 0   ;;  %s15468_s0 = inlined_call_operand.vmem [shape: bf16[2,18,18,8], index: 0, kind: input, shape index: {}]   ;;  %s15469_s1 = inlined_call_operand.vmem [shape: bf16[9,8,128], index: 1, kind: input, shape index: {}]   ;;  %s15470_s2 = inlined_call_operand.vmem [shape: f32[1,128], index: 2, kind: input, shape index: {}]   ;;  %s15471_s3 = inlined_call_operand.vmem [shape: bf16[9,128,128], index: 3, kind: input, shape index: {}]   ;;  %s15472_s4 = inlined_call_operand.vmem [shape: f32[1,128], index: 4, kind: input, shape index: {}]   ;;  %s15473_s5 = inlined_call_operand.vmem [shape: f32[1,128], index: 5, kind: input, shape index: {}]   ;;  %s15474_s6 = inlined_call_operand.vmem [shape: f32[256,1], index: 6, kind: input, shape index: {}]   ;;  %s15475_s7 = inlined_call_operand.vmem [shape: bf16[128,128], index: 7, kind: input, shape index: {}]   ;;  %s15476_s8 = inlined_call_operand.vmem [shape: f32[1,128], index: 8, kind: input, shape index: {}]   ;;  %s15477_s9 = inlined_call_operand.vmem [shape: bf16[128,128], index: 9, kind: input, shape index: {}]   ;;  %s15478_s10 = inlined_call_operand.<no memory space> [shape: f32[1,1], index: 10, kind: input, shape index: {}]   ;;  %s15479_s11 = inlined_call_operand.vmem [shape: f32[2,1,1], index: 11, kind: output, shape index: {}]  }
   0x1   :  { %v16_v0 = vstv %s15478_s10 }
   0x2   :  { %17 = vst [vmem:[#allocation3] sm:$0x1] %v16_v0 }
   0x3 LB: > { %s9692_s20 = sadd.s32 4294967295, %s11233_s19   ;;  %p9696_p0 = scmp.ge.s32.totalorder %s11233_s19, 1  ;;  %s11233_s19 = sphi %s11299_s19, %s23_s19  }
   0x4   : > { %p339_p1 = scmp.lt.s32.totalorder %s11233_s19, 3 }
   0x6   : > { %p340_p2 = pnand %p9696_p0, %p339_p1 }
   0x8   : > { %343 = sbr.rel (%p340_p2) target bundleno = 1805 (0x70d), region = 64 }
   0xd   : > { %v418_v1 = vld [vmem:[%s15469_s1] sm:$0xf]  ;;  %vm921_vm0 = vcmask 1043456   ;;  %p377_p3 = scmp.lt.s32.totalorder %s9692_s20, 1  ;;  %v9698_v3 = vld [vmem:[%s15469_s1 + $0x4] sm:$0xf] }
   0xe   : > { %v1143_v2 = vsel %vm921_vm0, %v418_v1, 0  ;;  %v923_v4 = vsel %vm921_vm0, %v9698_v3, 0  ;;  %v9989_v5 = vld [vmem:[%s15469_s1 + $0x10] sm:$0xf]  ;;  %vm872_vm1 = vcmask 64512   ;;  %vm1282_vm5 = vcmask 1042432  }
   0xf   : > { %11189 = vmatpush.bf16.msra.mxu3 %v1143_v2  ;;  %s15672_s20 = smov (!%p377_p3, %s9692_s20), 1  ;;  %1152 = vmatpush.bf16.msra.mxu1 %v1143_v2  ;;  %v2437_v6 = vsel %vm921_vm0, %v9989_v5, 0  ;;  %vm435_vm2 = vsmask.f32 3328  ;;  %vm436_vm3 = vsmask.f32 7440 }
  0x10   : > { %932 = vmatpush.bf16.msra.mxu0 %v923_v4  ;;  %11188 = vmatpush.bf16.msra.mxu2 %v923_v4  ;;  %s11190_s26 = smul.u32 216, %s15672_s20  ;;  %vm11349_vm4 = vmor %vm435_vm2, %vm436_vm3  ;;  %vm1283_vm6 = vcmask 1046532   ;;  %vm4808_vm8 = vsmask.f32 7938  ;;  %vm4483_vm9 = vsmask.f32 256  ;;  %s384_s30 = scalar_lea.vmem %s15479_s11, %s15672_s20 }
  0x11   : > { %vm11554_vm7 = vmor %vm1282_vm5, %vm1283_vm6  ;;  %vm4484_vm11 = vsmask.f32 4368  ;;  %vm4814_vm12 = vcmask 1040384   ;;  %vm9643_vm15 = vcmask 0  }
  0x12   : > { %s11325_s29 = scalar_lea.vmem %s15468_s0, %s11190_s26  ;;  %vm12850_vm10 = vmand %vm921_vm0, %vm4808_vm8 }
  0x13   : > { %v11013_v7 = vld [vmem:[%s11325_s29 + $0x6c] sm:$0xff]  ;;  %v386_v8 = vld [vmem:[%s11325_s29] sm:$0xf]  ;;  %v11330_v9 = vld [vmem:[%s11325_s29 + $0x4] sm:$0xf] }
  0x14   : > { %2446 = vmatpush.bf16.msrb.mxu0 %v2437_v6  ;;  %v11333_v10 = vld [vmem:[%s11325_s29 + $0x8] sm:$0x1]  ;;  %v439_v11 = vshrl.u32 %v386_v8, 16  ;;  %v442_v12 = vshll.u32 %v386_v8, 16  ;;  %v448_v13 = vshll.u32 %v11330_v9, 16  ;;  %v452_v14 = vshrl.u32 %v11330_v9, 16  ;;  %9788 = vmatmul.msk.bf16.vlgmr.msra.gmra.mxu3 %vm872_vm1, %v11013_v7  ;;  %vm12898_vm13 = vmor %vm4483_vm9, %vm4484_vm11 }
  0x15   : > { %v458_v15 = vshll.u32 %v11333_v10, 16  ;;  %v404_v16 = vld [vmem:[%s11325_s29 + $0x6c] sm:$0xf]  ;;  %v405_v17 = vld [vmem:[%s11325_s29 + $0x70] sm:$0xf]  ;;  %v11004_v27 = vld [vmem:[%s11325_s29] sm:$0xff] }
  0x16   : > { %v441_v18 = vrot.slane %v439_v11, 4  ;;  %v444_v19 = vrot.slane %v442_v12, 5  ;;  %v450_v20 = vrot.slane %v448_v13, 5  ;;  %v454_v21 = vrot.slane %v452_v14, 4  ;;  %v428_v22 = vld [vmem:[%s11325_s29 + $0x74] sm:$0x1]  ;;  %9779 = vmatmul.msk.bf16.vlgmr.msra.gmra.mxu1 %vm872_vm1, %v11004_v27  ;;  %vm12914_vm14 = vmand %vm4814_vm12, %vm4483_vm9 }
  0x17   : > { %v460_v23 = vrot.slane %v458_v15, 5  ;;  %v655_v24 = vshrl.u32 %v404_v16, 16  ;;  %v658_v25 = vshll.u32 %v404_v16, 16  ;;  %v664_v26 = vshll.u32 %v405_v17, 16  ;;  %v388_v32 = vld [vmem:[%s11325_s29 + $0xc] sm:$0xf] }
  0x18   : > { %v445_v28 = vor.u32 %v444_v19, %v441_v18  ;;  %v455_v29 = vor.u32 %v454_v21, %v450_v20  ;;  %v668_v30 = vshrl.u32 %v405_v17, 16  ;;  %v674_v31 = vshll.u32 %v428_v22, 16  ;;  %v11345_v33 = vld [vmem:[%s11325_s29 + $0x10] sm:$0xf]  ;;  %v11360_v49 = vld [vmem:[%s11325_s29 + $0x14] sm:$0x1] }
  0x19   : > { %v657_v35 = vrot.slane %v655_v24, 4  ;;  %v660_v36 = vrot.slane %v658_v25, 5  ;;  %v666_v37 = vrot.slane %v664_v26, 5  ;;  %v463_v43 = vshrl.u32 %v388_v32, 16  ;;  %v406_v51 = vld [vmem:[%s11325_s29 + $0x78] sm:$0xf] }
  0x1a   : > { %v446_v38 = vrot.slane %v445_v28, 4  ;;  %v456_v39 = vrot.slane %v455_v29, 4  ;;  %v670_v40 = vrot.slane %v668_v30, 4  ;;  %v676_v41 = vrot.slane %v674_v31, 5  ;;  %v407_v63 = vld [vmem:[%s11325_s29 + $0x7c] sm:$0xf] }
  0x1b   : > { %v661_v42 = vor.u32 %v660_v36, %v657_v35  ;;  %v466_v44 = vshll.u32 %v388_v32, 16  ;;  %v472_v45 = vshll.u32 %v11345_v33, 16  ;;  %v476_v50 = vshrl.u32 %v11345_v33, 16  ;;  %v429_v5 = vld [vmem:[%s11325_s29 + $0x80] sm:$0x1]  ;;  %v11014_v7 = vld [vmem:[%s11325_s29 + $0x78] sm:$0xff] }
  0x1c   : > { %v451_v46 = vsel %vm11349_vm4, %v446_v38, %v450_v20  ;;  %v461_v47 = vsel %vm11349_vm4, %v456_v39, %v460_v23  ;;  %v671_v48 = vor.u32 %v670_v40, %v666_v37  ;;  %v465_v55 = vrot.slane %v463_v43, 4  ;;  %v9811_v17 = vld [vmem:[%s15469_s1 + $0x8] sm:$0xf]  ;;  %v9860_v21 = vld [vmem:[%s15469_s1 + $0xc] sm:$0xf] }
  0x1d   : > { %v824_v52 = vunpack.c.l.b16 %v451_v46  ;;  %v825_v53 = vunpack.c.l.b16 %v461_v47  ;;  %v662_v54 = vrot.slane %v661_v42, 4  ;;  %v468_v57 = vrot.slane %v466_v44, 5  ;;  %v390_v22 = vld [vmem:[%s11325_s29 + $0x18] sm:$0xf]  ;;  %v11385_v27 = vld [vmem:[%s11325_s29 + $0x1c] sm:$0xf] }
  0x1e   : > { %v672_v56 = vrot.slane %v671_v48, 4  ;;  %v474_v58 = vrot.slane %v472_v45, 5  ;;  %v478_v59 = vrot.slane %v476_v50, 4  ;;  %v482_v62 = vshll.u32 %v11360_v49, 16  ;;  %v11005_v31 = vld [vmem:[%s11325_s29 + $0xc] sm:$0xff] }
  0x1f   : > { %v856_v60 = vpack.c.b16 %v825_v53, %v824_v52  ;;  %v667_v61 = vsel %vm11349_vm4, %v662_v54, %v666_v37  ;;  %v679_v0 = vshrl.u32 %v406_v51, 16  ;;  %v469_v3 = vor.u32 %v468_v57, %v465_v55  ;;  %v408_v38 = vld [vmem:[%s11325_s29 + $0x84] sm:$0xf]  ;;  %v11395_v44 = vld [vmem:[%s11325_s29 + $0x20] sm:$0x1] }
  0x20   : > { %v677_v1 = vsel %vm11349_vm4, %v672_v56, %v676_v41  ;;  %v842_v2 = vunpack.c.l.b16 %v667_v61  ;;  %v479_v4 = vor.u32 %v478_v59, %v474_v58  ;;  %v484_v8 = vrot.slane %v482_v62, 5 }
  0x21   : > { %9699 = vmatmul.msk.bf16.vlgmr.msra.gmra.mxu0 %vm872_vm1, %v856_v60  ;;  %v843_v6 = vunpack.c.l.b16 %v677_v1  ;;  %v681_v11 = vrot.slane %v679_v0, 4  ;;  %v682_v12 = vshll.u32 %v406_v51, 16  ;;  %v470_v13 = vrot.slane %v469_v3, 4  ;;  %v409_v51 = vld [vmem:[%s11325_s29 + $0x88] sm:$0xf] }
  0x22   : > { %v480_v14 = vrot.slane %v479_v4, 4  ;;  %v688_v15 = vshll.u32 %v407_v63, 16  ;;  %v692_v16 = vshrl.u32 %v407_v63, 16  ;;  %v698_v20 = vshll.u32 %v429_v5, 16  ;;  %v430_v4 = vld [vmem:[%s11325_s29 + $0x8c] sm:$0x1] }
  0x23   : > { %v865_v18 = vpack.c.b16 %v843_v6, %v842_v2  ;;  %v684_v19 = vrot.slane %v682_v12, 5  ;;  %v475_v23 = vsel %vm11349_vm4, %v470_v13, %v474_v58  ;;  %v1496_v35 = vsel %vm921_vm0, %v9811_v17, 0  ;;  %v392_v13 = vld [vmem:[%s11325_s29 + $0x24] sm:$0xf] }
  0x24   : > { %v485_v24 = vsel %vm11349_vm4, %v480_v14, %v484_v8  ;;  %v690_v25 = vrot.slane %v688_v15, 5  ;;  %v694_v26 = vrot.slane %v692_v16, 4  ;;  %9789 = vmatmul.msk.bf16.gmra.mxu3 %vm872_vm1, %v11014_v7  ;;  %v826_v28 = vunpack.c.l.b16 %v475_v23  ;;  %1505 = vmatpush.bf16.msrb.mxu2 %v1496_v35  ;;  %v11015_v7 = vld [vmem:[%s11325_s29 + $0x84] sm:$0xff] }
  0x25   : > { %9708 = vmatmul.msk.bf16.vlgmr.msra.gmra.mxu2 %vm872_vm1, %v865_v18  ;;  %v685_v29 = vor.u32 %v684_v19, %v681_v11  ;;  %v700_v30 = vrot.slane %v698_v20, 5  ;;  %v1783_v36 = vsel %vm921_vm0, %v9860_v21, 0  ;;  %v487_v37 = vshrl.u32 %v390_v22, 16  ;;  %v11410_v16 = vld [vmem:[%s11325_s29 + $0x28] sm:$0xf] }
  0x26   : > { %v695_v32 = vor.u32 %v694_v26, %v690_v25  ;;  %v827_v39 = vunpack.c.l.b16 %v485_v24  ;;  %1792 = vmatpush.bf16.msrb.mxu3 %v1783_v36  ;;  %v490_v41 = vshll.u32 %v390_v22, 16  ;;  %v496_v42 = vshll.u32 %v11385_v27, 16  ;;  %9780 = vmatmul.msk.bf16.gmra.mxu1 %vm872_vm1, %v11005_v31  ;;  %v11006_v22 = vld [vmem:[%s11325_s29 + $0x18] sm:$0xff] }
  0x27   : > { %v686_v40 = vrot.slane %v685_v29, 4  ;;  %v489_v45 = vrot.slane %v487_v37, 4  ;;  %v500_v46 = vshrl.u32 %v11385_v27, 16  ;;  %v703_v52 = vshrl.u32 %v408_v38, 16  ;;  %v411_v29 = vld [vmem:[%s11325_s29 + $0x94] sm:$0xf] }
  0x28   : > { %v696_v43 = vrot.slane %v695_v32, 4  ;;  %v492_v48 = vrot.slane %v490_v41, 5  ;;  %v498_v50 = vrot.slane %v496_v42, 5  ;;  %v857_v55 = vpack.c.b16 %v827_v39, %v826_v28  ;;  %v410_v28 = vld [vmem:[%s11325_s29 + $0x90] sm:$0xf] }
  0x29   : > { %v691_v47 = vsel %vm11349_vm4, %v686_v40, %v690_v25  ;;  %v502_v54 = vrot.slane %v500_v46, 4  ;;  %v506_v56 = vshll.u32 %v11395_v44, 16  ;;  %v706_v57 = vshll.u32 %v408_v38, 16  ;;  %v11427_v37 = vld [vmem:[%s11325_s29 + $0x2c] sm:$0x1] }
  0x2a   : > { %v701_v53 = vsel %vm11349_vm4, %v696_v43, %v700_v30  ;;  %v844_v58 = vunpack.c.l.b16 %v691_v47  ;;  %v712_v60 = vshll.u32 %v409_v51, 16  ;;  %v716_v61 = vshrl.u32 %v409_v51, 16 }
  0x2b   : > { %v845_v59 = vunpack.c.l.b16 %v701_v53  ;;  %v493_v62 = vor.u32 %v492_v48, %v489_v45  ;;  %v503_v63 = vor.u32 %v502_v54, %v498_v50  ;;  %v705_v0 = vrot.slane %v703_v52, 4 }
  0x2c   : > { %v708_v1 = vrot.slane %v706_v57, 5  ;;  %v714_v2 = vrot.slane %v712_v60, 5  ;;  %v718_v3 = vrot.slane %v716_v61, 4  ;;  %v508_v5 = vrot.slane %v506_v56, 5  ;;  %v431_v57 = vld [vmem:[%s11325_s29 + $0x98] sm:$0x1] }
  0x2d   : > { %v866_v6 = vpack.c.b16 %v845_v59, %v844_v58  ;;  %v494_v8 = vrot.slane %v493_v62, 4  ;;  %v504_v11 = vrot.slane %v503_v63, 4  ;;  %v722_v15 = vshll.u32 %v430_v4, 16  ;;  %v11016_v59 = vld [vmem:[%s11325_s29 + $0x90] sm:$0xff] }
  0x2e   : > { %v709_v12 = vor.u32 %v708_v1, %v705_v0  ;;  %v719_v14 = vor.u32 %v718_v3, %v714_v2  ;;  %v511_v17 = vshrl.u32 %v392_v13, 16  ;;  %v514_v18 = vshll.u32 %v392_v13, 16  ;;  %v394_v62 = vld [vmem:[%s11325_s29 + $0x30] sm:$0xf]  ;;  %v11437_v63 = vld [vmem:[%s11325_s29 + $0x34] sm:$0xf] }
  0x2f   : > { %v499_v19 = vsel %vm11349_vm4, %v494_v8, %v498_v50  ;;  %v509_v20 = vsel %vm11349_vm4, %v504_v11, %v508_v5  ;;  %v520_v23 = vshll.u32 %v11410_v16, 16  ;;  %v724_v25 = vrot.slane %v722_v15, 5  ;;  %v11007_v11 = vld [vmem:[%s11325_s29 + $0x24] sm:$0xff] }
  0x30   : > { %v710_v21 = vrot.slane %v709_v12, 4  ;;  %v720_v24 = vrot.slane %v719_v14, 4  ;;  %v524_v26 = vshrl.u32 %v11410_v16, 16  ;;  %v828_v30 = vunpack.c.l.b16 %v499_v19 }
  0x31   : > { %9700 = vmatmul.msk.bf16.gmra.mxu0 %vm872_vm1, %v857_v55  ;;  %v829_v31 = vunpack.c.l.b16 %v509_v20  ;;  %v513_v32 = vrot.slane %v511_v17, 4  ;;  %v516_v35 = vrot.slane %v514_v18, 5  ;;  %v522_v38 = vrot.slane %v520_v23, 5  ;;  %v412_v17 = vld [vmem:[%s11325_s29 + $0x9c] sm:$0xf] }
  0x32   : > { %v715_v36 = vsel %vm11349_vm4, %v710_v21, %v714_v2  ;;  %v727_v39 = vshrl.u32 %v410_v28, 16  ;;  %v730_v40 = vshll.u32 %v410_v28, 16  ;;  %v725_v41 = vsel %vm11349_vm4, %v720_v24, %v724_v25  ;;  %v413_v18 = vld [vmem:[%s11325_s29 + $0xa0] sm:$0xf] }
  0x33   : > { %v526_v42 = vrot.slane %v524_v26, 4  ;;  %v736_v43 = vshll.u32 %v411_v29, 16  ;;  %v740_v45 = vshrl.u32 %v411_v29, 16  ;;  %v858_v46 = vpack.c.b16 %v829_v31, %v828_v30  ;;  %v11454_v26 = vld [vmem:[%s11325_s29 + $0x38] sm:$0x1] }
  0x34   : > { %9790 = vmatmul.msk.bf16.gmra.mxu3 %vm872_vm1, %v11015_v7  ;;  %v530_v47 = vshll.u32 %v11427_v37, 16  ;;  %v846_v48 = vunpack.c.l.b16 %v715_v36  ;;  %v847_v50 = vunpack.c.l.b16 %v725_v41  ;;  %v729_v51 = vrot.slane %v727_v39, 4 }
  0x35   : > { %9709 = vmatmul.msk.bf16.gmra.mxu2 %vm872_vm1, %v866_v6  ;;  %v732_v52 = vrot.slane %v730_v40, 5  ;;  %v517_v53 = vor.u32 %v516_v35, %v513_v32  ;;  %v527_v54 = vor.u32 %v526_v42, %v522_v38  ;;  %v738_v55 = vrot.slane %v736_v43, 5 }
  0x36   : > { %9781 = vmatmul.msk.bf16.gmra.mxu1 %vm872_vm1, %v11006_v22  ;;  %v742_v56 = vrot.slane %v740_v45, 4  ;;  %v867_v58 = vpack.c.b16 %v847_v50, %v846_v48  ;;  %v532_v60 = vrot.slane %v530_v47, 5  ;;  %v746_v3 = vshll.u32 %v431_v57, 16  ;;  %v432_v47 = vld [vmem:[%s11325_s29 + $0xa4] sm:$0x1] }
  0x37   : > { %v733_v61 = vor.u32 %v732_v52, %v729_v51  ;;  %v518_v0 = vrot.slane %v517_v53, 4  ;;  %v528_v1 = vrot.slane %v527_v54, 4  ;;  %v535_v4 = vshrl.u32 %v394_v62, 16  ;;  %v396_v52 = vld [vmem:[%s11325_s29 + $0x3c] sm:$0xf] }
  0x38   : > { %v743_v2 = vor.u32 %v742_v56, %v738_v55  ;;  %v538_v5 = vshll.u32 %v394_v62, 16  ;;  %v544_v6 = vshll.u32 %v11437_v63, 16  ;;  %v548_v7 = vshrl.u32 %v11437_v63, 16  ;;  %v11017_v54 = vld [vmem:[%s11325_s29 + $0x9c] sm:$0xff] }
  0x39   : > { %v734_v8 = vrot.slane %v733_v61, 4  ;;  %v523_v12 = vsel %vm11349_vm4, %v518_v0, %v522_v38  ;;  %v533_v13 = vsel %vm11349_vm4, %v528_v1, %v532_v60  ;;  %v748_v15 = vrot.slane %v746_v3, 5  ;;  %v11008_v0 = vld [vmem:[%s11325_s29 + $0x30] sm:$0xff]  ;;  %v414_v3 = vld [vmem:[%s11325_s29 + $0xa8] sm:$0xf] }
  0x3a   : > { %v744_v14 = vrot.slane %v743_v2, 4  ;;  %v537_v19 = vrot.slane %v535_v4, 4  ;;  %v540_v20 = vrot.slane %v538_v5, 5  ;;  %v546_v21 = vrot.slane %v544_v6, 5  ;;  %v415_v4 = vld [vmem:[%s11325_s29 + $0xac] sm:$0xf] }
  0x3b   : > { %v550_v22 = vrot.slane %v548_v7, 4  ;;  %v830_v23 = vunpack.c.l.b16 %v523_v12  ;;  %v831_v24 = vunpack.c.l.b16 %v533_v13  ;;  %v739_v25 = vsel %vm11349_vm4, %v734_v8, %v738_v55 }
  0x3c   : > { %v751_v28 = vshrl.u32 %v412_v17, 16  ;;  %v749_v29 = vsel %vm11349_vm4, %v744_v14, %v748_v15  ;;  %v754_v30 = vshll.u32 %v412_v17, 16  ;;  %v760_v31 = vshll.u32 %v413_v18, 16 }
  0x3d   : > { %v764_v32 = vshrl.u32 %v413_v18, 16  ;;  %v541_v35 = vor.u32 %v540_v20, %v537_v19  ;;  %v551_v36 = vor.u32 %v550_v22, %v546_v21  ;;  %v554_v38 = vshll.u32 %v11454_v26, 16 }
  0x3e   : > { %v859_v39 = vpack.c.b16 %v831_v24, %v830_v23  ;;  %v848_v40 = vunpack.c.l.b16 %v739_v25  ;;  %v849_v41 = vunpack.c.l.b16 %v749_v29  ;;  %v753_v42 = vrot.slane %v751_v28, 4  ;;  %v11483_v23 = vld [vmem:[%s11325_s29 + $0x44] sm:$0x1] }
  0x3f   : > { %v756_v43 = vrot.slane %v754_v30, 5  ;;  %v762_v45 = vrot.slane %v760_v31, 5  ;;  %v542_v48 = vrot.slane %v541_v35, 4  ;;  %v552_v50 = vrot.slane %v551_v36, 4 }
  0x40   : > { %v556_v51 = vrot.slane %v554_v38, 5  ;;  %v868_v53 = vpack.c.b16 %v849_v41, %v848_v40  ;;  %v770_v57 = vshll.u32 %v432_v47, 16  ;;  %v562_v60 = vshll.u32 %v396_v52, 16 }
  0x41   : > { %9701 = vmatmul.msk.bf16.gmra.mxu0 %vm872_vm1, %v858_v46  ;;  %v766_v46 = vrot.slane %v764_v32, 4  ;;  %v757_v55 = vor.u32 %v756_v43, %v753_v42  ;;  %v547_v61 = vsel %vm11349_vm4, %v542_v48, %v546_v21  ;;  %v775_v14 = vshrl.u32 %v414_v3, 16 }
  0x42   : > { %v557_v62 = vsel %vm11349_vm4, %v552_v50, %v556_v51  ;;  %v772_v7 = vrot.slane %v770_v57, 5  ;;  %v832_v8 = vunpack.c.l.b16 %v547_v61  ;;  %v564_v13 = vrot.slane %v562_v60, 5  ;;  %v398_v50 = vld [vmem:[%s11325_s29 + $0x48] sm:$0xf]  ;;  %v11491_v51 = vld [vmem:[%s11325_s29 + $0x4c] sm:$0xf] }
  0x43   : > { %v767_v56 = vor.u32 %v766_v46, %v762_v45  ;;  %v758_v5 = vrot.slane %v757_v55, 4  ;;  %v778_v15 = vshll.u32 %v414_v3, 16  ;;  %v784_v17 = vshll.u32 %v415_v4, 16  ;;  %v11018_v46 = vld [vmem:[%s11325_s29 + $0xa8] sm:$0xff]  ;;  %v11009_v57 = vld [vmem:[%s11325_s29 + $0x3c] sm:$0xff] }
  0x44   : > { %9791 = vmatmul.msk.bf16.gmra.mxu3 %vm872_vm1, %v11016_v59  ;;  %v559_v59 = vshrl.u32 %v396_v52, 16  ;;  %v788_v18 = vshrl.u32 %v415_v4, 16  ;;  %v777_v28 = vrot.slane %v775_v14, 4  ;;  %v578_v38 = vshll.u32 %v11483_v23, 16 }
  0x45   : > { %9710 = vmatmul.msk.bf16.gmra.mxu2 %vm872_vm1, %v867_v58  ;;  %v11464_v58 = vld [vmem:[%s11325_s29 + $0x40] sm:$0xf]  ;;  %v768_v6 = vrot.slane %v767_v56, 4  ;;  %v763_v21 = vsel %vm11349_vm4, %v758_v5, %v762_v45  ;;  %v780_v29 = vrot.slane %v778_v15, 5  ;;  %v786_v30 = vrot.slane %v784_v17, 5 }
  0x46   : > { %9782 = vmatmul.msk.bf16.gmra.mxu1 %vm872_vm1, %v11007_v11  ;;  %v568_v1 = vshll.u32 %v11464_v58, 16  ;;  %v572_v2 = vshrl.u32 %v11464_v58, 16  ;;  %v833_v11 = vunpack.c.l.b16 %v557_v62  ;;  %v561_v12 = vrot.slane %v559_v59, 4 }
  0x47   : > { %v773_v22 = vsel %vm11349_vm4, %v768_v6, %v772_v7  ;;  %v790_v31 = vrot.slane %v788_v18, 4  ;;  %v850_v32 = vunpack.c.l.b16 %v763_v21  ;;  %v781_v41 = vor.u32 %v780_v29, %v777_v28 }
  0x48   : > { %v570_v19 = vrot.slane %v568_v1, 5  ;;  %v574_v20 = vrot.slane %v572_v2, 4  ;;  %v860_v24 = vpack.c.b16 %v833_v11, %v832_v8  ;;  %v565_v25 = vor.u32 %v564_v13, %v561_v12  ;;  %v417_v1 = vld [vmem:[%s11325_s29 + $0xb8] sm:$0xf]  ;;  %v11510_v12 = vld [vmem:[%s11325_s29 + $0x50] sm:$0x1] }
  0x49   : > { %v851_v35 = vunpack.c.l.b16 %v773_v22  ;;  %v791_v42 = vor.u32 %v790_v31, %v786_v30  ;;  %v580_v48 = vrot.slane %v578_v38, 5  ;;  %v583_v59 = vshrl.u32 %v398_v50, 16  ;;  %v434_v31 = vld [vmem:[%s11325_s29 + $0xbc] sm:$0x1] }
  0x4a   : > { %v575_v36 = vor.u32 %v574_v20, %v570_v19  ;;  %v566_v40 = vrot.slane %v565_v25, 4  ;;  %v586_v60 = vshll.u32 %v398_v50, 16  ;;  %v592_v61 = vshll.u32 %v11491_v51, 16 }
  0x4b   : > { %v869_v45 = vpack.c.b16 %v851_v35, %v850_v32  ;;  %v596_v62 = vshrl.u32 %v11491_v51, 16  ;;  %v585_v6 = vrot.slane %v583_v59, 4  ;;  %v808_v15 = vshll.u32 %v417_v1, 16  ;;  %v11019_v32 = vld [vmem:[%s11325_s29 + $0xb4] sm:$0xff] }
  0x4c   : > { %v576_v47 = vrot.slane %v575_v36, 4  ;;  %v571_v52 = vsel %vm11349_vm4, %v566_v40, %v570_v19  ;;  %v588_v7 = vrot.slane %v586_v60, 5  ;;  %v594_v8 = vrot.slane %v592_v61, 5  ;;  %v11518_v40 = vld [vmem:[%s11325_s29 + $0x58] sm:$0xf] }
  0x4d   : > { %v834_v2 = vunpack.c.l.b16 %v571_v52  ;;  %v598_v13 = vrot.slane %v596_v62, 4  ;;  %v812_v17 = vshrl.u32 %v417_v1, 16  ;;  %v602_v22 = vshll.u32 %v11510_v12, 16 }
  0x4e   : > { %v581_v56 = vsel %vm11349_vm4, %v576_v47, %v580_v48  ;;  %v589_v21 = vor.u32 %v588_v7, %v585_v6  ;;  %v810_v29 = vrot.slane %v808_v15, 5  ;;  %v616_v48 = vshll.u32 %v11518_v40, 16 }
  0x4f   : > { %v835_v3 = vunpack.c.l.b16 %v581_v56  ;;  %v599_v25 = vor.u32 %v598_v13, %v594_v8  ;;  %v604_v38 = vrot.slane %v602_v22, 5  ;;  %v620_v50 = vshrl.u32 %v11518_v40, 16  ;;  %v402_v22 = vld [vmem:[%s11325_s29 + $0x60] sm:$0xf] }
  0x50   : > { %v590_v36 = vrot.slane %v589_v21, 4  ;;  %v618_v61 = vrot.slane %v616_v48, 5  ;;  %v1234_v21 = vld [vmem:[%s11325_s29] sm:$0xe]  ;;  %v10216_v48 = vld [vmem:[%s15469_s1 + $0x1c] sm:$0xf] }
  0x51   : > { %9702 = vmatmul.msk.bf16.gmra.mxu0 %vm872_vm1, %v859_v39  ;;  %v433_v39 = vld [vmem:[%s11325_s29 + $0xb0] sm:$0x1]  ;;  %v861_v18 = vpack.c.b16 %v835_v3, %v834_v2  ;;  %v622_v62 = vrot.slane %v620_v50, 4  ;;  %v11531_v2 = vld [vmem:[%s11325_s29 + $0x5c] sm:$0x1] }
  0x52   : > { %v794_v43 = vshll.u32 %v433_v39, 16  ;;  %v400_v39 = vld [vmem:[%s11325_s29 + $0x54] sm:$0xf]  ;;  %v595_v52 = vsel %vm11349_vm4, %v590_v36, %v594_v8  ;;  %v626_v7 = vshll.u32 %v11531_v2, 16  ;;  %v15488_v36 = vmov 0 }
  0x53   : > { %v610_v47 = vshll.u32 %v400_v39, 16  ;;  %v623_v6 = vor.u32 %v622_v62, %v618_v61  ;;  %v15489_v36 = vsel %vm11554_vm7, 4294967295, %v15488_v36 }
  0x54   : > { %9792 = vmatmul.msk.bf16.gmra.mxu3 %vm872_vm1, %v11017_v54  ;;  %v792_v54 = vrot.slane %v791_v42, 4  ;;  %v796_v55 = vrot.slane %v794_v43, 5  ;;  %15490 = vst [vmem:[#allocation4_spill] sm:$0xff] %v15489_v36 }
  0x55   : > { %9711 = vmatmul.msk.bf16.gmra.mxu2 %vm872_vm1, %v868_v53  ;;  %v782_v53 = vrot.slane %v781_v41, 4  ;;  %v600_v41 = vrot.slane %v599_v25, 4  ;;  %v612_v60 = vrot.slane %v610_v47, 5  ;;  %v624_v15 = vrot.slane %v623_v6, 4  ;;  %v10087_v47 = vld [vmem:[%s15469_s1 + $0x18] sm:$0xf] }
  0x56   : > { %9783 = vmatmul.msk.bf16.gmra.mxu1 %vm872_vm1, %v11008_v0  ;;  %v416_v0 = vld [vmem:[%s11325_s29 + $0xb4] sm:$0xf]  ;;  %v797_v5 = vsel %vm11349_vm4, %v792_v54, %v796_v55  ;;  %v1290_v25 = vrot.slane %v11333_v10, 5  ;;  %v9942_v6 = vld [vmem:[%s11325_s29 + $0x10] sm:$0xf] }
  0x57   : > { %v787_v4 = vsel %vm11349_vm4, %v782_v53, %v786_v30  ;;  %v799_v11 = vshrl.u32 %v416_v0, 16  ;;  %v802_v14 = vshll.u32 %v416_v0, 16  ;;  %v853_v20 = vunpack.c.l.b16 %v797_v5  ;;  %v11010_v53 = vld [vmem:[%s11325_s29 + $0x48] sm:$0xff] }
  0x58   : > { %v852_v19 = vunpack.c.l.b16 %v787_v4  ;;  %v814_v30 = vrot.slane %v812_v17, 4  ;;  %v605_v54 = vsel %vm11349_vm4, %v600_v41, %v604_v38  ;;  %v836_v0 = vunpack.c.l.b16 %v595_v52 }
  0x59   : > { %v804_v28 = vrot.slane %v802_v14, 5  ;;  %v837_v1 = vunpack.c.l.b16 %v605_v54  ;;  %v628_v17 = vrot.slane %v626_v7, 5  ;;  %v3776_v54 = vsel %vm921_vm0, %v10216_v48, 0 }
  0x5a   : > { %v870_v35 = vpack.c.b16 %v853_v20, %v852_v19  ;;  %v815_v43 = vor.u32 %v814_v30, %v810_v29  ;;  %v11020_v19 = vld [vmem:[%s11325_s29 + $0xc] sm:$0xff]  ;;  %v1287_v20 = vrot.slane %v11330_v9, 5  ;;  %v11011_v30 = vld [vmem:[%s11325_s29 + $0x54] sm:$0xff]  ;;  %v9795_v9 = vrot.slane %v1234_v21, 9  ;;  %3785 = vmatpush.bf16.msra.mxu3 %v3776_v54 }
  0x5b   : > { %v862_v8 = vpack.c.b16 %v837_v1, %v836_v0  ;;  %v11021_v0 = vld [vmem:[%s11325_s29 + $0x18] sm:$0xff]  ;;  %v1294_v1 = vrot.slane %v11345_v33, 5  ;;  %v1964_v33 = vshll.u32 %v9942_v6, 16 }
  0x5c   : > { %v816_v56 = vrot.slane %v815_v43, 4 }
  0x5d   : > { %v1296_v21 = vrot.slane %v1294_v1, 4 }
  0x61   : > { %9703 = vmatmul.msk.bf16.gmra.mxu0 %vm872_vm1, %v860_v24  ;;  %v801_v24 = vrot.slane %v799_v11, 4 }
  0x63   : > { %v805_v42 = vor.u32 %v804_v28, %v801_v24  ;;  %v11544_v24 = vld [vmem:[%s11325_s29 + $0x64] sm:$0xf] }
  0x64   : > { %9793 = vmatmul.msk.bf16.gmra.mxu3 %vm872_vm1, %v11018_v46  ;;  %v607_v46 = vshrl.u32 %v400_v39, 16  ;;  %v640_v10 = vshll.u32 %v11544_v24, 16  ;;  %v644_v38 = vshrl.u32 %v11544_v24, 16 }
  0x65   : > { %9712 = vmatmul.msk.bf16.gmra.mxu2 %vm872_vm1, %v869_v45  ;;  %v818_v45 = vshll.u32 %v434_v31, 16  ;;  %v806_v55 = vrot.slane %v805_v42, 4  ;;  %v1289_v31 = vrot.slane %v1287_v20, 4  ;;  %v1288_v42 = vsel %vm11554_vm7, %v9795_v9, %v1287_v20 }
  0x66   : > { %9784 = vmatmul.msk.bf16.gmra.mxu1 %vm872_vm1, %v11009_v57  ;;  %v609_v59 = vrot.slane %v607_v46, 4  ;;  %v642_v50 = vrot.slane %v640_v10, 5  ;;  %v646_v52 = vrot.slane %v644_v38, 4  ;;  %v1966_v38 = vrot.slane %v1964_v33, 5  ;;  %v9945_v33 = vld [vmem:[%s11325_s29 + $0x1c] sm:$0xf] }
  0x67   : > { %v820_v57 = vrot.slane %v818_v45, 5  ;;  %v811_v3 = vsel %vm11349_vm4, %v806_v55, %v810_v29  ;;  %v629_v29 = vsel %vm11349_vm4, %v624_v15, %v628_v17  ;;  %v1291_v43 = vsel %vm11554_vm7, %v1289_v31, %v1290_v25  ;;  %v11574_v55 = vld [vmem:[%s11325_s29 + $0x68] sm:$0x1]  ;;  %v10265_v25 = vld [vmem:[%s15469_s1 + $0x20] sm:$0xf] }
  0x68   : > { %v613_v5 = vor.u32 %v612_v60, %v609_v59  ;;  %v854_v11 = vunpack.c.l.b16 %v811_v3  ;;  %v839_v41 = vunpack.c.l.b16 %v629_v29  ;;  %v1400_v59 = vunpack.c.l.b16 %v1291_v43 }
  0x69   : > { %v821_v4 = vsel %vm11349_vm4, %v816_v56, %v820_v57  ;;  %v1399_v57 = vunpack.c.l.b16 %v1288_v42  ;;  %v650_v62 = vshll.u32 %v11574_v55, 16  ;;  %v4174_v9 = vsel %vm921_vm0, %v10265_v25, 0 }
  0x6a   : > { %v855_v13 = vunpack.c.l.b16 %v821_v4  ;;  %v614_v14 = vrot.slane %v613_v5, 4  ;;  %v10038_v4 = vld [vmem:[%s15469_s1 + $0x14] sm:$0xf]  ;;  %v9941_v5 = vld [vmem:[%s11325_s29 + $0xc] sm:$0xf]  ;;  %v2626_v31 = vrot.slane %v9942_v6, 5  ;;  %4183 = vmatpush.bf16.msra.mxu0 %v4174_v9 }
  0x6b   : > { %v1431_v3 = vpack.c.b16 %v1400_v59, %v1399_v57  ;;  %v1955_v15 = vshrl.u32 %v9941_v5, 16  ;;  %v1958_v17 = vshll.u32 %v9941_v5, 16  ;;  %v1301_v5 = vrot.slane %v11385_v27, 5 }
  0x6c   : > { %v619_v28 = vsel %vm11349_vm4, %v614_v14, %v618_v61  ;;  %v647_v61 = vor.u32 %v646_v52, %v642_v50  ;;  %v2835_v14 = vsel %vm921_vm0, %v10038_v4, 0  ;;  %v2628_v48 = vrot.slane %v2626_v31, 4  ;;  %v1236_v4 = vld [vmem:[%s11325_s29 + $0x18] sm:$0xe] }
  0x6d   : > { %v838_v39 = vunpack.c.l.b16 %v619_v28  ;;  %2844 = vmatpush.bf16.msrb.mxu1 %v2835_v14  ;;  %v1957_v10 = vrot.slane %v1955_v15, 4 }
  0x6f   : > { %v863_v56 = vpack.c.b16 %v839_v41, %v838_v39 }
  0x71   : > { %9704 = vmatmul.msk.bf16.gmra.mxu0 %vm872_vm1, %v861_v18  ;;  %v871_v18 = vpack.c.b16 %v855_v13, %v854_v11  ;;  %v652_v11 = vrot.slane %v650_v62, 5  ;;  %v1235_v13 = vld [vmem:[%s11325_s29 + $0xc] sm:$0xe] }
  0x72   : > { %v9796_v20 = vrot.slane %v1235_v13, 9  ;;  %v11022_v13 = vld [vmem:[%s11325_s29 + $0x24] sm:$0xff] }
  0x74   : > { %9794 = vmatmul.msk.bf16.gmra.mxu3 %vm872_vm1, %v11019_v32  ;;  %v631_v32 = vshrl.u32 %v402_v22, 16  ;;  %v1295_v43 = vsel %vm11554_vm7, %v9796_v20, %v1294_v1  ;;  %v1304_v20 = vrot.slane %v11395_v44, 5 }
  0x75   : > { %9713 = vmatmul.msk.bf16.gmra.mxu2 %vm872_vm1, %v870_v35  ;;  %v634_v35 = vshll.u32 %v402_v22, 16  ;;  %v1297_v22 = vrot.slane %v11360_v49, 5  ;;  %v1960_v49 = vrot.slane %v1958_v17, 5  ;;  %v1401_v57 = vunpack.c.l.b16 %v1295_v43  ;;  %v9944_v17 = vld [vmem:[%s11325_s29 + $0x18] sm:$0xf] }
  0x76   : > { %9785 = vmatmul.msk.bf16.gmra.mxu1 %vm872_vm1, %v11010_v53  ;;  %v633_v45 = vrot.slane %v631_v32, 4  ;;  %v3122_v53 = vsel %vm921_vm0, %v10087_v47, 0  ;;  %v10006_v32 = vld [vmem:[%s11325_s29 + $0xc] sm:$0xe]  ;;  %v1979_v25 = vshrl.u32 %v9944_v17, 16 }
  0x77   : > { %v636_v46 = vrot.slane %v634_v35, 5  ;;  %3131 = vmatpush.bf16.msra.mxu2 %v3122_v53  ;;  %v10022_v47 = vrot.slane %v10006_v32, 9  ;;  %v1961_v52 = vor.u32 %v1960_v49, %v1957_v10  ;;  %v2633_v32 = vrot.slane %v9945_v33, 5  ;;  %v10007_v10 = vld [vmem:[%s11325_s29 + $0x18] sm:$0xe] }
  0x79   : > { %v637_v60 = vor.u32 %v636_v46, %v633_v45  ;;  %v9943_v45 = vld [vmem:[%s11325_s29 + $0x14] sm:$0x1]  ;;  %v1298_v46 = vsel %vm11554_vm7, %v1296_v21, %v1297_v22  ;;  %v2627_v62 = vsel %vm11554_vm7, %v10022_v47, %v2626_v31  ;;  %v1992_v31 = vshrl.u32 %v9945_v33, 16 }
  0x7a   : > { %v1974_v54 = vshll.u32 %v9943_v45, 16  ;;  %v1402_v59 = vunpack.c.l.b16 %v1298_v46  ;;  %v2738_v14 = vunpack.c.l.b16 %v2627_v62  ;;  %v9946_v46 = vld [vmem:[%s11325_s29 + $0x20] sm:$0x1]  ;;  %v1981_v47 = vrot.slane %v1979_v25, 4 }
  0x7b   : > { %v638_v7 = vrot.slane %v637_v60, 4 }
  0x7d   : > { %v643_v29 = vsel %vm11349_vm4, %v638_v7, %v642_v50  ;;  %v2629_v50 = vrot.slane %v9943_v45, 5 }
  0x7e   : > { %v840_v41 = vunpack.c.l.b16 %v643_v29  ;;  %v1988_v29 = vshll.u32 %v9945_v33, 16 }
  0x81   : > { %9705 = vmatmul.msk.bf16.gmra.mxu0 %vm872_vm1, %v862_v8  ;;  %v648_v8 = vrot.slane %v647_v61, 4 }
  0x84   : > { %9925 = vmatmul.msk.bf16.vlgmr.msrb.gmra.mxu3 %vm872_vm1, %v11020_v19  ;;  %v11012_v19 = vld [vmem:[%s11325_s29 + $0x60] sm:$0xff] }
  0x85   : > { %9714 = vmatmul.msk.bf16.gmra.mxu2 %vm872_vm1, %v871_v18  ;;  %v1968_v18 = vshrl.u32 %v9942_v6, 16  ;;  %v1962_v6 = vrot.slane %v1961_v52, 4  ;;  %v1994_v52 = vrot.slane %v1992_v31, 4 }
  0x86   : > { %9786 = vmatmul.msk.bf16.gmra.mxu1 %vm872_vm1, %v11011_v30  ;;  %v653_v30 = vsel %vm11349_vm4, %v648_v8, %v652_v11  ;;  %v1976_v8 = vrot.slane %v1974_v54, 5  ;;  %v1432_v11 = vpack.c.b16 %v1402_v59, %v1401_v57  ;;  %v2635_v54 = vrot.slane %v2633_v32, 4 }
  0x87   : > { %v1970_v39 = vrot.slane %v1968_v18, 4  ;;  %v841_v42 = vunpack.c.l.b16 %v653_v30  ;;  %v9797_v18 = vrot.slane %v1236_v4, 9  ;;  %v1967_v21 = vsel %vm11349_vm4, %v1962_v6, %v1966_v38 }
  0x88   : > { %v1998_v4 = vshll.u32 %v9946_v46, 16 }
  0x89   : > { %v1971_v53 = vor.u32 %v1970_v39, %v1966_v38  ;;  %v1302_v39 = vsel %vm11554_vm7, %v9797_v18, %v1301_v5 }
  0x8a   : > { %v1403_v57 = vunpack.c.l.b16 %v1302_v39  ;;  %v2000_v25 = vrot.slane %v1998_v4, 5 }
  0x8b   : > { %v1972_v7 = vrot.slane %v1971_v53, 4  ;;  %v10023_v53 = vrot.slane %v10007_v10, 9 }
  0x8d   : > { %v1977_v27 = vsel %vm11349_vm4, %v1972_v7, %v1976_v8 }
  0x8e   : > { %v2341_v43 = vunpack.c.l.b16 %v1977_v27 }
  0x91   : > { %9706 = vmatmul.msk.bf16.gmra.mxu0 %vm872_vm1, %v863_v56  ;;  %v864_v56 = vpack.c.b16 %v841_v42, %v840_v41  ;;  %v2340_v42 = vunpack.c.l.b16 %v1967_v21  ;;  %v1237_v21 = vld [vmem:[%s11325_s29 + $0x24] sm:$0xe] }
  0x93   : > { %v1154_v28 = vpop.f32.mrf.mxu1 }
  0x94   : > { %9926 = vmatmul.msk.bf16.gmra.mxu3 %vm872_vm1, %v11021_v0  ;;  %v2630_v0 = vsel %vm11554_vm7, %v2628_v48, %v2629_v50  ;;  %v1990_v50 = vrot.slane %v1988_v29, 5 }
  0x95   : > { %9812 = vmatmul.msk.bf16.vlgmr.msrb.gmra.mxu2 %vm872_vm1, %v1431_v3  ;;  %v2739_v15 = vunpack.c.l.b16 %v2630_v0 }
  0x96   : > { %9787 = vmatmul.msk.bf16.gmra.mxu1 %vm872_vm1, %v11012_v19  ;;  %v1303_v19 = vrot.slane %v1301_v5, 4  ;;  %v2634_v5 = vsel %vm11554_vm7, %v10023_v53, %v2633_v32 }
  0x97   : > { %v1199_v35 = vpop.f32.mrf.mxu3  ;;  %v2770_v22 = vpack.c.b16 %v2739_v15, %v2738_v14  ;;  %v11023_v15 = vld [vmem:[%s11325_s29 + $0x30] sm:$0xff]  ;;  %v2740_v33 = vunpack.c.l.b16 %v2634_v5 }
  0x98   : > { %v1305_v41 = vsel %vm11554_vm7, %v1303_v19, %v1304_v20  ;;  %v9947_v19 = vld [vmem:[%s11325_s29 + $0x24] sm:$0xf]  ;;  %v9948_v20 = vld [vmem:[%s11325_s29 + $0x28] sm:$0xf] }
  0x99   : > { %v1404_v59 = vunpack.c.l.b16 %v1305_v41  ;;  %v2006_v29 = vshll.u32 %v9947_v19, 16 }
  0x9b   : > { %v1156_v61 = vpop.f32.mrf.mxu1  ;;  %v2008_v53 = vrot.slane %v2006_v29, 5 }
  0x9e   : > { %v934_v60 = vpop.f32.mrf.mxu0 }
  0x9f   : > { %v11610_v1 = vadd.f32 %v1154_v28, %v934_v60  ;;  %v1201_v3 = vpop.f32.mrf.mxu3  ;;  %v1982_v28 = vshll.u32 %v9944_v17, 16  ;;  %v2372_v60 = vpack.c.b16 %v2341_v43, %v2340_v42  ;;  %v1308_v17 = vrot.slane %v11410_v16, 5 }
  0xa0   : > { %v2640_v42 = vrot.slane %v9948_v20, 5 }
  0xa1   : > { %9707 = vmatmul.msk.bf16.gmra.mxu0 %vm872_vm1, %v864_v56  ;;  %v1984_v48 = vrot.slane %v1982_v28, 5  ;;  %v2636_v56 = vrot.slane %v9946_v46, 5  ;;  %v2003_v28 = vshrl.u32 %v9947_v19, 16  ;;  %v1310_v31 = vrot.slane %v1308_v17, 4  ;;  %v10008_v46 = vld [vmem:[%s11325_s29 + $0x24] sm:$0xe] }
  0xa3   : > { %v1159_v9 = vpop.f32.mrf.mxu1  ;;  %v2637_v6 = vsel %vm11554_vm7, %v2635_v54, %v2636_v56 }
  0xa4   : > { %9927 = vmatmul.msk.bf16.gmra.mxu3 %vm872_vm1, %v11022_v13  ;;  %v1433_v13 = vpack.c.b16 %v1404_v59, %v1403_v57  ;;  %v2741_v18 = vunpack.c.l.b16 %v2637_v6 }
  0xa5   : > { %9813 = vmatmul.msk.bf16.gmra.mxu2 %vm872_vm1, %v1432_v11 }
  0xa6   : > { %v936_v30 = vpop.f32.mrf.mxu0  ;;  %10039 = vmatmul.msk.bf16.vlgmr.msrb.gmra.mxu1 %vm872_vm1, %v2770_v22  ;;  %v2771_v16 = vpack.c.b16 %v2741_v18, %v2740_v33 }
  0xa7   : > { %v11625_v44 = vadd.f32 %v1156_v61, %v936_v30  ;;  %v11628_v38 = vpop.f32.mrf.mxu3  ;;  %v1985_v61 = vor.u32 %v1984_v48, %v1981_v47  ;;  %v2012_v30 = vshll.u32 %v9948_v20, 16 }
  0xa8   : > { %v979_v49 = vpop.f32.mrf.mxu2 }
  0xa9   : > { %v11634_v45 = vadd.f32 %v1199_v35, %v979_v49  ;;  %v1995_v35 = vor.u32 %v1994_v52, %v1990_v50  ;;  %v1986_v27 = vrot.slane %v1985_v61, 4  ;;  %v1311_v49 = vrot.slane %v11427_v37, 5 }
  0xaa   : > { %v2005_v52 = vrot.slane %v2003_v28, 4  ;;  %v2014_v54 = vrot.slane %v2012_v30, 5 }
  0xab   : > { %v1161_v0 = vpop.f32.mrf.mxu1  ;;  %v1996_v22 = vrot.slane %v1995_v35, 4  ;;  %v1991_v39 = vsel %vm11349_vm4, %v1986_v27, %v1990_v50  ;;  %v1312_v61 = vsel %vm11554_vm7, %v1310_v31, %v1311_v49  ;;  %v1238_v27 = vld [vmem:[%s11325_s29 + $0x30] sm:$0xe] }
  0xac   : > { %v2342_v57 = vunpack.c.l.b16 %v1991_v39  ;;  %v2009_v4 = vor.u32 %v2008_v53, %v2005_v52  ;;  %v9799_v49 = vrot.slane %v1238_v27, 9 }
  0xad   : > { %v2001_v41 = vsel %vm11349_vm4, %v1996_v22, %v2000_v25  ;;  %v1315_v22 = vrot.slane %v11437_v63, 5 }
  0xae   : > { %v939_v62 = vpop.f32.mrf.mxu0  ;;  %v2343_v59 = vunpack.c.l.b16 %v2001_v41  ;;  %v2010_v25 = vrot.slane %v2009_v4, 4  ;;  %v1318_v41 = vrot.slane %v11454_v26, 5 }
  0xaf   : > { %v11642_v7 = vadd.f32 %v1159_v9, %v939_v62  ;;  %v11644_v11 = vpop.f32.mrf.mxu3  ;;  %v2016_v9 = vshrl.u32 %v9948_v20, 16  ;;  %v10024_v62 = vrot.slane %v10008_v46, 9  ;;  %v1317_v39 = vrot.slane %v1315_v22, 4 }
  0xb0   : > { %v981_v8 = vpop.f32.mrf.mxu2  ;;  %v2015_v63 = vsel %vm11349_vm4, %v2010_v25, %v2014_v54 }
  0xb1   : > { %v11646_v14 = vadd.f32 %v1201_v3, %v981_v8  ;;  %9990 = vmatmul.msk.bf16.vlgmr.msrb.gmra.mxu0 %vm872_vm1, %v2372_v60  ;;  %v9798_v3 = vrot.slane %v1237_v21, 9  ;;  %v2018_v56 = vrot.slane %v2016_v9, 4  ;;  %v9949_v60 = vld [vmem:[%s11325_s29 + $0x2c] sm:$0x1]  ;;  %v1406_v8 = vunpack.c.l.b16 %v1312_v61 }
  0xb2   : > { %v2643_v35 = vrot.slane %v9949_v60, 5  ;;  %v2022_v6 = vshll.u32 %v9949_v60, 16  ;;  %v2641_v33 = vsel %vm11554_vm7, %v10024_v62, %v2640_v42  ;;  %v1316_v61 = vsel %vm11554_vm7, %v9799_v49, %v1315_v22 }
  0xb3   : > { %v1164_v10 = vpop.f32.mrf.mxu1  ;;  %v1309_v50 = vsel %vm11554_vm7, %v9798_v3, %v1308_v17  ;;  %v2019_v5 = vor.u32 %v2018_v56, %v2014_v54  ;;  %v11024_v3 = vld [vmem:[%s11325_s29 + $0x3c] sm:$0xff]  ;;  %v2742_v31 = vunpack.c.l.b16 %v2641_v33  ;;  %v1319_v62 = vsel %vm11554_vm7, %v1317_v39, %v1318_v41  ;;  %v11025_v39 = vld [vmem:[%s11325_s29 + $0x48] sm:$0xff] }
  0xb4   : > { %9928 = vmatmul.msk.bf16.gmra.mxu3 %vm872_vm1, %v11023_v15  ;;  %v2024_v29 = vrot.slane %v2022_v6, 5 }
  0xb5   : > { %9814 = vmatmul.msk.bf16.gmra.mxu2 %vm872_vm1, %v1433_v13  ;;  %v2373_v13 = vpack.c.b16 %v2343_v59, %v2342_v57  ;;  %v2020_v28 = vrot.slane %v2019_v5, 4  ;;  %v10009_v59 = vld [vmem:[%s11325_s29 + $0x30] sm:$0xe]  ;;  %v9952_v5 = vld [vmem:[%s11325_s29 + $0x38] sm:$0x1] }
  0xb6   : > { %v941_v32 = vpop.f32.mrf.mxu0  ;;  %10040 = vmatmul.msk.bf16.gmra.mxu1 %vm872_vm1, %v2771_v16  ;;  %v2650_v33 = vrot.slane %v9952_v5, 5 }
  0xb7   : > { %v11661_v43 = vadd.f32 %v1161_v0, %v941_v32  ;;  %v11664_v48 = vpop.f32.mrf.mxu3  ;;  %v2642_v0 = vrot.slane %v2640_v42, 4  ;;  %v9950_v32 = vld [vmem:[%s11325_s29 + $0x30] sm:$0xf] }
  0xb8   : > { %v984_v47 = vpop.f32.mrf.mxu2  ;;  %v2027_v46 = vshrl.u32 %v9950_v32, 16 }
  0xb9   : > { %v11667_v37 = vadd.f32 %v11628_v38, %v984_v47  ;;  %v1405_v38 = vunpack.c.l.b16 %v1309_v50  ;;  %v2644_v18 = vsel %vm11554_vm7, %v2642_v0, %v2643_v35  ;;  %v2030_v47 = vshll.u32 %v9950_v32, 16 }
  0xba   : > { %v2743_v16 = vunpack.c.l.b16 %v2644_v18  ;;  %v2344_v0 = vunpack.c.l.b16 %v2015_v63  ;;  %v2029_v6 = vrot.slane %v2027_v46, 4  ;;  %v1407_v18 = vunpack.c.l.b16 %v1316_v61  ;;  %v1239_v46 = vld [vmem:[%s11325_s29 + $0x3c] sm:$0xe] }
  0xbb   : > { %v1166_v17 = vpop.f32.mrf.mxu1  ;;  %v1434_v9 = vpack.c.b16 %v1406_v8, %v1405_v38  ;;  %v2032_v38 = vrot.slane %v2030_v47, 5  ;;  %v1322_v47 = vrot.slane %v11464_v58, 5  ;;  %v9800_v61 = vrot.slane %v1239_v46, 9 }
  0xbc   : > { %v2772_v42 = vpack.c.b16 %v2743_v16, %v2742_v31 }
  0xbd   : > { %v2033_v22 = vor.u32 %v2032_v38, %v2029_v6 }
  0xbe   : > { %v944_v15 = vpop.f32.mrf.mxu0 }
  0xbf   : > { %v11679_v19 = vadd.f32 %v1164_v10, %v944_v15  ;;  %v1211_v21 = vpop.f32.mrf.mxu3  ;;  %v9951_v10 = vld [vmem:[%s11325_s29 + $0x34] sm:$0xf]  ;;  %v10025_v15 = vrot.slane %v10009_v59, 9 }
  0xc0   : > { %v986_v20 = vpop.f32.mrf.mxu2  ;;  %v2036_v52 = vshll.u32 %v9951_v10, 16  ;;  %v2040_v50 = vshrl.u32 %v9951_v10, 16  ;;  %v2647_v57 = vrot.slane %v9951_v10, 5 }
  0xc1   : > { %v11684_v30 = vadd.f32 %v11644_v11, %v986_v20  ;;  %9991 = vmatmul.msk.bf16.gmra.mxu0 %vm872_vm1, %v2373_v13  ;;  %v2025_v11 = vsel %vm11349_vm4, %v2020_v28, %v2024_v29  ;;  %v1408_v20 = vunpack.c.l.b16 %v1319_v62  ;;  %v2046_v29 = vshll.u32 %v9952_v5, 16 }
  0xc2   : > { %v2345_v35 = vunpack.c.l.b16 %v2025_v11  ;;  %v2038_v8 = vrot.slane %v2036_v52, 5  ;;  %v2042_v13 = vrot.slane %v2040_v50, 4  ;;  %v9953_v11 = vld [vmem:[%s11325_s29 + $0x3c] sm:$0xf]  ;;  %v2034_v52 = vrot.slane %v2033_v22, 4 }
  0xc3   : > { %v1169_v56 = vpop.f32.mrf.mxu1  ;;  %v1435_v49 = vpack.c.b16 %v1408_v20, %v1407_v18  ;;  %v2051_v50 = vshrl.u32 %v9953_v11, 16  ;;  %v1324_v5 = vrot.slane %v1322_v47, 4 }
  0xc4   : > { %9929 = vmatmul.msk.bf16.gmra.mxu3 %vm872_vm1, %v11024_v3  ;;  %v2374_v27 = vpack.c.b16 %v2345_v35, %v2344_v0  ;;  %v2043_v28 = vor.u32 %v2042_v13, %v2038_v8  ;;  %v2039_v58 = vsel %vm11349_vm4, %v2034_v52, %v2038_v8  ;;  %v1323_v8 = vsel %vm11554_vm7, %v9800_v61, %v1322_v47 }
  0xc5   : > { %9815 = vmatmul.msk.bf16.gmra.mxu2 %vm872_vm1, %v1434_v9  ;;  %v2648_v9 = vsel %vm11554_vm7, %v10025_v15, %v2647_v57 }
  0xc6   : > { %v946_v53 = vpop.f32.mrf.mxu0  ;;  %10041 = vmatmul.msk.bf16.gmra.mxu1 %vm872_vm1, %v2772_v42  ;;  %v2744_v41 = vunpack.c.l.b16 %v2648_v9  ;;  %v9954_v42 = vld [vmem:[%s11325_s29 + $0x40] sm:$0xf] }
  0xc7   : > { %v11697_v26 = vadd.f32 %v1166_v17, %v946_v53  ;;  %v11700_v60 = vpop.f32.mrf.mxu3  ;;  %v2649_v17 = vrot.slane %v2647_v57, 4  ;;  %v2044_v53 = vrot.slane %v2043_v28, 4  ;;  %v2054_v57 = vshll.u32 %v9953_v11, 16 }
  0xc8   : > { %v989_v54 = vpop.f32.mrf.mxu2  ;;  %v2060_v59 = vshll.u32 %v9954_v42, 16  ;;  %v2654_v38 = vrot.slane %v9954_v42, 5 }
  0xc9   : > { %v11707_v4 = vadd.f32 %v11664_v48, %v989_v54  ;;  %v2651_v3 = vsel %vm11554_vm7, %v2649_v17, %v2650_v33  ;;  %v1325_v54 = vrot.slane %v11483_v23, 5  ;;  %v10010_v23 = vld [vmem:[%s11325_s29 + $0x3c] sm:$0xe]  ;;  %v2053_v33 = vrot.slane %v2051_v50, 4 }
  0xca   : > { %v2745_v63 = vunpack.c.l.b16 %v2651_v3  ;;  %v2056_v18 = vrot.slane %v2054_v57, 5  ;;  %v2062_v20 = vrot.slane %v2060_v59, 5  ;;  %v10026_v9 = vrot.slane %v10010_v23, 9 }
  0xcb   : > { %v1171_v48 = vpop.f32.mrf.mxu1  ;;  %v2656_v3 = vrot.slane %v2654_v38, 4  ;;  %v1329_v57 = vrot.slane %v11491_v51, 5  ;;  %v1332_v23 = vrot.slane %v11510_v12, 5 }
  0xcc   : > { %v2773_v62 = vpack.c.b16 %v2745_v63, %v2744_v41  ;;  %v1409_v63 = vunpack.c.l.b16 %v1323_v8  ;;  %v2655_v47 = vsel %vm11554_vm7, %v10026_v9, %v2654_v38  ;;  %v9956_v38 = vld [vmem:[%s11325_s29 + $0x48] sm:$0xf] }
  0xcd   : > { %v1331_v51 = vrot.slane %v1329_v57, 4  ;;  %v2078_v8 = vshll.u32 %v9956_v38, 16 }
  0xce   : > { %v949_v25 = vpop.f32.mrf.mxu0 }
  0xcf   : > { %v11715_v31 = vadd.f32 %v1169_v56, %v949_v25  ;;  %v11717_v32 = vpop.f32.mrf.mxu3  ;;  %v2048_v56 = vrot.slane %v2046_v29, 5  ;;  %v2346_v25 = vunpack.c.l.b16 %v2039_v58  ;;  %v1326_v29 = vsel %vm11554_vm7, %v1324_v5, %v1325_v54  ;;  %v1240_v5 = vld [vmem:[%s11325_s29 + $0x48] sm:$0xe] }
  0xd0   : > { %v991_v16 = vpop.f32.mrf.mxu2  ;;  %v2746_v58 = vunpack.c.l.b16 %v2655_v47 }
  0xd1   : > { %v11719_v10 = vadd.f32 %v1211_v21, %v991_v16  ;;  %9992 = vmatmul.msk.bf16.gmra.mxu0 %vm872_vm1, %v2374_v27  ;;  %v2064_v21 = vshrl.u32 %v9954_v42, 16  ;;  %v2049_v6 = vsel %vm11349_vm4, %v2044_v53, %v2048_v56 }
  0xd2   : > { %v2347_v28 = vunpack.c.l.b16 %v2049_v6 }
  0xd3   : > { %v1174_v35 = vpop.f32.mrf.mxu1  ;;  %v2066_v27 = vrot.slane %v2064_v21, 4 }
  0xd4   : > { %9930 = vmatmul.msk.bf16.gmra.mxu3 %vm872_vm1, %v11025_v39  ;;  %v2375_v11 = vpack.c.b16 %v2347_v28, %v2346_v25 }
  0xd5   : > { %9816 = vmatmul.msk.bf16.gmra.mxu2 %vm872_vm1, %v1435_v49  ;;  %v2057_v49 = vor.u32 %v2056_v18, %v2053_v33  ;;  %v2067_v39 = vor.u32 %v2066_v27, %v2062_v20  ;;  %v2075_v27 = vshrl.u32 %v9956_v38, 16 }
  0xd6   : > { %v951_v0 = vpop.f32.mrf.mxu0  ;;  %10042 = vmatmul.msk.bf16.gmra.mxu1 %vm872_vm1, %v2773_v62 }
  0xd7   : > { %v11734_v13 = vadd.f32 %v1171_v48, %v951_v0  ;;  %v11737_v17 = vpop.f32.mrf.mxu3  ;;  %v9955_v48 = vld [vmem:[%s11325_s29 + $0x44] sm:$0x1]  ;;  %v2058_v59 = vrot.slane %v2057_v49, 4  ;;  %v2068_v21 = vrot.slane %v2067_v39, 4  ;;  %v11026_v0 = vld [vmem:[%s11325_s29 + $0x54] sm:$0xff]  ;;  %v1333_v39 = vsel %vm11554_vm7, %v1331_v51, %v1332_v23 }
  0xd8   : > { %v994_v15 = vpop.f32.mrf.mxu2  ;;  %v2657_v16 = vrot.slane %v9955_v48, 5  ;;  %v2070_v41 = vshll.u32 %v9955_v48, 16 }
  0xd9   : > { %v11740_v22 = vadd.f32 %v11700_v60, %v994_v15  ;;  %v1410_v60 = vunpack.c.l.b16 %v1326_v29  ;;  %v9801_v15 = vrot.slane %v1240_v5, 9  ;;  %v2063_v33 = vsel %vm11349_vm4, %v2058_v59, %v2062_v20 }
  0xda   : > { %v2658_v52 = vsel %vm11554_vm7, %v2656_v3, %v2657_v16  ;;  %v2072_v54 = vrot.slane %v2070_v41, 5  ;;  %v10011_v3 = vld [vmem:[%s11325_s29 + $0x48] sm:$0xe]  ;;  %v2348_v41 = vunpack.c.l.b16 %v2063_v33 }
  0xdb   : > { %v1176_v46 = vpop.f32.mrf.mxu1  ;;  %v1436_v62 = vpack.c.b16 %v1410_v60, %v1409_v63  ;;  %v2747_v6 = vunpack.c.l.b16 %v2658_v52  ;;  %v1330_v49 = vsel %vm11554_vm7, %v9801_v15, %v1329_v57  ;;  %v1412_v57 = vunpack.c.l.b16 %v1333_v39 }
  0xdd   : > { %v2774_v18 = vpack.c.b16 %v2747_v6, %v2746_v58 }
  0xde   : > { %v954_v42 = vpop.f32.mrf.mxu0 }
  0xdf   : > { %v11752_v53 = vadd.f32 %v1174_v35, %v954_v42  ;;  %v1221_v50 = vpop.f32.mrf.mxu3  ;;  %v9957_v35 = vld [vmem:[%s11325_s29 + $0x4c] sm:$0xf]  ;;  %v2077_v42 = vrot.slane %v2075_v27, 4 }
  0xe0   : > { %v996_v56 = vpop.f32.mrf.mxu2  ;;  %v2084_v25 = vshll.u32 %v9957_v35, 16  ;;  %v2088_v48 = vshrl.u32 %v9957_v35, 16  ;;  %v2661_v29 = vrot.slane %v9957_v35, 5 }
  0xe1   : > { %v11756_v61 = vadd.f32 %v11717_v32, %v996_v56  ;;  %9993 = vmatmul.msk.bf16.gmra.mxu0 %vm872_vm1, %v2375_v11  ;;  %v2073_v32 = vsel %vm11349_vm4, %v2068_v21, %v2072_v54  ;;  %v9958_v11 = vld [vmem:[%s11325_s29 + $0x50] sm:$0x1]  ;;  %v10027_v56 = vrot.slane %v10011_v3, 9  ;;  %v1411_v54 = vunpack.c.l.b16 %v1330_v49 }
  0xe2   : > { %v2349_v63 = vunpack.c.l.b16 %v2073_v32  ;;  %v2086_v47 = vrot.slane %v2084_v25, 5  ;;  %v2090_v52 = vrot.slane %v2088_v48, 4  ;;  %v2663_v59 = vrot.slane %v2661_v29, 4  ;;  %v9959_v25 = vld [vmem:[%s11325_s29 + $0x54] sm:$0xf] }
  0xe3   : > { %v1179_v12 = vpop.f32.mrf.mxu1  ;;  %v2664_v21 = vrot.slane %v9958_v11, 5  ;;  %v2094_v6 = vshll.u32 %v9958_v11, 16  ;;  %v2662_v38 = vsel %vm11554_vm7, %v10027_v56, %v2661_v29  ;;  %v1437_v32 = vpack.c.b16 %v1412_v57, %v1411_v54  ;;  %v1241_v48 = vld [vmem:[%s11325_s29 + $0x54] sm:$0xe] }
  0xe4   : > { %9931 = vmatmul.msk.bf16.gmra.mxu3 %vm872_vm1, %v11026_v0  ;;  %v2091_v58 = vor.u32 %v2090_v52, %v2086_v47  ;;  %v2748_v27 = vunpack.c.l.b16 %v2662_v38  ;;  %v1336_v29 = vrot.slane %v11518_v40, 5  ;;  %v2099_v49 = vshrl.u32 %v9959_v25, 16 }
  0xe5   : > { %9817 = vmatmul.msk.bf16.gmra.mxu2 %vm872_vm1, %v1436_v62  ;;  %v2376_v62 = vpack.c.b16 %v2349_v63, %v2348_v41  ;;  %v2665_v35 = vsel %vm11554_vm7, %v2663_v59, %v2664_v21  ;;  %v2102_v39 = vshll.u32 %v9959_v25, 16  ;;  %v1339_v63 = vrot.slane %v11531_v2, 5  ;;  %v10012_v2 = vld [vmem:[%s11325_s29 + $0x54] sm:$0xe] }
  0xe6   : > { %v956_v28 = vpop.f32.mrf.mxu0  ;;  %10043 = vmatmul.msk.bf16.gmra.mxu1 %vm872_vm1, %v2774_v18  ;;  %v11027_v18 = vld [vmem:[%s11325_s29 + $0x60] sm:$0xff]  ;;  %v9802_v11 = vrot.slane %v1241_v48, 9  ;;  %v1338_v56 = vrot.slane %v1336_v29, 4 }
  0xe7   : > { %v11770_v9 = vadd.f32 %v1176_v46, %v956_v28  ;;  %v11773_v16 = vpop.f32.mrf.mxu3  ;;  %v2080_v46 = vrot.slane %v2078_v8, 5  ;;  %v2749_v8 = vunpack.c.l.b16 %v2665_v35  ;;  %v9960_v28 = vld [vmem:[%s11325_s29 + $0x58] sm:$0xf] }
  0xe8   : > { %v999_v20 = vpop.f32.mrf.mxu2  ;;  %v2108_v41 = vshll.u32 %v9960_v28, 16  ;;  %v2668_v21 = vrot.slane %v9960_v28, 5 }
  0xe9   : > { %v11780_v60 = vadd.f32 %v11737_v17, %v999_v20  ;;  %v2081_v0 = vor.u32 %v2080_v46, %v2077_v42  ;;  %v2092_v20 = vrot.slane %v2091_v58, 4  ;;  %v2775_v42 = vpack.c.b16 %v2749_v8, %v2748_v27 }
  0xea   : > { %v2110_v58 = vrot.slane %v2108_v41, 5  ;;  %v2670_v27 = vrot.slane %v2668_v21, 4 }
  0xeb   : > { %v1181_v17 = vpop.f32.mrf.mxu1  ;;  %v2082_v3 = vrot.slane %v2081_v0, 4  ;;  %v2101_v0 = vrot.slane %v2099_v49, 4 }
  0xed   : > { %v2087_v40 = vsel %vm11349_vm4, %v2082_v3, %v2086_v47  ;;  %v1337_v47 = vsel %vm11554_vm7, %v9802_v11, %v1336_v29  ;;  %v1343_v11 = vrot.slane %v11544_v24, 5 }
  0xee   : > { %v959_v5 = vpop.f32.mrf.mxu0  ;;  %v2350_v35 = vunpack.c.l.b16 %v2087_v40  ;;  %v1413_v3 = vunpack.c.l.b16 %v1337_v47 }
  0xef   : > { %v11788_v23 = vadd.f32 %v1179_v12, %v959_v5  ;;  %v11790_v51 = vpop.f32.mrf.mxu3  ;;  %v2096_v12 = vrot.slane %v2094_v6, 5  ;;  %v2104_v5 = vrot.slane %v2102_v39, 5  ;;  %v1345_v24 = vrot.slane %v1343_v11, 4 }
  0xf0   : > { %v1001_v15 = vpop.f32.mrf.mxu2 }
  0xf1   : > { %v11792_v33 = vadd.f32 %v1221_v50, %v1001_v15  ;;  %9994 = vmatmul.msk.bf16.gmra.mxu0 %vm872_vm1, %v2376_v62  ;;  %v2112_v50 = vshrl.u32 %v9960_v28, 16  ;;  %v2097_v59 = vsel %vm11349_vm4, %v2092_v20, %v2096_v12  ;;  %v2105_v25 = vor.u32 %v2104_v5, %v2101_v0  ;;  %v9962_v5 = vld [vmem:[%s11325_s29 + $0x60] sm:$0xf] }
  0xf2   : > { %v2351_v15 = vunpack.c.l.b16 %v2097_v59 }
  0xf3   : > { %v1184_v52 = vpop.f32.mrf.mxu1  ;;  %v2114_v6 = vrot.slane %v2112_v50, 4 }
  0xf4   : > { %9932 = vmatmul.msk.bf16.gmra.mxu3 %vm872_vm1, %v11027_v18  ;;  %v10028_v18 = vrot.slane %v10012_v2, 9  ;;  %v2377_v20 = vpack.c.b16 %v2351_v15, %v2350_v35  ;;  %v1242_v2 = vld [vmem:[%s11325_s29 + $0x60] sm:$0xe] }
  0xf5   : > { %9818 = vmatmul.msk.bf16.gmra.mxu2 %vm872_vm1, %v1437_v32  ;;  %v1340_v32 = vsel %vm11554_vm7, %v1338_v56, %v1339_v63  ;;  %v2115_v28 = vor.u32 %v2114_v6, %v2110_v58  ;;  %v1346_v6 = vrot.slane %v11574_v55, 5  ;;  %v9803_v47 = vrot.slane %v1242_v2, 9 }
  0xf6   : > { %v961_v46 = vpop.f32.mrf.mxu0  ;;  %10044 = vmatmul.msk.bf16.gmra.mxu1 %vm872_vm1, %v2775_v42  ;;  %v2669_v49 = vsel %vm11554_vm7, %v10028_v18, %v2668_v21  ;;  %v2106_v42 = vrot.slane %v2105_v25, 4  ;;  %v11028_v21 = vld [vmem:[%s11325_s29 + $0x6c] sm:$0xff] }
  0xf7   : > { %v11807_v54 = vadd.f32 %v1181_v17, %v961_v46  ;;  %v11810_v62 = vpop.f32.mrf.mxu3  ;;  %v9961_v17 = vld [vmem:[%s11325_s29 + $0x5c] sm:$0x1]  ;;  %v2116_v46 = vrot.slane %v2115_v28, 4 }
  0xf8   : > { %v1004_v57 = vpop.f32.mrf.mxu2  ;;  %v2671_v8 = vrot.slane %v9961_v17, 5  ;;  %v2118_v48 = vshll.u32 %v9961_v17, 16  ;;  %v2111_v35 = vsel %vm11349_vm4, %v2106_v42, %v2110_v58  ;;  %v2123_v17 = vshrl.u32 %v9962_v5, 16 }
  0xf9   : > { %v11813_v38 = vadd.f32 %v11773_v16, %v1004_v57  ;;  %v1414_v16 = vunpack.c.l.b16 %v1340_v32  ;;  %v2750_v57 = vunpack.c.l.b16 %v2669_v49  ;;  %v2126_v32 = vshll.u32 %v9962_v5, 16 }
  0xfa   : > { %v2672_v39 = vsel %vm11554_vm7, %v2670_v27, %v2671_v8  ;;  %v2120_v56 = vrot.slane %v2118_v48, 5  ;;  %v10013_v48 = vld [vmem:[%s11325_s29 + $0x60] sm:$0xe] }
  0xfb   : > { %v1186_v12 = vpop.f32.mrf.mxu1  ;;  %v1438_v59 = vpack.c.b16 %v1414_v16, %v1413_v3  ;;  %v2751_v0 = vunpack.c.l.b16 %v2672_v39  ;;  %v1344_v16 = vsel %vm11554_vm7, %v9803_v47, %v1343_v11  ;;  %v2128_v42 = vrot.slane %v2126_v32, 5 }
  0xfd   : > { %v2776_v15 = vpack.c.b16 %v2751_v0, %v2750_v57  ;;  %v1415_v57 = vunpack.c.l.b16 %v1344_v16  ;;  %v9966_v16 = vld [vmem:[%s11325_s29 + $0x70] sm:$0xf] }
  0xfe   : > { %v964_v29 = vpop.f32.mrf.mxu0 }
  0xff   : > { %v11825_v41 = vadd.f32 %v1184_v52, %v964_v29  ;;  %v1231_v63 = vpop.f32.mrf.mxu3  ;;  %v9963_v52 = vld [vmem:[%s11325_s29 + $0x64] sm:$0xf]  ;;  %v2352_v29 = vunpack.c.l.b16 %v2111_v35 }
 0x100   : > { %v1006_v50 = vpop.f32.mrf.mxu2  ;;  %v2132_v18 = vshll.u32 %v9963_v52, 16  ;;  %v2136_v8 = vshrl.u32 %v9963_v52, 16  ;;  %v2675_v25 = vrot.slane %v9963_v52, 5 }
 0x101   : > { %v11829_v40 = vadd.f32 %v11790_v51, %v1006_v50  ;;  %9995 = vmatmul.msk.bf16.gmra.mxu0 %vm872_vm1, %v2377_v20  ;;  %v2121_v51 = vsel %vm11349_vm4, %v2116_v46, %v2120_v56  ;;  %v1347_v20 = vsel %vm11554_vm7, %v1345_v24, %v1346_v6  ;;  %v9964_v50 = vld [vmem:[%s11325_s29 + $0x68] sm:$0x1] }
 0x102   : > { %v2353_v49 = vunpack.c.l.b16 %v2121_v51  ;;  %v2134_v46 = vrot.slane %v2132_v18, 5  ;;  %v2138_v56 = vrot.slane %v2136_v8, 4  ;;  %v2678_v2 = vrot.slane %v9964_v50, 5 }
 0x103   : > { %v1189_v55 = vpop.f32.mrf.mxu1  ;;  %v1416_v11 = vunpack.c.l.b16 %v1347_v20  ;;  %v2142_v47 = vshll.u32 %v9964_v50, 16  ;;  %v11210_v20 = vld [vmem:[%s11325_s29 + $0x70] sm:$0xf] }
 0x104   : > { %9933 = vmatmul.msk.bf16.gmra.mxu3 %vm872_vm1, %v11028_v21  ;;  %v2677_v21 = vrot.slane %v2675_v25, 4  ;;  %v2378_v0 = vpack.c.b16 %v2353_v49, %v2352_v29  ;;  %v2139_v6 = vor.u32 %v2138_v56, %v2134_v46  ;;  %v1350_v29 = vrot.slane %v11210_v20, 5 }
 0x105   : > { %9819 = vmatmul.msk.bf16.gmra.mxu2 %vm872_vm1, %v1438_v59  ;;  %v10029_v59 = vrot.slane %v10013_v48, 9  ;;  %v1439_v18 = vpack.c.b16 %v1416_v11, %v1415_v57  ;;  %v2144_v50 = vrot.slane %v2142_v47, 5  ;;  %v2160_v56 = vshrl.u32 %v9966_v16, 16 }
 0x106   : > { %v966_v27 = vpop.f32.mrf.mxu0  ;;  %10045 = vmatmul.msk.bf16.gmra.mxu1 %vm872_vm1, %v2776_v15  ;;  %v2679_v35 = vsel %vm11554_vm7, %v2677_v21, %v2678_v2  ;;  %v2682_v47 = vrot.slane %v9966_v16, 5 }
 0x107   : > { %v11843_v28 = vadd.f32 %v1186_v12, %v966_v27  ;;  %v11846_v3 = vpop.f32.mrf.mxu3  ;;  %v2125_v12 = vrot.slane %v2123_v17, 4  ;;  %v2676_v24 = vsel %vm11554_vm7, %v10029_v59, %v2675_v25  ;;  %v11029_v27 = vld [vmem:[%s11325_s29 + $0x78] sm:$0xff]  ;;  %v2753_v48 = vunpack.c.l.b16 %v2679_v35  ;;  %v1243_v25 = vld [vmem:[%s11325_s29 + $0x6c] sm:$0xe]  ;;  %v11211_v59 = vld [vmem:[%s11325_s29 + $0x74] sm:$0x1] }
 0x108   : > { %v1009_v58 = vpop.f32.mrf.mxu2  ;;  %v2752_v8 = vunpack.c.l.b16 %v2676_v24  ;;  %v1353_v21 = vrot.slane %v11211_v59, 5  ;;  %v9804_v2 = vrot.slane %v1243_v25, 9  ;;  %v10014_v35 = vld [vmem:[%s11325_s29 + $0x6c] sm:$0xe] }
 0x109   : > { %v11853_v39 = vadd.f32 %v11810_v62, %v1009_v58  ;;  %v2129_v5 = vor.u32 %v2128_v42, %v2125_v12  ;;  %v9965_v58 = vld [vmem:[%s11325_s29 + $0x6c] sm:$0xf] }
 0x10a   : > { %v2147_v12 = vshrl.u32 %v9965_v58, 16  ;;  %v2150_v42 = vshll.u32 %v9965_v58, 16  ;;  %v2777_v57 = vpack.c.b16 %v2753_v48, %v2752_v8  ;;  %v2162_v48 = vrot.slane %v2160_v56, 4 }
 0x10b   : > { %v1191_v62 = vpop.f32.mrf.mxu1  ;;  %v2130_v49 = vrot.slane %v2129_v5, 4 }
 0x10c   : > { %v2152_v58 = vrot.slane %v2150_v42, 5 }
 0x10d   : > { %v2135_v5 = vsel %vm11349_vm4, %v2130_v49, %v2134_v46  ;;  %v1351_v46 = vsel %vm11554_vm7, %v9804_v2, %v1350_v29 }
 0x10e   : > { %v969_v52 = vpop.f32.mrf.mxu0  ;;  %v2354_v20 = vunpack.c.l.b16 %v2135_v5 }
 0x10f   : > { %v11861_v51 = vadd.f32 %v1189_v55, %v969_v52  ;;  %v11863_v17 = vpop.f32.mrf.mxu3  ;;  %v2140_v55 = vrot.slane %v2139_v6, 4  ;;  %v1352_v52 = vrot.slane %v1350_v29, 4  ;;  %v1417_v29 = vunpack.c.l.b16 %v1351_v46 }
 0x110   : > { %v1011_v15 = vpop.f32.mrf.mxu2 }
 0x111   : > { %v11865_v32 = vadd.f32 %v1231_v63, %v1011_v15  ;;  %9996 = vmatmul.msk.bf16.gmra.mxu0 %vm872_vm1, %v2378_v0  ;;  %v2156_v63 = vshll.u32 %v9966_v16, 16  ;;  %v2145_v6 = vsel %vm11349_vm4, %v2140_v55, %v2144_v50  ;;  %v1354_v16 = vsel %vm11554_vm7, %v1352_v52, %v1353_v21 }
 0x112   : > { %v2355_v49 = vunpack.c.l.b16 %v2145_v6  ;;  %v10030_v55 = vrot.slane %v10014_v35, 9  ;;  %v2684_v50 = vrot.slane %v2682_v47, 4  ;;  %v1418_v59 = vunpack.c.l.b16 %v1354_v16  ;;  %v11212_v35 = vld [vmem:[%s11325_s29 + $0x7c] sm:$0xf] }
 0x113   : > { %15491 = vst [vmem:[#allocation5_spill] sm:$0xff] %v11865_v32  ;;  %v1194_v0 = vpop.f32.mrf.mxu1  ;;  %v11885_v8 = vrot.slane %v2156_v63, 5  ;;  %v9969_v16 = vld [vmem:[%s11325_s29 + $0x7c] sm:$0xf] }
 0x114   : > { %9934 = vmatmul.msk.bf16.gmra.mxu3 %vm872_vm1, %v11029_v27  ;;  %v2149_v27 = vrot.slane %v2147_v12, 4  ;;  %v2379_v2 = vpack.c.b16 %v2355_v49, %v2354_v20  ;;  %v2683_v21 = vsel %vm11554_vm7, %v10030_v55, %v2682_v47  ;;  %v1440_v46 = vpack.c.b16 %v1418_v59, %v1417_v29  ;;  %v11030_v47 = vld [vmem:[%s11325_s29 + $0x84] sm:$0xff]  ;;  %v1244_v20 = vld [vmem:[%s11325_s29 + $0x78] sm:$0xe]  ;;  %v11213_v55 = vld [vmem:[%s11325_s29 + $0x80] sm:$0x1] }
 0x115   : > { %9820 = vmatmul.msk.bf16.gmra.mxu2 %vm872_vm1, %v1439_v18  ;;  %v2754_v49 = vunpack.c.l.b16 %v2683_v21 }
 0x116   : > { %v971_v11 = vpop.f32.mrf.mxu0  ;;  %10046 = vmatmul.msk.bf16.gmra.mxu1 %vm872_vm1, %v2777_v57  ;;  %v2153_v63 = vor.u32 %v2152_v58, %v2149_v27 }
 0x117   : > { %v11880_v24 = vadd.f32 %v1191_v62, %v971_v11  ;;  %v11883_v18 = vpop.f32.mrf.mxu3  ;;  %v9967_v62 = vld [vmem:[%s11325_s29 + $0x74] sm:$0x1] }
 0x118   : > { %v1507_v15 = vpop.f32.mrf.mxu2  ;;  %v2685_v12 = vrot.slane %v9967_v62, 5  ;;  %v2166_v56 = vshll.u32 %v9967_v62, 16  ;;  %v2154_v27 = vrot.slane %v2153_v63, 4  ;;  %v9968_v62 = vld [vmem:[%s11325_s29 + $0x78] sm:$0xf]  ;;  %v9805_v63 = vrot.slane %v1244_v20, 9 }
 0x119   : > { %v1587_v25 = vadd.f32 %v1507_v15, %v11610_v1  ;;  %v2163_v1 = vor.u32 %v2162_v48, %v11885_v8  ;;  %v1357_v15 = vrot.slane %v11212_v35, 5  ;;  %v2171_v59 = vshrl.u32 %v9968_v62, 16 }
 0x11a   : > { %v2686_v52 = vsel %vm11554_vm7, %v2684_v50, %v2685_v12  ;;  %v2168_v48 = vrot.slane %v2166_v56, 5  ;;  %v1360_v50 = vrot.slane %v11213_v55, 5 }
 0x11b   : > { %v11895_v42 = vadd.f32 %v11846_v3, %v1587_v25  ;;  %v1196_v11 = vpop.f32.mrf.mxu1  ;;  %v2164_v58 = vrot.slane %v2163_v1, 4  ;;  %v1359_v1 = vrot.slane %v1357_v15, 4 }
 0x11d   : > { %v2169_v56 = vsel %vm11349_vm4, %v2164_v58, %v2168_v48  ;;  %v1358_v58 = vsel %vm11554_vm7, %v9805_v63, %v1357_v15  ;;  %v1361_v48 = vsel %vm11554_vm7, %v1359_v1, %v1360_v50 }
 0x11e   : > { %v974_v57 = vpop.f32.mrf.mxu0  ;;  %v1419_v50 = vunpack.c.l.b16 %v1358_v58  ;;  %v1420_v63 = vunpack.c.l.b16 %v1361_v48 }
 0x11f   : > { %v11902_v3 = vadd.f32 %v1194_v0, %v974_v57  ;;  %v11904_v6 = vpop.f32.mrf.mxu3  ;;  %v2755_v0 = vunpack.c.l.b16 %v2686_v52  ;;  %v2184_v52 = vshrl.u32 %v9969_v16, 16 }
 0x120   : > { %v1509_v5 = vpop.f32.mrf.mxu2  ;;  %v1441_v58 = vpack.c.b16 %v1420_v63, %v1419_v50  ;;  %v11215_v50 = vld [vmem:[%s11325_s29 + $0x8c] sm:$0x1] }
 0x121   : > { %v1588_v25 = vadd.f32 %v1509_v5, %v11625_v44  ;;  %9997 = vmatmul.msk.bf16.gmra.mxu0 %vm872_vm1, %v2379_v2  ;;  %v2159_v44 = vsel %vm11349_vm4, %v2154_v27, %v11885_v8  ;;  %v2778_v29 = vpack.c.b16 %v2755_v0, %v2754_v49  ;;  %v2174_v2 = vshll.u32 %v9968_v62, 16  ;;  %v9970_v49 = vld [vmem:[%s11325_s29 + $0x80] sm:$0x1] }
 0x122   : > { %v2689_v5 = vrot.slane %v9969_v16, 5  ;;  %v2173_v0 = vrot.slane %v2171_v59, 4  ;;  %v2692_v32 = vrot.slane %v9970_v49, 5  ;;  %v2190_v59 = vshll.u32 %v9970_v49, 16 }
 0x123   : > { %v11915_v12 = vadd.f32 %v11863_v17, %v1588_v25  ;;  %v2180_v17 = vshll.u32 %v9969_v16, 16  ;;  %v2846_v21 = vpop.f32.mrf.mxu1  ;;  %v10015_v25 = vld [vmem:[%s11325_s29 + $0x78] sm:$0xe]  ;;  %v2186_v16 = vrot.slane %v2184_v52, 4  ;;  %v11214_v52 = vld [vmem:[%s11325_s29 + $0x88] sm:$0xf] }
 0x124   : > { %9935 = vmatmul.msk.bf16.gmra.mxu3 %vm872_vm1, %v11030_v47  ;;  %v2357_v47 = vunpack.c.l.b16 %v2169_v56  ;;  %v10031_v55 = vrot.slane %v10015_v25, 9  ;;  %v1364_v25 = vrot.slane %v11214_v52, 5  ;;  %v1367_v63 = vrot.slane %v11215_v50, 5 }
 0x125   : > { %9821 = vmatmul.msk.bf16.gmra.mxu2 %vm872_vm1, %v1440_v46  ;;  %v2356_v46 = vunpack.c.l.b16 %v2159_v44  ;;  %v11936_v62 = vrot.slane %v2180_v17, 5 }
 0x126   : > { %v976_v57 = vpop.f32.mrf.mxu0  ;;  %10047 = vmatmul.msk.bf16.gmra.mxu1 %vm872_vm1, %v2778_v29  ;;  %v1366_v52 = vrot.slane %v1364_v25, 4 }
 0x127   : > { %v11924_v35 = vadd.f32 %v1196_v11, %v976_v57  ;;  %v11927_v27 = vpop.f32.mrf.mxu3  ;;  %v2176_v11 = vrot.slane %v2174_v2, 5  ;;  %v2691_v57 = vrot.slane %v2689_v5, 4  ;;  %v2187_v29 = vor.u32 %v2186_v16, %v11936_v62 }
 0x128   : > { %v1512_v8 = vpop.f32.mrf.mxu2  ;;  %v2690_v2 = vsel %vm11554_vm7, %v10031_v55, %v2689_v5 }
 0x129   : > { %v1589_v20 = vadd.f32 %v1512_v8, %v11642_v7  ;;  %v2380_v7 = vpack.c.b16 %v2357_v47, %v2356_v46  ;;  %v2177_v1 = vor.u32 %v2176_v11, %v2173_v0  ;;  %v2693_v17 = vsel %vm11554_vm7, %v2691_v57, %v2692_v32  ;;  %v11031_v46 = vld [vmem:[%s11325_s29 + $0x90] sm:$0xff]  ;;  %v1245_v47 = vld [vmem:[%s11325_s29 + $0x84] sm:$0xe]  ;;  %v9972_v11 = vld [vmem:[%s11325_s29 + $0x88] sm:$0xf] }
 0x12a   : > { %v2756_v5 = vunpack.c.l.b16 %v2690_v2  ;;  %v2757_v32 = vunpack.c.l.b16 %v2693_v17  ;;  %v9971_v0 = vld [vmem:[%s11325_s29 + $0x84] sm:$0xf]  ;;  %v2188_v55 = vrot.slane %v2187_v29, 4  ;;  %v2192_v57 = vrot.slane %v2190_v59, 5 }
 0x12b   : > { %v11939_v15 = vadd.f32 %v11883_v18, %v1589_v20  ;;  %v2848_v56 = vpop.f32.mrf.mxu1  ;;  %v2178_v16 = vrot.slane %v2177_v1, 4  ;;  %v2204_v2 = vshll.u32 %v9972_v11, 16  ;;  %v2208_v17 = vshrl.u32 %v9972_v11, 16 }
 0x12c   : > { %v2779_v1 = vpack.c.b16 %v2757_v32, %v2756_v5 }
 0x12e   : > { %v2448_v44 = vpop.f32.mrf.mxu0 }
 0x12f   : > { %v2528_v18 = vadd.f32 %v2448_v44, %v11895_v42  ;;  %v11948_v48 = vpop.f32.mrf.mxu3  ;;  %v11083_v42 = vld [vmem:[%s15471_s3 + $0x78] sm:$0xff]  ;;  %v9806_v44 = vrot.slane %v1245_v47, 9 }
 0x130   : > { %v1514_v8 = vpop.f32.mrf.mxu2  ;;  %5501 = vmatpush.bf16.msra.mxu1 %v11083_v42 }
 0x131   : > { %v1590_v20 = vadd.f32 %v1514_v8, %v11661_v43  ;;  %v11953_v49 = vadd.f32 %v2846_v21, %v2528_v18  ;;  %9998 = vmatmul.msk.bf16.gmra.mxu0 %vm872_vm1, %v2380_v7  ;;  %v2195_v21 = vshrl.u32 %v9971_v0, 16  ;;  %v2198_v7 = vshll.u32 %v9971_v0, 16 }
 0x132   : > { %v2183_v18 = vsel %vm11349_vm4, %v2178_v16, %v11936_v62  ;;  %v2696_v8 = vrot.slane %v9972_v11, 5  ;;  %v11980_v62 = vrot.slane %v2204_v2, 5  ;;  %v2210_v16 = vrot.slane %v2208_v17, 4 }
 0x133   : > { %15492 = vst [vmem:[#allocation6_spill] sm:$0xff] %v11953_v49  ;;  %v11963_v43 = vadd.f32 %v11904_v6, %v1590_v20  ;;  %v2851_v59 = vpop.f32.mrf.mxu1  ;;  %v2193_v6 = vsel %vm11349_vm4, %v2188_v55, %v2192_v57  ;;  %v1365_v20 = vsel %vm11554_vm7, %v9806_v44, %v1364_v25  ;;  %v2197_v42 = vrot.slane %v2195_v21, 4  ;;  %v9973_v25 = vld [vmem:[%s11325_s29 + $0x8c] sm:$0x1]  ;;  %v12150_v49 = vld [vmem:[%s11325_s29 + $0x20] sm:$0x1] }
 0x134   : > { %9936 = vmatmul.msk.bf16.gmra.mxu3 %vm872_vm1, %v11031_v46  ;;  %v10016_v46 = vld [vmem:[%s11325_s29 + $0x84] sm:$0xe]  ;;  %v2200_v0 = vrot.slane %v2198_v7, 5  ;;  %v2359_v57 = vunpack.c.l.b16 %v2193_v6  ;;  %v2699_v44 = vrot.slane %v9973_v25, 5 }
 0x135   : > { %9822 = vmatmul.msk.bf16.gmra.mxu2 %vm872_vm1, %v1441_v58  ;;  %v1368_v58 = vsel %vm11554_vm7, %v1366_v52, %v1367_v63  ;;  %v10032_v50 = vrot.slane %v10016_v46, 9  ;;  %v2698_v63 = vrot.slane %v2696_v8, 4  ;;  %v1421_v52 = vunpack.c.l.b16 %v1365_v20  ;;  %v1246_v46 = vld [vmem:[%s11325_s29 + $0x90] sm:$0xe] }
 0x136   : > { %v2450_v29 = vpop.f32.mrf.mxu0  ;;  %10048 = vmatmul.msk.bf16.gmra.mxu1 %vm872_vm1, %v2779_v1  ;;  %v1422_v21 = vunpack.c.l.b16 %v1368_v58  ;;  %v2201_v2 = vor.u32 %v2200_v0, %v2197_v42 }
 0x137   : > { %v2529_v47 = vadd.f32 %v2450_v29, %v11915_v12  ;;  %v11978_v32 = vpop.f32.mrf.mxu3  ;;  %v2358_v12 = vunpack.c.l.b16 %v2183_v18  ;;  %v2697_v1 = vsel %vm11554_vm7, %v10032_v50, %v2696_v8  ;;  %v2700_v6 = vsel %vm11554_vm7, %v2698_v63, %v2699_v44  ;;  %v9974_v50 = vld [vmem:[%s11325_s29 + $0x90] sm:$0xf]  ;;  %v9975_v63 = vld [vmem:[%s11325_s29 + $0x94] sm:$0xf] }
 0x138   : > { %v1517_v5 = vpop.f32.mrf.mxu2  ;;  %v1442_v20 = vpack.c.b16 %v1422_v21, %v1421_v52  ;;  %v2202_v0 = vrot.slane %v2201_v2, 4  ;;  %v9807_v44 = vrot.slane %v1246_v46, 9  ;;  %v11217_v21 = vld [vmem:[%s11325_s29 + $0x98] sm:$0x1] }
 0x139   : > { %v1591_v11 = vadd.f32 %v1517_v5, %v11679_v19  ;;  %v11983_v55 = vadd.f32 %v2848_v56, %v2529_v47  ;;  %v2211_v19 = vor.u32 %v2210_v16, %v11980_v62  ;;  %v2214_v56 = vshll.u32 %v9973_v25, 16  ;;  %v11216_v5 = vld [vmem:[%s11325_s29 + $0x94] sm:$0xf] }
 0x13a   : > { %v2381_v17 = vpack.c.b16 %v2359_v57, %v2358_v12  ;;  %v1371_v42 = vrot.slane %v11216_v5, 5  ;;  %v2758_v57 = vunpack.c.l.b16 %v2697_v1  ;;  %v2759_v25 = vunpack.c.l.b16 %v2700_v6  ;;  %v10017_v5 = vld [vmem:[%s11325_s29 + $0x90] sm:$0xe] }
 0x13b   : > { %15493 = vst [vmem:[#allocation7_spill] sm:$0xff] %v11983_v55  ;;  %v11988_v7 = vadd.f32 %v11927_v27, %v1591_v11  ;;  %v2853_v18 = vpop.f32.mrf.mxu1  ;;  %v2212_v16 = vrot.slane %v2211_v19, 4  ;;  %v2216_v11 = vrot.slane %v2214_v56, 5 }
 0x13c   : > { %v1373_v2 = vrot.slane %v1371_v42, 4  ;;  %v2780_v56 = vpack.c.b16 %v2759_v25, %v2758_v57 }
 0x13d   : > { %v2217_v19 = vsel %vm11349_vm4, %v2212_v16, %v2216_v11 }
 0x13e   : > { %v2453_v29 = vpop.f32.mrf.mxu0 }
 0x13f   : > { %v2530_v47 = vadd.f32 %v2453_v29, %v11939_v15  ;;  %v11996_v58 = vpop.f32.mrf.mxu3  ;;  %v11032_v15 = vld [vmem:[%s11325_s29 + $0x9c] sm:$0xff]  ;;  %v1374_v29 = vrot.slane %v11217_v21, 5 }
 0x140   : > { %v1519_v27 = vpop.f32.mrf.mxu2 }
 0x141   : > { %v1592_v8 = vadd.f32 %v1519_v27, %v11697_v26  ;;  %v12001_v12 = vadd.f32 %v2851_v59, %v2530_v47  ;;  %9999 = vmatmul.msk.bf16.gmra.mxu0 %vm872_vm1, %v2381_v17  ;;  %v2207_v26 = vsel %vm11349_vm4, %v2202_v0, %v11980_v62  ;;  %v2219_v59 = vshrl.u32 %v9974_v50, 16 }
 0x142   : > { %v2222_v17 = vshll.u32 %v9974_v50, 16  ;;  %v2232_v47 = vshrl.u32 %v9975_v63, 16  ;;  %v2703_v27 = vrot.slane %v9975_v63, 5  ;;  %v1372_v62 = vsel %vm11554_vm7, %v9807_v44, %v1371_v42 }
 0x143   : > { %15494 = vst [vmem:[#allocation8_spill] sm:$0xff] %v12001_v12  ;;  %v12008_v52 = vadd.f32 %v11948_v48, %v1592_v8  ;;  %v2228_v48 = vshll.u32 %v9975_v63, 16  ;;  %v2856_v6 = vpop.f32.mrf.mxu1  ;;  %v1375_v16 = vsel %vm11554_vm7, %v1373_v2, %v1374_v29  ;;  %v2360_v11 = vunpack.c.l.b16 %v2207_v26 }
 0x144   : > { %9937 = vmatmul.msk.bf16.gmra.mxu3 %vm872_vm1, %v11032_v15  ;;  %v2361_v8 = vunpack.c.l.b16 %v2217_v19  ;;  %v2221_v15 = vrot.slane %v2219_v59, 4  ;;  %v2224_v50 = vrot.slane %v2222_v17, 5  ;;  %v2234_v42 = vrot.slane %v2232_v47, 4 }
 0x145   : > { %9823 = vmatmul.msk.bf16.gmra.mxu2 %vm872_vm1, %v1442_v20  ;;  %v12031_v63 = vrot.slane %v2228_v48, 5  ;;  %v10033_v44 = vrot.slane %v10017_v5, 9  ;;  %v2705_v21 = vrot.slane %v2703_v27, 4  ;;  %v1423_v2 = vunpack.c.l.b16 %v1372_v62 }
 0x146   : > { %v2455_v1 = vpop.f32.mrf.mxu0  ;;  %10049 = vmatmul.msk.bf16.gmra.mxu1 %vm872_vm1, %v2780_v56  ;;  %v1424_v26 = vunpack.c.l.b16 %v1375_v16 }
 0x147   : > { %v2531_v46 = vadd.f32 %v2455_v1, %v11963_v43  ;;  %v12022_v0 = vpop.f32.mrf.mxu3  ;;  %v9976_v43 = vld [vmem:[%s11325_s29 + $0x98] sm:$0x1]  ;;  %v2235_v56 = vor.u32 %v2234_v42, %v12031_v63  ;;  %v2704_v48 = vsel %vm11554_vm7, %v10033_v44, %v2703_v27  ;;  %v9978_v42 = vld [vmem:[%s11325_s29 + $0xa0] sm:$0xf] }
 0x148   : > { %v1522_v20 = vpop.f32.mrf.mxu2  ;;  %v2706_v1 = vrot.slane %v9976_v43, 5  ;;  %v2238_v17 = vshll.u32 %v9976_v43, 16  ;;  %v2760_v27 = vunpack.c.l.b16 %v2704_v48  ;;  %v2252_v48 = vshll.u32 %v9978_v42, 16 }
 0x149   : > { %v1593_v57 = vadd.f32 %v1522_v20, %v11715_v31  ;;  %v12027_v25 = vadd.f32 %v2853_v18, %v2531_v46  ;;  %v2382_v31 = vpack.c.b16 %v2361_v8, %v2360_v11  ;;  %v2225_v18 = vor.u32 %v2224_v50, %v2221_v15  ;;  %v11218_v46 = vld [vmem:[%s11325_s29 + $0xa0] sm:$0xf]  ;;  %v11033_v11 = vld [vmem:[%s11325_s29 + $0xa8] sm:$0xff]  ;;  %v1247_v8 = vld [vmem:[%s11325_s29 + $0x9c] sm:$0xe] }
 0x14a   : > { %v2707_v47 = vsel %vm11554_vm7, %v2705_v21, %v2706_v1  ;;  %v1378_v62 = vrot.slane %v11218_v46, 5  ;;  %v1443_v20 = vpack.c.b16 %v1424_v26, %v1423_v2  ;;  %v9977_v50 = vld [vmem:[%s11325_s29 + $0x9c] sm:$0xf]  ;;  %v2236_v21 = vrot.slane %v2235_v56, 4  ;;  %v11219_v2 = vld [vmem:[%s11325_s29 + $0xa4] sm:$0x1] }
 0x14b   : > { %15495 = vst [vmem:[#allocation9_spill] sm:$0xff] %v12027_v25  ;;  %v12034_v29 = vadd.f32 %v11978_v32, %v1593_v57  ;;  %v2858_v19 = vpop.f32.mrf.mxu1  ;;  %v2761_v43 = vunpack.c.l.b16 %v2707_v47  ;;  %v2226_v44 = vrot.slane %v2225_v18, 4  ;;  %v2240_v1 = vrot.slane %v2238_v17, 5 }
 0x14c   : > { %v1381_v26 = vrot.slane %v11219_v2, 5  ;;  %v1380_v46 = vrot.slane %v1378_v62, 4  ;;  %v2256_v47 = vshrl.u32 %v9978_v42, 16  ;;  %v11220_v2 = vld [vmem:[%s11325_s29 + $0xac] sm:$0xf] }
 0x14d   : > { %v2781_v18 = vpack.c.b16 %v2761_v43, %v2760_v27 }
 0x14e   : > { %v2458_v59 = vpop.f32.mrf.mxu0 }
 0x14f   : > { %v2532_v32 = vadd.f32 %v2458_v59, %v11988_v7  ;;  %v12043_v16 = vpop.f32.mrf.mxu3  ;;  %v11082_v7 = vld [vmem:[%s15471_s3 + $0x70] sm:$0xff]  ;;  %v9808_v59 = vrot.slane %v1247_v8, 9 }
 0x150   : > { %v1524_v5 = vpop.f32.mrf.mxu2  ;;  %5502 = vmatpush.bf16.msra.mxu1 %v11082_v7 }
 0x151   : > { %v1594_v15 = vadd.f32 %v1524_v5, %v11734_v13  ;;  %v12048_v57 = vadd.f32 %v2856_v6, %v2532_v32  ;;  %10000 = vmatmul.msk.bf16.gmra.mxu0 %vm872_vm1, %v2382_v31  ;;  %v2243_v6 = vshrl.u32 %v9977_v50, 16  ;;  %v2246_v31 = vshll.u32 %v9977_v50, 16 }
 0x152   : > { %v2231_v32 = vsel %vm11349_vm4, %v2226_v44, %v12031_v63  ;;  %v2710_v5 = vrot.slane %v9978_v42, 5  ;;  %v12075_v50 = vrot.slane %v2252_v48, 5  ;;  %v2258_v42 = vrot.slane %v2256_v47, 4  ;;  %v1248_v47 = vld [vmem:[%s11325_s29 + $0xa8] sm:$0xe] }
 0x153   : > { %15496 = vst [vmem:[#allocation10_spill] sm:$0xff] %v12048_v57  ;;  %v12058_v13 = vadd.f32 %v11996_v58, %v1594_v15  ;;  %v2861_v17 = vpop.f32.mrf.mxu1  ;;  %v2241_v58 = vsel %vm11349_vm4, %v2236_v21, %v2240_v1  ;;  %v10018_v15 = vld [vmem:[%s11325_s29 + $0x9c] sm:$0xe]  ;;  %v2245_v7 = vrot.slane %v2243_v6, 4  ;;  %v2248_v63 = vrot.slane %v2246_v31, 5 }
 0x154   : > { %9938 = vmatmul.msk.bf16.gmra.mxu3 %vm872_vm1, %v11033_v11  ;;  %v1382_v11 = vsel %vm11554_vm7, %v1380_v46, %v1381_v26  ;;  %v2362_v21 = vunpack.c.l.b16 %v2231_v32  ;;  %v9979_v1 = vld [vmem:[%s11325_s29 + $0xa4] sm:$0x1]  ;;  %v1385_v26 = vrot.slane %v11220_v2, 5  ;;  %v2712_v46 = vrot.slane %v2710_v5, 4 }
 0x155   : > { %9824 = vmatmul.msk.bf16.gmra.mxu2 %vm872_vm1, %v1443_v20  ;;  %v1379_v20 = vsel %vm11554_vm7, %v9808_v59, %v1378_v62  ;;  %v2363_v62 = vunpack.c.l.b16 %v2241_v58  ;;  %v10034_v59 = vrot.slane %v10018_v15, 9  ;;  %v2713_v6 = vrot.slane %v9979_v1, 5  ;;  %v11221_v58 = vld [vmem:[%s11325_s29 + $0xb0] sm:$0x1] }
 0x156   : > { %v2460_v56 = vpop.f32.mrf.mxu0  ;;  %10050 = vmatmul.msk.bf16.gmra.mxu1 %vm872_vm1, %v2781_v18  ;;  %v1425_v31 = vunpack.c.l.b16 %v1379_v20  ;;  %v2262_v32 = vshll.u32 %v9979_v1, 16  ;;  %v9809_v15 = vrot.slane %v1248_v47, 9  ;;  %v1387_v2 = vrot.slane %v1385_v26, 4 }
 0x157   : > { %v2533_v8 = vadd.f32 %v2460_v56, %v12008_v52  ;;  %v12073_v43 = vpop.f32.mrf.mxu3  ;;  %v2259_v56 = vor.u32 %v2258_v42, %v12075_v50  ;;  %v2383_v18 = vpack.c.b16 %v2363_v62, %v2362_v21  ;;  %v2711_v20 = vsel %vm11554_vm7, %v10034_v59, %v2710_v5  ;;  %v11034_v5 = vld [vmem:[%s11325_s29 + $0xb4] sm:$0xff] }
 0x158   : > { %v1527_v27 = vpop.f32.mrf.mxu2  ;;  %v2264_v1 = vrot.slane %v2262_v32, 5  ;;  %v2762_v59 = vunpack.c.l.b16 %v2711_v20 }
 0x159   : > { %v1595_v44 = vadd.f32 %v1527_v27, %v11752_v53  ;;  %v12078_v52 = vadd.f32 %v2858_v19, %v2533_v8  ;;  %v1426_v53 = vunpack.c.l.b16 %v1382_v11  ;;  %v2249_v19 = vor.u32 %v2248_v63, %v2245_v7  ;;  %v9980_v7 = vld [vmem:[%s11325_s29 + $0xa8] sm:$0xf] }
 0x15a   : > { %v1388_v8 = vrot.slane %v11221_v58, 5  ;;  %v2260_v62 = vrot.slane %v2259_v56, 4  ;;  %v12116_v56 = vld [vmem:[%s11325_s29 + $0xbc] sm:$0x1] }
 0x15b   : > { %15497 = vst [vmem:[#allocation11_spill] sm:$0xff] %v12078_v52  ;;  %v12084_v48 = vadd.f32 %v12022_v0, %v1595_v44  ;;  %v2863_v52 = vpop.f32.mrf.mxu1  ;;  %v2714_v0 = vsel %vm11554_vm7, %v2712_v46, %v2713_v6  ;;  %v1444_v42 = vpack.c.b16 %v1426_v53, %v1425_v31  ;;  %v2250_v21 = vrot.slane %v2249_v19, 4  ;;  %v9981_v46 = vld [vmem:[%s11325_s29 + $0xac] sm:$0xf]  ;;  %v10168_v19 = vld [vmem:[%s11325_s29 + $0x18] sm:$0xf] }
 0x15c   : > { %v12105_v6 = vsel %vm11554_vm7, %v9809_v15, %v1385_v26  ;;  %v12109_v31 = vsel %vm11554_vm7, %v1387_v2, %v1388_v8  ;;  %v2267_v53 = vshrl.u32 %v9980_v7, 16  ;;  %v12123_v15 = vld [vmem:[%s11325_s29 + $0x1c] sm:$0xf]  ;;  %v2265_v2 = vsel %vm11349_vm4, %v2260_v62, %v2264_v1 }
 0x15d   : > { %v2255_v26 = vsel %vm11349_vm4, %v2250_v21, %v12075_v50  ;;  %v1428_v8 = vunpack.c.l.b16 %v12109_v31  ;;  %v3294_v21 = vshrl.u32 %v10168_v19, 16  ;;  %v3307_v31 = vshrl.u32 %v12123_v15, 16 }
 0x15e   : > { %v2463_v27 = vpop.f32.mrf.mxu0  ;;  %v2269_v50 = vrot.slane %v2267_v53, 4  ;;  %v2364_v1 = vunpack.c.l.b16 %v2255_v26 }
 0x15f   : > { %v2534_v11 = vadd.f32 %v2463_v27, %v12034_v29  ;;  %v12095_v44 = vpop.f32.mrf.mxu3  ;;  %v2763_v29 = vunpack.c.l.b16 %v2714_v0  ;;  %v2280_v27 = vshrl.u32 %v9981_v46, 16  ;;  %v3296_v55 = vrot.slane %v3294_v21, 4 }
 0x160   : > { %v1529_v63 = vpop.f32.mrf.mxu2 }
 0x161   : > { %v1596_v47 = vadd.f32 %v1529_v63, %v11770_v9  ;;  %v12098_v58 = vadd.f32 %v2861_v17, %v2534_v11  ;;  %10001 = vmatmul.msk.bf16.gmra.mxu0 %vm872_vm1, %v2383_v18  ;;  %v2270_v17 = vshll.u32 %v9980_v7, 16  ;;  %v2276_v18 = vshll.u32 %v9981_v46, 16  ;;  %v10019_v7 = vld [vmem:[%s11325_s29 + $0xa8] sm:$0xe] }
 0x162   : > { %v2782_v20 = vpack.c.b16 %v2763_v29, %v2762_v59  ;;  %v2717_v63 = vrot.slane %v9981_v46, 5  ;;  %v11223_v59 = vld [vmem:[%s11325_s29 + $0xb8] sm:$0xf]  ;;  %v2282_v46 = vrot.slane %v2280_v27, 4  ;;  %v10035_v57 = vrot.slane %v10019_v7, 9 }
 0x163   : > { %15498 = vst [vmem:[#allocation12_spill] sm:$0xff] %v12098_v58  ;;  %v12112_v9 = vadd.f32 %v12043_v16, %v1596_v47  ;;  %v1427_v16 = vunpack.c.l.b16 %v12105_v6  ;;  %v2866_v11 = vpop.f32.mrf.mxu1  ;;  %v3297_v47 = vshll.u32 %v10168_v19, 16  ;;  %v3303_v6 = vshll.u32 %v12123_v15, 16 }
 0x164   : > { %9939 = vmatmul.msk.bf16.gmra.mxu3 %vm872_vm1, %v11034_v5  ;;  %v2272_v5 = vrot.slane %v2270_v17, 5  ;;  %v1392_v29 = vrot.slane %v11223_v59, 5  ;;  %v12138_v53 = vrot.slane %v2276_v18, 5  ;;  %v1249_v17 = vld [vmem:[%s11325_s29 + $0xb4] sm:$0xe]  ;;  %v2719_v25 = vrot.slane %v2717_v63, 4 }
 0x165   : > { %9825 = vmatmul.msk.bf16.gmra.mxu2 %vm872_vm1, %v1444_v42  ;;  %v3299_v26 = vrot.slane %v3297_v47, 5  ;;  %v12152_v27 = vrot.slane %v3303_v6, 5  ;;  %v3313_v47 = vshll.u32 %v12150_v49, 16  ;;  %v1445_v6 = vpack.c.b16 %v1428_v8, %v1427_v16  ;;  %v12178_v16 = vld [vmem:[%s11325_s29 + $0xb8] sm:$0xf] }
 0x166   : > { %v2465_v0 = vpop.f32.mrf.mxu0  ;;  %10051 = vmatmul.msk.bf16.gmra.mxu1 %vm872_vm1, %v2782_v20  ;;  %v2273_v18 = vor.u32 %v2272_v5, %v2269_v50 }
 0x167   : > { %v2535_v42 = vadd.f32 %v2465_v0, %v12058_v13  ;;  %v12135_v62 = vpop.f32.mrf.mxu3  ;;  %v2365_v13 = vunpack.c.l.b16 %v2265_v2  ;;  %v9982_v0 = vld [vmem:[%s11325_s29 + $0xb0] sm:$0x1]  ;;  %v2283_v2 = vor.u32 %v2282_v46, %v12138_v53  ;;  %v3300_v21 = vor.u32 %v3299_v26, %v3296_v55  ;;  %v9983_v46 = vld [vmem:[%s11325_s29 + $0xb4] sm:$0xf] }
 0x168   : > { %v1532_v32 = vpop.f32.mrf.mxu2  ;;  %v2720_v12 = vrot.slane %v9982_v0, 5  ;;  %v2286_v20 = vshll.u32 %v9982_v0, 16 }
 0x169   : > { %v1597_v19 = vadd.f32 %v1532_v32, %v11788_v23  ;;  %v12141_v58 = vadd.f32 %v2863_v52, %v2535_v42  ;;  %v3309_v23 = vrot.slane %v3307_v31, 4  ;;  %v9810_v52 = vrot.slane %v1249_v17, 9  ;;  %v11035_v17 = vld [vmem:[%s11325_s29 + $0xc0] sm:$0xff] }
 0x16a   : > { %v1394_v32 = vrot.slane %v1392_v29, 4  ;;  %v2384_v7 = vpack.c.b16 %v2365_v13, %v2364_v1  ;;  %v2721_v50 = vsel %vm11554_vm7, %v2719_v25, %v2720_v12  ;;  %v2274_v31 = vrot.slane %v2273_v18, 4 }
 0x16b   : > { %15499 = vst [vmem:[#allocation13_spill] sm:$0xff] %v12141_v58  ;;  %v12147_v59 = vadd.f32 %v12073_v43, %v1597_v19  ;;  %v12155_v58 = vpop.f32.mrf.mxu1  ;;  %v2718_v43 = vsel %vm11554_vm7, %v10035_v57, %v2717_v63  ;;  %v3310_v1 = vor.u32 %v3309_v23, %v12152_v27  ;;  %v12169_v57 = vsel %vm11554_vm7, %v9810_v52, %v1392_v29 }
 0x16c   : > { %15500 = vst [vmem:[#allocation14_spill] sm:$0xff] %v12155_v58  ;;  %v15501_v12 = vrot.slane %v12116_v56, 5  ;;  %v2284_v25 = vrot.slane %v2283_v2, 4  ;;  %v2764_v0 = vunpack.c.l.b16 %v2718_v43  ;;  %v2765_v29 = vunpack.c.l.b16 %v2721_v50  ;;  %v11081_v56 = vld [vmem:[%s15471_s3 + $0x68] sm:$0xff]  ;;  %v10171_v50 = vld [vmem:[%s11325_s29 + $0x24] sm:$0xf] }
 0x16d   : > { %v3301_v26 = vrot.slane %v3300_v21, 4  ;;  %v3315_v18 = vrot.slane %v3313_v47, 5  ;;  %v2291_v23 = vshrl.u32 %v9983_v46, 16  ;;  %v2294_v52 = vshll.u32 %v9983_v46, 16  ;;  %5503 = vmatpush.bf16.msra.mxu1 %v11081_v56  ;;  %v12204_v21 = vld [vmem:[%s11325_s29 + $0x28] sm:$0xf] }
 0x16e   : > { %v2468_v42 = vpop.f32.mrf.mxu0  ;;  %v12175_v55 = vsel %vm11554_vm7, %v1394_v32, %v15501_v12  ;;  %v2304_v2 = vshrl.u32 %v12178_v16, 16  ;;  %v2783_v43 = vpack.c.b16 %v2765_v29, %v2764_v0  ;;  %v3327_v0 = vshll.u32 %v12204_v21, 16 }
 0x16f   : > { %v2536_v5 = vadd.f32 %v2468_v42, %v12084_v48  ;;  %v12165_v13 = vpop.f32.mrf.mxu3  ;;  %v2288_v48 = vrot.slane %v2286_v20, 5  ;;  %v2279_v20 = vsel %vm11349_vm4, %v2274_v31, %v12138_v53  ;;  %v3306_v53 = vsel %vm11349_vm4, %v3301_v26, %v12152_v27 }
 0x170   : > { %v1534_v19 = vpop.f32.mrf.mxu2  ;;  %v2296_v31 = vrot.slane %v2294_v52, 5  ;;  %v2306_v12 = vrot.slane %v2304_v2, 4  ;;  %v3321_v27 = vshll.u32 %v10171_v50, 16  ;;  %v2366_v29 = vunpack.c.l.b16 %v2279_v20 }
 0x171   : > { %v1598_v8 = vadd.f32 %v1534_v19, %v11807_v54  ;;  %v12181_v63 = vadd.f32 %v2866_v11, %v2536_v5  ;;  %10002 = vmatmul.msk.bf16.gmra.mxu0 %vm872_vm1, %v2384_v7  ;;  %v3311_v54 = vrot.slane %v3310_v1, 4  ;;  %v2300_v11 = vshll.u32 %v12178_v16, 16 }
 0x172   : > { %v1429_v7 = vunpack.c.l.b16 %v12169_v57  ;;  %v2289_v42 = vsel %vm11349_vm4, %v2284_v25, %v2288_v48  ;;  %v2724_v1 = vrot.slane %v12178_v16, 5  ;;  %v3331_v16 = vshrl.u32 %v12204_v21, 16 }
 0x173   : > { %15502 = vst [vmem:[#allocation15_spill] sm:$0xff] %v12181_v63  ;;  %v12189_v32 = vadd.f32 %v12095_v44, %v1598_v8  ;;  %v1430_v44 = vunpack.c.l.b16 %v12175_v55  ;;  %v2871_v5 = vpop.f32.mrf.mxu1  ;;  %v3316_v19 = vsel %vm11349_vm4, %v3311_v54, %v3315_v18  ;;  %v12215_v57 = vrot.slane %v2300_v11, 5  ;;  %v10020_v55 = vld [vmem:[%s11325_s29 + $0xb4] sm:$0xe]  ;;  %v9985_v8 = vld [vmem:[%s11325_s29 + $0xbc] sm:$0x1] }
 0x174   : > { %9940 = vmatmul.msk.bf16.gmra.mxu3 %vm872_vm1, %v11035_v17  ;;  %v3318_v17 = vshrl.u32 %v10171_v50, 16  ;;  %v2367_v56 = vunpack.c.l.b16 %v2289_v42  ;;  %v3679_v26 = vunpack.c.l.b16 %v3306_v53  ;;  %v3680_v18 = vunpack.c.l.b16 %v3316_v19 }
 0x175   : > { %9826 = vmatmul.msk.bf16.gmra.mxu2 %vm872_vm1, %v1445_v6  ;;  %v2293_v6 = vrot.slane %v2291_v23, 4  ;;  %v10036_v23 = vrot.slane %v10020_v55, 9  ;;  %v2726_v52 = vrot.slane %v2724_v1, 4  ;;  %v2727_v54 = vrot.slane %v9985_v8, 5 }
 0x176   : > { %v2470_v47 = vpop.f32.mrf.mxu0  ;;  %10052 = vmatmul.msk.bf16.gmra.mxu1 %vm872_vm1, %v2783_v43  ;;  %v2307_v50 = vor.u32 %v2306_v12, %v12215_v57  ;;  %v3320_v63 = vrot.slane %v3318_v17, 4  ;;  %v3323_v58 = vrot.slane %v3321_v27, 5  ;;  %v3333_v20 = vrot.slane %v3331_v16, 4 }
 0x177   : > { %v12211_v46 = vadd.f32 %v2470_v47, %v12112_v9  ;;  %v12218_v48 = vpop.f32.mrf.mxu3  ;;  %v2297_v2 = vor.u32 %v2296_v31, %v2293_v6  ;;  %v2310_v47 = vshll.u32 %v9985_v8, 16  ;;  %v2385_v42 = vpack.c.b16 %v2367_v56, %v2366_v29  ;;  %v9986_v56 = vld [vmem:[%s11325_s29 + $0xc0] sm:$0xf] }
 0x178   : > { %v1537_v25 = vpop.f32.mrf.mxu2  ;;  %v1446_v53 = vpack.c.b16 %v1430_v44, %v1429_v7  ;;  %v2728_v6 = vsel %vm11554_vm7, %v2726_v52, %v2727_v54  ;;  %v2308_v55 = vrot.slane %v2307_v50, 4  ;;  %v3711_v7 = vpack.c.b16 %v3680_v18, %v3679_v26  ;;  %v10174_v18 = vld [vmem:[%s11325_s29 + $0x30] sm:$0xf] }
 0x179   : > { %v1599_v9 = vadd.f32 %v1537_v25, %v11825_v41  ;;  %v12229_v41 = vrot.slane %v3327_v0, 5  ;;  %v12232_v25 = vld [vmem:[%s11325_s29 + $0x2c] sm:$0x1]  ;;  %v2298_v12 = vrot.slane %v2297_v2, 4  ;;  %v2312_v8 = vrot.slane %v2310_v47, 5 }
 0x17a   : > { %v3324_v44 = vor.u32 %v3323_v58, %v3320_v63  ;;  %v2767_v29 = vunpack.c.l.b16 %v2728_v6  ;;  %v2315_v54 = vshrl.u32 %v9986_v56, 16  ;;  %v12261_v2 = vld [vmem:[%s11325_s29 + $0x34] sm:$0xf]  ;;  %v3342_v6 = vshrl.u32 %v10174_v18, 16 }
 0x17b   : > { %v12226_v11 = vadd.f32 %v12135_v62, %v1599_v9  ;;  %v12234_v19 = vpop.f32.mrf.mxu1  ;;  %v2725_v62 = vsel %vm11554_vm7, %v10036_v23, %v2724_v1  ;;  %v3334_v0 = vor.u32 %v3333_v20, %v12229_v41  ;;  %v3337_v1 = vshll.u32 %v12232_v25, 16  ;;  %v9987_v23 = vld [vmem:[%s11325_s29 + $0xc4] sm:$0xf] }
 0x17c   : > { %15503 = vst [vmem:[#allocation16_spill] sm:$0xff] %v12234_v19  ;;  %v2303_v26 = vsel %vm11349_vm4, %v2298_v12, %v12215_v57  ;;  %v2313_v58 = vsel %vm11349_vm4, %v2308_v55, %v2312_v8  ;;  %v2318_v57 = vshll.u32 %v9986_v56, 16  ;;  %v2324_v47 = vshll.u32 %v9987_v23, 16  ;;  %v10021_v12 = vld [vmem:[%s11325_s29 + $0xc0] sm:$0xe] }
 0x17d   : > { %v3339_v52 = vrot.slane %v3337_v1, 5  ;;  %v2328_v20 = vshrl.u32 %v9987_v23, 16  ;;  %v3345_v55 = vshll.u32 %v10174_v18, 16  ;;  %v3351_v8 = vshll.u32 %v12261_v2, 16 }
 0x17e   : > { %v2473_v43 = vpop.f32.mrf.mxu0  ;;  %v2326_v56 = vrot.slane %v2324_v47, 5 }
 0x17f   : > { %v2538_v31 = vadd.f32 %v2473_v43, %v12147_v59  ;;  %v12241_v27 = vpop.f32.mrf.mxu3  ;;  %v2766_v59 = vunpack.c.l.b16 %v2725_v62  ;;  %v2731_v62 = vrot.slane %v9987_v23, 5  ;;  %v2330_v23 = vrot.slane %v2328_v20, 4 }
 0x180   : > { %v1539_v17 = vpop.f32.mrf.mxu2 }
 0x181   : > { %v1600_v16 = vadd.f32 %v1539_v17, %v11843_v28  ;;  %v12246_v9 = vadd.f32 %v2871_v5, %v2538_v31  ;;  %10003 = vmatmul.msk.bf16.gmra.mxu0 %vm872_vm1, %v2385_v42  ;;  %v3325_v28 = vrot.slane %v3324_v44, 4  ;;  %v3335_v5 = vrot.slane %v3334_v0, 4 }
 0x182   : > { %v2784_v50 = vpack.c.b16 %v2767_v29, %v2766_v59  ;;  %v2369_v44 = vunpack.c.l.b16 %v2313_v58  ;;  %v9988_v59 = vld [vmem:[%s11325_s29 + $0xc8] sm:$0x1]  ;;  %v2320_v29 = vrot.slane %v2318_v57, 5  ;;  %v2733_v18 = vrot.slane %v2731_v62, 4 }
 0x183   : > { %15504 = vst [vmem:[#allocation17_spill] sm:$0xff] %v12246_v9  ;;  %v12257_v63 = vadd.f32 %v12165_v13, %v1600_v16  ;;  %v2876_v43 = vpop.f32.mrf.mxu1  ;;  %v2368_v13 = vunpack.c.l.b16 %v2303_v26  ;;  %v3330_v0 = vsel %vm11349_vm4, %v3325_v28, %v12229_v41  ;;  %v3340_v1 = vsel %vm11349_vm4, %v3335_v5, %v3339_v52 }
 0x184   : > { %10217 = vmatmul.msk.bf16.vlgmr.msra.gmra.mxu3 %vm872_vm1, %v3711_v7  ;;  %v2317_v16 = vrot.slane %v2315_v54, 4  ;;  %v10037_v26 = vrot.slane %v10021_v12, 9  ;;  %v2734_v58 = vrot.slane %v9988_v59, 5  ;;  %v3347_v41 = vrot.slane %v3345_v55, 5 }
 0x185   : > { %9827 = vmatmul.msk.bf16.gmra.mxu2 %vm872_vm1, %v1446_v53  ;;  %v3355_v53 = vshrl.u32 %v12261_v2, 16  ;;  %v3353_v28 = vrot.slane %v3351_v8, 5  ;;  %v3681_v52 = vunpack.c.l.b16 %v3330_v0  ;;  %v3682_v54 = vunpack.c.l.b16 %v3340_v1 }
 0x186   : > { %v2475_v42 = vpop.f32.mrf.mxu0  ;;  %10053 = vmatmul.msk.bf16.gmra.mxu1 %vm872_vm1, %v2784_v50  ;;  %v2321_v50 = vor.u32 %v2320_v29, %v2317_v16  ;;  %v2331_v47 = vor.u32 %v2330_v23, %v2326_v56  ;;  %v2334_v20 = vshll.u32 %v9988_v59, 16 }
 0x187   : > { %v12266_v31 = vadd.f32 %v2475_v42, %v12189_v32  ;;  %v12271_v7 = vpop.f32.mrf.mxu3  ;;  %v3344_v42 = vrot.slane %v3342_v6, 4  ;;  %v3357_v5 = vrot.slane %v3355_v53, 4  ;;  %v2732_v6 = vsel %vm11554_vm7, %v10037_v26, %v2731_v62  ;;  %v11036_v62 = vld [vmem:[%s11325_s29 + $0x18] sm:$0xff] }
 0x188   : > { %v1542_v17 = vpop.f32.mrf.mxu2  ;;  %v3712_v0 = vpack.c.b16 %v3682_v54, %v3681_v52  ;;  %v2332_v29 = vrot.slane %v2331_v47, 4  ;;  %v2336_v23 = vrot.slane %v2334_v20, 5 }
 0x189   : > { %v1601_v32 = vadd.f32 %v1542_v17, %v11861_v51  ;;  %v12285_v51 = vld [vmem:[%s11325_s29 + $0x38] sm:$0x1]  ;;  %v2386_v17 = vpack.c.b16 %v2369_v44, %v2368_v13  ;;  %v3348_v55 = vor.u32 %v3347_v41, %v3344_v42  ;;  %v3358_v8 = vor.u32 %v3357_v5, %v3353_v28  ;;  %v10177_v42 = vld [vmem:[%s11325_s29 + $0x3c] sm:$0xf]  ;;  %v12312_v41 = vld [vmem:[%s11325_s29 + $0x40] sm:$0xf] }
 0x18a   : > { %v3361_v53 = vshll.u32 %v12285_v51, 16 }
 0x18b   : > { %v12282_v9 = vadd.f32 %v12218_v48, %v1601_v32  ;;  %v12287_v57 = vpop.f32.mrf.mxu1  ;;  %v2735_v48 = vsel %vm11554_vm7, %v2733_v18, %v2734_v58  ;;  %v2768_v32 = vunpack.c.l.b16 %v2732_v6 }
 0x18c   : > { %v2769_v59 = vunpack.c.l.b16 %v2735_v48  ;;  %v3363_v18 = vrot.slane %v3361_v53, 5  ;;  %v3366_v48 = vshrl.u32 %v10177_v42, 16 }
 0x18e   : > { %v2478_v19 = vpop.f32.mrf.mxu0  ;;  %v2785_v58 = vpack.c.b16 %v2769_v59, %v2768_v32 }
 0x18f   : > { %v2540_v12 = vadd.f32 %v2478_v19, %v12226_v11  ;;  %v12295_v44 = vpop.f32.mrf.mxu3  ;;  %v11080_v11 = vld [vmem:[%s15471_s3 + $0x60] sm:$0xff]  ;;  %v2322_v19 = vrot.slane %v2321_v50, 4 }
 0x190   : > { %v1544_v13 = vpop.f32.mrf.mxu2  ;;  %5504 = vmatpush.bf16.msra.mxu1 %v11080_v11 }
 0x191   : > { %v1602_v1 = vadd.f32 %v1544_v13, %v11880_v24  ;;  %v12298_v16 = vadd.f32 %v2876_v43, %v2540_v12  ;;  %10004 = vmatmul.msk.bf16.gmra.mxu0 %vm872_vm1, %v2386_v17  ;;  %v3349_v24 = vrot.slane %v3348_v55, 4  ;;  %v3359_v43 = vrot.slane %v3358_v8, 4 }
 0x192   : > { %v2327_v54 = vsel %vm11349_vm4, %v2322_v19, %v2326_v56  ;;  %v3369_v12 = vshll.u32 %v10177_v42, 16  ;;  %v3375_v55 = vshll.u32 %v12312_v41, 16  ;;  %v3379_v56 = vshrl.u32 %v12312_v41, 16  ;;  %v10233_v19 = vld [vmem:[%s11325_s29 + $0x18] sm:$0xe] }
 0x193   : > { %v12306_v26 = vadd.f32 %v12241_v27, %v1602_v1  ;;  %v2881_v52 = vpop.f32.mrf.mxu1  ;;  %v2337_v27 = vsel %vm11349_vm4, %v2332_v29, %v2336_v23  ;;  %v3354_v50 = vsel %vm11349_vm4, %v3349_v24, %v3353_v28  ;;  %v3364_v47 = vsel %vm11349_vm4, %v3359_v43, %v3363_v18  ;;  %v12333_v23 = vld [vmem:[%s11325_s29 + $0x44] sm:$0x1] }
 0x194   : > { %10218 = vmatmul.msk.bf16.gmra.mxu3 %vm872_vm1, %v3712_v0  ;;  %v2371_v53 = vunpack.c.l.b16 %v2337_v27  ;;  %v3683_v28 = vunpack.c.l.b16 %v3354_v50  ;;  %v3684_v13 = vunpack.c.l.b16 %v3364_v47  ;;  %v3368_v1 = vrot.slane %v3366_v48, 4  ;;  %v11037_v47 = vld [vmem:[%s11325_s29 + $0x24] sm:$0xff] }
 0x195   : > { %10152 = vmatmul.msk.bf16.vlgmr.msra.gmra.mxu2 %vm872_vm1, %v11036_v62  ;;  %v3371_v62 = vrot.slane %v3369_v12, 5  ;;  %v3377_v32 = vrot.slane %v3375_v55, 5  ;;  %v3381_v59 = vrot.slane %v3379_v56, 4  ;;  %v3965_v29 = vrot.slane %v12123_v15, 5 }
 0x196   : > { %v2480_v5 = vpop.f32.mrf.mxu0  ;;  %10054 = vmatmul.msk.bf16.gmra.mxu1 %vm872_vm1, %v2785_v58  ;;  %v3713_v18 = vpack.c.b16 %v3684_v13, %v3683_v28  ;;  %v3385_v27 = vshll.u32 %v12333_v23, 16 }
 0x197   : > { %v12319_v17 = vadd.f32 %v2480_v5, %v12257_v63  ;;  %v1839_v6 = vpop.f32.mrf.mxu3  ;;  %v2370_v63 = vunpack.c.l.b16 %v2327_v54  ;;  %v3372_v5 = vor.u32 %v3371_v62, %v3368_v1  ;;  %v3382_v54 = vor.u32 %v3381_v59, %v3377_v32 }
 0x198   : > { %v1547_v20 = vpop.f32.mrf.mxu2 }
 0x199   : > { %v1603_v8 = vadd.f32 %v1547_v20, %v11902_v3  ;;  %v2387_v11 = vpack.c.b16 %v2371_v53, %v2370_v63  ;;  %v3967_v20 = vrot.slane %v3965_v29, 4  ;;  %v3373_v55 = vrot.slane %v3372_v5, 4 }
 0x19a   : > { %v3383_v56 = vrot.slane %v3382_v54, 4  ;;  %v10234_v54 = vld [vmem:[%s11325_s29 + $0x24] sm:$0xe] }
 0x19b   : > { %v1890_v0 = vadd.f32 %v12271_v7, %v1603_v8  ;;  %v12335_v24 = vpop.f32.mrf.mxu1  ;;  %v10249_v7 = vrot.slane %v10233_v19, 9  ;;  %v3387_v8 = vrot.slane %v3385_v27, 5  ;;  %v3378_v59 = vsel %vm11349_vm4, %v3373_v55, %v3377_v32  ;;  %v12374_v27 = vld [vmem:[%s11325_s29 + $0x50] sm:$0x1] }
 0x19d   : > { %v3966_v12 = vsel %vm11554_vm7, %v10249_v7, %v3965_v29  ;;  %v3685_v7 = vunpack.c.l.b16 %v3378_v59 }
 0x19e   : > { %v2483_v3 = vpop.f32.mrf.mxu0  ;;  %v4077_v28 = vunpack.c.l.b16 %v3966_v12  ;;  %v3972_v12 = vrot.slane %v12204_v21, 5  ;;  %v11079_v21 = vld [vmem:[%s15471_s3 + $0x58] sm:$0xff] }
 0x19f   : > { %v2542_v43 = vadd.f32 %v2483_v3, %v12282_v9  ;;  %v12338_v42 = vpop.f32.mrf.mxu3  ;;  %v3968_v9 = vrot.slane %v12150_v49, 5  ;;  %v12358_v49 = vld [vmem:[%s11325_s29 + $0x4c] sm:$0xf]  ;;  %5505 = vmatpush.bf16.msra.mxu1 %v11079_v21 }
 0x1a0   : > { %v1549_v58 = vpop.f32.mrf.mxu2 }
 0x1a1   : > { %v1604_v50 = vadd.f32 %v1549_v58, %v11924_v35  ;;  %v12342_v15 = vadd.f32 %v2881_v52, %v2542_v43  ;;  %10005 = vmatmul.msk.bf16.gmra.mxu0 %vm872_vm1, %v2387_v11  ;;  %v3969_v35 = vsel %vm11554_vm7, %v3967_v20, %v3968_v9  ;;  %v10180_v52 = vld [vmem:[%s11325_s29 + $0x48] sm:$0xf]  ;;  %v3388_v11 = vsel %vm11349_vm4, %v3383_v56, %v3387_v8 }
 0x1a2   : > { %v4078_v62 = vunpack.c.l.b16 %v3969_v35  ;;  %v3390_v19 = vshrl.u32 %v10180_v52, 16  ;;  %v3393_v3 = vshll.u32 %v10180_v52, 16  ;;  %v3399_v43 = vshll.u32 %v12358_v49, 16 }
 0x1a3   : > { %v12348_v48 = vadd.f32 %v12295_v44, %v1604_v50  ;;  %v2886_v53 = vpop.f32.mrf.mxu1  ;;  %v3686_v5 = vunpack.c.l.b16 %v3388_v11  ;;  %v10250_v35 = vrot.slane %v10234_v54, 9  ;;  %v3409_v52 = vshll.u32 %v12374_v27, 16 }
 0x1a4   : > { %10219 = vmatmul.msk.bf16.gmra.mxu3 %vm872_vm1, %v3713_v18  ;;  %v4109_v58 = vpack.c.b16 %v4078_v62, %v4077_v28  ;;  %v3392_v32 = vrot.slane %v3390_v19, 4  ;;  %v3395_v50 = vrot.slane %v3393_v3, 5  ;;  %v3975_v11 = vrot.slane %v12232_v25, 5 }
 0x1a5   : > { %10153 = vmatmul.msk.bf16.gmra.mxu2 %vm872_vm1, %v11037_v47  ;;  %v3401_v47 = vrot.slane %v3399_v43, 5  ;;  %v3714_v8 = vpack.c.b16 %v3686_v5, %v3685_v7  ;;  %v3411_v3 = vrot.slane %v3409_v52, 5  ;;  %v12405_v7 = vld [vmem:[%s11325_s29 + $0x58] sm:$0xf] }
 0x1a6   : > { %v2485_v63 = vpop.f32.mrf.mxu0  ;;  %v3396_v62 = vor.u32 %v3395_v50, %v3392_v32 }
 0x1a7   : > { %v12361_v44 = vadd.f32 %v2485_v63, %v12306_v26  ;;  %v1844_v1 = vpop.f32.mrf.mxu3  ;;  %v3403_v26 = vshrl.u32 %v12358_v49, 16 }
 0x1a8   : > { %v1552_v13 = vpop.f32.mrf.mxu2 }
 0x1a9   : > { %v1605_v29 = vadd.f32 %v1552_v13, %v11634_v45  ;;  %v3405_v20 = vrot.slane %v3403_v26, 4  ;;  %v11038_v13 = vld [vmem:[%s11325_s29 + $0x30] sm:$0xff] }
 0x1ab   : > { %v12370_v18 = vadd.f32 %v1839_v6, %v1605_v29  ;;  %v12376_v45 = vpop.f32.mrf.mxu1  ;;  %v3406_v59 = vor.u32 %v3405_v20, %v3401_v47 }
 0x1ac   : > { %15505 = vst [vmem:[#allocation18_spill] sm:$0xff] %v12376_v45 }
 0x1ad   : > { %v3407_v29 = vrot.slane %v3406_v59, 4 }
 0x1ae   : > { %v2488_v9 = vpop.f32.mrf.mxu0 }
 0x1af   : > { %v2544_v55 = vadd.f32 %v2488_v9, %v1890_v0  ;;  %v12379_v6 = vpop.f32.mrf.mxu3  ;;  %v3974_v0 = vrot.slane %v3972_v12, 4 }
 0x1b0   : > { %v1554_v56 = vpop.f32.mrf.mxu2 }
 0x1b1   : > { %v1606_v63 = vadd.f32 %v1554_v56, %v11646_v14  ;;  %v12383_v28 = vadd.f32 %v2886_v53, %v2544_v55  ;;  %10266 = vmatmul.msk.bf16.vlgmr.msra.gmra.mxu0 %vm872_vm1, %v4109_v58  ;;  %v3973_v14 = vsel %vm11554_vm7, %v10250_v35, %v3972_v12  ;;  %v3397_v53 = vrot.slane %v3396_v62, 4 }
 0x1b2   : > { %v3976_v58 = vsel %vm11554_vm7, %v3974_v0, %v3975_v11  ;;  %v4079_v32 = vunpack.c.l.b16 %v3973_v14  ;;  %v3412_v12 = vsel %vm11349_vm4, %v3407_v29, %v3411_v3  ;;  %v3979_v62 = vrot.slane %v12261_v2, 5  ;;  %v12422_v29 = vld [vmem:[%s11325_s29 + $0x5c] sm:$0x1] }
 0x1b3   : > { %v12392_v19 = vadd.f32 %v12338_v42, %v1606_v63  ;;  %v2891_v26 = vpop.f32.mrf.mxu1  ;;  %v10183_v42 = vld [vmem:[%s11325_s29 + $0x54] sm:$0xf]  ;;  %v4080_v20 = vunpack.c.l.b16 %v3976_v58  ;;  %v3402_v9 = vsel %vm11349_vm4, %v3397_v53, %v3401_v47  ;;  %v3688_v63 = vunpack.c.l.b16 %v3412_v12 }
 0x1b4   : > { %10220 = vmatmul.msk.bf16.gmra.mxu3 %vm872_vm1, %v3714_v8  ;;  %v3414_v55 = vshrl.u32 %v10183_v42, 16  ;;  %v3417_v56 = vshll.u32 %v10183_v42, 16  ;;  %v3427_v8 = vshrl.u32 %v12405_v7, 16  ;;  %v3687_v52 = vunpack.c.l.b16 %v3402_v9 }
 0x1b5   : > { %10154 = vmatmul.msk.bf16.gmra.mxu2 %vm872_vm1, %v11038_v13  ;;  %v4110_v13 = vpack.c.b16 %v4080_v20, %v4079_v32  ;;  %v3981_v32 = vrot.slane %v3979_v62, 4  ;;  %v3433_v9 = vshll.u32 %v12422_v29, 16 }
 0x1b6   : > { %v2490_v43 = vpop.f32.mrf.mxu0  ;;  %v3416_v21 = vrot.slane %v3414_v55, 4  ;;  %v3419_v0 = vrot.slane %v3417_v56, 5  ;;  %v3429_v14 = vrot.slane %v3427_v8, 4  ;;  %v10186_v55 = vld [vmem:[%s11325_s29 + $0x60] sm:$0xf] }
 0x1b7   : > { %v12401_v25 = vadd.f32 %v2490_v43, %v12348_v48  ;;  %v1849_v54 = vpop.f32.mrf.mxu3  ;;  %v3423_v48 = vshll.u32 %v12405_v7, 16  ;;  %v3715_v43 = vpack.c.b16 %v3688_v63, %v3687_v52  ;;  %v12438_v56 = vld [vmem:[%s11325_s29 + $0x64] sm:$0xf]  ;;  %v3435_v63 = vrot.slane %v3433_v9, 5 }
 0x1b8   : > { %v1557_v5 = vpop.f32.mrf.mxu2 }
 0x1b9   : > { %v1607_v50 = vadd.f32 %v1557_v5, %v11667_v37  ;;  %v10235_v37 = vld [vmem:[%s11325_s29 + $0x30] sm:$0xe]  ;;  %v3425_v11 = vrot.slane %v3423_v48, 5  ;;  %v11039_v5 = vld [vmem:[%s11325_s29 + $0x3c] sm:$0xff] }
 0x1ba   : > { %v10251_v58 = vrot.slane %v10235_v37, 9  ;;  %v3441_v37 = vshll.u32 %v10186_v55, 16 }
 0x1bb   : > { %v12414_v35 = vadd.f32 %v1844_v1, %v1607_v50  ;;  %v12418_v59 = vpop.f32.mrf.mxu1  ;;  %v3982_v50 = vrot.slane %v12285_v51, 5  ;;  %v3430_v20 = vor.u32 %v3429_v14, %v3425_v11 }
 0x1bc   : > { %15506 = vst [vmem:[#allocation19_spill] sm:$0xff] %v12418_v59 }
 0x1bd   : > { %v3983_v51 = vsel %vm11554_vm7, %v3981_v32, %v3982_v50  ;;  %v3431_v52 = vrot.slane %v3430_v20, 4 }
 0x1be   : > { %v2493_v47 = vpop.f32.mrf.mxu0 }
 0x1bf   : > { %v2546_v53 = vadd.f32 %v2493_v47, %v12370_v18  ;;  %v12424_v3 = vpop.f32.mrf.mxu3  ;;  %v3420_v18 = vor.u32 %v3419_v0, %v3416_v21  ;;  %v3447_v47 = vshll.u32 %v12438_v56, 16  ;;  %v3451_v21 = vshrl.u32 %v12438_v56, 16 }
 0x1c0   : > { %v1559_v1 = vpop.f32.mrf.mxu2 }
 0x1c1   : > { %v1608_v2 = vadd.f32 %v1559_v1, %v11684_v30  ;;  %v12427_v42 = vadd.f32 %v2891_v26, %v2546_v53  ;;  %10267 = vmatmul.msk.bf16.gmra.mxu0 %vm872_vm1, %v4110_v13  ;;  %v3980_v30 = vsel %vm11554_vm7, %v10251_v58, %v3979_v62  ;;  %v3421_v8 = vrot.slane %v3420_v18, 4  ;;  %v12459_v18 = vld [vmem:[%s11325_s29 + $0x68] sm:$0x1] }
 0x1c2   : > { %v4081_v53 = vunpack.c.l.b16 %v3980_v30  ;;  %v4082_v1 = vunpack.c.l.b16 %v3983_v51  ;;  %v3449_v32 = vrot.slane %v3447_v47, 5  ;;  %v3453_v50 = vrot.slane %v3451_v21, 4  ;;  %v11040_v21 = vld [vmem:[%s11325_s29 + $0x48] sm:$0xff] }
 0x1c3   : > { %15507 = vst [vmem:[#allocation20_spill] sm:$0xff] %v12427_v42  ;;  %v12434_v12 = vadd.f32 %v12379_v6, %v1608_v2  ;;  %v2896_v48 = vpop.f32.mrf.mxu1  ;;  %v3438_v6 = vshrl.u32 %v10186_v55, 16 }
 0x1c4   : > { %10221 = vmatmul.msk.bf16.gmra.mxu3 %vm872_vm1, %v3715_v43  ;;  %v3426_v43 = vsel %vm11349_vm4, %v3421_v8, %v3425_v11  ;;  %v4111_v20 = vpack.c.b16 %v4082_v1, %v4081_v53  ;;  %v3986_v11 = vrot.slane %v12312_v41, 5  ;;  %v11078_v41 = vld [vmem:[%s15471_s3 + $0x50] sm:$0xff]  ;;  %v3989_v53 = vrot.slane %v12333_v23, 5 }
 0x1c5   : > { %10155 = vmatmul.msk.bf16.gmra.mxu2 %vm872_vm1, %v11039_v5  ;;  %v3440_v58 = vrot.slane %v3438_v6, 4  ;;  %v3443_v5 = vrot.slane %v3441_v37, 5  ;;  %5506 = vmatpush.bf16.msra.mxu1 %v11078_v41 }
 0x1c6   : > { %v2495_v26 = vpop.f32.mrf.mxu0 }
 0x1c7   : > { %v12447_v13 = vadd.f32 %v2495_v26, %v12392_v19  ;;  %v1854_v62 = vpop.f32.mrf.mxu3  ;;  %v3436_v19 = vsel %vm11349_vm4, %v3431_v52, %v3435_v63  ;;  %v10236_v26 = vld [vmem:[%s11325_s29 + $0x3c] sm:$0xe]  ;;  %v3444_v8 = vor.u32 %v3443_v5, %v3440_v58  ;;  %v3457_v52 = vshll.u32 %v12459_v18, 16  ;;  %v12483_v58 = vld [vmem:[%s11325_s29 + $0x70] sm:$0xf] }
 0x1c8   : > { %v1562_v0 = vpop.f32.mrf.mxu2  ;;  %v3690_v9 = vunpack.c.l.b16 %v3436_v19  ;;  %v10189_v19 = vld [vmem:[%s11325_s29 + $0x6c] sm:$0xf] }
 0x1c9   : > { %15508 = vst [vmem:[#allocation21_spill] sm:$0xff] %v12447_v13  ;;  %v1609_v14 = vadd.f32 %v1562_v0, %v11707_v4  ;;  %v3689_v4 = vunpack.c.l.b16 %v3426_v43 }
 0x1cb   : > { %v12456_v2 = vadd.f32 %v1849_v54, %v1609_v14  ;;  %v12461_v30 = vpop.f32.mrf.mxu1  ;;  %v3454_v54 = vor.u32 %v3453_v50, %v3449_v32  ;;  %v3716_v0 = vpack.c.b16 %v3690_v9, %v3689_v4  ;;  %v3988_v14 = vrot.slane %v3986_v11, 4 }
 0x1cc   : > { %15509 = vst [vmem:[#allocation22_spill] sm:$0xff] %v12461_v30 }
 0x1cd   : > { %v3455_v43 = vrot.slane %v3454_v54, 4  ;;  %v3990_v23 = vsel %vm11554_vm7, %v3988_v14, %v3989_v53  ;;  %v3475_v54 = vshrl.u32 %v12483_v58, 16 }
 0x1ce   : > { %v2498_v55 = vpop.f32.mrf.mxu0 }
 0x1cf   : > { %v2548_v51 = vadd.f32 %v2498_v55, %v12414_v35  ;;  %v1856_v6 = vpop.f32.mrf.mxu3  ;;  %v10252_v35 = vrot.slane %v10236_v26, 9  ;;  %v3462_v26 = vshrl.u32 %v10189_v19, 16  ;;  %v3477_v14 = vrot.slane %v3475_v54, 4 }
 0x1d0   : > { %v1564_v63 = vpop.f32.mrf.mxu2 }
 0x1d1   : > { %v1610_v37 = vadd.f32 %v1564_v63, %v11719_v10  ;;  %v12468_v47 = vadd.f32 %v2896_v48, %v2548_v51  ;;  %10268 = vmatmul.msk.bf16.gmra.mxu0 %vm872_vm1, %v4111_v20  ;;  %v3445_v10 = vrot.slane %v3444_v8, 4  ;;  %v3459_v48 = vrot.slane %v3457_v52, 5 }
 0x1d2   : > { %v3987_v20 = vsel %vm11554_vm7, %v10252_v35, %v3986_v11  ;;  %v3465_v8 = vshll.u32 %v10189_v19, 16  ;;  %v3471_v11 = vshll.u32 %v12483_v58, 16  ;;  %v4084_v63 = vunpack.c.l.b16 %v3990_v23 }
 0x1d3   : > { %15510 = vst [vmem:[#allocation23_spill] sm:$0xff] %v12468_v47  ;;  %v12477_v1 = vadd.f32 %v12424_v3, %v1610_v37  ;;  %v2901_v50 = vpop.f32.mrf.mxu1  ;;  %v3450_v4 = vsel %vm11349_vm4, %v3445_v10, %v3449_v32  ;;  %v3460_v9 = vsel %vm11349_vm4, %v3455_v43, %v3459_v48  ;;  %v10237_v10 = vld [vmem:[%s11325_s29 + $0x48] sm:$0xe]  ;;  %v3993_v43 = vrot.slane %v12358_v49, 5  ;;  %v12502_v48 = vld [vmem:[%s11325_s29 + $0x74] sm:$0x1] }
 0x1d4   : > { %10222 = vmatmul.msk.bf16.gmra.mxu3 %vm872_vm1, %v3716_v0  ;;  %v3691_v37 = vunpack.c.l.b16 %v3450_v4  ;;  %v3464_v0 = vrot.slane %v3462_v26, 4  ;;  %v3467_v41 = vrot.slane %v3465_v8, 5  ;;  %v3473_v35 = vrot.slane %v3471_v11, 5  ;;  %v11041_v11 = vld [vmem:[%s11325_s29 + $0x54] sm:$0xff] }
 0x1d5   : > { %10156 = vmatmul.msk.bf16.gmra.mxu2 %vm872_vm1, %v11040_v21  ;;  %v3692_v21 = vunpack.c.l.b16 %v3460_v9  ;;  %v3481_v26 = vshll.u32 %v12502_v48, 16  ;;  %v3995_v54 = vrot.slane %v3993_v43, 4 }
 0x1d6   : > { %v2500_v5 = vpop.f32.mrf.mxu0  ;;  %v3468_v9 = vor.u32 %v3467_v41, %v3464_v0 }
 0x1d7   : > { %v12490_v3 = vadd.f32 %v2500_v5, %v12434_v12  ;;  %v1859_v51 = vpop.f32.mrf.mxu3  ;;  %v4083_v12 = vunpack.c.l.b16 %v3987_v20  ;;  %v3717_v20 = vpack.c.b16 %v3692_v21, %v3691_v37  ;;  %v3483_v21 = vrot.slane %v3481_v26, 5 }
 0x1d8   : > { %v1567_v55 = vpop.f32.mrf.mxu2 }
 0x1d9   : > { %15511 = vst [vmem:[#allocation24_spill] sm:$0xff] %v12490_v3  ;;  %v1611_v52 = vadd.f32 %v1567_v55, %v11740_v22  ;;  %v4112_v53 = vpack.c.b16 %v4084_v63, %v4083_v12  ;;  %v3478_v55 = vor.u32 %v3477_v14, %v3473_v35  ;;  %v3469_v63 = vrot.slane %v3468_v9, 4  ;;  %v12526_v14 = vld [vmem:[%s11325_s29 + $0x7c] sm:$0xf] }
 0x1da   : > { %v3495_v9 = vshll.u32 %v12526_v14, 16 }
 0x1db   : > { %v1898_v32 = vadd.f32 %v1854_v62, %v1611_v52  ;;  %v12504_v5 = vpop.f32.mrf.mxu1  ;;  %v10253_v62 = vrot.slane %v10237_v10, 9  ;;  %v3479_v37 = vrot.slane %v3478_v55, 4 }
 0x1dc   : > { %15512 = vst [vmem:[#allocation25_spill] sm:$0xff] %v12504_v5 }
 0x1dd   : > { %v3994_v12 = vsel %vm11554_vm7, %v10253_v62, %v3993_v43 }
 0x1de   : > { %v2503_v19 = vpop.f32.mrf.mxu0 }
 0x1df   : > { %v2550_v22 = vadd.f32 %v2503_v19, %v12456_v2  ;;  %v12507_v4 = vpop.f32.mrf.mxu3  ;;  %v3996_v2 = vrot.slane %v12374_v27, 5  ;;  %v3474_v19 = vsel %vm11349_vm4, %v3469_v63, %v3473_v35  ;;  %v3497_v63 = vrot.slane %v3495_v9, 5 }
 0x1e0   : > { %v1569_v23 = vpop.f32.mrf.mxu2  ;;  %v4003_v9 = vrot.slane %v12422_v29, 5 }
 0x1e1   : > { %v1612_v8 = vadd.f32 %v1569_v23, %v11756_v61  ;;  %v12511_v49 = vadd.f32 %v2901_v50, %v2550_v22  ;;  %10269 = vmatmul.msk.bf16.gmra.mxu0 %vm872_vm1, %v4112_v53  ;;  %v3997_v61 = vsel %vm11554_vm7, %v3995_v54, %v3996_v2  ;;  %v10192_v50 = vld [vmem:[%s11325_s29 + $0x78] sm:$0xf]  ;;  %v3484_v22 = vsel %vm11349_vm4, %v3479_v37, %v3483_v21  ;;  %v10238_v54 = vld [vmem:[%s11325_s29 + $0x54] sm:$0xe]  ;;  %v12542_v2 = vld [vmem:[%s11325_s29 + $0x80] sm:$0x1] }
 0x1e2   : > { %v4086_v43 = vunpack.c.l.b16 %v3997_v61  ;;  %v3489_v62 = vshll.u32 %v10192_v50, 16  ;;  %v4000_v61 = vrot.slane %v12405_v7, 5  ;;  %v11077_v7 = vld [vmem:[%s15471_s3 + $0x48] sm:$0xff] }
 0x1e3   : > { %15513 = vst [vmem:[#allocation26_spill] sm:$0xff] %v12511_v49  ;;  %v12516_v52 = vadd.f32 %v1856_v6, %v1612_v8  ;;  %v2906_v41 = vpop.f32.mrf.mxu1  ;;  %v4085_v6 = vunpack.c.l.b16 %v3994_v12  ;;  %v3693_v8 = vunpack.c.l.b16 %v3474_v19  ;;  %5507 = vmatpush.bf16.msra.mxu1 %v11077_v7 }
 0x1e4   : > { %10223 = vmatmul.msk.bf16.gmra.mxu3 %vm872_vm1, %v3717_v20  ;;  %v3486_v20 = vshrl.u32 %v10192_v50, 16  ;;  %v3491_v12 = vrot.slane %v3489_v62, 5 }
 0x1e5   : > { %10157 = vmatmul.msk.bf16.gmra.mxu2 %vm872_vm1, %v11041_v11  ;;  %v4113_v26 = vpack.c.b16 %v4086_v43, %v4085_v6  ;;  %v3694_v11 = vunpack.c.l.b16 %v3484_v22  ;;  %v3505_v43 = vshll.u32 %v12542_v2, 16 }
 0x1e6   : > { %v2505_v0 = vpop.f32.mrf.mxu0  ;;  %v3488_v35 = vrot.slane %v3486_v20, 4  ;;  %v11042_v20 = vld [vmem:[%s11325_s29 + $0x60] sm:$0xff] }
 0x1e7   : > { %v12529_v27 = vadd.f32 %v2505_v0, %v12477_v1  ;;  %v1864_v10 = vpop.f32.mrf.mxu3  ;;  %v3499_v1 = vshrl.u32 %v12526_v14, 16  ;;  %v3718_v6 = vpack.c.b16 %v3694_v11, %v3693_v8  ;;  %v3507_v8 = vrot.slane %v3505_v43, 5 }
 0x1e8   : > { %v1572_v53 = vpop.f32.mrf.mxu2 }
 0x1e9   : > { %15514 = vst [vmem:[#allocation27_spill] sm:$0xff] %v12529_v27  ;;  %v1613_v23 = vadd.f32 %v1572_v53, %v11780_v60  ;;  %v3501_v37 = vrot.slane %v3499_v1, 4  ;;  %v10254_v53 = vrot.slane %v10238_v54, 9 }
 0x1eb   : > { %v12538_v55 = vadd.f32 %v1859_v51, %v1613_v23  ;;  %v12544_v60 = vpop.f32.mrf.mxu1  ;;  %v3492_v23 = vor.u32 %v3491_v12, %v3488_v35  ;;  %v3502_v62 = vor.u32 %v3501_v37, %v3497_v63  ;;  %v12573_v12 = vld [vmem:[%s11325_s29 + $0x88] sm:$0xf] }
 0x1ec   : > { %15515 = vst [vmem:[#allocation28_spill] sm:$0xff] %v12544_v60 }
 0x1ee   : > { %v2508_v21 = vpop.f32.mrf.mxu0 }
 0x1ef   : > { %v2552_v50 = vadd.f32 %v2508_v21, %v1898_v32  ;;  %v12547_v51 = vpop.f32.mrf.mxu3  ;;  %v4002_v32 = vrot.slane %v4000_v61, 4 }
 0x1f0   : > { %v1574_v0 = vpop.f32.mrf.mxu2 }
 0x1f1   : > { %v1614_v19 = vadd.f32 %v1574_v0, %v11792_v33  ;;  %v12551_v22 = vadd.f32 %v2906_v41, %v2552_v50  ;;  %10270 = vmatmul.msk.bf16.gmra.mxu0 %vm872_vm1, %v4113_v26  ;;  %v4001_v33 = vsel %vm11554_vm7, %v10254_v53, %v4000_v61  ;;  %v3493_v41 = vrot.slane %v3492_v23, 4 }
 0x1f2   : > { %v3503_v26 = vrot.slane %v3502_v62, 4  ;;  %v4004_v35 = vsel %vm11554_vm7, %v4002_v32, %v4003_v9  ;;  %v4087_v50 = vunpack.c.l.b16 %v4001_v33 }
 0x1f3   : > { %15516 = vst [vmem:[#allocation29_spill] sm:$0xff] %v12551_v22  ;;  %v12560_v1 = vadd.f32 %v12507_v4, %v1614_v19  ;;  %v2911_v54 = vpop.f32.mrf.mxu1  ;;  %v10195_v4 = vld [vmem:[%s11325_s29 + $0x84] sm:$0xf]  ;;  %v4088_v0 = vunpack.c.l.b16 %v4004_v35 }
 0x1f4   : > { %10224 = vmatmul.msk.bf16.gmra.mxu3 %vm872_vm1, %v3718_v6  ;;  %v3498_v6 = vsel %vm11349_vm4, %v3493_v41, %v3497_v63  ;;  %v3508_v53 = vsel %vm11349_vm4, %v3503_v26, %v3507_v8  ;;  %v3510_v43 = vshrl.u32 %v10195_v4, 16  ;;  %v3513_v19 = vshll.u32 %v10195_v4, 16  ;;  %v10239_v63 = vld [vmem:[%s11325_s29 + $0x60] sm:$0xe]  ;;  %v12590_v4 = vld [vmem:[%s11325_s29 + $0x8c] sm:$0x1] }
 0x1f5   : > { %10158 = vmatmul.msk.bf16.gmra.mxu2 %vm872_vm1, %v11042_v20  ;;  %v3523_v20 = vshrl.u32 %v12573_v12, 16  ;;  %v3695_v62 = vunpack.c.l.b16 %v3498_v6  ;;  %v3696_v7 = vunpack.c.l.b16 %v3508_v53  ;;  %v4114_v32 = vpack.c.b16 %v4088_v0, %v4087_v50  ;;  %v11043_v0 = vld [vmem:[%s11325_s29 + $0x6c] sm:$0xff] }
 0x1f6   : > { %v2510_v11 = vpop.f32.mrf.mxu0  ;;  %v3512_v33 = vrot.slane %v3510_v43, 4  ;;  %v3515_v41 = vrot.slane %v3513_v19, 5  ;;  %v10255_v6 = vrot.slane %v10239_v63, 9 }
 0x1f7   : > { %v12569_v29 = vadd.f32 %v2510_v11, %v12516_v52  ;;  %v1869_v21 = vpop.f32.mrf.mxu3  ;;  %v3519_v52 = vshll.u32 %v12573_v12, 16  ;;  %v3525_v8 = vrot.slane %v3523_v20, 4  ;;  %v3719_v50 = vpack.c.b16 %v3696_v7, %v3695_v62  ;;  %v12610_v62 = vld [vmem:[%s11325_s29 + $0x94] sm:$0xf] }
 0x1f8   : > { %v1577_v37 = vpop.f32.mrf.mxu2  ;;  %v3516_v43 = vor.u32 %v3515_v41, %v3512_v33 }
 0x1f9   : > { %15517 = vst [vmem:[#allocation30_spill] sm:$0xff] %v12569_v29  ;;  %v1615_v61 = vadd.f32 %v1577_v37, %v11813_v38  ;;  %v4007_v38 = vrot.slane %v12438_v56, 5  ;;  %v3521_v26 = vrot.slane %v3519_v52, 5  ;;  %v3529_v52 = vshll.u32 %v12590_v4, 16  ;;  %v10207_v29 = vld [vmem:[%s11325_s29 + $0xb4] sm:$0xf] }
 0x1fb   : > { %v12582_v23 = vadd.f32 %v1864_v10, %v1615_v61  ;;  %v12587_v35 = vpop.f32.mrf.mxu1  ;;  %v4009_v53 = vrot.slane %v4007_v38, 4  ;;  %v3526_v19 = vor.u32 %v3525_v8, %v3521_v26  ;;  %v3531_v63 = vrot.slane %v3529_v52, 5 }
 0x1fc   : > { %15518 = vst [vmem:[#allocation31_spill] sm:$0xff] %v12587_v35 }
 0x1fe   : > { %v2513_v9 = vpop.f32.mrf.mxu0 }
 0x1ff   : > { %v2554_v11 = vadd.f32 %v2513_v9, %v12538_v55  ;;  %v12592_v37 = vpop.f32.mrf.mxu3  ;;  %v4010_v55 = vrot.slane %v12459_v18, 5  ;;  %v3527_v9 = vrot.slane %v3526_v19, 4  ;;  %v10240_v19 = vld [vmem:[%s11325_s29 + $0x6c] sm:$0xe] }
 0x200   : > { %v1579_v10 = vpop.f32.mrf.mxu2 }
 0x201   : > { %v1616_v56 = vadd.f32 %v1579_v10, %v11829_v40  ;;  %v12595_v61 = vadd.f32 %v2911_v54, %v2554_v11  ;;  %10271 = vmatmul.msk.bf16.gmra.mxu0 %vm872_vm1, %v4114_v32  ;;  %v4008_v40 = vsel %vm11554_vm7, %v10255_v6, %v4007_v38  ;;  %v10198_v54 = vld [vmem:[%s11325_s29 + $0x90] sm:$0xf]  ;;  %v4011_v18 = vsel %vm11554_vm7, %v4009_v53, %v4010_v55 }
 0x202   : > { %v3517_v32 = vrot.slane %v3516_v43, 4  ;;  %v3534_v8 = vshrl.u32 %v10198_v54, 16  ;;  %v3537_v11 = vshll.u32 %v10198_v54, 16  ;;  %v3543_v38 = vshll.u32 %v12610_v62, 16 }
 0x203   : > { %15519 = vst [vmem:[#allocation32_spill] sm:$0xff] %v12595_v61  ;;  %v12602_v20 = vadd.f32 %v12547_v51, %v1616_v56  ;;  %v3547_v10 = vshrl.u32 %v12610_v62, 16  ;;  %v4089_v56 = vunpack.c.l.b16 %v4008_v40  ;;  %v2916_v6 = vpop.f32.mrf.mxu1  ;;  %v4014_v43 = vrot.slane %v12483_v58, 5 }
 0x204   : > { %10225 = vmatmul.msk.bf16.gmra.mxu3 %vm872_vm1, %v3719_v50  ;;  %v3522_v53 = vsel %vm11349_vm4, %v3517_v32, %v3521_v26  ;;  %v3536_v52 = vrot.slane %v3534_v8, 4  ;;  %v3539_v54 = vrot.slane %v3537_v11, 5  ;;  %v10256_v32 = vrot.slane %v10240_v19, 9 }
 0x205   : > { %10159 = vmatmul.msk.bf16.gmra.mxu2 %vm872_vm1, %v11043_v0  ;;  %v4090_v0 = vunpack.c.l.b16 %v4011_v18  ;;  %v3549_v35 = vrot.slane %v3547_v10, 4  ;;  %v3697_v40 = vunpack.c.l.b16 %v3522_v53  ;;  %v4017_v58 = vrot.slane %v12502_v48, 5  ;;  %v15521_v10 = vld [vmem:[#allocation5_spill] sm:$0xff] }
 0x206   : > { %v2515_v7 = vpop.f32.mrf.mxu0  ;;  %v3540_v8 = vor.u32 %v3539_v54, %v3536_v52  ;;  %v4015_v48 = vsel %vm11554_vm7, %v10256_v32, %v4014_v43  ;;  %v11235_v54 = vmov 0  }
 0x207   : > { %v12615_v51 = vadd.f32 %v2515_v7, %v12560_v1  ;;  %v12617_v41 = vpop.f32.mrf.mxu3  ;;  %v3532_v1 = vsel %vm11349_vm4, %v3527_v9, %v3531_v63  ;;  %v3545_v7 = vrot.slane %v3543_v38, 5  ;;  %v4016_v9 = vrot.slane %v4014_v43, 4  ;;  %4400 = vst [vmem:[#allocation2 + $0xc] sm:$0xf] %v11235_v54  ;;  %11200 = vset.pattern.permute.xlu0 %v11235_v54  ;;  %11201 = vset.pattern.permute.xlu1 %v11235_v54 }
 0x208   : > { %v1582_v33 = vpop.f32.mrf.mxu2  ;;  %v3698_v18 = vunpack.c.l.b16 %v3532_v1  ;;  %v3541_v1 = vrot.slane %v3540_v8, 4  ;;  %4397 = vst [vmem:[#allocation2] sm:$0xf] %v11235_v54  ;;  %11202 = vset.pattern.permute.xlu2 %v11235_v54 }
 0x209   : > { %15520 = vst [vmem:[#allocation33_spill] sm:$0xff] %v12615_v51  ;;  %v1617_v50 = vadd.f32 %v1582_v33, %v11853_v39  ;;  %v4115_v39 = vpack.c.b16 %v4090_v0, %v4089_v56  ;;  %v12631_v33 = vld [vmem:[%s11325_s29 + $0x98] sm:$0x1]  ;;  %v3550_v11 = vor.u32 %v3549_v35, %v3545_v7 }
 0x20a   : > { %v3553_v38 = vshll.u32 %v12631_v33, 16  ;;  %v11044_v0 = vld [vmem:[%s11325_s29 + $0x78] sm:$0xff]  ;;  %v3720_v53 = vpack.c.b16 %v3698_v18, %v3697_v40  ;;  %4398 = vst [vmem:[#allocation2 + $0x4] sm:$0xf] %v11235_v54  ;;  %v4091_v18 = vunpack.c.l.b16 %v4015_v48 }
 0x20b   : > { %v12626_v55 = vadd.f32 %v1869_v21, %v1617_v50  ;;  %v3551_v19 = vrot.slane %v3550_v11, 4  ;;  %4399 = vst [vmem:[#allocation2 + $0x8] sm:$0x1] %v11235_v54  ;;  %v10241_v11 = vld [vmem:[%s11325_s29 + $0x78] sm:$0xe] }
 0x20c   : > { %v3555_v52 = vrot.slane %v3553_v38, 5  ;;  %4401 = vst [vmem:[#allocation2 + $0x10] sm:$0xf] %v11235_v54  ;;  %v10257_v48 = vrot.slane %v10241_v11, 9 }
 0x20d   : > { %4402 = vst [vmem:[#allocation2 + $0x14] sm:$0x1] %v11235_v54 }
 0x20e   : > { %v2518_v51 = vpop.f32.mrf.mxu0  ;;  %4403 = vst [vmem:[#allocation2 + $0x18] sm:$0xf] %v11235_v54 }
 0x20f   : > { %v2556_v26 = vadd.f32 %v2518_v51, %v12582_v23  ;;  %v12634_v63 = vpop.f32.mrf.mxu3  ;;  %v11076_v23 = vld [vmem:[%s15471_s3 + $0x40] sm:$0xff]  ;;  %v12651_v51 = vpop.f32.mrf.mxu1  ;;  %4404 = vst [vmem:[#allocation2 + $0x1c] sm:$0xf] %v11235_v54 }
 0x210   : > { %v1584_v21 = vpop.f32.mrf.mxu2  ;;  %5508 = vmatpush.bf16.msra.mxu1 %v11076_v23  ;;  %15523 = vst [vmem:[#allocation34_spill] sm:$0xff] %v12651_v51 }
 0x211   : > { %v1618_v50 = vadd.f32 %v1584_v21, %v15521_v10  ;;  %v12639_v56 = vadd.f32 %v2916_v6, %v2556_v26  ;;  %10272 = vmatmul.msk.bf16.gmra.mxu0 %vm872_vm1, %v4115_v39  ;;  %v4018_v6 = vsel %vm11554_vm7, %v4016_v9, %v4017_v58  ;;  %v12664_v39 = vld [vmem:[%s11325_s29 + $0xa0] sm:$0xf]  ;;  %v3546_v21 = vsel %vm11349_vm4, %v3541_v1, %v3545_v7  ;;  %v12698_v51 = vld [vmem:[#allocation2 + $0x4] sm:$0xf] }
 0x212   : > { %v4092_v26 = vunpack.c.l.b16 %v4018_v6  ;;  %v3556_v58 = vsel %vm11349_vm4, %v3551_v19, %v3555_v52  ;;  %v3567_v38 = vshll.u32 %v12664_v39, 16  ;;  %v3571_v10 = vshrl.u32 %v12664_v39, 16  ;;  %4405 = vst [vmem:[#allocation2 + $0x20] sm:$0x1] %v11235_v54  ;;  %v4924_v6 = vld [vmem:[#allocation2] sm:$0xf] }
 0x213   : > { %15522 = vst [vmem:[#allocation5_spill] sm:$0xff] %v12639_v56  ;;  %v12649_v35 = vadd.f32 %v12592_v37, %v1618_v50  ;;  %v10201_v37 = vld [vmem:[%s11325_s29 + $0x9c] sm:$0xf]  ;;  %v4021_v50 = vrot.slane %v12526_v14, 5  ;;  %v3700_v7 = vunpack.c.l.b16 %v3556_v58  ;;  %v4992_v61 = vshll.u32 %v4924_v6, 16 }
 0x214   : > { %10226 = vmatmul.msk.bf16.gmra.mxu3 %vm872_vm1, %v3720_v53  ;;  %v3558_v8 = vshrl.u32 %v10201_v37, 16  ;;  %v12688_v53 = vld [vmem:[%s11325_s29 + $0xa4] sm:$0x1]  ;;  %v4116_v23 = vpack.c.b16 %v4092_v26, %v4091_v18  ;;  %4406 = vst [vmem:[#allocation2 + $0x24] sm:$0xf] %v11235_v54  ;;  %v12692_v52 = vrot.slane %v3567_v38, 5 }
 0x215   : > { %10160 = vmatmul.msk.bf16.gmra.mxu2 %vm872_vm1, %v11044_v0  ;;  %v3699_v0 = vunpack.c.l.b16 %v3546_v21  ;;  %4407 = vst [vmem:[#allocation2 + $0x28] sm:$0xf] %v11235_v54  ;;  %v4023_v21 = vrot.slane %v4021_v50, 4  ;;  %v3577_v58 = vshll.u32 %v12688_v53, 16  ;;  %v4989_v18 = vshrl.u32 %v4924_v6, 16 }
 0x216   : > { %v2520_v43 = vpop.f32.mrf.mxu0  ;;  %v3560_v1 = vrot.slane %v3558_v8, 4  ;;  %4408 = vst [vmem:[#allocation2 + $0x2c] sm:$0x1] %v11235_v54  ;;  %v4972_v8 = vld [vmem:[#allocation2 + $0x8] sm:$0x1]  ;;  %v4994_v60 = vrot.slane %v4992_v61, 5 }
 0x217   : > { %v12668_v40 = vadd.f32 %v2520_v43, %v12602_v20  ;;  %v12673_v9 = vpop.f32.mrf.mxu3  ;;  %v3561_v20 = vshll.u32 %v10201_v37, 16  ;;  %v3573_v37 = vrot.slane %v3571_v10, 4  ;;  %v2921_v14 = vpop.f32.mrf.mxu1  ;;  %v3721_v11 = vpack.c.b16 %v3700_v7, %v3699_v0  ;;  %4409 = vst [vmem:[#allocation2 + $0x30] sm:$0xf] %v11235_v54  ;;  %v11045_v0 = vld [vmem:[%s11325_s29 + $0x84] sm:$0xff] }
 0x218   : > { %v12671_v32 = vpop.f32.mrf.mxu2  ;;  %v4022_v10 = vsel %vm11554_vm7, %v10257_v48, %v4021_v50  ;;  %v4991_v56 = vrot.slane %v4989_v18, 4  ;;  %4410 = vst [vmem:[#allocation2 + $0x34] sm:$0xf] %v11235_v54  ;;  %v4998_v50 = vshll.u32 %v12698_v51, 16  ;;  %v5008_v48 = vshll.u32 %v4972_v8, 16 }
 0x219   : > { %15524 = vst [vmem:[#allocation35_spill] sm:$0xff] %v12668_v40  ;;  %v3563_v19 = vrot.slane %v3561_v20, 5  ;;  %v4024_v40 = vrot.slane %v12542_v2, 5  ;;  %v5002_v2 = vshrl.u32 %v12698_v51, 16  ;;  %v3579_v6 = vrot.slane %v3577_v58, 5 }
 0x21a   : > { %4411 = vst [vmem:[#allocation2 + $0x38] sm:$0x1] %v11235_v54  ;;  %v4093_v61 = vunpack.c.l.b16 %v4022_v10  ;;  %v12726_v58 = vld [vmem:[%s11325_s29 + $0xac] sm:$0xf] }
 0x21b   : > { %v3564_v7 = vor.u32 %v3563_v19, %v3560_v1  ;;  %4412 = vst [vmem:[#allocation2 + $0x3c] sm:$0xf] %v11235_v54  ;;  %v4995_v1 = vor.u32 %v4994_v60, %v4991_v56  ;;  %v5000_v19 = vrot.slane %v4998_v50, 5  ;;  %v4028_v60 = vrot.slane %v12573_v12, 5  ;;  %v10242_v50 = vld [vmem:[%s11325_s29 + $0x84] sm:$0xe] }
 0x21c   : > { %4413 = vst [vmem:[#allocation2 + $0x40] sm:$0xf] %v11235_v54 }
 0x21d   : > { %4414 = vst [vmem:[#allocation2 + $0x44] sm:$0x1] %v11235_v54  ;;  %v3565_v18 = vrot.slane %v3564_v7, 4  ;;  %v4996_v56 = vrot.slane %v4995_v1, 4 }
 0x21e   : > { %v2523_v43 = vpop.f32.mrf.mxu0  ;;  %4415 = vst [vmem:[#allocation2 + $0x48] sm:$0xf] %v11235_v54 }
 0x21f   : > { %v2558_v26 = vadd.f32 %v2523_v43, %v12626_v55  ;;  %v12702_v38 = vpop.f32.mrf.mxu3  ;;  %v3574_v43 = vor.u32 %v3573_v37, %v12692_v52  ;;  %v5004_v37 = vrot.slane %v5002_v2, 4  ;;  %4416 = vst [vmem:[#allocation2 + $0x4c] sm:$0xf] %v11235_v54  ;;  %v5001_v12 = vsel %vm11349_vm4, %v4996_v56, %v5000_v19 }
 0x220   : > { %v12700_v20 = vpop.f32.mrf.mxu2  ;;  %4417 = vst [vmem:[#allocation2 + $0x50] sm:$0x1] %v11235_v54 }
 0x221   : > { %v12708_v55 = vadd.f32 %v2921_v14, %v2558_v26  ;;  %10273 = vmatmul.msk.bf16.gmra.mxu0 %vm872_vm1, %v4116_v23  ;;  %v4025_v23 = vsel %vm11554_vm7, %v4023_v21, %v4024_v40  ;;  %v10204_v14 = vld [vmem:[%s11325_s29 + $0xa8] sm:$0xf]  ;;  %v3575_v26 = vrot.slane %v3574_v43, 4  ;;  %v5005_v40 = vor.u32 %v5004_v37, %v5000_v19  ;;  %4418 = vst [vmem:[#allocation2 + $0x54] sm:$0xf] %v11235_v54 }
 0x222   : > { %v5010_v21 = vrot.slane %v5008_v48, 5  ;;  %v3582_v10 = vshrl.u32 %v10204_v14, 16  ;;  %v3585_v7 = vshll.u32 %v10204_v14, 16  ;;  %v3595_v48 = vshrl.u32 %v12726_v58, 16  ;;  %v15527_v37 = vld [vmem:[#allocation6_spill] sm:$0xff] }
 0x223   : > { %15525 = vst [vmem:[#allocation36_spill] sm:$0xff] %v12708_v55  ;;  %v5006_v1 = vrot.slane %v5005_v40, 4  ;;  %v3570_v14 = vsel %vm11349_vm4, %v3565_v18, %v12692_v52  ;;  %v3580_v19 = vsel %vm11349_vm4, %v3575_v26, %v3579_v6  ;;  %v5389_v40 = vunpack.c.l.b16 %v5001_v12 }
 0x224   : > { %10227 = vmatmul.msk.bf16.gmra.mxu3 %vm872_vm1, %v3721_v11  ;;  %v4094_v11 = vunpack.c.l.b16 %v4025_v23  ;;  %v3213_v23 = vadd.f32 %v12671_v32, %v15527_v37  ;;  %4419 = vst [vmem:[#allocation2 + $0x58] sm:$0xf] %v11235_v54  ;;  %v4030_v32 = vrot.slane %v4028_v60, 4  ;;  %v4031_v37 = vrot.slane %v12590_v4, 5 }
 0x225   : > { %10161 = vmatmul.msk.bf16.gmra.mxu2 %vm872_vm1, %v11045_v0  ;;  %v5011_v56 = vsel %vm11349_vm4, %v5006_v1, %v5010_v21  ;;  %4420 = vst [vmem:[#allocation2 + $0x5c] sm:$0x1] %v11235_v54  ;;  %v3584_v52 = vrot.slane %v3582_v10, 4  ;;  %v3587_v18 = vrot.slane %v3585_v7, 5  ;;  %v3597_v6 = vrot.slane %v3595_v48, 4  ;;  %v15528_v48 = vld [vmem:[#allocation7_spill] sm:$0xff] }
 0x226   : > { %v2525_v8 = vpop.f32.mrf.mxu0  ;;  %v5390_v55 = vunpack.c.l.b16 %v5011_v56  ;;  %4421 = vst [vmem:[#allocation2 + $0x60] sm:$0xf] %v11235_v54  ;;  %v3867_v26 = vadd.f32 %v12617_v41, %v3213_v23  ;;  %v3701_v4 = vunpack.c.l.b16 %v3570_v14  ;;  %v3702_v21 = vunpack.c.l.b16 %v3580_v19  ;;  %v11091_v19 = vld [vmem:[%s15471_s3 + $0xb8] sm:$0xff] }
 0x227   : > { %v12731_v0 = vadd.f32 %v2525_v8, %v12649_v35  ;;  %v12737_v2 = vpop.f32.mrf.mxu3  ;;  %v3591_v35 = vshll.u32 %v12726_v58, 16  ;;  %v10258_v8 = vrot.slane %v10242_v50, 9  ;;  %4422 = vst [vmem:[#allocation2 + $0x64] sm:$0xf] %v11235_v54  ;;  %v12769_v50 = vld [vmem:[%s11325_s29 + $0xb0] sm:$0x1]  ;;  %v3214_v23 = vadd.f32 %v12700_v20, %v15528_v48  ;;  %6112 = vmatpush.bf16.msrb.mxu3 %v11091_v19 }
 0x228   : > { %v12735_v43 = vpop.f32.mrf.mxu2  ;;  %4423 = vst [vmem:[#allocation2 + $0x68] sm:$0x1] %v11235_v54  ;;  %v3606_v7 = vshrl.u32 %v10207_v29, 16  ;;  %v3609_v12 = vshll.u32 %v10207_v29, 16 }
 0x229   : > { %15526 = vst [vmem:[#allocation37_spill] sm:$0xff] %v12731_v0  ;;  %v4117_v0 = vpack.c.b16 %v4094_v11, %v4093_v61  ;;  %v12759_v22 = vrot.slane %v3591_v35, 5  ;;  %v12765_v61 = vld [vmem:[%s15470_s2] ss:$0 sm:$0xff]  ;;  %v5421_v11 = vpack.c.b16 %v5390_v55, %v5389_v40  ;;  %v4029_v41 = vsel %vm11554_vm7, %v10258_v8, %v4028_v60  ;;  %v12778_v55 = vld [vmem:[%s11325_s29 + $0xb8] sm:$0xf] }
 0x22a   : > { %4424 = vst [vmem:[#allocation2 + $0x6c] sm:$0xf] %v11235_v54  ;;  %v4032_v35 = vsel %vm11554_vm7, %v4030_v32, %v4031_v37  ;;  %v11075_v60 = vld [vmem:[%s15471_s3 + $0x38] sm:$0xff]  ;;  %v3588_v8 = vor.u32 %v3587_v18, %v3584_v52  ;;  %v3601_v40 = vshll.u32 %v12769_v50, 16  ;;  %v11046_v32 = vld [vmem:[%s11325_s29 + $0x90] sm:$0xff]  ;;  %v3722_v37 = vpack.c.b16 %v3702_v21, %v3701_v4 }
 0x22b   : > { %5509 = vmatmul.bf16.vlgmr.msra.gmra.mxu1 %v5421_v11  ;;  %4425 = vst [vmem:[#allocation2 + $0x70] sm:$0xf] %v11235_v54  ;;  %v3598_v56 = vor.u32 %v3597_v6, %v12759_v22  ;;  %v4035_v11 = vrot.slane %v12610_v62, 5  ;;  %5734 = vmatpush.bf16.msrb.mxu2 %v11075_v60  ;;  %v3608_v52 = vrot.slane %v3606_v7, 4  ;;  %v3611_v18 = vrot.slane %v3609_v12, 5 }
 0x22c   : > { %4426 = vst [vmem:[#allocation2 + $0x74] sm:$0x1] %v11235_v54  ;;  %v3615_v6 = vshll.u32 %v12778_v55, 16  ;;  %v4095_v48 = vunpack.c.l.b16 %v4029_v41  ;;  %v4096_v5 = vunpack.c.l.b16 %v4032_v35  ;;  %v3589_v62 = vrot.slane %v3588_v8, 4 }
 0x22d   : > { %4427 = vst [vmem:[#allocation2 + $0x78] sm:$0xf] %v11235_v54  ;;  %v3599_v4 = vrot.slane %v3598_v56, 4  ;;  %v3603_v21 = vrot.slane %v3601_v40, 5  ;;  %v4037_v12 = vrot.slane %v4035_v11, 4  ;;  %v4038_v41 = vrot.slane %v12631_v33, 5 }
 0x22e   : > { %v4185_v10 = vpop.f32.mrf.mxu0  ;;  %4428 = vst [vmem:[#allocation2 + $0x7c] sm:$0xf] %v11235_v54  ;;  %v3612_v19 = vor.u32 %v3611_v18, %v3608_v52  ;;  %v12816_v40 = vld [vmem:[%s11325_s29 + $0xbc] sm:$0x1]  ;;  %v3594_v52 = vsel %vm11349_vm4, %v3589_v62, %v12759_v22 }
 0x22f   : > { %v4265_v1 = vadd.f32 %v4185_v10, %v3867_v26  ;;  %v12785_v29 = vpop.f32.mrf.mxu3  ;;  %v10243_v26 = vld [vmem:[%s11325_s29 + $0x90] sm:$0xe]  ;;  %v3619_v10 = vshrl.u32 %v12778_v55, 16  ;;  %4429 = vst [vmem:[#allocation2 + $0x80] sm:$0x1] %v11235_v54  ;;  %v3604_v18 = vsel %vm11349_vm4, %v3599_v4, %v3603_v21  ;;  %v4039_v22 = vsel %vm11554_vm7, %v4037_v12, %v4038_v41 }
 0x230   : > { %v12782_v14 = vpop.f32.mrf.mxu2  ;;  %4430 = vst [vmem:[#allocation2 + $0x84] sm:$0xf] %v11235_v54  ;;  %v10259_v7 = vrot.slane %v10243_v26, 9  ;;  %v4118_v26 = vpack.c.b16 %v4096_v5, %v4095_v48  ;;  %v11123_v5 = vld [vmem:[%s15471_s3 + $0x138] sm:$0xff]  ;;  %v3613_v48 = vrot.slane %v3612_v19, 4  ;;  %v3625_v62 = vshll.u32 %v12816_v40, 16 }
 0x231   : > { %v4301_v20 = vadd.f32 %v12765_v61, %v4265_v1  ;;  %10274 = vmatmul.msk.bf16.gmra.mxu0 %vm872_vm1, %v4117_v0  ;;  %v3868_v0 = vadd.f32 %v12634_v63, %v3214_v23  ;;  %4431 = vst [vmem:[#allocation2 + $0x88] sm:$0xf] %v11235_v54  ;;  %v12812_v63 = vrot.slane %v3615_v6, 5  ;;  %v3621_v23 = vrot.slane %v3619_v10, 4  ;;  %7108 = vmatpush.bf16.msrb.mxu1 %v11123_v5  ;;  %v4810_v41 = vld [vmem:[#allocation2 + $0xc] sm:$0xf] }
 0x232   : > { %4432 = vst [vmem:[#allocation2 + $0x8c] sm:$0x1] %v11235_v54  ;;  %v3704_v19 = vunpack.c.l.b16 %v3604_v18  ;;  %v3627_v5 = vrot.slane %v3625_v62, 5  ;;  %v4042_v62 = vrot.slane %v12664_v39, 5 }
 0x233   : > { %v4333_v1 = vmul.f32 0.2, %v4301_v20  ;;  %4433 = vst [vmem:[#allocation2 + $0x90] sm:$0xf] %v11235_v54  ;;  %v3618_v18 = vsel %vm11349_vm4, %v3613_v48, %v12812_v63 }
 0x234   : > { %10228 = vmatmul.msk.bf16.gmra.mxu3 %vm872_vm1, %v3722_v37  ;;  %4434 = vst [vmem:[#allocation2 + $0x94] sm:$0xf] %v11235_v54 }
 0x235   : > { %v4365_v60 = vmax.f32 %v4301_v20, %v4333_v1  ;;  %10162 = vmatmul.msk.bf16.gmra.mxu2 %vm872_vm1, %v11046_v32  ;;  %v15529_v20 = vld [vmem:[#allocation8_spill] sm:$0xff]  ;;  %v4036_v1 = vsel %vm11554_vm7, %v10259_v7, %v4035_v11  ;;  %4435 = vst [vmem:[#allocation2 + $0x98] sm:$0x1] %v11235_v54  ;;  %v15532_v7 = vld [vmem:[#allocation9_spill] sm:$0xff] }
 0x236   : > { %v4187_v35 = vpop.f32.mrf.mxu0  ;;  %v3215_v32 = vadd.f32 %v12735_v43, %v15529_v20  ;;  %v11115_v43 = vld [vmem:[%s15471_s3 + $0xf8] sm:$0xff]  ;;  %4436 = vst [vmem:[#allocation2 + $0x9c] sm:$0xf] %v11235_v54  ;;  %v3216_v12 = vadd.f32 %v12782_v14, %v15532_v7  ;;  %v15533_v7 = vld [vmem:[#allocation10_spill] sm:$0xff] }
 0x237   : > { %v4451_v8 = vpack.c.bf16 %v4365_v60, %v4365_v60  ;;  %v4266_v56 = vadd.f32 %v4187_v35, %v3868_v0  ;;  %v12821_v37 = vpop.f32.mrf.mxu3  ;;  %v3622_v0 = vor.u32 %v3621_v23, %v12812_v63  ;;  %v12846_v35 = vunpack.c.l.b16 %v3594_v52  ;;  %6426 = vmatpush.bf16.msrb.mxu0 %v11115_v43  ;;  %4437 = vst [vmem:[#allocation2 + $0xa0] sm:$0xf] %v11235_v54 }
 0x238   : > { %v3143_v33 = vpop.f32.mrf.mxu2  ;;  %v4097_v23 = vunpack.c.l.b16 %v4036_v1  ;;  %4438 = vst [vmem:[#allocation2 + $0xa4] sm:$0x1] %v11235_v54  ;;  %v3870_v48 = vadd.f32 %v12702_v38, %v3216_v12 }
 0x239   : > { %v4487_v6 = vshrl.u32 %v4451_v8, 16  ;;  %v4302_v10 = vadd.f32 %v12765_v61, %v4266_v56  ;;  %v4490_v21 = vshll.u32 %v4451_v8, 16  ;;  %v4098_v8 = vunpack.c.l.b16 %v4039_v22  ;;  %v10210_v56 = vld [vmem:[%s11325_s29 + $0xc0] sm:$0xf]  ;;  %4439 = vst [vmem:[#allocation2 + $0xa8] sm:$0xf] %v11235_v54 }
 0x23a   : > { %v3623_v43 = vrot.slane %v3622_v0, 4  ;;  %4440 = vst [vmem:[#allocation2 + $0xac] sm:$0xf] %v11235_v54  ;;  %v3723_v63 = vpack.c.b16 %v3704_v19, %v12846_v35  ;;  %v12888_v35 = vld [vmem:[%s11325_s29 + $0xc4] sm:$0xf]  ;;  %v3633_v19 = vshll.u32 %v10210_v56, 16 }
 0x23b   : > { %v12843_v4 = vrot.slane %v4487_v6, 7  ;;  %v4334_v60 = vmul.f32 0.2, %v4302_v10  ;;  %v3869_v6 = vadd.f32 %v12673_v9, %v3215_v32  ;;  %v3630_v9 = vshrl.u32 %v10210_v56, 16  ;;  %4441 = vst [vmem:[#allocation2 + $0xb0] sm:$0x1] %v11235_v54 }
 0x23c   : > { %v12875_v0 = vpack.c.b16 %v4098_v8, %v4097_v23  ;;  %4442 = vst [vmem:[#allocation2 + $0xb4] sm:$0xf] %v11235_v54  ;;  %v3628_v8 = vsel %vm11349_vm4, %v3623_v43, %v3627_v5  ;;  %v3639_v56 = vshll.u32 %v12888_v35, 16  ;;  %v4045_v5 = vrot.slane %v12688_v53, 5 }
 0x23d   : > { %v4492_v20 = vor.u32 %v4490_v21, %v12843_v4  ;;  %v4366_v52 = vmax.f32 %v4302_v10, %v4334_v60  ;;  %v10244_v21 = vld [vmem:[%s11325_s29 + $0x9c] sm:$0xe]  ;;  %v4493_v38 = vrot.slane %v12843_v4, 4  ;;  %4443 = vst [vmem:[#allocation2 + $0xb8] sm:$0xf] %v11235_v54 }
 0x23e   : > { %v4190_v14 = vpop.f32.mrf.mxu0  ;;  %v10260_v12 = vrot.slane %v10244_v21, 9  ;;  %4444 = vst [vmem:[#allocation2 + $0xbc] sm:$0x1] %v11235_v54 }
 0x23f   : > { %v4811_v1 = vsel %vm12850_vm10, %v4492_v20, %v4810_v41  ;;  %v4452_v10 = vpack.c.bf16 %v4366_v52, %v4366_v52  ;;  %v4267_v22 = vadd.f32 %v4190_v14, %v3869_v6  ;;  %v12871_v60 = vpop.f32.mrf.mxu3  ;;  %v12880_v41 = vadd.f32 %v3143_v33, %v15533_v7  ;;  %v11047_v6 = vld [vmem:[%s11325_s29 + $0x9c] sm:$0xff]  ;;  %4445 = vst [vmem:[#allocation2 + $0xc0] sm:$0xf] %v11235_v54 }
 0x240   : > { %4812 = vst [vmem:[#allocation2 + $0xc] sm:$0xf] %v4811_v1  ;;  %v12869_v32 = vpop.f32.mrf.mxu2  ;;  %v12885_v14 = vunpack.c.l.b16 %v3618_v18  ;;  %v4044_v18 = vrot.slane %v4042_v62, 4  ;;  %v3635_v1 = vrot.slane %v3633_v19, 5  ;;  %v12918_v19 = vunpack.c.l.b16 %v3628_v8 }
 0x241   : > { %v4495_v20 = vshrl.u32 %v4452_v10, 16  ;;  %v4303_v52 = vadd.f32 %v12765_v61, %v4267_v22  ;;  %10275 = vmatmul.msk.bf16.gmra.mxu0 %vm872_vm1, %v4118_v26  ;;  %v4498_v39 = vshll.u32 %v4452_v10, 16  ;;  %v3632_v26 = vrot.slane %v3630_v9, 4  ;;  %v12909_v9 = vld [vmem:[%s11325_s29 + $0xc8] sm:$0x1] }
 0x242   : > { %v3643_v10 = vshrl.u32 %v12888_v35, 16  ;;  %4446 = vst [vmem:[#allocation2 + $0xc4] sm:$0xf] %v11235_v54 }
 0x243   : > { %v4497_v33 = vrot.slane %v4495_v20, 7  ;;  %v4335_v23 = vmul.f32 0.2, %v4303_v52  ;;  %v4816_v20 = vld [vmem:[#allocation2 + $0x14] sm:$0x1]  ;;  %v3636_v49 = vor.u32 %v3635_v1, %v3632_v26  ;;  %v4046_v26 = vsel %vm11554_vm7, %v4044_v18, %v4045_v5 }
 0x244   : > { %10229 = vmatmul.msk.bf16.gmra.mxu3 %vm872_vm1, %v3723_v63  ;;  %v12922_v63 = vrot.slane %v3639_v56, 5  ;;  %v3645_v53 = vrot.slane %v3643_v10, 4  ;;  %4447 = vst [vmem:[#allocation2 + $0xc8] sm:$0x1] %v11235_v54  ;;  %v15538_v1 = vld [vmem:[#allocation11_spill] sm:$0xff]  ;;  %v4100_v18 = vunpack.c.l.b16 %v4046_v26 }
 0x245   : > { %v4500_v22 = vor.u32 %v4498_v39, %v4497_v33  ;;  %v4502_v21 = vrot.slane %v4497_v33, 4  ;;  %v4367_v43 = vmax.f32 %v4303_v52, %v4335_v23  ;;  %10163 = vmatmul.msk.bf16.gmra.mxu2 %vm872_vm1, %v11047_v6  ;;  %v4043_v52 = vsel %vm11554_vm7, %v10260_v12, %v4042_v62  ;;  %4448 = vst [vmem:[#allocation2 + $0xcc] sm:$0xf] %v11235_v54 }
 0x246   : > { %v4192_v39 = vpop.f32.mrf.mxu0  ;;  %v3646_v62 = vor.u32 %v3645_v53, %v12922_v63  ;;  %v3649_v12 = vshll.u32 %v12909_v9, 16  ;;  %4449 = vst [vmem:[#allocation2 + $0xd0] sm:$0xf] %v11235_v54  ;;  %v4099_v59 = vunpack.c.l.b16 %v4043_v52  ;;  %v11090_v52 = vld [vmem:[%s15471_s3 + $0xb0] sm:$0xff] }
 0x247   : > { %v4501_v6 = vsel %vm12898_vm13, %v4493_v38, %v4500_v22  ;;  %v4453_v33 = vpack.c.bf16 %v4367_v43, %v4367_v43  ;;  %v4268_v23 = vadd.f32 %v4192_v39, %v3870_v48  ;;  %v4926_v27 = vld [vmem:[#allocation2 + $0xc] sm:$0xf]  ;;  %v12928_v8 = vpop.f32.mrf.mxu3  ;;  %v4817_v38 = vsel %vm12914_vm14, %v4502_v21, %v4816_v20  ;;  %4450 = vst [vmem:[#allocation2 + $0xd4] sm:$0x1] %v11235_v54  ;;  %v4819_v20 = vld [vmem:[#allocation2 + $0x18] sm:$0xf] }
 0x248   : > { %v3148_v30 = vpop.f32.mrf.mxu2  ;;  %v5013_v3 = vshrl.u32 %v4926_v27, 16  ;;  %v5016_v47 = vshll.u32 %v4926_v27, 16  ;;  %v3218_v27 = vadd.f32 %v12869_v32, %v15538_v1  ;;  %4813 = vst [vmem:[#allocation2 + $0x10] sm:$0xf] %v4501_v6  ;;  %v3637_v21 = vrot.slane %v3636_v49, 4  ;;  %6113 = vmatpush.bf16.msrb.mxu3 %v11090_v52 }
 0x249   : > { %v4504_v56 = vshrl.u32 %v4453_v33, 16  ;;  %v4304_v48 = vadd.f32 %v12765_v61, %v4268_v23  ;;  %v4507_v10 = vshll.u32 %v4453_v33, 16  ;;  %4818 = vst [vmem:[#allocation2 + $0x14] sm:$0x1] %v4817_v38  ;;  %v15539_v23 = vld [vmem:[#allocation12_spill] sm:$0xff]  ;;  %v3647_v5 = vrot.slane %v3646_v62, 4 }
 0x24a   : > { %v5015_v22 = vrot.slane %v5013_v3, 4  ;;  %v5018_v43 = vrot.slane %v5016_v47, 5  ;;  %v3219_v13 = vadd.f32 %v3148_v30, %v15539_v23  ;;  %v3651_v54 = vrot.slane %v3649_v12, 5  ;;  %v10245_v33 = vld [vmem:[%s11325_s29 + $0xa8] sm:$0xe] }
 0x24b   : > { %v12941_v39 = vrot.slane %v4504_v56, 7  ;;  %v4336_v53 = vmul.f32 0.2, %v4304_v48  ;;  %v3871_v47 = vadd.f32 %v12737_v2, %v12880_v41  ;;  %v3724_v6 = vpack.c.b16 %v12918_v19, %v12885_v14 }
 0x24c   : > { %v5019_v3 = vor.u32 %v5018_v43, %v5015_v22  ;;  %v3872_v30 = vadd.f32 %v12785_v29, %v3218_v27  ;;  %v4049_v62 = vrot.slane %v12726_v58, 5  ;;  %v3642_v2 = vsel %vm11349_vm4, %v3637_v21, %v12922_v63 }
 0x24d   : > { %v4509_v42 = vor.u32 %v4507_v10, %v12941_v39  ;;  %v4368_v32 = vmax.f32 %v4304_v48, %v4336_v53  ;;  %v11048_v48 = vld [vmem:[%s11325_s29 + $0xa8] sm:$0xff]  ;;  %v12964_v29 = vadd.f32 %v12821_v37, %v3219_v13  ;;  %v12966_v58 = vpack.c.b16 %v4100_v18, %v4099_v59 }
 0x24e   : > { %v4195_v49 = vpop.f32.mrf.mxu0  ;;  %v3652_v19 = vsel %vm11349_vm4, %v3647_v5, %v3651_v54  ;;  %v10261_v26 = vrot.slane %v10245_v33, 9  ;;  %v4510_v63 = vrot.slane %v12941_v39, 4  ;;  %v12977_v13 = vrot.slane %v5019_v3, 4  ;;  %v11089_v59 = vld [vmem:[%s15471_s3 + $0xa8] sm:$0xff]  ;;  %v4823_v5 = vld [vmem:[#allocation2 + $0x20] sm:$0x1] }
 0x24f   : > { %v4820_v12 = vsel %vm12850_vm10, %v4509_v42, %v4819_v20  ;;  %v4454_v38 = vpack.c.bf16 %v4368_v32, %v4368_v32  ;;  %v4269_v56 = vadd.f32 %v4195_v49, %v3871_v47  ;;  %v12961_v14 = vpop.f32.mrf.mxu3  ;;  %v11074_v42 = vld [vmem:[%s15471_s3 + $0x30] sm:$0xff]  ;;  %v10213_v37 = vld [vmem:[%s11325_s29 + $0xcc] sm:$0xf]  ;;  %v12985_v43 = vunpack.c.l.b16 %v3642_v2  ;;  %6114 = vmatpush.bf16.msrb.mxu3 %v11089_v59  ;;  %v15540_v54 = vld [vmem:[#allocation13_spill] sm:$0xff] }
 0x250   : > { %4821 = vst [vmem:[#allocation2 + $0x18] sm:$0xf] %v4820_v12  ;;  %v3150_v41 = vpop.f32.mrf.mxu2  ;;  %v12983_v22 = vld [vmem:[#allocation2 + $0x10] sm:$0xf]  ;;  %5735 = vmatpush.bf16.msrb.mxu2 %v11074_v42  ;;  %v4051_v39 = vrot.slane %v4049_v62, 4  ;;  %v4052_v53 = vrot.slane %v12769_v50, 5  ;;  %v12991_v18 = vunpack.c.l.b16 %v3652_v19  ;;  %v12999_v3 = vsel %vm11554_vm7, %v10261_v26, %v4049_v62 }
 0x251   : > { %v4512_v1 = vshrl.u32 %v4454_v38, 16  ;;  %v4305_v27 = vadd.f32 %v12765_v61, %v4269_v56  ;;  %10276 = vmatmul.msk.bf16.gmra.mxu0 %vm872_vm1, %v12875_v0  ;;  %v4515_v10 = vshll.u32 %v4454_v38, 16  ;;  %v12988_v23 = vld [vmem:[#allocation2 + $0x14] sm:$0x1]  ;;  %v5022_v0 = vshll.u32 %v12983_v22, 16  ;;  %v11088_v38 = vld [vmem:[%s15471_s3 + $0xa0] sm:$0xff] }
 0x252   : > { %v12994_v32 = vadd.f32 %v3150_v41, %v15540_v54  ;;  %v5026_v47 = vshrl.u32 %v12983_v22, 16  ;;  %v3654_v50 = vshrl.u32 %v10213_v37, 16  ;;  %v5032_v41 = vshll.u32 %v12988_v23, 16 }
 0x253   : > { %v4514_v21 = vrot.slane %v4512_v1, 7  ;;  %v4337_v20 = vmul.f32 0.2, %v4305_v27  ;;  %v5024_v12 = vrot.slane %v5022_v0, 5  ;;  %v13009_v62 = vsel %vm11554_vm7, %v4051_v39, %v4052_v53  ;;  %6115 = vmatpush.bf16.msrb.mxu3 %v11088_v38  ;;  %v11122_v0 = vld [vmem:[%s15471_s3 + $0x130] sm:$0xff] }
 0x254   : > { %10230 = vmatmul.msk.bf16.gmra.mxu3 %vm872_vm1, %v3724_v6  ;;  %v5028_v2 = vrot.slane %v5026_v47, 4  ;;  %v3657_v42 = vshll.u32 %v10213_v37, 16  ;;  %v4102_v54 = vunpack.c.l.b16 %v13009_v62  ;;  %7109 = vmatpush.bf16.msrb.mxu1 %v11122_v0  ;;  %v4826_v62 = vld [vmem:[#allocation2 + $0x24] sm:$0xf] }
 0x255   : > { %v4517_v52 = vor.u32 %v4515_v10, %v4514_v21  ;;  %v4519_v49 = vrot.slane %v4514_v21, 4  ;;  %v4369_v33 = vmax.f32 %v4305_v27, %v4337_v20  ;;  %10164 = vmatmul.msk.bf16.gmra.mxu2 %vm872_vm1, %v11048_v48  ;;  %v13016_v27 = vld [vmem:[%s11325_s29 + $0xd0] sm:$0xf]  ;;  %v13022_v21 = vrot.slane %v3654_v50, 4 }
 0x256   : > { %v4197_v56 = vpop.f32.mrf.mxu0  ;;  %v5029_v39 = vor.u32 %v5028_v2, %v5024_v12  ;;  %v5025_v47 = vsel %vm11349_vm4, %v12977_v13, %v5024_v12  ;;  %v3663_v12 = vshll.u32 %v13016_v27, 16 }
 0x257   : > { %v4518_v19 = vsel %vm12898_vm13, %v4510_v63, %v4517_v52  ;;  %v4824_v6 = vsel %vm12914_vm14, %v4519_v49, %v4823_v5  ;;  %v4455_v48 = vpack.c.bf16 %v4369_v33, %v4369_v33  ;;  %v4270_v26 = vadd.f32 %v4197_v56, %v3872_v30  ;;  %v4928_v1 = vld [vmem:[#allocation2 + $0x18] sm:$0xf]  ;;  %v13020_v10 = vpop.f32.mrf.mxu3  ;;  %v11114_v30 = vld [vmem:[%s15471_s3 + $0xf0] sm:$0xff] }
 0x258   : > { %4822 = vst [vmem:[#allocation2 + $0x1c] sm:$0xf] %v4518_v19  ;;  %v13018_v59 = vpop.f32.mrf.mxu2  ;;  %v5037_v53 = vshrl.u32 %v4928_v1, 16  ;;  %v5040_v37 = vshll.u32 %v4928_v1, 16  ;;  %v4101_v5 = vunpack.c.l.b16 %v12999_v3  ;;  %v5030_v50 = vrot.slane %v5029_v39, 4  ;;  %v11087_v33 = vld [vmem:[%s15471_s3 + $0x98] sm:$0xff]  ;;  %6427 = vmatpush.bf16.msrb.mxu0 %v11114_v30 }
 0x259   : > { %4825 = vst [vmem:[#allocation2 + $0x20] sm:$0x1] %v4824_v6  ;;  %v4521_v63 = vshrl.u32 %v4455_v48, 16  ;;  %v4306_v20 = vadd.f32 %v12765_v61, %v4270_v26  ;;  %v5034_v52 = vrot.slane %v5032_v41, 5  ;;  %v13036_v49 = vrot.slane %v3657_v42, 5  ;;  %6116 = vmatpush.bf16.msrb.mxu3 %v11087_v33  ;;  %v11073_v1 = vld [vmem:[%s15471_s3 + $0x28] sm:$0xff] }
 0x25a   : > { %v4524_v56 = vshll.u32 %v4455_v48, 16  ;;  %v5039_v3 = vrot.slane %v5037_v53, 4  ;;  %v5042_v13 = vrot.slane %v5040_v37, 5  ;;  %v3667_v41 = vshrl.u32 %v13016_v27, 16  ;;  %v11086_v39 = vld [vmem:[%s15471_s3 + $0x90] sm:$0xff]  ;;  %5736 = vmatpush.bf16.msrb.mxu2 %v11073_v1 }
 0x25b   : > { %v13041_v38 = vrot.slane %v4521_v63, 7  ;;  %v4338_v2 = vmul.f32 0.2, %v4306_v20  ;;  %v5035_v19 = vsel %vm11349_vm4, %v5030_v50, %v5034_v52  ;;  %v5391_v26 = vunpack.c.l.b16 %v5025_v47  ;;  %v15541_v53 = vld [vmem:[#allocation14_spill] sm:$0xff] }
 0x25c   : > { %v5392_v48 = vunpack.c.l.b16 %v5035_v19  ;;  %v13056_v37 = vadd.f32 %v15541_v53, %v12211_v46  ;;  %v3725_v30 = vpack.c.b16 %v12991_v18, %v12985_v43  ;;  %v13060_v0 = vrot.slane %v3663_v12, 5 }
 0x25d   : > { %v4526_v42 = vor.u32 %v4524_v56, %v13041_v38  ;;  %v4370_v6 = vmax.f32 %v4306_v20, %v4338_v2  ;;  %v3669_v20 = vrot.slane %v3667_v41, 4  ;;  %v13068_v2 = vld [vmem:[%s11325_s29 + $0xd4] sm:$0x1]  ;;  %v3874_v18 = vadd.f32 %v12871_v60, %v12994_v32  ;;  %6117 = vmatpush.bf16.msrb.mxu3 %v11086_v39  ;;  %v11072_v32 = vld [vmem:[%s15471_s3 + $0x20] sm:$0xff] }
 0x25e   : > { %v4200_v63 = vpop.f32.mrf.mxu0  ;;  %v5422_v52 = vpack.c.b16 %v5392_v48, %v5391_v26  ;;  %v13084_v26 = vpack.c.b16 %v4102_v54, %v4101_v5  ;;  %v3660_v60 = vor.u32 %v13036_v49, %v13022_v21  ;;  %v3673_v53 = vshll.u32 %v13068_v2, 16  ;;  %5737 = vmatpush.bf16.msrb.mxu2 %v11072_v32  ;;  %v15542_v49 = vld [vmem:[#allocation15_spill] sm:$0xff] }
 0x25f   : > { %v4827_v47 = vsel %vm12850_vm10, %v4526_v42, %v4826_v62  ;;  %v4456_v50 = vpack.c.bf16 %v4370_v6, %v4370_v6  ;;  %v4271_v33 = vadd.f32 %v4200_v63, %v12964_v29  ;;  %v13065_v56 = vld [vmem:[#allocation2 + $0x1c] sm:$0xf]  ;;  %v13072_v43 = vpop.f32.mrf.mxu3  ;;  %v5043_v62 = vor.u32 %v5042_v13, %v5039_v3  ;;  %v11049_v6 = vld [vmem:[%s11325_s29 + $0xb4] sm:$0xff]  ;;  %v11085_v3 = vld [vmem:[%s15471_s3 + $0x88] sm:$0xff] }
 0x260   : > { %4828 = vst [vmem:[#allocation2 + $0x24] sm:$0xf] %v4827_v47  ;;  %v13070_v46 = vpop.f32.mrf.mxu2  ;;  %v13076_v19 = vld [vmem:[#allocation2 + $0x20] sm:$0x1]  ;;  %v5046_v12 = vshll.u32 %v13065_v56, 16  ;;  %v5050_v29 = vshrl.u32 %v13065_v56, 16  ;;  %5514 = vmatmul.bf16.gmra.mxu1 %v5422_v52  ;;  %v3670_v39 = vor.u32 %v3669_v20, %v13060_v0  ;;  %v3221_v63 = vadd.f32 %v13018_v59, %v15542_v49 }
 0x261   : > { %v4529_v41 = vshrl.u32 %v4456_v50, 16  ;;  %v4307_v42 = vadd.f32 %v12765_v61, %v4271_v33  ;;  %10277 = vmatmul.msk.bf16.gmra.mxu0 %vm872_vm1, %v12966_v58  ;;  %v5056_v1 = vshll.u32 %v13076_v19, 16  ;;  %v4532_v5 = vshll.u32 %v4456_v50, 16  ;;  %v4830_v47 = vld [vmem:[#allocation2 + $0x2c] sm:$0x1]  ;;  %6118 = vmatpush.bf16.msrb.mxu3 %v11085_v3  ;;  %v11071_v50 = vld [vmem:[%s15471_s3 + $0x18] sm:$0xff] }
 0x262   : > { %v5048_v13 = vrot.slane %v5046_v12, 5  ;;  %v5052_v48 = vrot.slane %v5050_v29, 4  ;;  %v4527_v21 = vrot.slane %v13041_v38, 4  ;;  %v5044_v52 = vrot.slane %v5043_v62, 4  ;;  %v11084_v59 = vld [vmem:[%s15471_s3 + $0x80] sm:$0xff]  ;;  %5738 = vmatpush.bf16.msrb.mxu2 %v11071_v50 }
 0x263   : > { %v4531_v58 = vrot.slane %v4529_v41, 7  ;;  %v4339_v54 = vmul.f32 0.2, %v4307_v42  ;;  %v3661_v20 = vrot.slane %v3660_v60, 4  ;;  %v5058_v41 = vrot.slane %v5056_v1, 5 }
 0x264   : > { %v5053_v33 = vor.u32 %v5052_v48, %v5048_v13  ;;  %10231 = vmatmul.msk.bf16.gmra.mxu3 %vm872_vm1, %v3725_v30  ;;  %v3671_v32 = vrot.slane %v3670_v39, 4  ;;  %v3675_v3 = vrot.slane %v3673_v53, 5  ;;  %v5049_v1 = vsel %vm11349_vm4, %v5044_v52, %v5048_v13  ;;  %v11070_v13 = vld [vmem:[%s15471_s3 + $0x10] sm:$0xff] }
 0x265   : > { %v4534_v12 = vor.u32 %v4532_v5, %v4531_v58  ;;  %v4536_v29 = vrot.slane %v4531_v58, 4  ;;  %v4371_v45 = vmax.f32 %v4307_v42, %v4339_v54  ;;  %10165 = vmatmul.msk.bf16.gmra.mxu2 %vm872_vm1, %v11049_v6  ;;  %6119 = vmatpush.bf16.msrb.mxu3 %v11084_v59  ;;  %v3666_v49 = vsel %vm11349_vm4, %v3661_v20, %v13060_v0  ;;  %v4833_v0 = vld [vmem:[#allocation2 + $0x30] sm:$0xf] }
 0x266   : > { %v4202_v38 = vpop.f32.mrf.mxu0  ;;  %v5054_v62 = vrot.slane %v5053_v33, 4  ;;  %v3222_v52 = vadd.f32 %v13070_v46, %v13056_v37  ;;  %v5393_v59 = vunpack.c.l.b16 %v5049_v1  ;;  %5739 = vmatpush.bf16.msrb.mxu2 %v11070_v13  ;;  %v3709_v20 = vunpack.c.l.b16 %v3666_v49 }
 0x267   : > { %v4535_v42 = vsel %vm12898_vm13, %v4527_v21, %v4534_v12  ;;  %v4831_v30 = vsel %vm12914_vm14, %v4536_v29, %v4830_v47  ;;  %v4457_v6 = vpack.c.bf16 %v4371_v45, %v4371_v45  ;;  %v4272_v60 = vadd.f32 %v4202_v38, %v3874_v18  ;;  %v4930_v48 = vld [vmem:[#allocation2 + $0x24] sm:$0xf]  ;;  %v13112_v5 = vpop.f32.mrf.mxu3  ;;  %v10246_v47 = vld [vmem:[%s11325_s29 + $0xb4] sm:$0xe] }
 0x268   : > { %4829 = vst [vmem:[#allocation2 + $0x28] sm:$0xf] %v4535_v42  ;;  %v3158_v58 = vpop.f32.mrf.mxu2  ;;  %v5059_v39 = vsel %vm11349_vm4, %v5054_v62, %v5058_v41  ;;  %v5061_v54 = vshrl.u32 %v4930_v48, 16  ;;  %v5064_v53 = vshll.u32 %v4930_v48, 16  ;;  %v3875_v18 = vadd.f32 %v12928_v8, %v3221_v63 }
 0x269   : > { %4832 = vst [vmem:[#allocation2 + $0x2c] sm:$0x1] %v4831_v30  ;;  %v4538_v21 = vshrl.u32 %v4457_v6, 16  ;;  %v4308_v45 = vadd.f32 %v12765_v61, %v4272_v60  ;;  %v5394_v33 = vunpack.c.l.b16 %v5059_v39  ;;  %v3676_v12 = vsel %vm11349_vm4, %v3671_v32, %v3675_v3  ;;  %v15543_v32 = vld [vmem:[#allocation16_spill] sm:$0xff] }
 0x26a   : > { %v4056_v29 = vrot.slane %v12778_v55, 5  ;;  %v4541_v8 = vshll.u32 %v4457_v6, 16  ;;  %v5063_v38 = vrot.slane %v5061_v54, 4  ;;  %v5066_v62 = vrot.slane %v5064_v53, 5  ;;  %v11069_v55 = vld [vmem:[%s15471_s3 + $0x8] sm:$0xff] }
 0x26b   : > { %v13132_v50 = vrot.slane %v4538_v21, 7  ;;  %v4340_v63 = vmul.f32 0.2, %v4308_v45  ;;  %v10262_v41 = vrot.slane %v10246_v47, 9  ;;  %v5423_v46 = vpack.c.b16 %v5394_v33, %v5393_v59  ;;  %5740 = vmatpush.bf16.msrb.mxu2 %v11069_v55  ;;  %v11068_v59 = vld [vmem:[%s15471_s3] sm:$0xff] }
 0x26c   : > { %v3710_v30 = vunpack.c.l.b16 %v3676_v12  ;;  %v13140_v3 = vadd.f32 %v15543_v32, %v12266_v31  ;;  %v3876_v60 = vadd.f32 %v12961_v14, %v3222_v52  ;;  %v4058_v48 = vrot.slane %v4056_v29, 4  ;;  %v15544_v31 = vld [vmem:[#allocation17_spill] sm:$0xff] }
 0x26d   : > { %v4543_v42 = vor.u32 %v4541_v8, %v13132_v50  ;;  %v4372_v37 = vmax.f32 %v4308_v45, %v4340_v63  ;;  %v4059_v1 = vrot.slane %v12816_v40, 5  ;;  %v5873_v45 = vrot.slane %v12698_v51, 5  ;;  %v11050_v51 = vld [vmem:[%s11325_s29 + $0xc0] sm:$0xff] }
 0x26e   : > { %v4205_v6 = vpop.f32.mrf.mxu0  ;;  %v13150_v49 = vadd.f32 %v3158_v58, %v15544_v31  ;;  %v5067_v40 = vor.u32 %v5066_v62, %v5063_v38  ;;  %v3726_v58 = vpack.c.b16 %v3710_v30, %v3709_v20  ;;  %v4057_v8 = vsel %vm11554_vm7, %v10262_v41, %v4056_v29  ;;  %v5823_v63 = vld [vmem:[#allocation2] sm:$0xe]  ;;  %v4837_v20 = vld [vmem:[#allocation2 + $0x38] sm:$0x1] }
 0x26f   : > { %v4834_v39 = vsel %vm12850_vm10, %v4543_v42, %v4833_v0  ;;  %v4458_v54 = vpack.c.bf16 %v4372_v37, %v4372_v37  ;;  %v4273_v53 = vadd.f32 %v4205_v6, %v3875_v18  ;;  %v13146_v21 = vld [vmem:[#allocation2 + $0x28] sm:$0xf]  ;;  %v13152_v14 = vpop.f32.mrf.mxu3  ;;  %v4544_v0 = vrot.slane %v13132_v50, 4  ;;  %5741 = vmatpush.bf16.msrb.mxu2 %v11068_v59 }
 0x270   : > { %4835 = vst [vmem:[#allocation2 + $0x30] sm:$0xf] %v4834_v39  ;;  %v3160_v47 = vpop.f32.mrf.mxu2  ;;  %v13154_v13 = vld [vmem:[#allocation2 + $0x2c] sm:$0x1]  ;;  %v5070_v52 = vshll.u32 %v13146_v21, 16  ;;  %v5074_v33 = vshrl.u32 %v13146_v21, 16  ;;  %5519 = vmatmul.bf16.gmra.mxu1 %v5423_v46 }
 0x271   : > { %v4546_v18 = vshrl.u32 %v4458_v54, 16  ;;  %v4309_v12 = vadd.f32 %v12765_v61, %v4273_v53  ;;  %10278 = vmatmul.msk.bf16.gmra.mxu0 %vm872_vm1, %v13084_v26  ;;  %v5080_v42 = vshll.u32 %v13154_v13, 16  ;;  %v4549_v46 = vshll.u32 %v4458_v54, 16  ;;  %v11224_v50 = vld [vmem:[#allocation2 + $0x8] sm:$0x1] }
 0x272   : > { %v5072_v38 = vrot.slane %v5070_v52, 5  ;;  %v5076_v62 = vrot.slane %v5074_v33, 4  ;;  %v4060_v26 = vsel %vm11554_vm7, %v4058_v48, %v4059_v1  ;;  %v5068_v29 = vrot.slane %v5067_v40, 4 }
 0x273   : > { %v4548_v37 = vrot.slane %v4546_v18, 7  ;;  %v4341_v55 = vmul.f32 0.2, %v4309_v12  ;;  %v10426_v30 = vrot.slane %v5823_v63, 9  ;;  %v5875_v32 = vrot.slane %v5873_v45, 4 }
 0x274   : > { %v5077_v41 = vor.u32 %v5076_v62, %v5072_v38  ;;  %10232 = vmatmul.msk.bf16.gmra.mxu3 %vm872_vm1, %v3726_v58  ;;  %v5876_v31 = vrot.slane %v11224_v50, 5  ;;  %v5082_v33 = vrot.slane %v5080_v42, 5  ;;  %v4103_v18 = vunpack.c.l.b16 %v4057_v8 }
 0x275   : > { %v4551_v6 = vor.u32 %v4549_v46, %v4548_v37  ;;  %v4553_v39 = vrot.slane %v4548_v37, 4  ;;  %v4373_v53 = vmax.f32 %v4309_v12, %v4341_v55  ;;  %10166 = vmatmul.msk.bf16.gmra.mxu2 %vm872_vm1, %v11050_v51  ;;  %v4104_v48 = vunpack.c.l.b16 %v4060_v26  ;;  %v11113_v26 = vld [vmem:[%s15471_s3 + $0xe8] sm:$0xff] }
 0x276   : > { %v4207_v54 = vpop.f32.mrf.mxu0  ;;  %v5078_v52 = vrot.slane %v5077_v41, 4  ;;  %v5073_v58 = vsel %vm11349_vm4, %v5068_v29, %v5072_v38  ;;  %v5877_v55 = vsel %vm11554_vm7, %v5875_v32, %v5876_v31  ;;  %v11121_v38 = vld [vmem:[%s15471_s3 + $0x128] sm:$0xff]  ;;  %v3877_v41 = vadd.f32 %v13020_v10, %v13150_v49  ;;  %6428 = vmatpush.bf16.msrb.mxu0 %v11113_v26 }
 0x277   : > { %v4552_v1 = vsel %vm12898_vm13, %v4544_v0, %v4551_v6  ;;  %v4838_v40 = vsel %vm12914_vm14, %v4553_v39, %v4837_v20  ;;  %v4459_v63 = vpack.c.bf16 %v4373_v53, %v4373_v53  ;;  %v4274_v59 = vadd.f32 %v4207_v54, %v3876_v60  ;;  %v4932_v12 = vld [vmem:[#allocation2 + $0x30] sm:$0xf]  ;;  %v13177_v62 = vpop.f32.mrf.mxu3  ;;  %7110 = vmatpush.bf16.msrb.mxu1 %v11121_v38  ;;  %v4840_v53 = vld [vmem:[#allocation2 + $0x3c] sm:$0xf] }
 0x278   : > { %4836 = vst [vmem:[#allocation2 + $0x34] sm:$0xf] %v4552_v1  ;;  %v3163_v51 = vpop.f32.mrf.mxu2  ;;  %v5083_v8 = vsel %vm11349_vm4, %v5078_v52, %v5082_v33  ;;  %v5085_v42 = vshrl.u32 %v4932_v12, 16  ;;  %v5088_v37 = vshll.u32 %v4932_v12, 16  ;;  %v5874_v60 = vsel %vm11554_vm7, %v10426_v30, %v5873_v45  ;;  %v10247_v33 = vld [vmem:[%s11325_s29 + $0xc0] sm:$0xe] }
 0x279   : > { %4839 = vst [vmem:[#allocation2 + $0x38] sm:$0x1] %v4838_v40  ;;  %v4555_v0 = vshrl.u32 %v4459_v63, 16  ;;  %v4310_v46 = vadd.f32 %v12765_v61, %v4274_v59  ;;  %v3224_v20 = vadd.f32 %v3160_v47, %v13140_v3  ;;  %v5396_v29 = vunpack.c.l.b16 %v5083_v8 }
 0x27a   : > { %v4122_v6 = vpack.c.b16 %v4104_v48, %v4103_v18  ;;  %v4558_v30 = vshll.u32 %v4459_v63, 16  ;;  %v5395_v39 = vunpack.c.l.b16 %v5073_v58  ;;  %v6000_v50 = vunpack.c.l.b16 %v5874_v60  ;;  %v11051_v60 = vld [vmem:[%s11325_s29 + $0xcc] sm:$0xff] }
 0x27b   : > { %v13197_v45 = vrot.slane %v4555_v0, 7  ;;  %v4342_v32 = vmul.f32 0.2, %v4310_v46  ;;  %v6001_v31 = vunpack.c.l.b16 %v5877_v55  ;;  %v5087_v54 = vrot.slane %v5085_v42, 4 }
 0x27c   : > { %v5090_v52 = vrot.slane %v5088_v37, 5  ;;  %v5424_v1 = vpack.c.b16 %v5396_v29, %v5395_v39  ;;  %v4063_v10 = vrot.slane %v12888_v35, 5  ;;  %v13204_v49 = vadd.f32 %v12287_v57, %v12319_v17 }
 0x27d   : > { %v4560_v3 = vor.u32 %v4558_v30, %v13197_v45  ;;  %v4374_v47 = vmax.f32 %v4310_v46, %v4342_v32  ;;  %v3878_v48 = vadd.f32 %v13072_v43, %v3224_v20  ;;  %v10263_v58 = vrot.slane %v10247_v33, 9 }
 0x27e   : > { %v4210_v18 = vpop.f32.mrf.mxu0  ;;  %v6032_v42 = vpack.c.b16 %v6001_v31, %v6000_v50  ;;  %v5091_v17 = vor.u32 %v5090_v52, %v5087_v54  ;;  %v4065_v55 = vrot.slane %v4063_v10, 4  ;;  %v4066_v26 = vrot.slane %v12909_v9, 5 }
 0x27f   : > { %v4841_v40 = vsel %vm12850_vm10, %v4560_v3, %v4840_v53  ;;  %v4460_v63 = vpack.c.bf16 %v4374_v47, %v4374_v47  ;;  %v4275_v59 = vadd.f32 %v4210_v18, %v3877_v41  ;;  %v13209_v12 = vld [vmem:[#allocation2 + $0x34] sm:$0xf]  ;;  %v13213_v35 = vpop.f32.mrf.mxu3  ;;  %v5880_v41 = vrot.slane %v12983_v22, 5  ;;  %v5824_v22 = vld [vmem:[#allocation2 + $0xc] sm:$0xe] }
 0x280   : > { %4842 = vst [vmem:[#allocation2 + $0x3c] sm:$0xf] %v4841_v40  ;;  %v13211_v8 = vpop.f32.mrf.mxu2  ;;  %v13215_v57 = vld [vmem:[#allocation2 + $0x38] sm:$0x1]  ;;  %v5094_v43 = vshll.u32 %v13209_v12, 16  ;;  %v5098_v37 = vshrl.u32 %v13209_v12, 16  ;;  %5524 = vmatmul.bf16.gmra.mxu1 %v5424_v1  ;;  %v3225_v30 = vadd.f32 %v3163_v51, %v12298_v16  ;;  %v4067_v16 = vsel %vm11554_vm7, %v4065_v55, %v4066_v26 }
 0x281   : > { %v4563_v0 = vshrl.u32 %v4460_v63, 16  ;;  %v4311_v46 = vadd.f32 %v12765_v61, %v4275_v59  ;;  %10279 = vmatmul.msk.bf16.gmra.mxu0 %vm872_vm1, %v4122_v6  ;;  %v5104_v29 = vshll.u32 %v13215_v57, 16  ;;  %v4566_v39 = vshll.u32 %v4460_v63, 16  ;;  %v4844_v61 = vld [vmem:[#allocation2 + $0x44] sm:$0x1] }
 0x282   : > { %v5096_v38 = vrot.slane %v5094_v43, 5  ;;  %v5100_v20 = vrot.slane %v5098_v37, 4  ;;  %v4561_v50 = vrot.slane %v13197_v45, 4  ;;  %v5092_v31 = vrot.slane %v5091_v17, 4 }
 0x283   : > { %v4565_v32 = vrot.slane %v4563_v0, 7  ;;  %v4343_v53 = vmul.f32 0.2, %v4311_v46  ;;  %v4064_v6 = vsel %vm11554_vm7, %v10263_v58, %v4063_v10  ;;  %v5106_v47 = vrot.slane %v5104_v29, 5 }
 0x284   : > { %v5101_v54 = vor.u32 %v5100_v20, %v5096_v38  ;;  %6120 = vmatmul.bf16.vlgmr.msrb.gmra.mxu3 %v6032_v42  ;;  %v5097_v45 = vsel %vm11349_vm4, %v5092_v31, %v5096_v38  ;;  %v5882_v1 = vrot.slane %v5880_v41, 4  ;;  %v3879_v17 = vadd.f32 %v13112_v5, %v3225_v30 }
 0x285   : > { %v4568_v9 = vor.u32 %v4566_v39, %v4565_v32  ;;  %v4570_v52 = vrot.slane %v4565_v32, 4  ;;  %v4375_v33 = vmax.f32 %v4311_v46, %v4343_v53  ;;  %10167 = vmatmul.msk.bf16.gmra.mxu2 %vm872_vm1, %v11051_v60  ;;  %v4105_v43 = vunpack.c.l.b16 %v4064_v6  ;;  %v13246_v46 = vld [vmem:[%s15470_s2] ss:$0 sm:$0xff] }
 0x286   : > { %v4212_v51 = vpop.f32.mrf.mxu0  ;;  %v5102_v3 = vrot.slane %v5101_v54, 4  ;;  %v10427_v37 = vrot.slane %v5824_v22, 9  ;;  %v4106_v60 = vunpack.c.l.b16 %v4067_v16  ;;  %v5883_v55 = vrot.slane %v12988_v23, 5 }
 0x287   : > { %v4569_v10 = vsel %vm12898_vm13, %v4561_v50, %v4568_v9  ;;  %v4845_v18 = vsel %vm12914_vm14, %v4570_v52, %v4844_v61  ;;  %v4461_v40 = vpack.c.bf16 %v4375_v33, %v4375_v33  ;;  %v4276_v63 = vadd.f32 %v4212_v51, %v3878_v48  ;;  %v13238_v58 = vpop.f32.mrf.mxu3  ;;  %v4934_v26 = vld [vmem:[#allocation2 + $0x3c] sm:$0xf]  ;;  %v4847_v61 = vld [vmem:[#allocation2 + $0x48] sm:$0xf] }
 0x288   : > { %4843 = vst [vmem:[#allocation2 + $0x40] sm:$0xf] %v4569_v10  ;;  %v3168_v59 = vpop.f32.mrf.mxu2  ;;  %v5107_v42 = vsel %vm11349_vm4, %v5102_v3, %v5106_v47  ;;  %v5397_v38 = vunpack.c.l.b16 %v5097_v45  ;;  %v5109_v29 = vshrl.u32 %v4934_v26, 16  ;;  %v5112_v32 = vshll.u32 %v4934_v26, 16 }
 0x289   : > { %4846 = vst [vmem:[#allocation2 + $0x44] sm:$0x1] %v4845_v18  ;;  %v4572_v0 = vshrl.u32 %v4461_v40, 16  ;;  %v4312_v48 = vadd.f32 %v13246_v46, %v4276_v63  ;;  %v5398_v20 = vunpack.c.l.b16 %v5107_v42  ;;  %v4575_v30 = vshll.u32 %v4461_v40, 16 }
 0x28a   : > { %v5884_v53 = vsel %vm11554_vm7, %v5882_v1, %v5883_v55  ;;  %v3226_v50 = vadd.f32 %v13211_v8, %v13204_v49  ;;  %v5881_v31 = vsel %vm11554_vm7, %v10427_v37, %v5880_v41  ;;  %v5111_v23 = vrot.slane %v5109_v29, 4  ;;  %v11052_v41 = vld [vmem:[#allocation2] sm:$0xff] }
 0x28b   : > { %v13250_v5 = vrot.slane %v4572_v0, 7  ;;  %v4344_v39 = vmul.f32 0.2, %v4312_v48  ;;  %v5114_v54 = vrot.slane %v5112_v32, 5  ;;  %v5425_v52 = vpack.c.b16 %v5398_v20, %v5397_v38  ;;  %v11112_v0 = vld [vmem:[%s15471_s3 + $0xe0] sm:$0xff] }
 0x28c   : > { %v4123_v33 = vpack.c.b16 %v4106_v60, %v4105_v43  ;;  %v6003_v22 = vunpack.c.l.b16 %v5884_v53  ;;  %v6002_v1 = vunpack.c.l.b16 %v5881_v31  ;;  %v5887_v40 = vrot.slane %v13065_v56, 5  ;;  %6429 = vmatpush.bf16.msrb.mxu0 %v11112_v0  ;;  %v4851_v32 = vld [vmem:[#allocation2 + $0x50] sm:$0x1] }
 0x28d   : > { %v4577_v6 = vor.u32 %v4575_v30, %v13250_v5  ;;  %v4376_v9 = vmax.f32 %v4312_v48, %v4344_v39  ;;  %v5115_v10 = vor.u32 %v5114_v54, %v5111_v23  ;;  %v13270_v63 = vadd.f32 %v3168_v59, %v12342_v15  ;;  %v10248_v48 = vld [vmem:[%s11325_s29 + $0xcc] sm:$0xe] }
 0x28e   : > { %v4215_v16 = vpop.f32.mrf.mxu0  ;;  %v3880_v43 = vadd.f32 %v13152_v14, %v3226_v50  ;;  %v6033_v60 = vpack.c.b16 %v6003_v22, %v6002_v1  ;;  %v10264_v59 = vrot.slane %v10248_v48, 9  ;;  %v4070_v29 = vrot.slane %v13016_v27, 5  ;;  %v11111_v14 = vld [vmem:[%s15471_s3 + $0xd8] sm:$0xff]  ;;  %v11110_v48 = vld [vmem:[%s15471_s3 + $0xd0] sm:$0xff] }
 0x28f   : > { %v4848_v51 = vsel %vm12850_vm10, %v4577_v6, %v4847_v61  ;;  %v4462_v45 = vpack.c.bf16 %v4376_v9, %v4376_v9  ;;  %v4277_v3 = vadd.f32 %v4215_v16, %v3879_v17  ;;  %v13261_v47 = vld [vmem:[#allocation2 + $0x40] sm:$0xf]  ;;  %v13265_v8 = vpop.f32.mrf.mxu3  ;;  %v5116_v30 = vrot.slane %v5115_v10, 4 }
 0x290   : > { %4849 = vst [vmem:[#allocation2 + $0x48] sm:$0xf] %v4848_v51  ;;  %v13263_v49 = vpop.f32.mrf.mxu2  ;;  %v5118_v18 = vshll.u32 %v13261_v47, 16  ;;  %5529 = vmatmul.bf16.gmra.mxu1 %v5425_v52  ;;  %v13275_v37 = vld [vmem:[#allocation2 + $0x44] sm:$0x1]  ;;  %v5122_v15 = vshrl.u32 %v13261_v47, 16  ;;  %v4071_v52 = vsel %vm11554_vm7, %v10264_v59, %v4070_v29  ;;  %6430 = vmatpush.bf16.msrb.mxu0 %v11111_v14 }
 0x291   : > { %v4580_v42 = vshrl.u32 %v4462_v45, 16  ;;  %v4313_v17 = vadd.f32 %v13246_v46, %v4277_v3  ;;  %10280 = vmatmul.msk.bf16.gmra.mxu0 %vm872_vm1, %v4123_v33  ;;  %v4583_v38 = vshll.u32 %v4462_v45, 16  ;;  %v5128_v53 = vshll.u32 %v13275_v37, 16  ;;  %v5825_v51 = vld [vmem:[#allocation2 + $0x18] sm:$0xe] }
 0x292   : > { %v5120_v55 = vrot.slane %v5118_v18, 5  ;;  %v5124_v39 = vrot.slane %v5122_v15, 4  ;;  %v4073_v50 = vrot.slane %v13068_v2, 5  ;;  %v4578_v61 = vrot.slane %v13250_v5, 4 }
 0x293   : > { %v4582_v26 = vrot.slane %v4580_v42, 7  ;;  %v4345_v20 = vmul.f32 0.2, %v4313_v17  ;;  %v4072_v33 = vrot.slane %v4070_v29, 4  ;;  %v5130_v1 = vrot.slane %v5128_v53, 5 }
 0x294   : > { %6125 = vmatmul.bf16.gmra.mxu3 %v6033_v60  ;;  %v5121_v27 = vsel %vm11349_vm4, %v5116_v30, %v5120_v55  ;;  %v5125_v9 = vor.u32 %v5124_v39, %v5120_v55  ;;  %v5889_v18 = vrot.slane %v5887_v40, 4  ;;  %v5890_v0 = vrot.slane %v13076_v19, 5  ;;  %6431 = vmatpush.bf16.msrb.mxu0 %v11110_v48  ;;  %v11109_v19 = vld [vmem:[%s15471_s3 + $0xc8] sm:$0xff]  ;;  %v4854_v30 = vld [vmem:[#allocation2 + $0x54] sm:$0xf] }
 0x295   : > { %v4585_v31 = vor.u32 %v4583_v38, %v4582_v26  ;;  %v4587_v23 = vrot.slane %v4582_v26, 4  ;;  %v4377_v54 = vmax.f32 %v4313_v17, %v4345_v20  ;;  %5742 = vmatmul.bf16.vlgmr.msrb.gmra.mxu2 %v11052_v41  ;;  %v4074_v10 = vsel %vm11554_vm7, %v4072_v33, %v4073_v50  ;;  %v11120_v38 = vld [vmem:[%s15471_s3 + $0x120] sm:$0xff] }
 0x296   : > { %v4217_v6 = vpop.f32.mrf.mxu0  ;;  %v5126_v41 = vrot.slane %v5125_v9, 4  ;;  %v5399_v15 = vunpack.c.l.b16 %v5121_v27  ;;  %v4108_v59 = vunpack.c.l.b16 %v4074_v10  ;;  %v3881_v39 = vadd.f32 %v13177_v62, %v13270_v63  ;;  %7111 = vmatpush.bf16.msrb.mxu1 %v11120_v38  ;;  %v4858_v38 = vld [vmem:[#allocation2 + $0x5c] sm:$0x1] }
 0x297   : > { %v4586_v16 = vsel %vm12898_vm13, %v4578_v61, %v4585_v31  ;;  %v4852_v2 = vsel %vm12914_vm14, %v4587_v23, %v4851_v32  ;;  %v4463_v5 = vpack.c.bf16 %v4377_v54, %v4377_v54  ;;  %v4278_v22 = vadd.f32 %v4217_v6, %v3880_v43  ;;  %v13299_v3 = vpop.f32.mrf.mxu3  ;;  %v4936_v26 = vld [vmem:[#allocation2 + $0x48] sm:$0xf] }
 0x298   : > { %4850 = vst [vmem:[#allocation2 + $0x4c] sm:$0xf] %v4586_v16  ;;  %v13297_v45 = vpop.f32.mrf.mxu2  ;;  %v4107_v43 = vunpack.c.l.b16 %v4071_v52  ;;  %v5131_v55 = vsel %vm11349_vm4, %v5126_v41, %v5130_v1  ;;  %v5133_v32 = vshrl.u32 %v4936_v26, 16  ;;  %v10428_v53 = vrot.slane %v5825_v51, 9  ;;  %6432 = vmatpush.bf16.msrb.mxu0 %v11109_v19 }
 0x299   : > { %4853 = vst [vmem:[#allocation2 + $0x50] sm:$0x1] %v4852_v2  ;;  %v4589_v42 = vshrl.u32 %v4463_v5, 16  ;;  %v4314_v17 = vadd.f32 %v13246_v46, %v4278_v22  ;;  %v4592_v60 = vshll.u32 %v4463_v5, 16  ;;  %v5400_v14 = vunpack.c.l.b16 %v5131_v55 }
 0x29a   : > { %v5891_v50 = vsel %vm11554_vm7, %v5889_v18, %v5890_v0  ;;  %v5136_v61 = vshll.u32 %v4936_v26, 16  ;;  %v4124_v6 = vpack.c.b16 %v4108_v59, %v4107_v43  ;;  %v2941_v27 = vadd.f32 %v12335_v24, %v12361_v44  ;;  %v11053_v59 = vld [vmem:[#allocation2 + $0xc] sm:$0xff] }
 0x29b   : > { %v13315_v20 = vrot.slane %v4589_v42, 7  ;;  %v4346_v29 = vmul.f32 0.2, %v4314_v17  ;;  %v5426_v54 = vpack.c.b16 %v5400_v14, %v5399_v15  ;;  %v5888_v62 = vsel %vm11554_vm7, %v10428_v53, %v5887_v40 }
 0x29c   : > { %v5135_v63 = vrot.slane %v5133_v32, 4  ;;  %v5138_v52 = vrot.slane %v5136_v61, 5  ;;  %v6005_v5 = vunpack.c.l.b16 %v5891_v50  ;;  %v3228_v51 = vadd.f32 %v13263_v49, %v2941_v27  ;;  %v11108_v49 = vld [vmem:[%s15471_s3 + $0xc0] sm:$0xff] }
 0x29d   : > { %v4594_v31 = vor.u32 %v4592_v60, %v13315_v20  ;;  %v4378_v23 = vmax.f32 %v4314_v17, %v4346_v29  ;;  %v6004_v18 = vunpack.c.l.b16 %v5888_v62  ;;  %v5894_v42 = vrot.slane %v13146_v21, 5  ;;  %6433 = vmatpush.bf16.msrb.mxu0 %v11108_v49 }
 0x29e   : > { %v4220_v9 = vpop.f32.mrf.mxu0  ;;  %v5139_v17 = vor.u32 %v5138_v52, %v5135_v63  ;;  %v3882_v29 = vadd.f32 %v13213_v35, %v3228_v51  ;;  %v4595_v19 = vrot.slane %v13315_v20, 4  ;;  %v5897_v52 = vrot.slane %v13154_v13, 5  ;;  %v15545_v13 = vld [vmem:[#allocation18_spill] sm:$0xff] }
 0x29f   : > { %v4855_v33 = vsel %vm12850_vm10, %v4594_v31, %v4854_v30  ;;  %v4464_v16 = vpack.c.bf16 %v4378_v23, %v4378_v23  ;;  %v4279_v2 = vadd.f32 %v4220_v9, %v3881_v39  ;;  %v13333_v22 = vld [vmem:[#allocation2 + $0x4c] sm:$0xf]  ;;  %v13338_v44 = vpop.f32.mrf.mxu3  ;;  %v6034_v26 = vpack.c.b16 %v6005_v5, %v6004_v18  ;;  %v5826_v31 = vld [vmem:[#allocation2 + $0x24] sm:$0xe] }
 0x2a0   : > { %4856 = vst [vmem:[#allocation2 + $0x54] sm:$0xf] %v4855_v33  ;;  %v13336_v24 = vpop.f32.mrf.mxu2  ;;  %v13340_v56 = vld [vmem:[#allocation2 + $0x50] sm:$0x1]  ;;  %v5142_v40 = vshll.u32 %v13333_v22, 16  ;;  %v5146_v41 = vshrl.u32 %v13333_v22, 16  ;;  %5534 = vmatmul.bf16.gmra.mxu1 %v5426_v54  ;;  %v3229_v33 = vadd.f32 %v13297_v45, %v12383_v28 }
 0x2a1   : > { %v4597_v1 = vshrl.u32 %v4464_v16, 16  ;;  %v4315_v10 = vadd.f32 %v13246_v46, %v4279_v2  ;;  %10281 = vmatmul.msk.bf16.gmra.mxu0 %vm872_vm1, %v4124_v6  ;;  %v5152_v48 = vshll.u32 %v13340_v56, 16  ;;  %v4600_v55 = vshll.u32 %v4464_v16, 16  ;;  %v4861_v28 = vld [vmem:[#allocation2 + $0x60] sm:$0xf] }
 0x2a2   : > { %v5144_v43 = vrot.slane %v5142_v40, 5  ;;  %v5148_v0 = vrot.slane %v5146_v41, 4  ;;  %v5140_v53 = vrot.slane %v5139_v17, 4  ;;  %v5896_v23 = vrot.slane %v5894_v42, 4 }
 0x2a3   : > { %v4599_v60 = vrot.slane %v4597_v1, 7  ;;  %v4347_v15 = vmul.f32 0.2, %v4315_v10  ;;  %v5154_v61 = vrot.slane %v5152_v48, 5  ;;  %v10429_v5 = vrot.slane %v5826_v31, 9 }
 0x2a4   : > { %v5149_v14 = vor.u32 %v5148_v0, %v5144_v43  ;;  %6130 = vmatmul.bf16.gmra.mxu3 %v6034_v26  ;;  %v5145_v62 = vsel %vm11349_vm4, %v5140_v53, %v5144_v43  ;;  %v5898_v41 = vsel %vm11554_vm7, %v5896_v23, %v5897_v52  ;;  %v2943_v0 = vadd.f32 %v15545_v13, %v12401_v25  ;;  %v11054_v52 = vld [vmem:[#allocation2 + $0x18] sm:$0xff] }
 0x2a5   : > { %v4602_v32 = vor.u32 %v4600_v55, %v4599_v60  ;;  %v4604_v30 = vrot.slane %v4599_v60, 4  ;;  %v4379_v21 = vmax.f32 %v4315_v10, %v4347_v15  ;;  %5747 = vmatmul.bf16.gmra.mxu2 %v11053_v59  ;;  %v5401_v43 = vunpack.c.l.b16 %v5145_v62 }
 0x2a6   : > { %v4222_v39 = vpop.f32.mrf.mxu0  ;;  %v5150_v50 = vrot.slane %v5149_v14, 4  ;;  %v5895_v45 = vsel %vm11554_vm7, %v10429_v5, %v5894_v42  ;;  %v3883_v26 = vadd.f32 %v13238_v58, %v3229_v33  ;;  %v3230_v14 = vadd.f32 %v13336_v24, %v2943_v0 }
 0x2a7   : > { %v4603_v54 = vsel %vm12898_vm13, %v4595_v19, %v4602_v32  ;;  %v4859_v35 = vsel %vm12914_vm14, %v4604_v30, %v4858_v38  ;;  %v4465_v6 = vpack.c.bf16 %v4379_v21, %v4379_v21  ;;  %v4280_v27 = vadd.f32 %v4222_v39, %v3882_v29  ;;  %v13359_v9 = vpop.f32.mrf.mxu3  ;;  %v4938_v51 = vld [vmem:[#allocation2 + $0x54] sm:$0xf]  ;;  %v11092_v30 = vld [vmem:[#allocation2 + $0xc] sm:$0xff] }
 0x2a8   : > { %4857 = vst [vmem:[#allocation2 + $0x58] sm:$0xf] %v4603_v54  ;;  %v13357_v20 = vpop.f32.mrf.mxu2  ;;  %v5155_v63 = vsel %vm11349_vm4, %v5150_v50, %v5154_v61  ;;  %v5157_v1 = vshrl.u32 %v4938_v51, 16  ;;  %v5160_v10 = vshll.u32 %v4938_v51, 16  ;;  %v6007_v29 = vunpack.c.l.b16 %v5898_v41 }
 0x2a9   : > { %4860 = vst [vmem:[#allocation2 + $0x5c] sm:$0x1] %v4859_v35  ;;  %v4606_v16 = vshrl.u32 %v4465_v6, 16  ;;  %v4316_v2 = vadd.f32 %v13246_v46, %v4280_v27  ;;  %v5402_v40 = vunpack.c.l.b16 %v5155_v63  ;;  %v4609_v49 = vshll.u32 %v4465_v6, 16 }
 0x2aa   : > { %v5159_v48 = vrot.slane %v5157_v1, 4  ;;  %v5162_v60 = vrot.slane %v5160_v10, 5  ;;  %v6006_v53 = vunpack.c.l.b16 %v5895_v45  ;;  %v5901_v61 = vrot.slane %v13209_v12, 5 }
 0x2ab   : > { %v4608_v18 = vrot.slane %v4606_v16, 7  ;;  %v4348_v17 = vmul.f32 0.2, %v4316_v2  ;;  %v5427_v59 = vpack.c.b16 %v5402_v40, %v5401_v43  ;;  %v3884_v33 = vadd.f32 %v13265_v8, %v3230_v14  ;;  %v4865_v16 = vld [vmem:[#allocation2 + $0x68] sm:$0x1] }
 0x2ac   : > { %v5163_v50 = vor.u32 %v5162_v60, %v5159_v48  ;;  %v6035_v54 = vpack.c.b16 %v6007_v29, %v6006_v53  ;;  %v5903_v51 = vrot.slane %v5901_v61, 4  ;;  %v5904_v8 = vrot.slane %v13215_v57, 5 }
 0x2ad   : > { %v4611_v55 = vor.u32 %v4609_v49, %v4608_v18  ;;  %v4380_v15 = vmax.f32 %v4316_v2, %v4348_v17  ;;  %v4612_v40 = vrot.slane %v4608_v18, 4  ;;  %v5827_v49 = vld [vmem:[#allocation2 + $0x30] sm:$0xe] }
 0x2ae   : > { %v4225_v38 = vpop.f32.mrf.mxu0  ;;  %v5164_v2 = vrot.slane %v5163_v50, 4  ;;  %v5905_v14 = vsel %vm11554_vm7, %v5903_v51, %v5904_v8  ;;  %v11119_v50 = vld [vmem:[%s15471_s3 + $0x118] sm:$0xff] }
 0x2af   : > { %v4862_v19 = vsel %vm12850_vm10, %v4611_v55, %v4861_v28  ;;  %v4466_v32 = vpack.c.bf16 %v4380_v15, %v4380_v15  ;;  %v4281_v25 = vadd.f32 %v4225_v38, %v3883_v26  ;;  %v13379_v21 = vld [vmem:[#allocation2 + $0x58] sm:$0xf]  ;;  %v13383_v39 = vpop.f32.mrf.mxu3  ;;  %7112 = vmatpush.bf16.msrb.mxu1 %v11119_v50  ;;  %v6009_v51 = vunpack.c.l.b16 %v5905_v14  ;;  %v13436_v14 = vpop.f32.mrf.mxu1 }
 0x2b0   : > { %4863 = vst [vmem:[#allocation2 + $0x60] sm:$0xf] %v4862_v19  ;;  %v13381_v42 = vpop.f32.mrf.mxu2  ;;  %v5166_v58 = vshll.u32 %v13379_v21, 16  ;;  %5539 = vmatmul.bf16.gmra.mxu1 %v5427_v59  ;;  %v13388_v23 = vld [vmem:[#allocation2 + $0x5c] sm:$0x1]  ;;  %v5170_v6 = vshrl.u32 %v13379_v21, 16 }
 0x2b1   : > { %v4614_v24 = vshrl.u32 %v4466_v32, 16  ;;  %v4317_v31 = vadd.f32 %v13246_v46, %v4281_v25  ;;  %6434 = vmatmul.bf16.vlgmr.msrb.gmra.mxu0 %v11092_v30  ;;  %v4617_v62 = vshll.u32 %v4466_v32, 16  ;;  %v5176_v5 = vshll.u32 %v13388_v23, 16  ;;  %v15546_v26 = vld [vmem:[#allocation20_spill] sm:$0xff] }
 0x2b2   : > { %v5168_v35 = vrot.slane %v5166_v58, 5  ;;  %v5172_v12 = vrot.slane %v5170_v6, 4  ;;  %v10430_v59 = vrot.slane %v5827_v49, 9  ;;  %v3231_v38 = vadd.f32 %v13357_v20, %v15546_v26 }
 0x2b3   : > { %v4616_v27 = vrot.slane %v4614_v24, 7  ;;  %v4349_v63 = vmul.f32 0.2, %v4317_v31  ;;  %v5178_v15 = vrot.slane %v5176_v5, 5  ;;  %v5908_v49 = vrot.slane %v13261_v47, 5 }
 0x2b4   : > { %6135 = vmatmul.bf16.gmra.mxu3 %v6035_v54  ;;  %v5169_v43 = vsel %vm11349_vm4, %v5164_v2, %v5168_v35  ;;  %v5173_v13 = vor.u32 %v5172_v12, %v5168_v35  ;;  %v4868_v54 = vld [vmem:[#allocation2 + $0x6c] sm:$0xf]  ;;  %v5902_v35 = vsel %vm11554_vm7, %v10430_v59, %v5901_v61  ;;  %v15548_v2 = vld [vmem:[#allocation19_spill] sm:$0xff] }
 0x2b5   : > { %v4619_v41 = vor.u32 %v4617_v62, %v4616_v27  ;;  %v4621_v1 = vrot.slane %v4616_v27, 4  ;;  %v4381_v10 = vmax.f32 %v4317_v31, %v4349_v63  ;;  %5752 = vmatmul.bf16.gmra.mxu2 %v11054_v52  ;;  %v5403_v25 = vunpack.c.l.b16 %v5169_v43 }
 0x2b6   : > { %v4227_v17 = vpop.f32.mrf.mxu0  ;;  %v5174_v55 = vrot.slane %v5173_v13, 4  ;;  %v6008_v13 = vunpack.c.l.b16 %v5902_v35 }
 0x2b7   : > { %v4620_v0 = vsel %vm12898_vm13, %v4612_v40, %v4619_v41  ;;  %v4866_v28 = vsel %vm12914_vm14, %v4621_v1, %v4865_v16  ;;  %v4467_v18 = vpack.c.bf16 %v4381_v10, %v4381_v10  ;;  %v4282_v45 = vadd.f32 %v4227_v17, %v3884_v33  ;;  %v13402_v60 = vpop.f32.mrf.mxu3  ;;  %v4940_v19 = vld [vmem:[#allocation2 + $0x60] sm:$0xf]  ;;  %v11093_v10 = vld [vmem:[#allocation2 + $0x18] sm:$0xff] }
 0x2b8   : > { %4864 = vst [vmem:[#allocation2 + $0x64] sm:$0xf] %v4620_v0  ;;  %v13400_v48 = vpop.f32.mrf.mxu2  ;;  %v5179_v32 = vsel %vm11349_vm4, %v5174_v55, %v5178_v15  ;;  %v5181_v30 = vshrl.u32 %v4940_v19, 16  ;;  %v5184_v53 = vshll.u32 %v4940_v19, 16  ;;  %v3885_v33 = vadd.f32 %v13299_v3, %v3231_v38  ;;  %v15547_v16 = vld [vmem:[#allocation21_spill] sm:$0xff] }
 0x2b9   : > { %4867 = vst [vmem:[#allocation2 + $0x68] sm:$0x1] %v4866_v28  ;;  %v4623_v57 = vshrl.u32 %v4467_v18, 16  ;;  %v4318_v29 = vadd.f32 %v13246_v46, %v4282_v45  ;;  %v4626_v20 = vshll.u32 %v4467_v18, 16  ;;  %v5404_v31 = vunpack.c.l.b16 %v5179_v32  ;;  %v4872_v19 = vld [vmem:[#allocation2 + $0x74] sm:$0x1] }
 0x2ba   : > { %v5183_v6 = vrot.slane %v5181_v30, 4  ;;  %v5186_v27 = vrot.slane %v5184_v53, 5  ;;  %v2945_v12 = vadd.f32 %v15548_v2, %v15547_v16  ;;  %v6036_v55 = vpack.c.b16 %v6009_v51, %v6008_v13  ;;  %v15549_v51 = vld [vmem:[#allocation23_spill] sm:$0xff] }
 0x2bb   : > { %v4625_v58 = vrot.slane %v4623_v57, 7  ;;  %v4350_v24 = vmul.f32 0.2, %v4318_v29  ;;  %v5428_v52 = vpack.c.b16 %v5404_v31, %v5403_v25  ;;  %v11055_v57 = vld [vmem:[#allocation2 + $0x24] sm:$0xff] }
 0x2bc   : > { %v3232_v17 = vadd.f32 %v13381_v42, %v2945_v12  ;;  %v5187_v8 = vor.u32 %v5186_v27, %v5183_v6 }
 0x2bd   : > { %v4628_v62 = vor.u32 %v4626_v20, %v4625_v58  ;;  %v4382_v63 = vmax.f32 %v4318_v29, %v4350_v24  ;;  %v5910_v29 = vrot.slane %v5908_v49, 4  ;;  %v4629_v50 = vrot.slane %v4625_v58, 4 }
 0x2be   : > { %v4230_v5 = vpop.f32.mrf.mxu0  ;;  %v3886_v32 = vadd.f32 %v13338_v44, %v3232_v17  ;;  %v5188_v25 = vrot.slane %v5187_v8, 4 }
 0x2bf   : > { %v4869_v40 = vsel %vm12850_vm10, %v4628_v62, %v4868_v54  ;;  %v4468_v41 = vpack.c.bf16 %v4382_v63, %v4382_v63  ;;  %v4283_v1 = vadd.f32 %v4230_v5, %v3885_v33  ;;  %v13421_v61 = vld [vmem:[#allocation2 + $0x64] sm:$0xf]  ;;  %v13427_v3 = vpop.f32.mrf.mxu3  ;;  %v5828_v54 = vld [vmem:[#allocation2 + $0x3c] sm:$0xe]  ;;  %v5911_v62 = vrot.slane %v13275_v37, 5 }
 0x2c0   : > { %4870 = vst [vmem:[#allocation2 + $0x6c] sm:$0xf] %v4869_v40  ;;  %v13425_v43 = vpop.f32.mrf.mxu2  ;;  %v5190_v0 = vshll.u32 %v13421_v61, 16  ;;  %5544 = vmatmul.bf16.gmra.mxu1 %v5428_v52  ;;  %v13431_v45 = vld [vmem:[#allocation2 + $0x68] sm:$0x1]  ;;  %v5194_v42 = vshrl.u32 %v13421_v61, 16  ;;  %v3233_v40 = vadd.f32 %v13400_v48, %v15549_v51  ;;  %v13458_v48 = vpop.f32.mrf.mxu1 }
 0x2c1   : > { %v4631_v28 = vshrl.u32 %v4468_v41, 16  ;;  %v4319_v18 = vadd.f32 %v13246_v46, %v4283_v1  ;;  %6439 = vmatmul.bf16.gmra.mxu0 %v11093_v10  ;;  %v4634_v26 = vshll.u32 %v4468_v41, 16  ;;  %v5200_v53 = vshll.u32 %v13431_v45, 16 }
 0x2c2   : > { %v5192_v15 = vrot.slane %v5190_v0, 5  ;;  %v5196_v30 = vrot.slane %v5194_v42, 4  ;;  %v10431_v5 = vrot.slane %v5828_v54, 9  ;;  %v5912_v1 = vsel %vm11554_vm7, %v5910_v29, %v5911_v62  ;;  %v4875_v42 = vld [vmem:[#allocation2 + $0x78] sm:$0xf]  ;;  %v11094_v54 = vld [vmem:[#allocation2 + $0x24] sm:$0xff] }
 0x2c3   : > { %v4633_v59 = vrot.slane %v4631_v28, 7  ;;  %v4351_v38 = vmul.f32 0.2, %v4319_v18  ;;  %v5202_v12 = vrot.slane %v5200_v53, 5 }
 0x2c4   : > { %6140 = vmatmul.bf16.gmra.mxu3 %v6036_v55  ;;  %v5193_v6 = vsel %vm11349_vm4, %v5188_v25, %v5192_v15  ;;  %v5197_v27 = vor.u32 %v5196_v30, %v5192_v15  ;;  %v15550_v25 = vld [vmem:[#allocation24_spill] sm:$0xff]  ;;  %v15551_v30 = vld [vmem:[#allocation22_spill] sm:$0xff] }
 0x2c5   : > { %v4636_v20 = vor.u32 %v4634_v26, %v4633_v59  ;;  %v4638_v24 = vrot.slane %v4633_v59, 4  ;;  %v4383_v31 = vmax.f32 %v4319_v18, %v4351_v38  ;;  %5757 = vmatmul.bf16.gmra.mxu2 %v11055_v57  ;;  %v5405_v13 = vunpack.c.l.b16 %v5193_v6 }
 0x2c6   : > { %v4232_v35 = vpop.f32.mrf.mxu0  ;;  %v5198_v2 = vrot.slane %v5197_v27, 4  ;;  %v5909_v59 = vsel %vm11554_vm7, %v10431_v5, %v5908_v49  ;;  %v2947_v53 = vadd.f32 %v15551_v30, %v15550_v25  ;;  %v5915_v49 = vrot.slane %v13333_v22, 5 }
 0x2c7   : > { %v4637_v44 = vsel %vm12898_vm13, %v4629_v50, %v4636_v20  ;;  %v4873_v63 = vsel %vm12914_vm14, %v4638_v24, %v4872_v19  ;;  %v4469_v58 = vpack.c.bf16 %v4383_v31, %v4383_v31  ;;  %v4284_v52 = vadd.f32 %v4232_v35, %v3886_v32  ;;  %v13449_v16 = vpop.f32.mrf.mxu3  ;;  %v4942_v10 = vld [vmem:[#allocation2 + $0x6c] sm:$0xf] }
 0x2c8   : > { %4871 = vst [vmem:[#allocation2 + $0x70] sm:$0xf] %v4637_v44  ;;  %v13447_v33 = vpop.f32.mrf.mxu2  ;;  %v5203_v17 = vsel %vm11349_vm4, %v5198_v2, %v5202_v12  ;;  %v5205_v8 = vshrl.u32 %v4942_v10, 16  ;;  %v5208_v0 = vshll.u32 %v4942_v10, 16  ;;  %v3887_v32 = vadd.f32 %v13359_v9, %v3233_v40  ;;  %v4879_v10 = vld [vmem:[#allocation2 + $0x80] sm:$0x1] }
 0x2c9   : > { %4874 = vst [vmem:[#allocation2 + $0x74] sm:$0x1] %v4873_v63  ;;  %v4640_v37 = vshrl.u32 %v4469_v58, 16  ;;  %v4320_v41 = vadd.f32 %v13246_v46, %v4284_v52  ;;  %v4643_v18 = vshll.u32 %v4469_v58, 16  ;;  %v5406_v15 = vunpack.c.l.b16 %v5203_v17 }
 0x2ca   : > { %v5207_v26 = vrot.slane %v5205_v8, 4  ;;  %v5210_v38 = vrot.slane %v5208_v0, 5  ;;  %v6011_v20 = vunpack.c.l.b16 %v5912_v1  ;;  %v3234_v6 = vadd.f32 %v13425_v43, %v2947_v53 }
 0x2cb   : > { %v4642_v28 = vrot.slane %v4640_v37, 7  ;;  %v4352_v55 = vmul.f32 0.2, %v4320_v41  ;;  %v5429_v19 = vpack.c.b16 %v5406_v15, %v5405_v13  ;;  %v6010_v62 = vunpack.c.l.b16 %v5909_v59  ;;  %v5829_v59 = vld [vmem:[#allocation2 + $0x48] sm:$0xe] }
 0x2cc   : > { %v5211_v44 = vor.u32 %v5210_v38, %v5207_v26  ;;  %v5917_v1 = vrot.slane %v5915_v49, 4  ;;  %v3888_v17 = vadd.f32 %v13383_v39, %v3234_v6  ;;  %v13486_v26 = vpop.f32.mrf.mxu1  ;;  %v5918_v39 = vrot.slane %v13340_v56, 5 }
 0x2cd   : > { %v4645_v57 = vor.u32 %v4643_v18, %v4642_v28  ;;  %v4384_v29 = vmax.f32 %v4320_v41, %v4352_v55  ;;  %v6037_v12 = vpack.c.b16 %v6011_v20, %v6010_v62  ;;  %v11056_v41 = vld [vmem:[#allocation2 + $0x30] sm:$0xff]  ;;  %v4646_v18 = vrot.slane %v4642_v28, 4 }
 0x2ce   : > { %v4235_v50 = vpop.f32.mrf.mxu0  ;;  %v5212_v13 = vrot.slane %v5211_v44, 4  ;;  %v5919_v6 = vsel %vm11554_vm7, %v5917_v1, %v5918_v39  ;;  %v5922_v39 = vrot.slane %v13379_v21, 5 }
 0x2cf   : > { %v4876_v24 = vsel %vm12850_vm10, %v4645_v57, %v4875_v42  ;;  %v4470_v31 = vpack.c.bf16 %v4384_v29, %v4384_v29  ;;  %v4285_v47 = vadd.f32 %v4235_v50, %v3887_v32  ;;  %v13469_v35 = vld [vmem:[#allocation2 + $0x70] sm:$0xf]  ;;  %v13475_v9 = vpop.f32.mrf.mxu3 }
 0x2d0   : > { %4877 = vst [vmem:[#allocation2 + $0x78] sm:$0xf] %v4876_v24  ;;  %v13473_v27 = vpop.f32.mrf.mxu2  ;;  %v5214_v63 = vshll.u32 %v13469_v35, 16  ;;  %5549 = vmatmul.bf16.gmra.mxu1 %v5429_v19  ;;  %v13479_v2 = vld [vmem:[#allocation2 + $0x74] sm:$0x1]  ;;  %v5218_v43 = vshrl.u32 %v13469_v35, 16 }
 0x2d1   : > { %v4648_v58 = vshrl.u32 %v4470_v31, 16  ;;  %v4321_v52 = vadd.f32 %v13246_v46, %v4285_v47  ;;  %6444 = vmatmul.bf16.gmra.mxu0 %v11094_v54  ;;  %v4651_v40 = vshll.u32 %v4470_v31, 16  ;;  %v5224_v0 = vshll.u32 %v13479_v2, 16  ;;  %v15552_v31 = vld [vmem:[#allocation26_spill] sm:$0xff] }
 0x2d2   : > { %v5216_v5 = vrot.slane %v5214_v63, 5  ;;  %v5220_v8 = vrot.slane %v5218_v43, 4  ;;  %v10432_v24 = vrot.slane %v5829_v59, 9  ;;  %v3235_v47 = vadd.f32 %v13447_v33, %v15552_v31 }
 0x2d3   : > { %v4650_v51 = vrot.slane %v4648_v58, 7  ;;  %v4353_v37 = vmul.f32 0.2, %v4321_v52  ;;  %v5226_v20 = vrot.slane %v5224_v0, 5  ;;  %v15553_v0 = vld [vmem:[#allocation27_spill] sm:$0xff]  ;;  %v6013_v59 = vunpack.c.l.b16 %v5919_v6 }
 0x2d4   : > { %6145 = vmatmul.bf16.gmra.mxu3 %v6037_v12  ;;  %v5217_v57 = vsel %vm11349_vm4, %v5212_v13, %v5216_v5  ;;  %v5221_v29 = vor.u32 %v5220_v8, %v5216_v5  ;;  %v11118_v12 = vld [vmem:[%s15471_s3 + $0x110] sm:$0xff]  ;;  %v3889_v8 = vadd.f32 %v13402_v60, %v3235_v47 }
 0x2d5   : > { %v4653_v55 = vor.u32 %v4651_v40, %v4650_v51  ;;  %v4655_v15 = vrot.slane %v4650_v51, 4  ;;  %v4385_v42 = vmax.f32 %v4321_v52, %v4353_v37  ;;  %5762 = vmatmul.bf16.gmra.mxu2 %v11056_v41  ;;  %v5407_v63 = vunpack.c.l.b16 %v5217_v57  ;;  %v4882_v40 = vld [vmem:[#allocation2 + $0x84] sm:$0xf]  ;;  %7113 = vmatpush.bf16.msrb.mxu1 %v11118_v12  ;;  %v11095_v57 = vld [vmem:[#allocation2 + $0x30] sm:$0xff] }
 0x2d6   : > { %v4237_v38 = vpop.f32.mrf.mxu0  ;;  %v5222_v50 = vrot.slane %v5221_v29, 4  ;;  %v5916_v37 = vsel %vm11554_vm7, %v10432_v24, %v5915_v49 }
 0x2d7   : > { %v4654_v19 = vsel %vm12898_vm13, %v4646_v18, %v4653_v55  ;;  %v4880_v28 = vsel %vm12914_vm14, %v4655_v15, %v4879_v10  ;;  %v4471_v32 = vpack.c.bf16 %v4385_v42, %v4385_v42  ;;  %v4286_v25 = vadd.f32 %v4237_v38, %v3888_v17  ;;  %v13497_v53 = vpop.f32.mrf.mxu3  ;;  %v4944_v62 = vld [vmem:[#allocation2 + $0x78] sm:$0xf]  ;;  %v15554_v18 = vld [vmem:[#allocation25_spill] sm:$0xff] }
 0x2d8   : > { %4878 = vst [vmem:[#allocation2 + $0x7c] sm:$0xf] %v4654_v19  ;;  %v13495_v30 = vpop.f32.mrf.mxu2  ;;  %v5227_v44 = vsel %vm11349_vm4, %v5222_v50, %v5226_v20  ;;  %v5229_v58 = vshrl.u32 %v4944_v62, 16  ;;  %v5232_v52 = vshll.u32 %v4944_v62, 16  ;;  %v2949_v55 = vadd.f32 %v15554_v18, %v15553_v0 }
 0x2d9   : > { %4881 = vst [vmem:[#allocation2 + $0x80] sm:$0x1] %v4880_v28  ;;  %v4657_v56 = vshrl.u32 %v4471_v32, 16  ;;  %v4322_v54 = vadd.f32 %v13246_v46, %v4286_v25  ;;  %v4660_v33 = vshll.u32 %v4471_v32, 16  ;;  %v5408_v51 = vunpack.c.l.b16 %v5227_v44  ;;  %v11057_v44 = vld [vmem:[#allocation2 + $0x3c] sm:$0xff] }
 0x2da   : > { %v5231_v41 = vrot.slane %v5229_v58, 4  ;;  %v5234_v1 = vrot.slane %v5232_v52, 5  ;;  %v3236_v19 = vadd.f32 %v13473_v27, %v2949_v55  ;;  %v6012_v32 = vunpack.c.l.b16 %v5916_v37  ;;  %v4886_v58 = vld [vmem:[#allocation2 + $0x8c] sm:$0x1] }
 0x2db   : > { %v4659_v5 = vrot.slane %v4657_v56, 7  ;;  %v4354_v43 = vmul.f32 0.2, %v4322_v54  ;;  %v5430_v13 = vpack.c.b16 %v5408_v51, %v5407_v63  ;;  %v5924_v63 = vrot.slane %v5922_v39, 4 }
 0x2dc   : > { %v5235_v25 = vor.u32 %v5234_v1, %v5231_v41  ;;  %v6038_v47 = vpack.c.b16 %v6013_v59, %v6012_v32  ;;  %v3890_v52 = vadd.f32 %v13427_v3, %v3236_v19  ;;  %v5830_v1 = vld [vmem:[#allocation2 + $0x54] sm:$0xe]  ;;  %v5925_v3 = vrot.slane %v13388_v23, 5 }
 0x2dd   : > { %v4662_v10 = vor.u32 %v4660_v33, %v4659_v5  ;;  %v4386_v17 = vmax.f32 %v4322_v54, %v4354_v43  ;;  %v13516_v15 = vpop.f32.mrf.mxu1  ;;  %v4663_v51 = vrot.slane %v4659_v5, 4 }
 0x2de   : > { %v4240_v42 = vpop.f32.mrf.mxu0  ;;  %v5236_v12 = vrot.slane %v5235_v25, 4  ;;  %v5926_v25 = vsel %vm11554_vm7, %v5924_v63, %v5925_v3  ;;  %v5929_v3 = vrot.slane %v13421_v61, 5 }
 0x2df   : > { %v4883_v22 = vsel %vm12850_vm10, %v4662_v10, %v4882_v40  ;;  %v4472_v38 = vpack.c.bf16 %v4386_v17, %v4386_v17  ;;  %v4287_v49 = vadd.f32 %v4240_v42, %v3889_v8  ;;  %v13520_v29 = vld [vmem:[#allocation2 + $0x7c] sm:$0xf]  ;;  %v13526_v28 = vpop.f32.mrf.mxu3 }
 0x2e0   : > { %4884 = vst [vmem:[#allocation2 + $0x84] sm:$0xf] %v4883_v22  ;;  %v13524_v60 = vpop.f32.mrf.mxu2  ;;  %v5238_v50 = vshll.u32 %v13520_v29, 16  ;;  %5554 = vmatmul.bf16.gmra.mxu1 %v5430_v13  ;;  %v13530_v31 = vld [vmem:[#allocation2 + $0x80] sm:$0x1]  ;;  %v5242_v27 = vshrl.u32 %v13520_v29, 16 }
 0x2e1   : > { %v4665_v20 = vshrl.u32 %v4472_v38, 16  ;;  %v4323_v24 = vadd.f32 %v13246_v46, %v4287_v49  ;;  %6449 = vmatmul.bf16.gmra.mxu0 %v11095_v57  ;;  %v4668_v6 = vshll.u32 %v4472_v38, 16  ;;  %v5248_v43 = vshll.u32 %v13530_v31, 16  ;;  %v15555_v57 = vld [vmem:[#allocation29_spill] sm:$0xff] }
 0x2e2   : > { %v5240_v56 = vrot.slane %v5238_v50, 5  ;;  %v5244_v33 = vrot.slane %v5242_v27, 4  ;;  %v10433_v49 = vrot.slane %v5830_v1, 9  ;;  %v3237_v19 = vadd.f32 %v13495_v30, %v15555_v57 }
 0x2e3   : > { %v4667_v54 = vrot.slane %v4665_v20, 7  ;;  %v4355_v62 = vmul.f32 0.2, %v4323_v24  ;;  %v5250_v38 = vrot.slane %v5248_v43, 5  ;;  %v15556_v43 = vld [vmem:[#allocation30_spill] sm:$0xff]  ;;  %v6015_v1 = vunpack.c.l.b16 %v5926_v25 }
 0x2e4   : > { %6150 = vmatmul.bf16.gmra.mxu3 %v6038_v47  ;;  %v5241_v13 = vsel %vm11349_vm4, %v5236_v12, %v5240_v56  ;;  %v5245_v8 = vor.u32 %v5244_v33, %v5240_v56  ;;  %v3891_v33 = vadd.f32 %v13449_v16, %v3237_v19 }
 0x2e5   : > { %v4670_v40 = vor.u32 %v4668_v6, %v4667_v54  ;;  %v4672_v37 = vrot.slane %v4667_v54, 4  ;;  %v4387_v41 = vmax.f32 %v4323_v24, %v4355_v62  ;;  %5767 = vmatmul.bf16.gmra.mxu2 %v11057_v44  ;;  %v13537_v10 = vpop.f32.mrf.mxu1  ;;  %v5409_v24 = vunpack.c.l.b16 %v5241_v13  ;;  %v4889_v44 = vld [vmem:[#allocation2 + $0x90] sm:$0xf] }
 0x2e6   : > { %v4242_v17 = vpop.f32.mrf.mxu0  ;;  %v5246_v22 = vrot.slane %v5245_v8, 4 }
 0x2e7   : > { %v4671_v0 = vsel %vm12898_vm13, %v4663_v51, %v4670_v40  ;;  %v4887_v5 = vsel %vm12914_vm14, %v4672_v37, %v4886_v58  ;;  %v4473_v18 = vpack.c.bf16 %v4387_v41, %v4387_v41  ;;  %v4288_v55 = vadd.f32 %v4242_v17, %v3890_v52  ;;  %v13548_v59 = vpop.f32.mrf.mxu3  ;;  %v4946_v50 = vld [vmem:[#allocation2 + $0x84] sm:$0xf]  ;;  %v15557_v51 = vld [vmem:[#allocation28_spill] sm:$0xff] }
 0x2e8   : > { %4885 = vst [vmem:[#allocation2 + $0x88] sm:$0xf] %v4671_v0  ;;  %v13546_v42 = vpop.f32.mrf.mxu2  ;;  %v5251_v20 = vsel %vm11349_vm4, %v5246_v22, %v5250_v38  ;;  %v5253_v47 = vshrl.u32 %v4946_v50, 16  ;;  %v5256_v56 = vshll.u32 %v4946_v50, 16  ;;  %v2951_v40 = vadd.f32 %v15557_v51, %v15556_v43 }
 0x2e9   : > { %4888 = vst [vmem:[#allocation2 + $0x8c] sm:$0x1] %v4887_v5  ;;  %v4674_v23 = vshrl.u32 %v4473_v18, 16  ;;  %v4324_v32 = vadd.f32 %v13246_v46, %v4288_v55  ;;  %v4677_v54 = vshll.u32 %v4473_v18, 16  ;;  %v5410_v62 = vunpack.c.l.b16 %v5251_v20 }
 0x2ea   : > { %v5923_v46 = vsel %vm11554_vm7, %v10433_v49, %v5922_v39  ;;  %v5255_v30 = vrot.slane %v5253_v47, 4  ;;  %v5258_v58 = vrot.slane %v5256_v56, 5  ;;  %v11096_v39 = vld [vmem:[#allocation2 + $0x3c] sm:$0xff]  ;;  %v3238_v0 = vadd.f32 %v13524_v60, %v2951_v40  ;;  %v4893_v56 = vld [vmem:[#allocation2 + $0x98] sm:$0x1] }
 0x2eb   : > { %v4676_v27 = vrot.slane %v4674_v23, 7  ;;  %v4356_v6 = vmul.f32 0.2, %v4324_v32  ;;  %v5431_v12 = vpack.c.b16 %v5410_v62, %v5409_v24  ;;  %v6014_v18 = vunpack.c.l.b16 %v5923_v46  ;;  %v13580_v49 = vld [vmem:[%s15470_s2] ss:$0 sm:$0xff]  ;;  %v11058_v24 = vld [vmem:[#allocation2 + $0x48] sm:$0xff] }
 0x2ec   : > { %v5259_v55 = vor.u32 %v5258_v58, %v5255_v30  ;;  %v5931_v47 = vrot.slane %v5929_v3, 4 }
 0x2ed   : > { %v4679_v63 = vor.u32 %v4677_v54, %v4676_v27  ;;  %v4388_v52 = vmax.f32 %v4324_v32, %v4356_v6  ;;  %v13564_v37 = vpop.f32.mrf.mxu1  ;;  %v6039_v19 = vpack.c.b16 %v6015_v1, %v6014_v18  ;;  %v3892_v54 = vadd.f32 %v13475_v9, %v3238_v0  ;;  %v15558_v18 = vld [vmem:[#allocation32_spill] sm:$0xff] }
 0x2ee   : > { %v4245_v41 = vpop.f32.mrf.mxu0  ;;  %v5260_v6 = vrot.slane %v5259_v55, 4  ;;  %v4680_v46 = vrot.slane %v4676_v27, 4  ;;  %v5932_v9 = vrot.slane %v13431_v45, 5  ;;  %v3239_v55 = vadd.f32 %v13546_v42, %v15558_v18 }
 0x2ef   : > { %v4890_v21 = vsel %vm12850_vm10, %v4679_v63, %v4889_v44  ;;  %v4474_v17 = vpack.c.bf16 %v4388_v52, %v4388_v52  ;;  %v4289_v13 = vadd.f32 %v4245_v41, %v3891_v33  ;;  %v13568_v8 = vld [vmem:[#allocation2 + $0x88] sm:$0xf]  ;;  %v13574_v5 = vpop.f32.mrf.mxu3  ;;  %v5831_v52 = vld [vmem:[#allocation2 + $0x60] sm:$0xe] }
 0x2f0   : > { %4891 = vst [vmem:[#allocation2 + $0x90] sm:$0xf] %v4890_v21  ;;  %v13572_v16 = vpop.f32.mrf.mxu2  ;;  %v5262_v22 = vshll.u32 %v13568_v8, 16  ;;  %5559 = vmatmul.bf16.gmra.mxu1 %v5431_v12  ;;  %v13583_v60 = vld [vmem:[#allocation2 + $0x8c] sm:$0x1]  ;;  %v5266_v32 = vshrl.u32 %v13568_v8, 16 }
 0x2f1   : > { %v4682_v38 = vshrl.u32 %v4474_v17, 16  ;;  %v4325_v57 = vadd.f32 %v13580_v49, %v4289_v13  ;;  %6454 = vmatmul.bf16.gmra.mxu0 %v11096_v39  ;;  %v4685_v50 = vshll.u32 %v4474_v17, 16  ;;  %v5272_v44 = vshll.u32 %v13583_v60, 16 }
 0x2f2   : > { %v5264_v23 = vrot.slane %v5262_v22, 5  ;;  %v5268_v62 = vrot.slane %v5266_v32, 4  ;;  %v10434_v0 = vrot.slane %v5831_v52, 9  ;;  %v15560_v52 = vld [vmem:[#allocation31_spill] sm:$0xff] }
 0x2f3   : > { %v4684_v25 = vrot.slane %v4682_v38, 7  ;;  %v4357_v20 = vmul.f32 0.2, %v4325_v57  ;;  %v5274_v39 = vrot.slane %v5272_v44, 5  ;;  %v5933_v38 = vsel %vm11554_vm7, %v5931_v47, %v5932_v9 }
 0x2f4   : > { %6155 = vmatmul.bf16.gmra.mxu3 %v6039_v19  ;;  %v5265_v43 = vsel %vm11349_vm4, %v5260_v6, %v5264_v23  ;;  %v5269_v51 = vor.u32 %v5268_v62, %v5264_v23  ;;  %v5930_v47 = vsel %vm11554_vm7, %v10434_v0, %v5929_v3  ;;  %v6017_v9 = vunpack.c.l.b16 %v5933_v38 }
 0x2f5   : > { %v4687_v30 = vor.u32 %v4685_v50, %v4684_v25  ;;  %v4689_v58 = vrot.slane %v4684_v25, 4  ;;  %v4389_v63 = vmax.f32 %v4325_v57, %v4357_v20  ;;  %5772 = vmatmul.bf16.gmra.mxu2 %v11058_v24  ;;  %v13590_v12 = vpop.f32.mrf.mxu1  ;;  %v5411_v23 = vunpack.c.l.b16 %v5265_v43  ;;  %v11117_v50 = vld [vmem:[%s15471_s3 + $0x108] sm:$0xff] }
 0x2f6   : > { %v4247_v33 = vpop.f32.mrf.mxu0  ;;  %v5270_v13 = vrot.slane %v5269_v51, 4  ;;  %7114 = vmatpush.bf16.msrb.mxu1 %v11117_v50  ;;  %v6016_v0 = vunpack.c.l.b16 %v5930_v47  ;;  %v11059_v50 = vld [vmem:[#allocation2 + $0x54] sm:$0xff] }
 0x2f7   : > { %v4688_v40 = vsel %vm12898_vm13, %v4680_v46, %v4687_v30  ;;  %v4894_v27 = vsel %vm12914_vm14, %v4689_v58, %v4893_v56  ;;  %v4475_v41 = vpack.c.bf16 %v4389_v63, %v4389_v63  ;;  %v4290_v1 = vadd.f32 %v4247_v33, %v3892_v54  ;;  %v13601_v17 = vpop.f32.mrf.mxu3  ;;  %v4948_v57 = vld [vmem:[#allocation2 + $0x90] sm:$0xf]  ;;  %v4896_v54 = vld [vmem:[#allocation2 + $0x9c] sm:$0xf]  ;;  %v15559_v63 = vld [vmem:[#allocation33_spill] sm:$0xff] }
 0x2f8   : > { %4892 = vst [vmem:[#allocation2 + $0x94] sm:$0xf] %v4688_v40  ;;  %v13599_v21 = vpop.f32.mrf.mxu2  ;;  %v5275_v19 = vsel %vm11349_vm4, %v5270_v13, %v5274_v39  ;;  %v5277_v32 = vshrl.u32 %v4948_v57, 16  ;;  %v5280_v25 = vshll.u32 %v4948_v57, 16  ;;  %v3893_v58 = vadd.f32 %v13497_v53, %v3239_v55 }
 0x2f9   : > { %4895 = vst [vmem:[#allocation2 + $0x98] sm:$0x1] %v4894_v27  ;;  %v4691_v45 = vshrl.u32 %v4475_v41, 16  ;;  %v4326_v22 = vadd.f32 %v13580_v49, %v4290_v1  ;;  %v4694_v42 = vshll.u32 %v4475_v41, 16  ;;  %v5412_v56 = vunpack.c.l.b16 %v5275_v19  ;;  %v11097_v27 = vld [vmem:[#allocation2 + $0x48] sm:$0xff] }
 0x2fa   : > { %v5279_v6 = vrot.slane %v5277_v32, 4  ;;  %v5282_v62 = vrot.slane %v5280_v25, 5  ;;  %v2953_v33 = vadd.f32 %v15560_v52, %v15559_v63  ;;  %v5936_v1 = vrot.slane %v13469_v35, 5 }
 0x2fb   : > { %v4693_v20 = vrot.slane %v4691_v45, 7  ;;  %v4358_v24 = vmul.f32 0.2, %v4326_v22  ;;  %v5432_v30 = vpack.c.b16 %v5412_v56, %v5411_v23  ;;  %v6040_v57 = vpack.c.b16 %v6017_v9, %v6016_v0 }
 0x2fc   : > { %v3240_v13 = vadd.f32 %v13572_v16, %v2953_v33  ;;  %v5283_v18 = vor.u32 %v5282_v62, %v5279_v6 }
 0x2fd   : > { %v4696_v44 = vor.u32 %v4694_v42, %v4693_v20  ;;  %v4390_v46 = vmax.f32 %v4326_v22, %v4358_v24  ;;  %v13620_v43 = vpop.f32.mrf.mxu1  ;;  %v5938_v42 = vrot.slane %v5936_v1, 4  ;;  %v4900_v24 = vld [vmem:[#allocation2 + $0xa4] sm:$0x1]  ;;  %v4697_v62 = vrot.slane %v4693_v20, 4 }
 0x2fe   : > { %v4250_v51 = vpop.f32.mrf.mxu0  ;;  %v3894_v56 = vadd.f32 %v13526_v28, %v3240_v13  ;;  %v5939_v28 = vrot.slane %v13479_v2, 5 }
 0x2ff   : > { %v4897_v61 = vsel %vm12850_vm10, %v4696_v44, %v4896_v54  ;;  %v4476_v40 = vpack.c.bf16 %v4390_v46, %v4390_v46  ;;  %v4291_v3 = vadd.f32 %v4250_v51, %v3893_v58  ;;  %v13624_v41 = vld [vmem:[#allocation2 + $0x94] sm:$0xf]  ;;  %v13630_v39 = vpop.f32.mrf.mxu3  ;;  %v5284_v54 = vrot.slane %v5283_v18, 4  ;;  %v5832_v58 = vld [vmem:[#allocation2 + $0x6c] sm:$0xe] }
 0x300   : > { %4898 = vst [vmem:[#allocation2 + $0x9c] sm:$0xf] %v4897_v61  ;;  %v13628_v53 = vpop.f32.mrf.mxu2  ;;  %v5286_v55 = vshll.u32 %v13624_v41, 16  ;;  %5564 = vmatmul.bf16.gmra.mxu1 %v5432_v30  ;;  %v13634_v38 = vld [vmem:[#allocation2 + $0x98] sm:$0x1]  ;;  %v5290_v16 = vshrl.u32 %v13624_v41, 16 }
 0x301   : > { %v4699_v45 = vshrl.u32 %v4476_v40, 16  ;;  %v4327_v22 = vadd.f32 %v13580_v49, %v4291_v3  ;;  %6459 = vmatmul.bf16.gmra.mxu0 %v11097_v27  ;;  %v4702_v32 = vshll.u32 %v4476_v40, 16  ;;  %v5296_v6 = vshll.u32 %v13634_v38, 16 }
 0x302   : > { %v5288_v19 = vrot.slane %v5286_v55, 5  ;;  %v5292_v47 = vrot.slane %v5290_v16, 4  ;;  %v10435_v18 = vrot.slane %v5832_v58, 9  ;;  %v15561_v55 = vld [vmem:[#allocation5_spill] sm:$0xff]  ;;  %v15562_v58 = vld [vmem:[#allocation35_spill] sm:$0xff] }
 0x303   : > { %v4701_v23 = vrot.slane %v4699_v45, 7  ;;  %v4359_v25 = vmul.f32 0.2, %v4327_v22  ;;  %v5298_v0 = vrot.slane %v5296_v6, 5  ;;  %v3241_v45 = vadd.f32 %v13599_v21, %v15561_v55 }
 0x304   : > { %6160 = vmatmul.bf16.gmra.mxu3 %v6040_v57  ;;  %v5289_v33 = vsel %vm11349_vm4, %v5284_v54, %v5288_v19  ;;  %v5293_v51 = vor.u32 %v5292_v47, %v5288_v19  ;;  %v5940_v57 = vsel %vm11554_vm7, %v5938_v42, %v5939_v28  ;;  %v4903_v47 = vld [vmem:[#allocation2 + $0xa8] sm:$0xf]  ;;  %v5937_v21 = vsel %vm11554_vm7, %v10435_v18, %v5936_v1  ;;  %v11098_v1 = vld [vmem:[#allocation2 + $0x54] sm:$0xff] }
 0x305   : > { %v4704_v44 = vor.u32 %v4702_v32, %v4701_v23  ;;  %v4706_v46 = vrot.slane %v4701_v23, 4  ;;  %v4391_v30 = vmax.f32 %v4327_v22, %v4359_v25  ;;  %5777 = vmatmul.bf16.gmra.mxu2 %v11059_v50  ;;  %v13641_v63 = vpop.f32.mrf.mxu1  ;;  %v5413_v23 = vunpack.c.l.b16 %v5289_v33 }
 0x306   : > { %v4252_v52 = vpop.f32.mrf.mxu0  ;;  %v5294_v13 = vrot.slane %v5293_v51, 4  ;;  %v6018_v55 = vunpack.c.l.b16 %v5937_v21  ;;  %v4907_v21 = vld [vmem:[#allocation2 + $0xb0] sm:$0x1] }
 0x307   : > { %v4705_v9 = vsel %vm12898_vm13, %v4697_v62, %v4704_v44  ;;  %v4901_v20 = vsel %vm12914_vm14, %v4706_v46, %v4900_v24  ;;  %v4477_v61 = vpack.c.bf16 %v4391_v30, %v4391_v30  ;;  %v4292_v40 = vadd.f32 %v4252_v52, %v3894_v56  ;;  %v13652_v27 = vpop.f32.mrf.mxu3  ;;  %v4950_v19 = vld [vmem:[#allocation2 + $0x9c] sm:$0xf]  ;;  %v15563_v52 = vld [vmem:[#allocation34_spill] sm:$0xff] }
 0x308   : > { %4899 = vst [vmem:[#allocation2 + $0xa0] sm:$0xf] %v4705_v9  ;;  %v13650_v3 = vpop.f32.mrf.mxu2  ;;  %v5299_v16 = vsel %vm11349_vm4, %v5294_v13, %v5298_v0  ;;  %v5301_v32 = vshrl.u32 %v4950_v19, 16  ;;  %v5304_v25 = vshll.u32 %v4950_v19, 16  ;;  %v3895_v30 = vadd.f32 %v13548_v59, %v3241_v45 }
 0x309   : > { %4902 = vst [vmem:[#allocation2 + $0xa4] sm:$0x1] %v4901_v20  ;;  %v4708_v2 = vshrl.u32 %v4477_v61, 16  ;;  %v4328_v22 = vadd.f32 %v13580_v49, %v4292_v40  ;;  %v4711_v24 = vshll.u32 %v4477_v61, 16  ;;  %v5414_v54 = vunpack.c.l.b16 %v5299_v16 }
 0x30a   : > { %v5303_v6 = vrot.slane %v5301_v32, 4  ;;  %v5306_v62 = vrot.slane %v5304_v25, 5  ;;  %v2955_v33 = vadd.f32 %v15563_v52, %v15562_v58  ;;  %v6019_v9 = vunpack.c.l.b16 %v5940_v57  ;;  %v5833_v32 = vld [vmem:[#allocation2 + $0x78] sm:$0xe] }
 0x30b   : > { %v4710_v50 = vrot.slane %v4708_v2, 7  ;;  %v4360_v56 = vmul.f32 0.2, %v4328_v22  ;;  %v5433_v46 = vpack.c.b16 %v5414_v54, %v5413_v23  ;;  %v5943_v13 = vrot.slane %v13520_v29, 5  ;;  %v11060_v54 = vld [vmem:[#allocation2 + $0x60] sm:$0xff] }
 0x30c   : > { %v3242_v0 = vadd.f32 %v13628_v53, %v2955_v33  ;;  %v5307_v45 = vor.u32 %v5306_v62, %v5303_v6  ;;  %v6041_v16 = vpack.c.b16 %v6019_v9, %v6018_v55  ;;  %v15564_v55 = vld [vmem:[#allocation36_spill] sm:$0xff]  ;;  %v5950_v29 = vrot.slane %v13568_v8, 5 }
 0x30d   : > { %v4713_v42 = vor.u32 %v4711_v24, %v4710_v50  ;;  %v4392_v44 = vmax.f32 %v4328_v22, %v4360_v56  ;;  %v13668_v51 = vpop.f32.mrf.mxu1 }
 0x30e   : > { %v4255_v28 = vpop.f32.mrf.mxu0  ;;  %v3896_v6 = vadd.f32 %v13574_v5, %v3242_v0  ;;  %v5308_v62 = vrot.slane %v5307_v45, 4  ;;  %v5946_v5 = vrot.slane %v13530_v31, 5  ;;  %v3243_v45 = vadd.f32 %v13650_v3, %v15564_v55  ;;  %v11099_v55 = vld [vmem:[#allocation2 + $0x60] sm:$0xff] }
 0x30f   : > { %v4904_v35 = vsel %vm12850_vm10, %v4713_v42, %v4903_v47  ;;  %v4478_v20 = vpack.c.bf16 %v4392_v44, %v4392_v44  ;;  %v4293_v61 = vadd.f32 %v4255_v28, %v3895_v30  ;;  %v13672_v40 = vld [vmem:[#allocation2 + $0xa0] sm:$0xf]  ;;  %v13678_v18 = vpop.f32.mrf.mxu3  ;;  %v5945_v47 = vrot.slane %v5943_v13, 4 }
 0x310   : > { %4905 = vst [vmem:[#allocation2 + $0xa8] sm:$0xf] %v4904_v35  ;;  %v13676_v59 = vpop.f32.mrf.mxu2  ;;  %v5310_v2 = vshll.u32 %v13672_v40, 16  ;;  %5569 = vmatmul.bf16.gmra.mxu1 %v5433_v46  ;;  %v13682_v19 = vld [vmem:[#allocation2 + $0xa4] sm:$0x1]  ;;  %v5314_v53 = vshrl.u32 %v13672_v40, 16 }
 0x311   : > { %v4716_v22 = vshrl.u32 %v4478_v20, 16  ;;  %v4329_v57 = vadd.f32 %v13580_v49, %v4293_v61  ;;  %6464 = vmatmul.bf16.gmra.mxu0 %v11098_v1  ;;  %v4719_v24 = vshll.u32 %v4478_v20, 16  ;;  %v5320_v44 = vshll.u32 %v13682_v19, 16 }
 0x312   : > { %v5312_v23 = vrot.slane %v5310_v2, 5  ;;  %v5316_v42 = vrot.slane %v5314_v53, 4  ;;  %v4714_v46 = vrot.slane %v4710_v50, 4  ;;  %v10436_v20 = vrot.slane %v5833_v32, 9 }
 0x313   : > { %v4718_v25 = vrot.slane %v4716_v22, 7  ;;  %v4361_v56 = vmul.f32 0.2, %v4329_v57  ;;  %v5947_v31 = vsel %vm11554_vm7, %v5945_v47, %v5946_v5  ;;  %v15565_v5 = vld [vmem:[#allocation37_spill] sm:$0xff] }
 0x314   : > { %6165 = vmatmul.bf16.gmra.mxu3 %v6041_v16  ;;  %v5313_v9 = vsel %vm11349_vm4, %v5308_v62, %v5312_v23  ;;  %v5317_v35 = vor.u32 %v5316_v42, %v5312_v23  ;;  %v5322_v16 = vrot.slane %v5320_v44, 5  ;;  %v4910_v44 = vld [vmem:[#allocation2 + $0xb4] sm:$0xf] }
 0x315   : > { %v4721_v30 = vor.u32 %v4719_v24, %v4718_v25  ;;  %v4723_v58 = vrot.slane %v4718_v25, 4  ;;  %v4393_v52 = vmax.f32 %v4329_v57, %v4361_v56  ;;  %5782 = vmatmul.bf16.gmra.mxu2 %v11060_v54  ;;  %v13689_v33 = vpop.f32.mrf.mxu1  ;;  %v5415_v25 = vunpack.c.l.b16 %v5313_v9 }
 0x316   : > { %v4257_v28 = vpop.f32.mrf.mxu0  ;;  %v5318_v57 = vrot.slane %v5317_v35, 4  ;;  %v3897_v35 = vadd.f32 %v13601_v17, %v3243_v45 }
 0x317   : > { %v4722_v61 = vsel %vm12898_vm13, %v4714_v46, %v4721_v30  ;;  %v4908_v50 = vsel %vm12914_vm14, %v4723_v58, %v4907_v21  ;;  %v4479_v1 = vpack.c.bf16 %v4393_v52, %v4393_v52  ;;  %v4294_v0 = vadd.f32 %v4257_v28, %v3896_v6  ;;  %v13700_v22 = vpop.f32.mrf.mxu3  ;;  %v4952_v24 = vld [vmem:[#allocation2 + $0xa8] sm:$0xf]  ;;  %v11116_v6 = vld [vmem:[%s15471_s3 + $0x100] sm:$0xff] }
 0x318   : > { %4906 = vst [vmem:[#allocation2 + $0xac] sm:$0xf] %v4722_v61  ;;  %v5743_v2 = vpop.f32.mrf.mxu2  ;;  %v5323_v3 = vsel %vm11349_vm4, %v5318_v57, %v5322_v16  ;;  %v5325_v54 = vshrl.u32 %v4952_v24, 16  ;;  %v5328_v21 = vshll.u32 %v4952_v24, 16  ;;  %v5944_v46 = vsel %vm11554_vm7, %v10436_v20, %v5943_v13  ;;  %7115 = vmatpush.bf16.msrb.mxu1 %v11116_v6 }
 0x319   : > { %4909 = vst [vmem:[#allocation2 + $0xb0] sm:$0x1] %v4908_v50  ;;  %v4725_v23 = vshrl.u32 %v4479_v1, 16  ;;  %v5744_v53 = vadd.f32 %v5743_v2, %v13458_v48  ;;  %v4330_v32 = vadd.f32 %v13580_v49, %v4294_v0  ;;  %v4728_v56 = vshll.u32 %v4479_v1, 16 }
 0x31a   : > { %v5416_v42 = vunpack.c.l.b16 %v5323_v3  ;;  %v5327_v30 = vrot.slane %v5325_v54, 4  ;;  %v5330_v58 = vrot.slane %v5328_v21, 5  ;;  %v2957_v61 = vadd.f32 %v13436_v14, %v15565_v5  ;;  %v5834_v5 = vld [vmem:[#allocation2 + $0x84] sm:$0xe] }
 0x31b   : > { %v13711_v62 = vrot.slane %v4725_v23, 7  ;;  %v4362_v47 = vmul.f32 0.2, %v4330_v32  ;;  %v13714_v48 = vadd.f32 %v13652_v27, %v5744_v53  ;;  %v6021_v1 = vunpack.c.l.b16 %v5947_v31 }
 0x31c   : > { %v5434_v9 = vpack.c.b16 %v5416_v42, %v5415_v25  ;;  %v3244_v57 = vadd.f32 %v13676_v59, %v2957_v61  ;;  %v6020_v14 = vunpack.c.l.b16 %v5944_v46  ;;  %v5331_v16 = vor.u32 %v5330_v58, %v5327_v30 }
 0x31d   : > { %v4730_v52 = vor.u32 %v4728_v56, %v13711_v62  ;;  %v4394_v28 = vmax.f32 %v4330_v32, %v4362_v47  ;;  %v13724_v27 = vpop.f32.mrf.mxu1  ;;  %v5952_v3 = vrot.slane %v5950_v29, 4  ;;  %v11061_v47 = vld [vmem:[#allocation2 + $0x6c] sm:$0xff] }
 0x31e   : > { %v4260_v50 = vpop.f32.mrf.mxu0  ;;  %v6042_v24 = vpack.c.b16 %v6021_v1, %v6020_v14  ;;  %v5332_v46 = vrot.slane %v5331_v16, 4 }
 0x31f   : > { %v4911_v13 = vsel %vm12850_vm10, %v4730_v52, %v4910_v44  ;;  %v4480_v20 = vpack.c.bf16 %v4394_v28, %v4394_v28  ;;  %v4295_v0 = vadd.f32 %v4260_v50, %v3897_v35  ;;  %v13729_v2 = vld [vmem:[#allocation2 + $0xac] sm:$0xf]  ;;  %v13732_v45 = vpop.f32.mrf.mxu3  ;;  %v3898_v44 = vadd.f32 %v13630_v39, %v3244_v57 }
 0x320   : > { %4912 = vst [vmem:[#allocation2 + $0xb4] sm:$0xf] %v4911_v13  ;;  %v5745_v17 = vpop.f32.mrf.mxu2  ;;  %v5334_v31 = vshll.u32 %v13729_v2, 16  ;;  %5574 = vmatmul.bf16.gmra.mxu1 %v5434_v9  ;;  %v13737_v25 = vld [vmem:[#allocation2 + $0xb0] sm:$0x1]  ;;  %v5338_v59 = vshrl.u32 %v13729_v2, 16 }
 0x321   : > { %v4733_v23 = vshrl.u32 %v4480_v20, 16  ;;  %v5746_v53 = vadd.f32 %v5745_v17, %v13486_v26  ;;  %v4331_v32 = vadd.f32 %v13580_v49, %v4295_v0  ;;  %6469 = vmatmul.bf16.gmra.mxu0 %v11099_v55  ;;  %v4736_v21 = vshll.u32 %v4480_v20, 16  ;;  %v4914_v26 = vld [vmem:[#allocation2 + $0xbc] sm:$0x1] }
 0x322   : > { %v5336_v56 = vrot.slane %v5334_v31, 5  ;;  %v5340_v30 = vrot.slane %v5338_v59, 4  ;;  %v5344_v58 = vshll.u32 %v13737_v25, 16  ;;  %v4731_v52 = vrot.slane %v13711_v62, 4  ;;  %v11155_v62 = vld [vmem:[%s15471_s3 + $0x1b8] sm:$0xff] }
 0x323   : > { %v4735_v54 = vrot.slane %v4733_v23, 7  ;;  %v4363_v6 = vmul.f32 0.2, %v4331_v32  ;;  %v13743_v42 = vadd.f32 %v13678_v18, %v5746_v53  ;;  %v11131_v18 = vld [vmem:[%s15471_s3 + $0x178] sm:$0xff]  ;;  %v5953_v13 = vrot.slane %v13583_v60, 5  ;;  %7849 = vmatpush.bf16.msra.mxu3 %v11155_v62 }
 0x324   : > { %6170 = vmatmul.bf16.gmra.mxu3 %v6042_v24  ;;  %v5337_v39 = vsel %vm11349_vm4, %v5332_v46, %v5336_v56  ;;  %v5341_v1 = vor.u32 %v5340_v30, %v5336_v56  ;;  %7534 = vmatpush.bf16.msra.mxu2 %v11131_v18  ;;  %v5346_v60 = vrot.slane %v5344_v58, 5  ;;  %v10437_v23 = vrot.slane %v5834_v5, 9 }
 0x325   : > { %v4738_v28 = vor.u32 %v4736_v21, %v4735_v54  ;;  %v4740_v9 = vrot.slane %v4735_v54, 4  ;;  %v4395_v35 = vmax.f32 %v4331_v32, %v4363_v6  ;;  %5787 = vmatmul.bf16.gmra.mxu2 %v11061_v47  ;;  %v13751_v61 = vpop.f32.mrf.mxu1  ;;  %v5954_v53 = vsel %vm11554_vm7, %v5952_v3, %v5953_v13  ;;  %v4917_v3 = vld [vmem:[#allocation2 + $0xc0] sm:$0xf] }
 0x326   : > { %v4262_v50 = vpop.f32.mrf.mxu0  ;;  %v5342_v31 = vrot.slane %v5341_v1, 4  ;;  %v5417_v59 = vunpack.c.l.b16 %v5337_v39 }
 0x327   : > { %v4739_v20 = vsel %vm12898_vm13, %v4731_v52, %v4738_v28  ;;  %v4915_v0 = vsel %vm12914_vm14, %v4740_v9, %v4914_v26  ;;  %v4481_v55 = vpack.c.bf16 %v4395_v35, %v4395_v35  ;;  %v4296_v57 = vadd.f32 %v4262_v50, %v3898_v44  ;;  %v4954_v17 = vld [vmem:[#allocation2 + $0xb4] sm:$0xf]  ;;  %v13763_v16 = vpop.f32.mrf.mxu3 }
 0x328   : > { %4913 = vst [vmem:[#allocation2 + $0xb8] sm:$0xf] %v4739_v20  ;;  %v5748_v14 = vpop.f32.mrf.mxu2  ;;  %v5347_v21 = vsel %vm11349_vm4, %v5342_v31, %v5346_v60  ;;  %v5349_v6 = vshrl.u32 %v4954_v17, 16  ;;  %v5352_v47 = vshll.u32 %v4954_v17, 16  ;;  %v6023_v28 = vunpack.c.l.b16 %v5954_v53 }
 0x329   : > { %4916 = vst [vmem:[#allocation2 + $0xbc] sm:$0x1] %v4915_v0  ;;  %v4742_v32 = vshrl.u32 %v4481_v55, 16  ;;  %v5749_v24 = vadd.f32 %v5748_v14, %v13516_v15  ;;  %v4332_v56 = vadd.f32 %v13580_v49, %v4296_v57  ;;  %v4745_v54 = vshll.u32 %v4481_v55, 16  ;;  %v11171_v14 = vld [vmem:[%s15471_s3 + $0x238] sm:$0xff] }
 0x32a   : > { %v5418_v46 = vunpack.c.l.b16 %v5347_v21  ;;  %v5951_v15 = vsel %vm11554_vm7, %v10437_v23, %v5950_v29  ;;  %v5351_v5 = vrot.slane %v5349_v6, 4  ;;  %v5354_v18 = vrot.slane %v5352_v47, 5  ;;  %v11100_v29 = vld [vmem:[#allocation2 + $0x6c] sm:$0xff]  ;;  %8957 = vmatpush.bf16.msra.mxu1 %v11171_v14 }
 0x32b   : > { %v4744_v26 = vrot.slane %v4742_v32, 7  ;;  %v4364_v44 = vmul.f32 0.2, %v4332_v56  ;;  %v13772_v30 = vadd.f32 %v13700_v22, %v5749_v24  ;;  %v11163_v22 = vld [vmem:[%s15471_s3 + $0x1f8] sm:$0xff]  ;;  %v6022_v1 = vunpack.c.l.b16 %v5951_v15 }
 0x32c   : > { %v5435_v52 = vpack.c.b16 %v5418_v46, %v5417_v59  ;;  %8531 = vmatpush.bf16.msra.mxu0 %v11163_v22  ;;  %v5355_v31 = vor.u32 %v5354_v18, %v5351_v5  ;;  %v5957_v59 = vrot.slane %v13624_v41, 5  ;;  %v13805_v46 = vld [vmem:[#allocation2 + $0x10] sm:$0xf] }
 0x32d   : > { %v4747_v49 = vor.u32 %v4745_v54, %v4744_v26  ;;  %v4396_v58 = vmax.f32 %v4332_v56, %v4364_v44  ;;  %v13778_v9 = vpop.f32.mrf.mxu1  ;;  %v11062_v56 = vld [vmem:[#allocation2 + $0x78] sm:$0xff]  ;;  %v4748_v6 = vrot.slane %v4744_v26, 4  ;;  %v6605_v4 = vshll.u32 %v13805_v46, 16 }
 0x32e   : > { %v6435_v35 = vpop.f32.mrf.mxu0  ;;  %v6609_v7 = vshrl.u32 %v13805_v46, 16 }
 0x32f   : > { %v4918_v50 = vsel %vm12850_vm10, %v4747_v49, %v4917_v3  ;;  %v4482_v8 = vpack.c.bf16 %v4396_v58, %v4396_v58  ;;  %v13786_v39 = vadd.f32 %v6435_v35, %v13714_v48  ;;  %v13788_v13 = vld [vmem:[#allocation2 + $0xb8] sm:$0xf]  ;;  %v13790_v20 = vpop.f32.mrf.mxu3  ;;  %v6043_v48 = vpack.c.b16 %v6023_v28, %v6022_v1  ;;  %v6547_v1 = vld [vmem:[#allocation2 + $0xc] sm:$0xf] }
 0x330   : > { %4919 = vst [vmem:[#allocation2 + $0xc0] sm:$0xf] %v4918_v50  ;;  %v5750_v62 = vpop.f32.mrf.mxu2  ;;  %v13792_v0 = vld [vmem:[#allocation2 + $0xbc] sm:$0x1]  ;;  %v5358_v55 = vshll.u32 %v13788_v13, 16  ;;  %v5362_v57 = vshrl.u32 %v13788_v13, 16  ;;  %5579 = vmatmul.bf16.gmra.mxu1 %v5435_v52 }
 0x331   : > { %v4750_v11 = vshrl.u32 %v4482_v8, 16  ;;  %v5751_v17 = vadd.f32 %v5750_v62, %v13537_v10  ;;  %6474 = vmatmul.bf16.gmra.mxu0 %v11100_v29  ;;  %v5368_v53 = vshll.u32 %v13792_v0, 16  ;;  %v4753_v24 = vshll.u32 %v4482_v8, 16  ;;  %v4921_v10 = vld [vmem:[#allocation2 + $0xc8] sm:$0x1] }
 0x332   : > { %v5360_v60 = vrot.slane %v5358_v55, 5  ;;  %v5364_v23 = vrot.slane %v5362_v57, 4  ;;  %v5356_v49 = vrot.slane %v5355_v31, 4  ;;  %v5959_v28 = vrot.slane %v5957_v59, 4  ;;  %v5835_v50 = vld [vmem:[#allocation2 + $0x90] sm:$0xe] }
 0x333   : > { %v4752_v32 = vrot.slane %v4750_v11, 7  ;;  %v13803_v54 = vadd.f32 %v13732_v45, %v5751_v17  ;;  %v5370_v52 = vrot.slane %v5368_v53, 5  ;;  %v5960_v29 = vrot.slane %v13634_v38, 5 }
 0x334   : > { %v5365_v21 = vor.u32 %v5364_v23, %v5360_v60  ;;  %6175 = vmatmul.bf16.gmra.mxu3 %v6043_v48  ;;  %v5361_v18 = vsel %vm11349_vm4, %v5356_v49, %v5360_v60  ;;  %v10438_v55 = vrot.slane %v5835_v50, 9  ;;  %v6596_v17 = vshrl.u32 %v6547_v1, 16 }
 0x335   : > { %v4755_v47 = vor.u32 %v4753_v24, %v4752_v32  ;;  %v4757_v44 = vrot.slane %v4752_v32, 4  ;;  %5792 = vmatmul.bf16.gmra.mxu2 %v11062_v56  ;;  %v13807_v3 = vpop.f32.mrf.mxu1  ;;  %v5419_v62 = vunpack.c.l.b16 %v5361_v18  ;;  %v5961_v57 = vsel %vm11554_vm7, %v5959_v28, %v5960_v29  ;;  %v11101_v24 = vld [vmem:[#allocation2 + $0x78] sm:$0xff]  ;;  %v13840_v56 = vld [vmem:[#allocation2 + $0x14] sm:$0x1] }
 0x336   : > { %v6437_v15 = vpop.f32.mrf.mxu0  ;;  %v5366_v58 = vrot.slane %v5365_v21, 4  ;;  %v6599_v48 = vshll.u32 %v6547_v1, 16  ;;  %v13831_v14 = vrot.slane %v6605_v4, 5  ;;  %v6611_v31 = vrot.slane %v6609_v7, 4  ;;  %v11130_v4 = vld [vmem:[%s15471_s3 + $0x170] sm:$0xff] }
 0x337   : > { %v4756_v41 = vsel %vm12898_vm13, %v4748_v6, %v4755_v47  ;;  %v4922_v45 = vsel %vm12914_vm14, %v4757_v44, %v4921_v10  ;;  %v13814_v26 = vadd.f32 %v6437_v15, %v13743_v42  ;;  %v13816_v5 = vpop.f32.mrf.mxu3  ;;  %v6025_v53 = vunpack.c.l.b16 %v5961_v57  ;;  %v13845_v15 = vld [vmem:[#allocation2 + $0x28] sm:$0xf]  ;;  %v6550_v1 = vld [vmem:[#allocation2 + $0x18] sm:$0xf]  ;;  %v11154_v57 = vld [vmem:[%s15471_s3 + $0x1b0] sm:$0xff]  ;;  %7535 = vmatpush.bf16.msra.mxu2 %v11130_v4 }
 0x338   : > { %4920 = vst [vmem:[#allocation2 + $0xc4] sm:$0xf] %v4756_v41  ;;  %v5753_v35 = vpop.f32.mrf.mxu2  ;;  %v5371_v22 = vsel %vm11349_vm4, %v5366_v58, %v5370_v52  ;;  %v6598_v6 = vrot.slane %v6596_v17, 4  ;;  %v6601_v47 = vrot.slane %v6599_v48, 5  ;;  %v6612_v44 = vor.u32 %v6611_v31, %v13831_v14  ;;  %v13849_v52 = vld [vmem:[#allocation2 + $0x2c] sm:$0x1]  ;;  %7850 = vmatpush.bf16.msra.mxu3 %v11154_v57 }
 0x339   : > { %15566 = vst [vmem:[#allocation6_spill] sm:$0xff] %v13814_v26  ;;  %v5754_v42 = vadd.f32 %v5753_v35, %v13564_v37  ;;  %v5420_v8 = vunpack.c.l.b16 %v5371_v22  ;;  %v5958_v37 = vsel %vm11554_vm7, %v10438_v55, %v5957_v59  ;;  %v7231_v59 = vld [vmem:[#allocation2 + $0x24] sm:$0xe]  ;;  %v6615_v58 = vshll.u32 %v13840_v56, 16  ;;  %v13855_v35 = vld [vmem:[#allocation2 + $0x1c] sm:$0xf] }
 0x33a   : > { %4923 = vst [vmem:[#allocation2 + $0xc8] sm:$0x1] %v4922_v45  ;;  %v6024_v21 = vunpack.c.l.b16 %v5958_v37  ;;  %v11063_v41 = vld [vmem:[#allocation2 + $0x84] sm:$0xff]  ;;  %v5964_v45 = vrot.slane %v13672_v40, 5  ;;  %v10652_v18 = vrot.slane %v7231_v59, 9  ;;  %v7309_v22 = vrot.slane %v13845_v15, 5 }
 0x33b   : > { %v13829_v11 = vadd.f32 %v13763_v16, %v5754_v42  ;;  %v5436_v60 = vpack.c.b16 %v5420_v8, %v5419_v62  ;;  %v6602_v50 = vor.u32 %v6601_v47, %v6598_v6  ;;  %v6617_v29 = vrot.slane %v6615_v58, 5 }
 0x33c   : > { %v7310_v7 = vsel %vm11554_vm7, %v10652_v18, %v7309_v22  ;;  %v7311_v40 = vrot.slane %v7309_v22, 4  ;;  %v6629_v62 = vshll.u32 %v13855_v35, 16  ;;  %v6633_v55 = vshrl.u32 %v13855_v35, 16 }
 0x33d   : > { %v13835_v23 = vpop.f32.mrf.mxu1  ;;  %v5966_v48 = vrot.slane %v5964_v45, 4  ;;  %v6620_v47 = vshrl.u32 %v6550_v1, 16 }
 0x33e   : > { %v6440_v38 = vpop.f32.mrf.mxu0 }
 0x33f   : > { %v13838_v32 = vadd.f32 %v6440_v38, %v13772_v30  ;;  %v13842_v10 = vpop.f32.mrf.mxu3  ;;  %v6044_v30 = vpack.c.b16 %v6025_v53, %v6024_v21  ;;  %v6603_v38 = vrot.slane %v6602_v50, 4 }
 0x340   : > { %v5755_v16 = vpop.f32.mrf.mxu2  ;;  %5584 = vmatmul.bf16.gmra.mxu1 %v5436_v60 }
 0x341   : > { %15567 = vst [vmem:[#allocation7_spill] sm:$0xff] %v13838_v32  ;;  %v5756_v49 = vadd.f32 %v5755_v16, %v13590_v12  ;;  %6479 = vmatmul.bf16.gmra.mxu0 %v11101_v24  ;;  %v6613_v12 = vrot.slane %v6612_v44, 4  ;;  %v5836_v24 = vld [vmem:[#allocation2 + $0x9c] sm:$0xe]  ;;  %v7426_v16 = vunpack.c.l.b16 %v7310_v7  ;;  %v6623_v44 = vshll.u32 %v6550_v1, 16 }
 0x342   : > { %v6608_v59 = vsel %vm11349_vm4, %v6603_v38, %v13831_v14  ;;  %v10439_v18 = vrot.slane %v5836_v24, 9  ;;  %v6622_v14 = vrot.slane %v6620_v47, 4  ;;  %v6553_v24 = vld [vmem:[#allocation2 + $0x24] sm:$0xf]  ;;  %v6657_v47 = vshrl.u32 %v13845_v15, 16 }
 0x343   : > { %v13853_v28 = vadd.f32 %v13790_v20, %v5756_v49  ;;  %v7312_v20 = vrot.slane %v13849_v52, 5  ;;  %v6618_v53 = vsel %vm11349_vm4, %v6613_v12, %v6617_v29  ;;  %v13885_v49 = vrot.slane %v6629_v62, 5  ;;  %v13896_v12 = vld [vmem:[#allocation2 + $0x20] sm:$0x1]  ;;  %v11162_v29 = vld [vmem:[%s15471_s3 + $0x1f0] sm:$0xff]  ;;  %v11102_v62 = vld [vmem:[#allocation2 + $0x84] sm:$0xff] }
 0x344   : > { %6180 = vmatmul.bf16.gmra.mxu3 %v6044_v30  ;;  %v6635_v30 = vrot.slane %v6633_v55, 4  ;;  %v5965_v50 = vsel %vm11554_vm7, %v10439_v18, %v5964_v45  ;;  %v6625_v4 = vrot.slane %v6623_v44, 5  ;;  %8532 = vmatpush.bf16.msra.mxu0 %v11162_v29  ;;  %v13921_v44 = vld [vmem:[#allocation2 + $0x38] sm:$0x1]  ;;  %v11152_v29 = vld [vmem:[%s15471_s3 + $0x1a0] sm:$0xff] }
 0x345   : > { %5797 = vmatmul.bf16.gmra.mxu2 %v11063_v41  ;;  %v13864_v42 = vpop.f32.mrf.mxu1  ;;  %v7313_v31 = vsel %vm11554_vm7, %v7311_v40, %v7312_v20  ;;  %v6997_v41 = vunpack.c.l.b16 %v6618_v53  ;;  %v6026_v57 = vunpack.c.l.b16 %v5965_v50 }
 0x346   : > { %v6442_v8 = vpop.f32.mrf.mxu0  ;;  %v7427_v21 = vunpack.c.l.b16 %v7313_v31  ;;  %v13910_v31 = vld [vmem:[#allocation2 + $0x34] sm:$0xf]  ;;  %v6626_v53 = vor.u32 %v6625_v4, %v6622_v14  ;;  %v7319_v14 = vrot.slane %v13921_v44, 5 }
 0x347   : > { %v13872_v17 = vadd.f32 %v6442_v8, %v13803_v54  ;;  %v13876_v37 = vpop.f32.mrf.mxu3  ;;  %v5967_v54 = vrot.slane %v13682_v19, 5  ;;  %v6996_v19 = vunpack.c.l.b16 %v6608_v59  ;;  %v6636_v8 = vor.u32 %v6635_v30, %v13885_v49 }
 0x348   : > { %v5758_v60 = vpop.f32.mrf.mxu2  ;;  %v13887_v58 = vpack.c.b16 %v7427_v21, %v7426_v16  ;;  %v11153_v16 = vld [vmem:[%s15471_s3 + $0x1a8] sm:$0xff]  ;;  %v5971_v59 = vrot.slane %v13729_v2, 5  ;;  %v7316_v18 = vrot.slane %v13910_v31, 5 }
 0x349   : > { %15568 = vst [vmem:[#allocation8_spill] sm:$0xff] %v13872_v17  ;;  %v5759_v6 = vadd.f32 %v5758_v60, %v13620_v43  ;;  %v5968_v22 = vsel %vm11554_vm7, %v5966_v48, %v5967_v54  ;;  %v6639_v48 = vshll.u32 %v13896_v12, 16  ;;  %v7232_v60 = vld [vmem:[#allocation2 + $0x30] sm:$0xe]  ;;  %v6653_v54 = vshll.u32 %v13845_v15, 16  ;;  %7851 = vmatpush.bf16.msra.mxu3 %v11153_v16 }
 0x34a   : > { %v6027_v20 = vunpack.c.l.b16 %v5968_v22  ;;  %v7318_v50 = vrot.slane %v7316_v18, 4  ;;  %v6681_v17 = vshrl.u32 %v13910_v31, 16 }
 0x34b   : > { %v13892_v43 = vadd.f32 %v13816_v5, %v5759_v6  ;;  %v7028_v5 = vpack.c.b16 %v6997_v41, %v6996_v19  ;;  %v6637_v6 = vrot.slane %v6636_v8, 4  ;;  %v10653_v41 = vrot.slane %v7232_v60, 9 }
 0x34c   : > { %v6045_v21 = vpack.c.b16 %v6027_v20, %v6026_v57  ;;  %v6641_v22 = vrot.slane %v6639_v48, 5  ;;  %v6644_v19 = vshrl.u32 %v6553_v24, 16  ;;  %v13935_v20 = vrot.slane %v6653_v54, 5 }
 0x34d   : > { %v13898_v7 = vpop.f32.mrf.mxu1  ;;  %v7317_v15 = vsel %vm11554_vm7, %v10653_v41, %v7316_v18  ;;  %v6659_v8 = vrot.slane %v6657_v47, 4  ;;  %v7320_v57 = vsel %vm11554_vm7, %v7318_v50, %v7319_v14  ;;  %7852 = vmatpush.bf16.msra.mxu3 %v11152_v29  ;;  %v13956_v41 = vld [vmem:[#allocation2 + $0x1c] sm:$0xf]  ;;  %v13968_v14 = vld [vmem:[#allocation2 + $0x20] sm:$0x1] }
 0x34e   : > { %v6445_v40 = vpop.f32.mrf.mxu0  ;;  %v6646_v54 = vrot.slane %v6644_v19, 4 }
 0x34f   : > { %v13905_v1 = vadd.f32 %v6445_v40, %v13829_v11  ;;  %v13907_v55 = vpop.f32.mrf.mxu3  ;;  %v11170_v11 = vld [vmem:[%s15471_s3 + $0x230] sm:$0xff]  ;;  %v6647_v40 = vshll.u32 %v6553_v24, 16  ;;  %v7428_v24 = vunpack.c.l.b16 %v7317_v15  ;;  %v8652_v15 = vld [vmem:[#allocation2 + $0x18] sm:$0xe] }
 0x350   : > { %v5760_v45 = vpop.f32.mrf.mxu2  ;;  %7116 = vmatmul.bf16.vlgmr.msrb.gmra.mxu1 %v7028_v5 }
 0x351   : > { %15569 = vst [vmem:[#allocation9_spill] sm:$0xff] %v13905_v1  ;;  %v5761_v38 = vadd.f32 %v5760_v45, %v13641_v63  ;;  %6484 = vmatmul.bf16.gmra.mxu0 %v11102_v62  ;;  %v11064_v63 = vld [vmem:[#allocation2 + $0x90] sm:$0xff]  ;;  %8958 = vmatpush.bf16.msra.mxu1 %v11170_v11  ;;  %v6627_v62 = vrot.slane %v6626_v53, 4  ;;  %v5973_v45 = vrot.slane %v5971_v59, 4  ;;  %v7429_v11 = vunpack.c.l.b16 %v7320_v57 }
 0x352   : > { %v5974_v53 = vrot.slane %v13737_v25, 5  ;;  %v6649_v47 = vrot.slane %v6647_v40, 5 }
 0x353   : > { %v13925_v30 = vadd.f32 %v13842_v10, %v5761_v38  ;;  %v6642_v10 = vsel %vm11349_vm4, %v6637_v6, %v6641_v22  ;;  %v5837_v38 = vld [vmem:[#allocation2 + $0xa8] sm:$0xe]  ;;  %v11151_v6 = vld [vmem:[%s15471_s3 + $0x198] sm:$0xff]  ;;  %v13958_v18 = vpack.c.b16 %v7429_v11, %v7428_v24  ;;  %v13988_v24 = vld [vmem:[#allocation2 + $0x40] sm:$0xf]  ;;  %v10874_v11 = vrot.slane %v8652_v15, 9 }
 0x354   : > { %6185 = vmatmul.bf16.gmra.mxu3 %v6045_v21  ;;  %v6632_v21 = vsel %vm11349_vm4, %v6627_v62, %v13885_v49  ;;  %v5975_v22 = vsel %vm11554_vm7, %v5973_v45, %v5974_v53  ;;  %v6663_v49 = vshll.u32 %v13849_v52, 16  ;;  %v6650_v29 = vor.u32 %v6649_v47, %v6646_v54  ;;  %v11129_v52 = vld [vmem:[%s15471_s3 + $0x168] sm:$0xff]  ;;  %v7233_v54 = vld [vmem:[#allocation2 + $0x3c] sm:$0xe] }
 0x355   : > { %5802 = vmatmul.bf16.gmra.mxu2 %v11064_v63  ;;  %v13931_v4 = vpop.f32.mrf.mxu1  ;;  %v6660_v63 = vor.u32 %v6659_v8, %v13935_v20  ;;  %7853 = vmatpush.bf16.msra.mxu3 %v11151_v6  ;;  %v6998_v50 = vunpack.c.l.b16 %v6632_v21  ;;  %v6029_v8 = vunpack.c.l.b16 %v5975_v22  ;;  %v13992_v6 = vld [vmem:[#allocation2 + $0x2c] sm:$0x1] }
 0x356   : > { %v6447_v2 = vpop.f32.mrf.mxu0  ;;  %7536 = vmatpush.bf16.msra.mxu2 %v11129_v52 }
 0x357   : > { %v13941_v5 = vadd.f32 %v6447_v2, %v13853_v28  ;;  %v13945_v60 = vpop.f32.mrf.mxu3  ;;  %v6999_v28 = vunpack.c.l.b16 %v6642_v10  ;;  %v8718_v2 = vrot.slane %v13956_v41, 5  ;;  %v13973_v62 = vrot.slane %v6660_v63, 4  ;;  %v11128_v63 = vld [vmem:[%s15471_s3 + $0x160] sm:$0xff] }
 0x358   : > { %v5763_v48 = vpop.f32.mrf.mxu2 }
 0x359   : > { %15570 = vst [vmem:[#allocation10_spill] sm:$0xff] %v13941_v5  ;;  %v5764_v16 = vadd.f32 %v5763_v48, %v13668_v51  ;;  %v10440_v51 = vrot.slane %v5837_v38, 9  ;;  %v7029_v45 = vpack.c.b16 %v6999_v28, %v6998_v50  ;;  %v11103_v48 = vld [vmem:[#allocation2 + $0x90] sm:$0xff]  ;;  %v13986_v38 = vrot.slane %v6663_v49, 5  ;;  %v8653_v49 = vld [vmem:[#allocation2 + $0x24] sm:$0xe] }
 0x35a   : > { %v8720_v47 = vrot.slane %v8718_v2, 4  ;;  %v8721_v28 = vrot.slane %v13968_v14, 5  ;;  %v8719_v22 = vsel %vm11554_vm7, %v10874_v11, %v8718_v2  ;;  %7537 = vmatpush.bf16.msra.mxu2 %v11128_v63 }
 0x35b   : > { %v13964_v25 = vadd.f32 %v13876_v37, %v5764_v16  ;;  %v5972_v19 = vsel %vm11554_vm7, %v10440_v51, %v5971_v59  ;;  %v11150_v37 = vld [vmem:[%s15471_s3 + $0x190] sm:$0xff]  ;;  %v13981_v59 = vld [vmem:[#allocation2 + $0x28] sm:$0xf]  ;;  %v8845_v11 = vunpack.c.l.b16 %v8719_v22  ;;  %v11127_v22 = vld [vmem:[%s15471_s3 + $0x158] sm:$0xff] }
 0x35c   : > { %v6028_v53 = vunpack.c.l.b16 %v5972_v19  ;;  %7854 = vmatpush.bf16.msra.mxu3 %v11150_v37  ;;  %v11149_v51 = vld [vmem:[%s15471_s3 + $0x188] sm:$0xff]  ;;  %v8725_v15 = vrot.slane %v13981_v59, 5  ;;  %v14005_v19 = vrot.slane %v6650_v29, 4  ;;  %v8722_v52 = vsel %vm11554_vm7, %v8720_v47, %v8721_v28  ;;  %v11065_v37 = vld [vmem:[#allocation2 + $0x9c] sm:$0xff] }
 0x35d   : > { %v13971_v10 = vpop.f32.mrf.mxu1  ;;  %v7323_v29 = vrot.slane %v13988_v24, 5 }
 0x35e   : > { %v6450_v40 = vpop.f32.mrf.mxu0  ;;  %v6046_v50 = vpack.c.b16 %v6029_v8, %v6028_v53  ;;  %v10654_v8 = vrot.slane %v7233_v54, 9  ;;  %v8727_v47 = vrot.slane %v8725_v15, 4  ;;  %7538 = vmatpush.bf16.msra.mxu2 %v11127_v22 }
 0x35f   : > { %v13984_v57 = vadd.f32 %v6450_v40, %v13892_v43  ;;  %v13990_v21 = vpop.f32.mrf.mxu3  ;;  %v14011_v40 = vld [vmem:[#allocation2 + $0x44] sm:$0x1] }
 0x360   : > { %v5765_v16 = vpop.f32.mrf.mxu2  ;;  %7121 = vmatmul.bf16.gmra.mxu1 %v7029_v45  ;;  %v5978_v45 = vrot.slane %v13788_v13, 5  ;;  %7855 = vmatpush.bf16.msra.mxu3 %v11149_v51  ;;  %v7324_v53 = vsel %vm11554_vm7, %v10654_v8, %v7323_v29  ;;  %v7325_v13 = vrot.slane %v7323_v29, 4  ;;  %v6677_v51 = vshll.u32 %v13910_v31, 16 }
 0x361   : > { %15571 = vst [vmem:[#allocation11_spill] sm:$0xff] %v13984_v57  ;;  %v5766_v43 = vadd.f32 %v5765_v16, %v13689_v33  ;;  %6489 = vmatmul.bf16.gmra.mxu0 %v11103_v48  ;;  %v6666_v33 = vsel %vm11349_vm4, %v13973_v62, %v13986_v38  ;;  %v6556_v48 = vld [vmem:[#allocation2 + $0x30] sm:$0xf]  ;;  %v8846_v16 = vunpack.c.l.b16 %v8722_v52  ;;  %v10875_v62 = vrot.slane %v8653_v49, 9  ;;  %v11148_v49 = vld [vmem:[%s15471_s3 + $0x180] sm:$0xff] }
 0x362   : > { %v8728_v38 = vrot.slane %v13992_v6, 5  ;;  %v6671_v63 = vshll.u32 %v6556_v48, 16  ;;  %v5980_v1 = vrot.slane %v5978_v45, 4  ;;  %v5981_v31 = vrot.slane %v13792_v0, 5 }
 0x363   : > { %v14017_v2 = vadd.f32 %v13907_v55, %v5766_v43  ;;  %v7326_v55 = vrot.slane %v14011_v40, 5  ;;  %v6668_v43 = vshrl.u32 %v6556_v48, 16  ;;  %v14040_v48 = vld [vmem:[#allocation2 + $0x34] sm:$0xf]  ;;  %v14042_v8 = vpack.c.b16 %v8846_v16, %v8845_v11 }
 0x364   : > { %6190 = vmatmul.bf16.gmra.mxu3 %v6046_v50  ;;  %v8726_v50 = vsel %vm11554_vm7, %v10875_v62, %v8725_v15  ;;  %v8729_v29 = vsel %vm11554_vm7, %v8727_v47, %v8728_v38  ;;  %v6656_v11 = vsel %vm11349_vm4, %v14005_v19, %v13935_v20  ;;  %v7001_v16 = vunpack.c.l.b16 %v6666_v33  ;;  %v11126_v38 = vld [vmem:[%s15471_s3 + $0x150] sm:$0xff]  ;;  %v14066_v19 = vld [vmem:[#allocation2 + $0x38] sm:$0x1] }
 0x365   : > { %5807 = vmatmul.bf16.gmra.mxu2 %v11065_v37  ;;  %v14024_v28 = vpop.f32.mrf.mxu1  ;;  %v7327_v37 = vsel %vm11554_vm7, %v7325_v13, %v7326_v55  ;;  %15573 = vst [vmem:[#allocation13_spill] sm:$0xff] %v14042_v8  ;;  %7856 = vmatpush.bf16.msra.mxu3 %v11148_v49  ;;  %v5838_v13 = vld [vmem:[#allocation2 + $0xb4] sm:$0xe]  ;;  %v8848_v55 = vunpack.c.l.b16 %v8729_v29  ;;  %v14061_v22 = vrot.slane %v6677_v51, 5  ;;  %v5982_v49 = vsel %vm11554_vm7, %v5980_v1, %v5981_v31  ;;  %v11161_v51 = vld [vmem:[%s15471_s3 + $0x1e8] sm:$0xff] }
 0x366   : > { %v6452_v54 = vpop.f32.mrf.mxu0  ;;  %v7431_v15 = vunpack.c.l.b16 %v7327_v37  ;;  %v10441_v33 = vrot.slane %v5838_v13, 9  ;;  %v6683_v37 = vrot.slane %v6681_v17, 4  ;;  %7539 = vmatpush.bf16.msra.mxu2 %v11126_v38  ;;  %v8735_v17 = vrot.slane %v14066_v19, 5  ;;  %v6559_v13 = vld [vmem:[#allocation2 + $0x3c] sm:$0xf]  ;;  %8533 = vmatpush.bf16.msra.mxu0 %v11161_v51 }
 0x367   : > { %v14036_v52 = vadd.f32 %v6452_v54, %v13925_v30  ;;  %v14046_v5 = vpop.f32.mrf.mxu3  ;;  %v7430_v30 = vunpack.c.l.b16 %v7324_v53  ;;  %v8847_v53 = vunpack.c.l.b16 %v8726_v50  ;;  %v8732_v54 = vrot.slane %v14040_v48, 5 }
 0x368   : > { %v5768_v57 = vpop.f32.mrf.mxu2  ;;  %v7000_v50 = vunpack.c.l.b16 %v6656_v11  ;;  %v6031_v11 = vunpack.c.l.b16 %v5982_v49  ;;  %v6684_v31 = vor.u32 %v6683_v37, %v14061_v22  ;;  %v14099_v37 = vld [vmem:[#allocation2 + $0x4c] sm:$0xf] }
 0x369   : > { %15572 = vst [vmem:[#allocation12_spill] sm:$0xff] %v14036_v52  ;;  %v5769_v62 = vadd.f32 %v5768_v57, %v13724_v27  ;;  %v14058_v47 = vpack.c.b16 %v7431_v15, %v7430_v30  ;;  %v6670_v27 = vrot.slane %v6668_v43, 4  ;;  %v6673_v57 = vrot.slane %v6671_v63, 5 }
 0x36a   : > { %v14070_v0 = vpack.c.b16 %v8848_v55, %v8847_v53  ;;  %v5979_v63 = vsel %vm11554_vm7, %v10441_v33, %v5978_v45  ;;  %v8734_v1 = vrot.slane %v8732_v54, 4  ;;  %v7030_v30 = vpack.c.b16 %v7001_v16, %v7000_v50  ;;  %v8654_v33 = vld [vmem:[#allocation2 + $0x30] sm:$0xe]  ;;  %v11169_v50 = vld [vmem:[%s15471_s3 + $0x228] sm:$0xff] }
 0x36b   : > { %15574 = vst [vmem:[#allocation14_spill] sm:$0xff] %v14058_v47  ;;  %v14064_v20 = vadd.f32 %v13945_v60, %v5769_v62  ;;  %v11125_v60 = vld [vmem:[%s15471_s3 + $0x148] sm:$0xff]  ;;  %v11104_v62 = vld [vmem:[#allocation2 + $0x9c] sm:$0xff]  ;;  %v6674_v55 = vor.u32 %v6673_v57, %v6670_v27  ;;  %v6687_v53 = vshll.u32 %v13921_v44, 16  ;;  %v6030_v49 = vunpack.c.l.b16 %v5979_v63  ;;  %8959 = vmatpush.bf16.msra.mxu1 %v11169_v50  ;;  %v14104_v63 = vld [vmem:[#allocation2 + $0x50] sm:$0x1] }
 0x36c   : > { %15575 = vst [vmem:[#allocation15_spill] sm:$0xff] %v14070_v0  ;;  %7540 = vmatpush.bf16.msra.mxu2 %v11125_v60  ;;  %v8736_v16 = vsel %vm11554_vm7, %v8734_v1, %v8735_v17  ;;  %v11124_v27 = vld [vmem:[%s15471_s3 + $0x140] sm:$0xff]  ;;  %v6692_v44 = vshrl.u32 %v6559_v13, 16  ;;  %v6695_v57 = vshll.u32 %v6559_v13, 16  ;;  %v11066_v60 = vld [vmem:[#allocation2 + $0xa8] sm:$0xff]  ;;  %v10876_v17 = vrot.slane %v8654_v33, 9 }
 0x36d   : > { %v14072_v29 = vpop.f32.mrf.mxu1  ;;  %v6047_v51 = vpack.c.b16 %v6031_v11, %v6030_v49  ;;  %v14106_v1 = vld [vmem:[#allocation2 + $0x40] sm:$0xf]  ;;  %v7330_v13 = vrot.slane %v14099_v37, 5  ;;  %v6701_v0 = vshll.u32 %v13988_v24, 16  ;;  %v6705_v11 = vshrl.u32 %v13988_v24, 16 }
 0x36e   : > { %v6455_v43 = vpop.f32.mrf.mxu0 }
 0x36f   : > { %v14084_v15 = vadd.f32 %v6455_v43, %v13964_v25  ;;  %v14086_v45 = vpop.f32.mrf.mxu3  ;;  %v7234_v43 = vld [vmem:[#allocation2 + $0x48] sm:$0xe]  ;;  %v7332_v33 = vrot.slane %v7330_v13, 4 }
 0x370   : > { %v5770_v38 = vpop.f32.mrf.mxu2  ;;  %7126 = vmatmul.bf16.gmra.mxu1 %v7030_v30  ;;  %v6675_v30 = vrot.slane %v6674_v55, 4  ;;  %7541 = vmatpush.bf16.msra.mxu2 %v11124_v27  ;;  %v7333_v55 = vrot.slane %v14104_v63, 5 }
 0x371   : > { %15576 = vst [vmem:[#allocation16_spill] sm:$0xff] %v14084_v15  ;;  %v5771_v25 = vadd.f32 %v5770_v38, %v13751_v61  ;;  %6494 = vmatmul.bf16.gmra.mxu0 %v11104_v62  ;;  %v6685_v62 = vrot.slane %v6684_v31, 4  ;;  %v6689_v38 = vrot.slane %v6687_v53, 5  ;;  %v8850_v31 = vunpack.c.l.b16 %v8736_v16  ;;  %v8655_v15 = vld [vmem:[#allocation2 + $0x3c] sm:$0xe] }
 0x372   : > { %v8739_v53 = vrot.slane %v14106_v1, 5 }
 0x373   : > { %v14102_v61 = vadd.f32 %v13990_v21, %v5771_v25  ;;  %v10655_v21 = vrot.slane %v7234_v43, 9  ;;  %v8733_v25 = vsel %vm11554_vm7, %v10876_v17, %v8732_v54  ;;  %v6690_v54 = vsel %vm11349_vm4, %v6685_v62, %v6689_v38 }
 0x374   : > { %6195 = vmatmul.bf16.gmra.mxu3 %v6047_v51  ;;  %v6697_v51 = vrot.slane %v6695_v57, 5  ;;  %v7334_v17 = vsel %vm11554_vm7, %v7332_v33, %v7333_v55  ;;  %v8849_v16 = vunpack.c.l.b16 %v8733_v25  ;;  %v8741_v62 = vrot.slane %v8739_v53, 4 }
 0x375   : > { %5812 = vmatmul.bf16.gmra.mxu2 %v11066_v60  ;;  %v14113_v49 = vpop.f32.mrf.mxu1  ;;  %v6694_v60 = vrot.slane %v6692_v44, 4  ;;  %v7331_v24 = vsel %vm11554_vm7, %v10655_v21, %v7330_v13  ;;  %v6703_v44 = vrot.slane %v6701_v0, 5  ;;  %v7433_v57 = vunpack.c.l.b16 %v7334_v17  ;;  %v14132_v13 = vld [vmem:[#allocation2 + $0x44] sm:$0x1] }
 0x376   : > { %v6457_v50 = vpop.f32.mrf.mxu0  ;;  %v6707_v21 = vrot.slane %v6705_v11, 4  ;;  %v7003_v38 = vunpack.c.l.b16 %v6690_v54  ;;  %v10877_v33 = vrot.slane %v8655_v15, 9  ;;  %v8742_v55 = vrot.slane %v14132_v13, 5 }
 0x377   : > { %v14118_v27 = vadd.f32 %v6457_v50, %v14017_v2  ;;  %v14122_v8 = vpop.f32.mrf.mxu3  ;;  %v6680_v2 = vsel %vm11349_vm4, %v6675_v30, %v14061_v22  ;;  %v7432_v50 = vunpack.c.l.b16 %v7331_v24  ;;  %v6698_v32 = vor.u32 %v6697_v51, %v6694_v60  ;;  %v14151_v51 = vld [vmem:[#allocation2 + $0x4c] sm:$0xf] }
 0x378   : > { %v5773_v43 = vpop.f32.mrf.mxu2  ;;  %v7002_v22 = vunpack.c.l.b16 %v6680_v2  ;;  %v8740_v0 = vsel %vm11554_vm7, %v10877_v33, %v8739_v53  ;;  %v8743_v24 = vsel %vm11554_vm7, %v8741_v62, %v8742_v55  ;;  %v6711_v53 = vshll.u32 %v14011_v40, 16  ;;  %v14165_v40 = vld [vmem:[#allocation2 + $0x58] sm:$0xf] }
 0x379   : > { %15577 = vst [vmem:[#allocation17_spill] sm:$0xff] %v14118_v27  ;;  %v5774_v52 = vadd.f32 %v5773_v43, %v13778_v9  ;;  %v14134_v27 = vpack.c.b16 %v8850_v31, %v8849_v16  ;;  %v14139_v9 = vpack.c.b16 %v7433_v57, %v7432_v50  ;;  %v6708_v31 = vor.u32 %v6707_v21, %v6703_v44  ;;  %v14163_v50 = vld [vmem:[#allocation2 + $0x18] sm:$0xe] }
 0x37a   : > { %v7031_v60 = vpack.c.b16 %v7003_v38, %v7002_v22  ;;  %v6699_v15 = vrot.slane %v6698_v32, 4  ;;  %v8851_v17 = vunpack.c.l.b16 %v8740_v0  ;;  %v8852_v16 = vunpack.c.l.b16 %v8743_v24  ;;  %v11160_v32 = vld [vmem:[%s15471_s3 + $0x1e0] sm:$0xff]  ;;  %v7235_v38 = vld [vmem:[#allocation2 + $0x54] sm:$0xe]  ;;  %v11132_v22 = vld [vmem:[#allocation2 + $0x18] sm:$0xff] }
 0x37b   : > { %15578 = vst [vmem:[#allocation18_spill] sm:$0xff] %v14134_v27  ;;  %v14137_v25 = vadd.f32 %v14046_v5, %v5774_v52  ;;  %v11105_v52 = vld [vmem:[#allocation2 + $0xa8] sm:$0xff]  ;;  %v7295_v21 = vrot.slane %v13805_v46, 5  ;;  %v6709_v62 = vrot.slane %v6708_v31, 4  ;;  %v11067_v55 = vld [vmem:[#allocation2 + $0xb4] sm:$0xff]  ;;  %8534 = vmatpush.bf16.msra.mxu0 %v11160_v32  ;;  %v6713_v0 = vrot.slane %v6711_v53, 5 }
 0x37c   : > { %15579 = vst [vmem:[#allocation20_spill] sm:$0xff] %v14139_v9  ;;  %v6704_v57 = vsel %vm11349_vm4, %v6699_v15, %v6703_v44  ;;  %v14167_v33 = vpack.c.b16 %v8852_v16, %v8851_v17  ;;  %v14173_v46 = vld [vmem:[#allocation2 + $0x5c] sm:$0x1]  ;;  %v6562_v31 = vld [vmem:[#allocation2 + $0x48] sm:$0xf]  ;;  %v7298_v15 = vrot.slane %v13840_v56, 5 }
 0x37d   : > { %v14144_v30 = vpop.f32.mrf.mxu1  ;;  %v10656_v17 = vrot.slane %v7235_v38, 9  ;;  %v6714_v53 = vsel %vm11349_vm4, %v6709_v62, %v6713_v0  ;;  %v7340_v32 = vrot.slane %v14173_v46, 5  ;;  %v6716_v38 = vshrl.u32 %v6562_v31, 16 }
 0x37e   : > { %v6460_v11 = vpop.f32.mrf.mxu0  ;;  %15581 = vst [vmem:[#allocation19_spill] sm:$0xff] %v14167_v33  ;;  %v6725_v62 = vshll.u32 %v14099_v37, 16  ;;  %v6729_v0 = vshrl.u32 %v14099_v37, 16  ;;  %v7302_v37 = vrot.slane %v13855_v35, 5 }
 0x37f   : > { %v14149_v5 = vadd.f32 %v6460_v11, %v14064_v20  ;;  %v14153_v54 = vpop.f32.mrf.mxu3  ;;  %v7229_v20 = vld [vmem:[#allocation2 + $0xc] sm:$0xe]  ;;  %v14175_v11 = vunpack.c.l.b16 %v6704_v57  ;;  %v11159_v57 = vld [vmem:[%s15471_s3 + $0x1d8] sm:$0xff] }
 0x380   : > { %v5775_v43 = vpop.f32.mrf.mxu2  ;;  %7131 = vmatmul.bf16.gmra.mxu1 %v7031_v60  ;;  %v10650_v24 = vrot.slane %v7229_v20, 9  ;;  %v7337_v60 = vrot.slane %v14165_v40, 5  ;;  %8535 = vmatpush.bf16.msra.mxu0 %v11159_v57  ;;  %v7970_v57 = vld [vmem:[#allocation2 + $0x18] sm:$0xf] }
 0x381   : > { %15580 = vst [vmem:[#allocation21_spill] sm:$0xff] %v14149_v5  ;;  %v5776_v2 = vadd.f32 %v5775_v43, %v13807_v3  ;;  %6499 = vmatmul.bf16.gmra.mxu0 %v11105_v52  ;;  %v8746_v3 = vrot.slane %v14151_v51, 5  ;;  %v7297_v52 = vrot.slane %v7295_v21, 4  ;;  %v10651_v43 = vrot.slane %v14163_v50, 9 }
 0x382   : > { %v7339_v20 = vrot.slane %v7337_v60, 4  ;;  %v7338_v33 = vsel %vm11554_vm7, %v10656_v17, %v7337_v60 }
 0x383   : > { %v14171_v44 = vadd.f32 %v14086_v45, %v5776_v2  ;;  %v14180_v45 = vld [vmem:[#allocation2 + $0x50] sm:$0x1]  ;;  %v8748_v56 = vrot.slane %v8746_v3, 4  ;;  %v7434_v47 = vunpack.c.l.b16 %v7338_v33 }
 0x384   : > { %7857 = vmatmul.bf16.vlgmr.msra.gmra.mxu3 %v11132_v22  ;;  %15582 = vst [vmem:[#allocation23_spill] sm:$0xff] %v14180_v45  ;;  %v6719_v22 = vshll.u32 %v6562_v31, 16  ;;  %v7341_v9 = vsel %vm11554_vm7, %v7339_v20, %v7340_v32  ;;  %v8749_v26 = vrot.slane %v14180_v45, 5  ;;  %v11158_v31 = vld [vmem:[%s15471_s3 + $0x1d0] sm:$0xff] }
 0x385   : > { %5817 = vmatmul.bf16.gmra.mxu2 %v11067_v55  ;;  %v14182_v16 = vpop.f32.mrf.mxu1  ;;  %v8656_v55 = vld [vmem:[#allocation2 + $0x48] sm:$0xe]  ;;  %v7435_v60 = vunpack.c.l.b16 %v7341_v9  ;;  %8536 = vmatpush.bf16.msra.mxu0 %v11158_v31 }
 0x386   : > { %v6462_v2 = vpop.f32.mrf.mxu0  ;;  %v10878_v17 = vrot.slane %v8656_v55, 9  ;;  %v8750_v20 = vsel %vm11554_vm7, %v8748_v56, %v8749_v26  ;;  %v6721_v32 = vrot.slane %v6719_v22, 5  ;;  %v14218_v55 = vrot.slane %v6725_v62, 5 }
 0x387   : > { %v14191_v50 = vadd.f32 %v6462_v2, %v14102_v61  ;;  %v14195_v5 = vpop.f32.mrf.mxu3  ;;  %v7005_v2 = vunpack.c.l.b16 %v6714_v53  ;;  %v14220_v35 = vpack.c.b16 %v7435_v60, %v7434_v47  ;;  %v7305_v26 = vrot.slane %v13896_v12, 5 }
 0x388   : > { %v5778_v27 = vpop.f32.mrf.mxu2  ;;  %v8747_v9 = vsel %vm11554_vm7, %v10878_v17, %v8746_v3  ;;  %v8022_v56 = vshll.u32 %v7970_v57, 16  ;;  %v11157_v3 = vld [vmem:[%s15471_s3 + $0x1c8] sm:$0xff]  ;;  %v8854_v62 = vunpack.c.l.b16 %v8750_v20  ;;  %v14234_v12 = vsel %vm11554_vm7, %v10651_v43, %v7302_v37 }
 0x389   : > { %15583 = vst [vmem:[#allocation24_spill] sm:$0xff] %v14191_v50  ;;  %v5779_v61 = vadd.f32 %v5778_v27, %v13835_v23  ;;  %v7296_v50 = vsel %vm11554_vm7, %v10650_v24, %v7295_v21  ;;  %v7299_v23 = vsel %vm11554_vm7, %v7297_v52, %v7298_v15  ;;  %v6718_v27 = vrot.slane %v6716_v38, 4  ;;  %8537 = vmatpush.bf16.msra.mxu0 %v11157_v3  ;;  %v11133_v3 = vld [vmem:[#allocation2 + $0x24] sm:$0xff] }
 0x38a   : > { %v6731_v21 = vrot.slane %v6729_v0, 4  ;;  %15584 = vst [vmem:[#allocation22_spill] sm:$0xff] %v14220_v35  ;;  %v7422_v33 = vunpack.c.l.b16 %v7296_v50  ;;  %v8019_v24 = vshrl.u32 %v7970_v57, 16  ;;  %v7423_v38 = vunpack.c.l.b16 %v7299_v23  ;;  %v11106_v50 = vld [vmem:[#allocation2 + $0xb4] sm:$0xff]  ;;  %v14244_v57 = vld [vmem:[#allocation2 + $0x24] sm:$0xf] }
 0x38b   : > { %v14214_v53 = vadd.f32 %v14122_v8, %v5779_v61  ;;  %v7032_v8 = vpack.c.b16 %v7005_v2, %v14175_v11  ;;  %v8853_v22 = vunpack.c.l.b16 %v8747_v9  ;;  %v8028_v0 = vshll.u32 %v13956_v41, 16  ;;  %v14238_v61 = vld [vmem:[#allocation2 + $0x58] sm:$0xf]  ;;  %v11168_v23 = vld [vmem:[%s15471_s3 + $0x220] sm:$0xff] }
 0x38c   : > { %v8032_v11 = vshrl.u32 %v13956_v41, 16  ;;  %15586 = vst [vmem:[#allocation27_spill] sm:$0xff] %v14238_v61  ;;  %v6722_v60 = vor.u32 %v6721_v32, %v6718_v27  ;;  %v6732_v17 = vor.u32 %v6731_v21, %v14218_v55  ;;  %v7304_v41 = vrot.slane %v7302_v37, 4  ;;  %v11156_v27 = vld [vmem:[%s15471_s3 + $0x1c0] sm:$0xff]  ;;  %8960 = vmatpush.bf16.msra.mxu1 %v11168_v23  ;;  %v14280_v21 = vld [vmem:[#allocation2 + $0x5c] sm:$0x1] }
 0x38d   : > { %v14223_v52 = vpop.f32.mrf.mxu1  ;;  %v14246_v20 = vpack.c.b16 %v8854_v62, %v8853_v22  ;;  %v14255_v9 = vrot.slane %v8019_v24, 4  ;;  %v7454_v32 = vpack.c.b16 %v7423_v38, %v7422_v33  ;;  %v7236_v37 = vld [vmem:[#allocation2 + $0x60] sm:$0xe]  ;;  %v14267_v62 = vrot.slane %v8028_v0, 5  ;;  %8538 = vmatpush.bf16.msra.mxu0 %v11156_v27 }
 0x38e   : > { %v6465_v15 = vpop.f32.mrf.mxu0  ;;  %v8034_v24 = vrot.slane %v8032_v11, 4  ;;  %v8043_v33 = vshrl.u32 %v14244_v57, 16  ;;  %v6723_v38 = vrot.slane %v6722_v60, 4  ;;  %v6749_v0 = vshll.u32 %v14165_v40, 16 }
 0x38f   : > { %v14230_v47 = vadd.f32 %v6465_v15, %v14137_v25  ;;  %v14240_v31 = vpop.f32.mrf.mxu3  ;;  %v6735_v25 = vshll.u32 %v14104_v63, 16  ;;  %15587 = vst [vmem:[#allocation25_spill] sm:$0xff] %v14246_v20  ;;  %v14257_v63 = vrot.slane %v8022_v56, 5  ;;  %v8753_v15 = vrot.slane %v14238_v61, 5  ;;  %v14269_v56 = vld [vmem:[#allocation2 + $0x68] sm:$0x1] }
 0x390   : > { %v5780_v2 = vpop.f32.mrf.mxu2  ;;  %7136 = vmatmul.bf16.gmra.mxu1 %v7032_v8  ;;  %v14261_v8 = vld [vmem:[#allocation2 + $0x64] sm:$0xf]  ;;  %v10657_v23 = vrot.slane %v7236_v37, 9  ;;  %v14303_v61 = vrot.slane %v6749_v0, 5 }
 0x391   : > { %15585 = vst [vmem:[#allocation26_spill] sm:$0xff] %v14230_v47  ;;  %v5781_v43 = vadd.f32 %v5780_v2, %v13864_v42  ;;  %6504 = vmatmul.bf16.gmra.mxu0 %v11106_v50  ;;  %v8038_v42 = vshll.u32 %v13968_v14, 16  ;;  %v6733_v50 = vrot.slane %v6732_v17, 4  ;;  %v6737_v14 = vrot.slane %v6735_v25, 5 }
 0x392   : > { %v7344_v2 = vrot.slane %v14261_v8, 5  ;;  %v8025_v11 = vor.u32 %v14257_v63, %v14255_v9  ;;  %v6753_v25 = vshrl.u32 %v14165_v40, 16  ;;  %v6728_v9 = vsel %vm11349_vm4, %v6723_v38, %v14218_v55 }
 0x393   : > { %v14265_v22 = vadd.f32 %v14153_v54, %v5781_v43  ;;  %v14275_v54 = vsel %vm11554_vm7, %v7304_v41, %v7305_v26  ;;  %v6565_v43 = vld [vmem:[#allocation2 + $0x54] sm:$0xf]  ;;  %v8755_v26 = vrot.slane %v8753_v15, 4  ;;  %v8035_v63 = vor.u32 %v8034_v24, %v14267_v62 }
 0x394   : > { %7862 = vmatmul.bf16.gmra.mxu3 %v11133_v3  ;;  %v7346_v27 = vrot.slane %v7344_v2, 4  ;;  %v8657_v3 = vld [vmem:[#allocation2 + $0x54] sm:$0xe]  ;;  %v7345_v37 = vsel %vm11554_vm7, %v10657_v23, %v7344_v2  ;;  %v6738_v40 = vsel %vm11349_vm4, %v6733_v50, %v6737_v14  ;;  %v6740_v35 = vshrl.u32 %v6565_v43, 16 }
 0x395   : > { %7542 = vmatmul.bf16.vlgmr.msra.gmra.mxu2 %v7454_v32  ;;  %v14282_v60 = vpop.f32.mrf.mxu1  ;;  %v7347_v32 = vrot.slane %v14269_v56, 5  ;;  %v6743_v55 = vshll.u32 %v6565_v43, 16  ;;  %v10879_v24 = vrot.slane %v8657_v3, 9  ;;  %v6755_v2 = vrot.slane %v6753_v25, 4 }
 0x396   : > { %15588 = vst [vmem:[#allocation29_spill] sm:$0xff] %v14282_v60  ;;  %v6467_v17 = vpop.f32.mrf.mxu0  ;;  %v7436_v23 = vunpack.c.l.b16 %v7345_v37  ;;  %v7007_v45 = vunpack.c.l.b16 %v6738_v40  ;;  %v7425_v50 = vunpack.c.l.b16 %v14275_v54  ;;  %v8046_v43 = vshll.u32 %v14244_v57, 16 }
 0x397   : > { %v14287_v41 = vadd.f32 %v6467_v17, %v14171_v44  ;;  %v14295_v47 = vpop.f32.mrf.mxu3  ;;  %v7348_v44 = vsel %vm11554_vm7, %v7346_v27, %v7347_v32  ;;  %v8756_v17 = vrot.slane %v14280_v21, 5  ;;  %v8754_v27 = vsel %vm11554_vm7, %v10879_v24, %v8753_v15  ;;  %v14337_v24 = vld [vmem:[#allocation2 + $0x30] sm:$0xf] }
 0x398   : > { %v5783_v20 = vpop.f32.mrf.mxu2  ;;  %v7437_v38 = vunpack.c.l.b16 %v7348_v44  ;;  %v7006_v25 = vunpack.c.l.b16 %v6728_v9  ;;  %v6742_v32 = vrot.slane %v6740_v35, 4  ;;  %v6745_v3 = vrot.slane %v6743_v55, 5 }
 0x399   : > { %15589 = vst [vmem:[#allocation30_spill] sm:$0xff] %v14287_v41  ;;  %v5784_v41 = vadd.f32 %v5783_v20, %v13898_v7  ;;  %v8757_v60 = vsel %vm11554_vm7, %v8755_v26, %v8756_v17  ;;  %v8036_v7 = vrot.slane %v8035_v63, 4  ;;  %v8040_v20 = vrot.slane %v8038_v42, 5  ;;  %v11107_v42 = vld [vmem:[#allocation2 + $0xc0] sm:$0xff] }
 0x39a   : > { %v14314_v0 = vpack.c.b16 %v7437_v38, %v7436_v23  ;;  %v8026_v37 = vrot.slane %v8025_v11, 4  ;;  %v6756_v54 = vor.u32 %v6755_v2, %v14303_v61  ;;  %v8856_v44 = vunpack.c.l.b16 %v8757_v60  ;;  %v14326_v11 = vld [vmem:[#allocation2 + $0x64] sm:$0xf] }
 0x39b   : > { %v14309_v14 = vadd.f32 %v14195_v5, %v5784_v41  ;;  %v8045_v5 = vrot.slane %v8043_v33, 4  ;;  %v8855_v41 = vunpack.c.l.b16 %v8754_v27  ;;  %v7033_v17 = vpack.c.b16 %v7007_v45, %v7006_v25  ;;  %v7237_v25 = vld [vmem:[#allocation2 + $0x6c] sm:$0xe] }
 0x39c   : > { %15590 = vst [vmem:[#allocation28_spill] sm:$0xff] %v14314_v0  ;;  %v8031_v57 = vsel %vm11349_vm4, %v8026_v37, %v14267_v62  ;;  %v8052_v35 = vshll.u32 %v13981_v59, 16  ;;  %v6759_v33 = vshll.u32 %v14173_v46, 16  ;;  %v8041_v45 = vsel %vm11349_vm4, %v8036_v7, %v8040_v20  ;;  %v14341_v46 = vld [vmem:[#allocation2 + $0x70] sm:$0xf] }
 0x39d   : > { %v14316_v26 = vpop.f32.mrf.mxu1  ;;  %v8048_v60 = vrot.slane %v8046_v43, 5  ;;  %v6746_v62 = vor.u32 %v6745_v3, %v6742_v32  ;;  %v8056_v38 = vshrl.u32 %v13981_v59, 16  ;;  %v15593_v2 = vunpack.c.l.b16 %v14234_v12  ;;  %v11134_v20 = vld [vmem:[#allocation2 + $0x30] sm:$0xff] }
 0x39e   : > { %v6470_v40 = vpop.f32.mrf.mxu0  ;;  %v6757_v27 = vrot.slane %v6756_v54, 4  ;;  %v8760_v7 = vrot.slane %v14326_v11, 5  ;;  %v14344_v43 = vunpack.c.l.b16 %v8031_v57  ;;  %v14351_v59 = vrot.slane %v8052_v35, 5  ;;  %v14353_v3 = vld [vmem:[#allocation2 + $0x74] sm:$0x1] }
 0x39f   : > { %v14320_v15 = vadd.f32 %v6470_v40, %v14214_v53  ;;  %v14328_v63 = vpop.f32.mrf.mxu3  ;;  %v14333_v53 = vpack.c.b16 %v8856_v44, %v8855_v41  ;;  %v7455_v23 = vpack.c.b16 %v7425_v50, %v15593_v2  ;;  %v6761_v12 = vrot.slane %v6759_v33, 5  ;;  %v6568_v50 = vld [vmem:[#allocation2 + $0x60] sm:$0xf] }
 0x3a0   : > { %v5785_v9 = vpop.f32.mrf.mxu2  ;;  %7141 = vmatmul.bf16.gmra.mxu1 %v7033_v17  ;;  %v8049_v37 = vor.u32 %v8048_v60, %v8045_v5  ;;  %v8062_v40 = vshll.u32 %v13992_v6, 16  ;;  %v7351_v54 = vrot.slane %v14341_v46, 5  ;;  %v6747_v41 = vrot.slane %v6746_v62, 4  ;;  %v8658_v33 = vld [vmem:[#allocation2 + $0x60] sm:$0xe] }
 0x3a1   : > { %15591 = vst [vmem:[#allocation32_spill] sm:$0xff] %v14320_v15  ;;  %v5786_v55 = vadd.f32 %v5785_v9, %v13931_v4  ;;  %6509 = vmatmul.bf16.gmra.mxu0 %v11107_v42  ;;  %v14346_v4 = vunpack.c.l.b16 %v8041_v45  ;;  %v8058_v44 = vrot.slane %v8056_v38, 4  ;;  %v8067_v17 = vshrl.u32 %v14337_v24, 16 }
 0x3a2   : > { %15592 = vst [vmem:[#allocation33_spill] sm:$0xff] %v14333_v53  ;;  %v10658_v42 = vrot.slane %v7237_v25, 9  ;;  %v6762_v9 = vsel %vm11349_vm4, %v6757_v27, %v6761_v12  ;;  %v7353_v5 = vrot.slane %v7351_v54, 4  ;;  %v7354_v6 = vrot.slane %v14353_v3, 5 }
 0x3a3   : > { %v14349_v32 = vadd.f32 %v14240_v31, %v5786_v55  ;;  %v14358_v31 = vld [vmem:[#allocation2 + $0x68] sm:$0x1]  ;;  %v8762_v45 = vrot.slane %v8760_v7, 4  ;;  %v6764_v55 = vshrl.u32 %v6568_v50, 16  ;;  %v6767_v62 = vshll.u32 %v6568_v50, 16 }
 0x3a4   : > { %7867 = vmatmul.bf16.gmra.mxu3 %v11134_v20  ;;  %v7352_v38 = vsel %vm11554_vm7, %v10658_v42, %v7351_v54  ;;  %v6773_v25 = vshll.u32 %v14261_v8, 16  ;;  %v6777_v27 = vshrl.u32 %v14261_v8, 16  ;;  %v7355_v20 = vsel %vm11554_vm7, %v7353_v5, %v7354_v6 }
 0x3a5   : > { %7547 = vmatmul.bf16.gmra.mxu2 %v7455_v23  ;;  %v14360_v57 = vpop.f32.mrf.mxu1  ;;  %v8763_v12 = vrot.slane %v14358_v31, 5  ;;  %v7439_v53 = vunpack.c.l.b16 %v7355_v20  ;;  %v10880_v50 = vrot.slane %v8658_v33, 9  ;;  %v6752_v54 = vsel %vm11349_vm4, %v6747_v41, %v14303_v61 }
 0x3a6   : > { %v6472_v35 = vpop.f32.mrf.mxu0  ;;  %v8059_v42 = vor.u32 %v8058_v44, %v14351_v59  ;;  %v7009_v15 = vunpack.c.l.b16 %v6762_v9  ;;  %v6766_v0 = vrot.slane %v6764_v55, 4  ;;  %v14389_v6 = vrot.slane %v6773_v25, 5 }
 0x3a7   : > { %v14366_v60 = vadd.f32 %v6472_v35, %v14265_v22  ;;  %v14370_v23 = vpop.f32.mrf.mxu3  ;;  %v8050_v35 = vrot.slane %v8049_v37, 4  ;;  %v8764_v8 = vsel %vm11554_vm7, %v8762_v45, %v8763_v12  ;;  %v6769_v37 = vrot.slane %v6767_v62, 5 }
 0x3a8   : > { %v5788_v2 = vpop.f32.mrf.mxu2  ;;  %v6779_v33 = vrot.slane %v6777_v27, 4  ;;  %v7008_v61 = vunpack.c.l.b16 %v6752_v54  ;;  %v8451_v41 = vpack.c.b16 %v14346_v4, %v14344_v43  ;;  %v8064_v44 = vrot.slane %v8062_v40, 5  ;;  %v14406_v4 = vld [vmem:[#allocation2 + $0x70] sm:$0xf]  ;;  %v11135_v54 = vld [vmem:[#allocation2 + $0x3c] sm:$0xff] }
 0x3a9   : > { %15594 = vst [vmem:[#allocation31_spill] sm:$0xff] %v14366_v60  ;;  %v5789_v22 = vadd.f32 %v5788_v2, %v13971_v10  ;;  %v7438_v60 = vunpack.c.l.b16 %v7352_v38  ;;  %v8761_v10 = vsel %vm11554_vm7, %v10880_v50, %v8760_v7  ;;  %v8070_v9 = vshll.u32 %v14337_v24, 16  ;;  %v7238_v50 = vld [vmem:[#allocation2 + $0x78] sm:$0xe] }
 0x3aa   : > { %v8055_v7 = vsel %vm11349_vm4, %v8050_v35, %v14351_v59  ;;  %v8060_v55 = vrot.slane %v8059_v42, 4  ;;  %v8857_v62 = vunpack.c.l.b16 %v8761_v10  ;;  %v8858_v38 = vunpack.c.l.b16 %v8764_v8 }
 0x3ab   : > { %v14385_v5 = vadd.f32 %v14295_v47, %v5789_v22  ;;  %v14391_v2 = vpack.c.b16 %v7439_v53, %v7438_v60  ;;  %v7034_v25 = vpack.c.b16 %v7009_v15, %v7008_v61  ;;  %v8076_v60 = vshll.u32 %v14040_v48, 16 }
 0x3ac   : > { %v8080_v43 = vshrl.u32 %v14040_v48, 16  ;;  %v6770_v27 = vor.u32 %v6769_v37, %v6766_v0  ;;  %v6780_v20 = vor.u32 %v6779_v33, %v14389_v6  ;;  %v6783_v59 = vshll.u32 %v14269_v56, 16  ;;  %v11167_v48 = vld [vmem:[%s15471_s3 + $0x218] sm:$0xff] }
 0x3ad   : > { %v14396_v45 = vpop.f32.mrf.mxu1  ;;  %v14412_v12 = vpack.c.b16 %v8858_v38, %v8857_v62  ;;  %v8072_v22 = vrot.slane %v8070_v9, 5  ;;  %v8065_v35 = vsel %vm11349_vm4, %v8060_v55, %v8064_v44  ;;  %v14420_v0 = vld [vmem:[#allocation2 + $0x7c] sm:$0xf]  ;;  %v8767_v56 = vrot.slane %v14406_v4, 5  ;;  %8961 = vmatpush.bf16.msra.mxu1 %v11167_v48  ;;  %v6571_v9 = vld [vmem:[#allocation2 + $0x6c] sm:$0xf] }
 0x3ae   : > { %v6475_v47 = vpop.f32.mrf.mxu0  ;;  %v14423_v42 = vunpack.c.l.b16 %v8055_v7  ;;  %v14428_v8 = vrot.slane %v8076_v60, 5  ;;  %v8082_v10 = vrot.slane %v8080_v43, 4  ;;  %v6771_v37 = vrot.slane %v6770_v27, 4  ;;  %v14437_v55 = vld [vmem:[#allocation2 + $0x74] sm:$0x1] }
 0x3af   : > { %v14402_v53 = vadd.f32 %v6475_v47, %v14309_v14  ;;  %v14408_v40 = vpop.f32.mrf.mxu3  ;;  %15595 = vst [vmem:[#allocation5_spill] sm:$0xff] %v14412_v12  ;;  %v8069_v14 = vrot.slane %v8067_v17, 4  ;;  %v14430_v17 = vld [vmem:[#allocation2 + $0x80] sm:$0x1]  ;;  %v6781_v33 = vrot.slane %v6780_v20, 4  ;;  %v6785_v61 = vrot.slane %v6783_v59, 5 }
 0x3b0   : > { %v5790_v24 = vpop.f32.mrf.mxu2  ;;  %7146 = vmatmul.bf16.gmra.mxu1 %v7034_v25  ;;  %v14434_v44 = vunpack.c.l.b16 %v8065_v35  ;;  %v10659_v7 = vrot.slane %v7238_v50, 9  ;;  %v6801_v25 = vshrl.u32 %v14341_v46, 16  ;;  %v7361_v43 = vrot.slane %v14430_v17, 5 }
 0x3b1   : > { %v5791_v15 = vadd.f32 %v5790_v24, %v14024_v28  ;;  %8539 = vmatmul.bf16.vlgmr.msra.gmra.mxu0 %v8451_v41  ;;  %v7358_v41 = vrot.slane %v14420_v0, 5  ;;  %v8073_v47 = vor.u32 %v8072_v22, %v8069_v14  ;;  %v8659_v24 = vld [vmem:[#allocation2 + $0x6c] sm:$0xe]  ;;  %v6776_v20 = vsel %vm11349_vm4, %v6771_v37, %v14389_v6 }
 0x3b2   : > { %v8083_v59 = vor.u32 %v8082_v10, %v14428_v8  ;;  %v6788_v22 = vshrl.u32 %v6571_v9, 16  ;;  %v8770_v35 = vrot.slane %v14437_v55, 5  ;;  %v6791_v6 = vshll.u32 %v6571_v9, 16 }
 0x3b3   : > { %v14426_v28 = vadd.f32 %v14328_v63, %v5791_v15  ;;  %v6797_v63 = vshll.u32 %v14341_v46, 16  ;;  %v7360_v60 = vrot.slane %v7358_v41, 4  ;;  %v7359_v15 = vsel %vm11554_vm7, %v10659_v7, %v7358_v41 }
 0x3b4   : > { %7872 = vmatmul.bf16.gmra.mxu3 %v11135_v54  ;;  %v6786_v46 = vsel %vm11349_vm4, %v6781_v33, %v6785_v61  ;;  %v7979_v54 = vld [vmem:[#allocation2 + $0x3c] sm:$0xf]  ;;  %v10881_v37 = vrot.slane %v8659_v24, 9  ;;  %v6803_v41 = vrot.slane %v6801_v25, 4  ;;  %v7440_v7 = vunpack.c.l.b16 %v7359_v15 }
 0x3b5   : > { %7552 = vmatmul.bf16.gmra.mxu2 %v13887_v58  ;;  %v14439_v62 = vpop.f32.mrf.mxu1  ;;  %v8769_v58 = vrot.slane %v8767_v56, 4  ;;  %v7011_v33 = vunpack.c.l.b16 %v6786_v46  ;;  %v8452_v9 = vpack.c.b16 %v14434_v44, %v14423_v42  ;;  %v7010_v25 = vunpack.c.l.b16 %v6776_v20 }
 0x3b6   : > { %v6477_v38 = vpop.f32.mrf.mxu0  ;;  %v6790_v15 = vrot.slane %v6788_v22, 4 }
 0x3b7   : > { %v14444_v27 = vadd.f32 %v6477_v38, %v14349_v32  ;;  %v14452_v14 = vpop.f32.mrf.mxu3  ;;  %v7362_v32 = vsel %vm11554_vm7, %v7360_v60, %v7361_v43  ;;  %v14460_v38 = vrot.slane %v6797_v63, 5  ;;  %v8771_v12 = vsel %vm11554_vm7, %v8769_v58, %v8770_v35 }
 0x3b8   : > { %v5793_v48 = vpop.f32.mrf.mxu2  ;;  %v7441_v10 = vunpack.c.l.b16 %v7362_v32  ;;  %v8086_v60 = vshll.u32 %v14066_v19, 16  ;;  %v8074_v43 = vrot.slane %v8073_v47, 4  ;;  %v8091_v63 = vshrl.u32 %v7979_v54, 16  ;;  %v14483_v47 = vld [vmem:[#allocation2 + $0x7c] sm:$0xf] }
 0x3b9   : > { %15596 = vst [vmem:[#allocation35_spill] sm:$0xff] %v14444_v27  ;;  %v5794_v50 = vadd.f32 %v5793_v48, %v14072_v29  ;;  %v8768_v29 = vsel %vm11554_vm7, %v10881_v37, %v8767_v56  ;;  %v6793_v48 = vrot.slane %v6791_v6, 5  ;;  %v8094_v58 = vshll.u32 %v7979_v54, 16 }
 0x3ba   : > { %v14472_v24 = vpack.c.b16 %v7441_v10, %v7440_v7  ;;  %v6804_v32 = vor.u32 %v6803_v41, %v14460_v38  ;;  %v8084_v19 = vrot.slane %v8083_v59, 4  ;;  %v8859_v35 = vunpack.c.l.b16 %v8768_v29 }
 0x3bb   : > { %v14465_v61 = vadd.f32 %v14370_v23, %v5794_v50  ;;  %v8860_v50 = vunpack.c.l.b16 %v8771_v12  ;;  %v7035_v56 = vpack.c.b16 %v7011_v33, %v7010_v25  ;;  %v8079_v42 = vsel %vm11349_vm4, %v8074_v43, %v14428_v8  ;;  %v11136_v43 = vld [vmem:[#allocation2 + $0x48] sm:$0xff] }
 0x3bc   : > { %v8088_v44 = vrot.slane %v8086_v60, 5  ;;  %v6807_v6 = vshll.u32 %v14353_v3, 16  ;;  %v8100_v59 = vshll.u32 %v14106_v1, 16  ;;  %v8104_v12 = vshrl.u32 %v14106_v1, 16  ;;  %v14495_v60 = vld [vmem:[#allocation2 + $0x88] sm:$0xf] }
 0x3bd   : > { %v14474_v46 = vpop.f32.mrf.mxu1  ;;  %v14490_v54 = vpack.c.b16 %v8860_v50, %v8859_v35  ;;  %v6794_v10 = vor.u32 %v6793_v48, %v6790_v15  ;;  %v8093_v8 = vrot.slane %v8091_v63, 4  ;;  %v8096_v41 = vrot.slane %v8094_v58, 5  ;;  %v7239_v3 = vld [vmem:[#allocation2 + $0x84] sm:$0xe]  ;;  %v14512_v50 = vld [vmem:[#allocation2 + $0x80] sm:$0x1] }
 0x3be   : > { %v6480_v23 = vpop.f32.mrf.mxu0  ;;  %v6805_v7 = vrot.slane %v6804_v32, 4  ;;  %v8089_v33 = vsel %vm11349_vm4, %v8084_v19, %v8088_v44  ;;  %v8774_v29 = vrot.slane %v14483_v47, 5  ;;  %v14498_v1 = vunpack.c.l.b16 %v8079_v42  ;;  %v6574_v19 = vld [vmem:[#allocation2 + $0x78] sm:$0xf] }
 0x3bf   : > { %v14478_v37 = vadd.f32 %v6480_v23, %v14385_v5  ;;  %v14485_v22 = vpop.f32.mrf.mxu3  ;;  %15598 = vst [vmem:[#allocation36_spill] sm:$0xff] %v14490_v54  ;;  %v6809_v63 = vrot.slane %v6807_v6, 5  ;;  %v14506_v15 = vrot.slane %v8100_v59, 5  ;;  %v8106_v48 = vrot.slane %v8104_v12, 4  ;;  %v8660_v6 = vld [vmem:[#allocation2 + $0x78] sm:$0xe] }
 0x3c0   : > { %v5795_v20 = vpop.f32.mrf.mxu2  ;;  %7151 = vmatmul.bf16.gmra.mxu1 %v7035_v56  ;;  %v7365_v58 = vrot.slane %v14495_v60, 5  ;;  %v6795_v23 = vrot.slane %v6794_v10, 4  ;;  %v14510_v32 = vunpack.c.l.b16 %v8089_v33  ;;  %v8097_v35 = vor.u32 %v8096_v41, %v8093_v8 }
 0x3c1   : > { %15597 = vst [vmem:[#allocation34_spill] sm:$0xff] %v14478_v37  ;;  %v5796_v5 = vadd.f32 %v5795_v20, %v14113_v49  ;;  %8544 = vmatmul.bf16.gmra.mxu0 %v8452_v9  ;;  %v8110_v49 = vshll.u32 %v14132_v13, 16  ;;  %v14504_v9 = vld [vmem:[#allocation2 + $0x8c] sm:$0x1]  ;;  %v6810_v42 = vsel %vm11349_vm4, %v6805_v7, %v6809_v63  ;;  %v6821_v12 = vshll.u32 %v14420_v0, 16 }
 0x3c2   : > { %v7367_v44 = vrot.slane %v7365_v58, 4  ;;  %v7368_v20 = vrot.slane %v14504_v9, 5  ;;  %v6800_v7 = vsel %vm11349_vm4, %v6795_v23, %v14460_v38  ;;  %v8107_v33 = vor.u32 %v8106_v48, %v14506_v15  ;;  %v7982_v23 = vld [vmem:[#allocation2 + $0x48] sm:$0xf] }
 0x3c3   : > { %v14501_v25 = vadd.f32 %v14408_v40, %v5796_v5  ;;  %v10660_v40 = vrot.slane %v7239_v3, 9  ;;  %v6825_v5 = vshrl.u32 %v14420_v0, 16  ;;  %v8777_v3 = vrot.slane %v14512_v50, 5 }
 0x3c4   : > { %7877 = vmatmul.bf16.gmra.mxu3 %v11136_v43  ;;  %v6812_v0 = vshrl.u32 %v6574_v19, 16  ;;  %v14538_v37 = vrot.slane %v6821_v12, 5  ;;  %v14555_v12 = vld [vmem:[#allocation2 + $0x88] sm:$0xf] }
 0x3c5   : > { %7557 = vmatmul.bf16.gmra.mxu2 %v13958_v18  ;;  %v14514_v13 = vpop.f32.mrf.mxu1  ;;  %v8776_v18 = vrot.slane %v8774_v29, 4  ;;  %v7366_v10 = vsel %vm11554_vm7, %v10660_v40, %v7365_v58  ;;  %v7013_v58 = vunpack.c.l.b16 %v6810_v42  ;;  %v6815_v40 = vshll.u32 %v6574_v19, 16 }
 0x3c6   : > { %v6482_v56 = vpop.f32.mrf.mxu0  ;;  %v7442_v54 = vunpack.c.l.b16 %v7366_v10  ;;  %v6827_v38 = vrot.slane %v6825_v5, 4  ;;  %v7012_v42 = vunpack.c.l.b16 %v6800_v7 }
 0x3c7   : > { %v14520_v59 = vadd.f32 %v6482_v56, %v14426_v28  ;;  %v14526_v41 = vpop.f32.mrf.mxu3  ;;  %v7369_v28 = vsel %vm11554_vm7, %v7367_v44, %v7368_v20  ;;  %v10882_v56 = vrot.slane %v8660_v6, 9  ;;  %v14547_v20 = vrot.slane %v8097_v35, 4 }
 0x3c8   : > { %v5798_v8 = vpop.f32.mrf.mxu2  ;;  %v7443_v63 = vunpack.c.l.b16 %v7369_v28  ;;  %v14551_v6 = vrot.slane %v8107_v33, 4  ;;  %v6817_v28 = vrot.slane %v6815_v40, 5  ;;  %v6828_v35 = vor.u32 %v6827_v38, %v14538_v37  ;;  %v11166_v40 = vld [vmem:[%s15471_s3 + $0x210] sm:$0xff] }
 0x3c9   : > { %15599 = vst [vmem:[#allocation37_spill] sm:$0xff] %v14520_v59  ;;  %v5799_v43 = vadd.f32 %v5798_v8, %v14144_v30  ;;  %v8778_v59 = vsel %vm11554_vm7, %v8776_v18, %v8777_v3  ;;  %v8775_v44 = vsel %vm11554_vm7, %v10882_v56, %v8774_v29  ;;  %v8453_v30 = vpack.c.b16 %v14510_v32, %v14498_v1 }
 0x3ca   : > { %v14549_v19 = vpack.c.b16 %v7443_v63, %v7442_v54  ;;  %v14553_v18 = vrot.slane %v8110_v49, 5  ;;  %v6814_v8 = vrot.slane %v6812_v0, 4  ;;  %v8115_v29 = vshrl.u32 %v7982_v23, 16  ;;  %v14564_v49 = vld [vmem:[#allocation2 + $0x8c] sm:$0x1]  ;;  %8962 = vmatpush.bf16.msra.mxu1 %v11166_v40 }
 0x3cb   : > { %v14541_v48 = vadd.f32 %v14452_v14, %v5799_v43  ;;  %v8862_v14 = vunpack.c.l.b16 %v8778_v59  ;;  %v8861_v3 = vunpack.c.l.b16 %v8775_v44  ;;  %v7036_v32 = vpack.c.b16 %v7013_v58, %v7012_v42  ;;  %v8661_v63 = vld [vmem:[#allocation2 + $0x84] sm:$0xe]  ;;  %v14586_v44 = vld [vmem:[#allocation2 + $0x94] sm:$0xf] }
 0x3cc   : > { %v8118_v59 = vshll.u32 %v7982_v23, 16  ;;  %v8124_v43 = vshll.u32 %v14151_v51, 16  ;;  %v8103_v58 = vsel %vm11349_vm4, %v14547_v20, %v14506_v15  ;;  %v8128_v38 = vshrl.u32 %v14151_v51, 16  ;;  %v14592_v51 = vld [vmem:[#allocation2 + $0x98] sm:$0x1] }
 0x3cd   : > { %v7117_v5 = vpop.f32.mrf.mxu1  ;;  %v14569_v0 = vpack.c.b16 %v8862_v14, %v8861_v3  ;;  %v6818_v23 = vor.u32 %v6817_v28, %v6814_v8  ;;  %v8784_v42 = vrot.slane %v14564_v49, 5  ;;  %v11137_v14 = vld [vmem:[#allocation2 + $0x54] sm:$0xff]  ;;  %v6829_v15 = vrot.slane %v6828_v35, 4  ;;  %v15602_v3 = vld [vmem:[#allocation14_spill] sm:$0xff] }
 0x3ce   : > { %v6485_v10 = vpop.f32.mrf.mxu0  ;;  %v14558_v1 = vadd.f32 %v7117_v5, %v13786_v39  ;;  %v8781_v39 = vrot.slane %v14555_v12, 5  ;;  %v8117_v5 = vrot.slane %v8115_v29, 4  ;;  %v8120_v8 = vrot.slane %v8118_v59, 5  ;;  %v6577_v59 = vld [vmem:[#allocation2 + $0x84] sm:$0xf] }
 0x3cf   : > { %v14561_v54 = vadd.f32 %v6485_v10, %v14465_v61  ;;  %v14566_v33 = vpop.f32.mrf.mxu3  ;;  %15601 = vst [vmem:[#allocation39_spill] sm:$0xff] %v14569_v0  ;;  %v6831_v61 = vshll.u32 %v14430_v17, 16  ;;  %v7240_v17 = vld [vmem:[#allocation2 + $0x90] sm:$0xe]  ;;  %v10883_v10 = vrot.slane %v8661_v63, 9  ;;  %v14594_v28 = vrot.slane %v8124_v43, 5 }
 0x3d0   : > { %v5800_v7 = vpop.f32.mrf.mxu2  ;;  %7156 = vmatmul.bf16.gmra.mxu1 %v7036_v32  ;;  %v8130_v35 = vrot.slane %v8128_v38, 4  ;;  %v6819_v63 = vrot.slane %v6818_v23, 4  ;;  %v7375_v40 = vrot.slane %v14592_v51, 5  ;;  %v6845_v23 = vshll.u32 %v14495_v60, 16 }
 0x3d1   : > { %15600 = vst [vmem:[#allocation38_spill] sm:$0xff] %v14561_v54  ;;  %v5801_v56 = vadd.f32 %v5800_v7, %v14182_v16  ;;  %8549 = vmatmul.bf16.gmra.mxu0 %v8453_v30  ;;  %v8113_v16 = vsel %vm11349_vm4, %v14551_v6, %v14553_v18  ;;  %v8783_v30 = vrot.slane %v8781_v39, 4  ;;  %v7372_v6 = vrot.slane %v14586_v44, 5  ;;  %v15603_v54 = vld [vmem:[#allocation6_spill] sm:$0xff] }
 0x3d2   : > { %v6833_v32 = vrot.slane %v6831_v61, 5  ;;  %v8782_v29 = vsel %vm11554_vm7, %v10883_v10, %v8781_v39  ;;  %v6836_v10 = vshrl.u32 %v6577_v59, 16 }
 0x3d3   : > { %v14590_v20 = vadd.f32 %v14485_v22, %v5801_v56  ;;  %v8785_v18 = vsel %vm11554_vm7, %v8783_v30, %v8784_v42  ;;  %v10661_v22 = vrot.slane %v7240_v17, 9  ;;  %v7374_v43 = vrot.slane %v7372_v6, 4 }
 0x3d4   : > { %7882 = vmatmul.bf16.gmra.mxu3 %v11137_v14  ;;  %v8864_v0 = vunpack.c.l.b16 %v8785_v18  ;;  %v6834_v61 = vsel %vm11349_vm4, %v6829_v15, %v6833_v32  ;;  %v6849_v42 = vshrl.u32 %v14495_v60, 16  ;;  %v8863_v14 = vunpack.c.l.b16 %v8782_v29 }
 0x3d5   : > { %7562 = vmatmul.bf16.gmra.mxu2 %v15602_v3  ;;  %v7119_v7 = vpop.f32.mrf.mxu1  ;;  %v7373_v39 = vsel %vm11554_vm7, %v10661_v22, %v7372_v6  ;;  %v6839_v18 = vshll.u32 %v6577_v59, 16  ;;  %v6824_v15 = vsel %vm11349_vm4, %v6819_v63, %v14538_v37  ;;  %v8121_v6 = vor.u32 %v8120_v8, %v8117_v5  ;;  %v15606_v63 = vld [vmem:[#allocation23_spill] sm:$0xff] }
 0x3d6   : > { %v6487_v56 = vpop.f32.mrf.mxu0  ;;  %v14604_v27 = vadd.f32 %v7119_v7, %v15603_v54  ;;  %v7376_v54 = vsel %vm11554_vm7, %v7374_v43, %v7375_v40  ;;  %v7444_v32 = vunpack.c.l.b16 %v7373_v39  ;;  %v14623_v22 = vpack.c.b16 %v8864_v0, %v8863_v14 }
 0x3d7   : > { %v14607_v30 = vadd.f32 %v6487_v56, %v14501_v25  ;;  %v14613_v17 = vpop.f32.mrf.mxu3  ;;  %v7445_v3 = vunpack.c.l.b16 %v7376_v54  ;;  %v7015_v7 = vunpack.c.l.b16 %v6834_v61  ;;  %v8426_v56 = vunpack.c.l.b16 %v8113_v16  ;;  %v15607_v16 = vld [vmem:[#allocation7_spill] sm:$0xff] }
 0x3d8   : > { %v5803_v38 = vpop.f32.mrf.mxu2  ;;  %15605 = vst [vmem:[#allocation6_spill] sm:$0xff] %v14623_v22  ;;  %v14628_v43 = vrot.slane %v6845_v23, 5  ;;  %v6851_v29 = vrot.slane %v6849_v42, 4  ;;  %v7014_v40 = vunpack.c.l.b16 %v6824_v15  ;;  %v6838_v54 = vrot.slane %v6836_v10, 4 }
 0x3d9   : > { %15604 = vst [vmem:[#allocation14_spill] sm:$0xff] %v14607_v30  ;;  %v5804_v25 = vadd.f32 %v5803_v38, %v14223_v52  ;;  %v8131_v52 = vor.u32 %v8130_v35, %v14594_v28  ;;  %v14631_v59 = vpack.c.b16 %v7445_v3, %v7444_v32  ;;  %v8425_v38 = vunpack.c.l.b16 %v8103_v58  ;;  %v14640_v35 = vld [vmem:[#allocation2 + $0x94] sm:$0xf]  ;;  %v15609_v3 = vld [vmem:[#allocation29_spill] sm:$0xff] }
 0x3da   : > { %v6841_v37 = vrot.slane %v6839_v18, 5  ;;  %v8122_v0 = vrot.slane %v8121_v6, 4  ;;  %v8134_v61 = vshll.u32 %v15606_v63, 16  ;;  %v6852_v58 = vor.u32 %v6851_v29, %v14628_v43  ;;  %v15610_v32 = vld [vmem:[#allocation27_spill] sm:$0xff] }
 0x3db   : > { %v14626_v60 = vadd.f32 %v14526_v41, %v5804_v25  ;;  %v7037_v41 = vpack.c.b16 %v7015_v7, %v7014_v40  ;;  %v8454_v42 = vpack.c.b16 %v8426_v56, %v8425_v38  ;;  %v8132_v18 = vrot.slane %v8131_v52, 4 }
 0x3dc   : > { %v8127_v10 = vsel %vm11349_vm4, %v8122_v0, %v14594_v28  ;;  %v6842_v6 = vor.u32 %v6841_v37, %v6838_v54  ;;  %v8148_v7 = vshll.u32 %v15610_v32, 16  ;;  %v8152_v56 = vshrl.u32 %v15610_v32, 16  ;;  %v15612_v32 = vld [vmem:[#allocation8_spill] sm:$0xff] }
 0x3dd   : > { %v7122_v5 = vpop.f32.mrf.mxu1  ;;  %v6855_v40 = vshll.u32 %v14504_v9, 16  ;;  %v8136_v38 = vrot.slane %v8134_v61, 5  ;;  %v8788_v29 = vrot.slane %v14640_v35, 5  ;;  %v14653_v63 = vunpack.c.l.b16 %v8127_v10 }
 0x3de   : > { %v6490_v8 = vpop.f32.mrf.mxu0  ;;  %v14635_v39 = vadd.f32 %v7122_v5, %v15607_v16  ;;  %v8662_v5 = vld [vmem:[#allocation2 + $0x90] sm:$0xe]  ;;  %v6853_v52 = vrot.slane %v6852_v58, 4  ;;  %v14660_v16 = vld [vmem:[#allocation2 + $0x98] sm:$0x1]  ;;  %v6843_v9 = vrot.slane %v6842_v6, 4 }
 0x3df   : > { %v14638_v23 = vadd.f32 %v6490_v8, %v14541_v48  ;;  %v14642_v25 = vpop.f32.mrf.mxu3  ;;  %v7985_v48 = vld [vmem:[#allocation2 + $0x54] sm:$0xf]  ;;  %v11138_v8 = vld [vmem:[#allocation2 + $0x60] sm:$0xff]  ;;  %v8137_v54 = vsel %vm11349_vm4, %v8132_v18, %v8136_v38  ;;  %v14663_v61 = vrot.slane %v8148_v7, 5  ;;  %v6869_v58 = vshll.u32 %v14586_v44, 16 }
 0x3e0   : > { %v5805_v14 = vpop.f32.mrf.mxu2  ;;  %7161 = vmatmul.bf16.gmra.mxu1 %v7037_v41  ;;  %v8139_v37 = vshrl.u32 %v7985_v48, 16  ;;  %v8142_v0 = vshll.u32 %v7985_v48, 16  ;;  %v15611_v41 = vld [vmem:[#allocation20_spill] sm:$0xff]  ;;  %v8790_v18 = vrot.slane %v8788_v29, 4  ;;  %v8791_v7 = vrot.slane %v14660_v16, 5 }
 0x3e1   : > { %15608 = vst [vmem:[#allocation23_spill] sm:$0xff] %v14638_v23  ;;  %v5806_v15 = vadd.f32 %v5805_v14, %v15609_v3  ;;  %8554 = vmatmul.bf16.gmra.mxu0 %v8454_v42  ;;  %v8154_v42 = vrot.slane %v8152_v56, 4  ;;  %v10884_v14 = vrot.slane %v8662_v5, 9 }
 0x3e2   : > { %v8144_v22 = vrot.slane %v8142_v0, 5 }
 0x3e3   : > { %v14656_v28 = vadd.f32 %v14566_v33, %v5806_v15  ;;  %v6857_v33 = vrot.slane %v6855_v40, 5  ;;  %v6873_v15 = vshrl.u32 %v14586_v44, 16  ;;  %v8789_v6 = vsel %vm11554_vm7, %v10884_v14, %v8788_v29  ;;  %v7988_v29 = vld [vmem:[#allocation2 + $0x60] sm:$0xf] }
 0x3e4   : > { %7887 = vmatmul.bf16.gmra.mxu3 %v11138_v8  ;;  %v6580_v8 = vld [vmem:[#allocation2 + $0x90] sm:$0xf]  ;;  %v8428_v44 = vunpack.c.l.b16 %v8137_v54  ;;  %v8792_v14 = vsel %vm11554_vm7, %v8790_v18, %v8791_v7  ;;  %v8865_v23 = vunpack.c.l.b16 %v8789_v6  ;;  %v14687_v54 = vrot.slane %v6869_v58, 5 }
 0x3e5   : > { %7567 = vmatmul.bf16.gmra.mxu2 %v15611_v41  ;;  %v7124_v10 = vpop.f32.mrf.mxu1  ;;  %v6858_v40 = vsel %vm11349_vm4, %v6853_v52, %v6857_v33  ;;  %v8141_v41 = vrot.slane %v8139_v37, 4  ;;  %v8866_v30 = vunpack.c.l.b16 %v8792_v14  ;;  %v6875_v37 = vrot.slane %v6873_v15, 4  ;;  %v7241_v14 = vld [vmem:[#allocation2 + $0x9c] sm:$0xe] }
 0x3e6   : > { %v6492_v3 = vpop.f32.mrf.mxu0  ;;  %v14668_v48 = vadd.f32 %v7124_v10, %v15612_v32  ;;  %v6860_v32 = vshrl.u32 %v6580_v8, 16  ;;  %v7017_v52 = vunpack.c.l.b16 %v6858_v40  ;;  %v8163_v0 = vshrl.u32 %v7988_v29, 16 }
 0x3e7   : > { %v14671_v38 = vadd.f32 %v6492_v3, %v14590_v20  ;;  %v14676_v5 = vpop.f32.mrf.mxu3  ;;  %v6848_v20 = vsel %vm11349_vm4, %v6843_v9, %v14628_v43  ;;  %v8155_v3 = vor.u32 %v8154_v42, %v14663_v61  ;;  %v14692_v33 = vpack.c.b16 %v8866_v30, %v8865_v23 }
 0x3e8   : > { %v5808_v56 = vpop.f32.mrf.mxu2  ;;  %v7016_v43 = vunpack.c.l.b16 %v6848_v20  ;;  %v8455_v9 = vpack.c.b16 %v8428_v44, %v14653_v63  ;;  %v8145_v42 = vor.u32 %v8144_v22, %v8141_v41  ;;  %v8166_v18 = vshll.u32 %v7988_v29, 16  ;;  %v14705_v63 = vld [vmem:[#allocation2 + $0xa4] sm:$0x1] }
 0x3e9   : > { %15613 = vst [vmem:[#allocation7_spill] sm:$0xff] %v14671_v38  ;;  %v5809_v10 = vadd.f32 %v5808_v56, %v14316_v26  ;;  %v6863_v38 = vshll.u32 %v6580_v8, 16  ;;  %v14695_v56 = vld [vmem:[#allocation2 + $0xa0] sm:$0xf]  ;;  %v6862_v7 = vrot.slane %v6860_v32, 4  ;;  %v8156_v58 = vrot.slane %v8155_v3, 4 }
 0x3ea   : > { %15614 = vst [vmem:[#allocation29_spill] sm:$0xff] %v14692_v33  ;;  %v8158_v15 = vshll.u32 %v14280_v21, 16  ;;  %v7038_v30 = vpack.c.b16 %v7017_v52, %v7016_v43  ;;  %v6876_v22 = vor.u32 %v6875_v37, %v14687_v54  ;;  %v8165_v20 = vrot.slane %v8163_v0, 4  ;;  %v11165_v32 = vld [vmem:[%s15471_s3 + $0x208] sm:$0xff] }
 0x3eb   : > { %v14690_v26 = vadd.f32 %v14613_v17, %v5809_v10  ;;  %v6865_v40 = vrot.slane %v6863_v38, 5  ;;  %v15615_v17 = vld [vmem:[#allocation9_spill] sm:$0xff]  ;;  %v8172_v38 = vshll.u32 %v14326_v11, 16  ;;  %v8176_v21 = vshrl.u32 %v14326_v11, 16  ;;  %v11139_v11 = vld [vmem:[#allocation2 + $0x6c] sm:$0xff]  ;;  %8963 = vmatpush.bf16.msra.mxu1 %v11165_v32 }
 0x3ec   : > { %v7379_v3 = vrot.slane %v14695_v56, 5  ;;  %v8168_v52 = vrot.slane %v8166_v18, 5  ;;  %v10662_v37 = vrot.slane %v7241_v14, 9  ;;  %v8146_v0 = vrot.slane %v8145_v42, 4 }
 0x3ed   : > { %v7127_v8 = vpop.f32.mrf.mxu1  ;;  %v6866_v43 = vor.u32 %v6865_v40, %v6862_v7  ;;  %v8160_v33 = vrot.slane %v8158_v15, 5  ;;  %v14726_v18 = vrot.slane %v8172_v38, 5  ;;  %v8178_v42 = vrot.slane %v8176_v21, 4  ;;  %v14730_v40 = vld [vmem:[#allocation2 + $0xa0] sm:$0xf]  ;;  %v15617_v15 = vld [vmem:[#allocation22_spill] sm:$0xff] }
 0x3ee   : > { %v6495_v6 = vpop.f32.mrf.mxu0  ;;  %v14699_v10 = vadd.f32 %v7127_v8, %v15615_v17  ;;  %v7381_v8 = vrot.slane %v7379_v3, 4  ;;  %v6877_v17 = vrot.slane %v6876_v22, 4  ;;  %v7991_v22 = vld [vmem:[#allocation2 + $0x6c] sm:$0xf]  ;;  %v6893_v21 = vshll.u32 %v14695_v56, 16 }
 0x3ef   : > { %v14702_v23 = vadd.f32 %v6495_v6, %v14626_v60  ;;  %v14707_v41 = vpop.f32.mrf.mxu3  ;;  %v6879_v60 = vshll.u32 %v14592_v51, 16  ;;  %v7382_v6 = vrot.slane %v14705_v63, 5  ;;  %v7380_v51 = vsel %vm11554_vm7, %v10662_v37, %v7379_v3 }
 0x3f0   : > { %v5810_v44 = vpop.f32.mrf.mxu2  ;;  %7166 = vmatmul.bf16.gmra.mxu1 %v7038_v30  ;;  %v8161_v14 = vsel %vm11349_vm4, %v8156_v58, %v8160_v33  ;;  %v8169_v30 = vor.u32 %v8168_v52, %v8165_v20  ;;  %v6867_v38 = vrot.slane %v6866_v43, 4  ;;  %v6897_v32 = vshrl.u32 %v14695_v56, 16 }
 0x3f1   : > { %15616 = vst [vmem:[#allocation27_spill] sm:$0xff] %v14702_v23  ;;  %v5811_v29 = vadd.f32 %v5810_v44, %v14360_v57  ;;  %8559 = vmatmul.bf16.gmra.mxu0 %v8455_v9  ;;  %v8151_v9 = vsel %vm11349_vm4, %v8146_v0, %v14663_v61  ;;  %v7383_v7 = vsel %vm11554_vm7, %v7381_v8, %v7382_v6  ;;  %v7446_v37 = vunpack.c.l.b16 %v7380_v51  ;;  %v15618_v0 = vld [vmem:[#allocation10_spill] sm:$0xff] }
 0x3f2   : > { %v7447_v44 = vunpack.c.l.b16 %v7383_v7  ;;  %v8795_v58 = vrot.slane %v14730_v40, 5  ;;  %v8429_v43 = vunpack.c.l.b16 %v8151_v9  ;;  %v8430_v6 = vunpack.c.l.b16 %v8161_v14 }
 0x3f3   : > { %v14719_v57 = vadd.f32 %v14642_v25, %v5811_v29  ;;  %v6881_v25 = vrot.slane %v6879_v60, 5  ;;  %v6583_v29 = vld [vmem:[#allocation2 + $0x9c] sm:$0xf] }
 0x3f4   : > { %7892 = vmatmul.bf16.gmra.mxu3 %v11139_v11  ;;  %v8179_v11 = vor.u32 %v8178_v42, %v14726_v18  ;;  %v14749_v56 = vpack.c.b16 %v7447_v44, %v7446_v37  ;;  %v6884_v7 = vshrl.u32 %v6583_v29, 16  ;;  %v14762_v42 = vrot.slane %v8169_v30, 4 }
 0x3f5   : > { %7572 = vmatmul.bf16.gmra.mxu2 %v15617_v15  ;;  %v7129_v3 = vpop.f32.mrf.mxu1  ;;  %v6882_v33 = vsel %vm11349_vm4, %v6877_v17, %v6881_v25  ;;  %v8187_v15 = vshrl.u32 %v7991_v22, 16  ;;  %v6887_v25 = vshll.u32 %v6583_v29, 16  ;;  %v8797_v14 = vrot.slane %v8795_v58, 4 }
 0x3f6   : > { %v6497_v61 = vpop.f32.mrf.mxu0  ;;  %v14738_v8 = vadd.f32 %v7129_v3, %v15618_v0  ;;  %15620 = vst [vmem:[#allocation8_spill] sm:$0xff] %v14749_v56  ;;  %v7019_v17 = vunpack.c.l.b16 %v6882_v33  ;;  %v14755_v3 = vrot.slane %v6893_v21, 5  ;;  %v14757_v0 = vld [vmem:[#allocation2 + $0xa4] sm:$0x1]  ;;  %v8456_v44 = vpack.c.b16 %v8430_v6, %v8429_v43 }
 0x3f7   : > { %v14741_v60 = vadd.f32 %v6497_v61, %v14656_v28  ;;  %v14746_v52 = vpop.f32.mrf.mxu3  ;;  %v6872_v28 = vsel %vm11349_vm4, %v6867_v38, %v14687_v54  ;;  %v6899_v61 = vrot.slane %v6897_v32, 4  ;;  %15621 = vst [vmem:[#allocation9_spill] sm:$0xff] %v14757_v0  ;;  %v8182_v37 = vshll.u32 %v14358_v31, 16  ;;  %v8663_v38 = vld [vmem:[#allocation2 + $0x9c] sm:$0xe] }
 0x3f8   : > { %v5813_v20 = vpop.f32.mrf.mxu2  ;;  %v8190_v54 = vshll.u32 %v7991_v22, 16  ;;  %v8175_v29 = vsel %vm11349_vm4, %v14762_v42, %v14726_v18  ;;  %v8180_v21 = vrot.slane %v8179_v11, 4  ;;  %v14769_v32 = vld [vmem:[#allocation2 + $0xac] sm:$0xf]  ;;  %v14771_v33 = vrot.slane %v8187_v15, 4 }
 0x3f9   : > { %15619 = vst [vmem:[#allocation20_spill] sm:$0xff] %v14741_v60  ;;  %v5814_v51 = vadd.f32 %v5813_v20, %v14396_v45  ;;  %v7018_v45 = vunpack.c.l.b16 %v6872_v28  ;;  %v6886_v43 = vrot.slane %v6884_v7, 4  ;;  %v6889_v6 = vrot.slane %v6887_v25, 5  ;;  %v7242_v22 = vld [vmem:[#allocation2 + $0xa8] sm:$0xe]  ;;  %v15622_v28 = vld [vmem:[#allocation11_spill] sm:$0xff] }
 0x3fa   : > { %v6900_v31 = vor.u32 %v6899_v61, %v14755_v3  ;;  %v14781_v11 = vld [vmem:[#allocation2 + $0xb0] sm:$0x1]  ;;  %v10885_v15 = vrot.slane %v8663_v38, 9  ;;  %v8192_v7 = vrot.slane %v8190_v54, 5  ;;  %v8196_v25 = vshll.u32 %v14406_v4, 16 }
 0x3fb   : > { %v14760_v9 = vadd.f32 %v14676_v5, %v5814_v51  ;;  %v8798_v5 = vrot.slane %v14757_v0, 5  ;;  %v7039_v20 = vpack.c.b16 %v7019_v17, %v7018_v45  ;;  %v8200_v61 = vshrl.u32 %v14406_v4, 16 }
 0x3fc   : > { %v7386_v45 = vrot.slane %v14769_v32, 5  ;;  %v10663_v38 = vrot.slane %v7242_v22, 9  ;;  %v7389_v54 = vrot.slane %v14781_v11, 5  ;;  %v6890_v56 = vor.u32 %v6889_v6, %v6886_v43 }
 0x3fd   : > { %v7132_v30 = vpop.f32.mrf.mxu1  ;;  %v8799_v42 = vsel %vm11554_vm7, %v8797_v14, %v8798_v5  ;;  %v8796_v14 = vsel %vm11554_vm7, %v10885_v15, %v8795_v58  ;;  %v8184_v5 = vrot.slane %v8182_v37, 5  ;;  %v6901_v4 = vrot.slane %v6900_v31, 4  ;;  %v15624_v37 = vld [vmem:[#allocation28_spill] sm:$0xff]  ;;  %v6586_v15 = vld [vmem:[#allocation2 + $0xa8] sm:$0xf] }
 0x3fe   : > { %v6500_v51 = vpop.f32.mrf.mxu0  ;;  %v14776_v60 = vadd.f32 %v7132_v30, %v15622_v28  ;;  %v8868_v28 = vunpack.c.l.b16 %v8799_v42  ;;  %v6917_v42 = vshll.u32 %v14769_v32, 16 }
 0x3ff   : > { %v14779_v18 = vadd.f32 %v6500_v51, %v14690_v26  ;;  %v14785_v17 = vpop.f32.mrf.mxu3  ;;  %v6903_v26 = vshll.u32 %v14705_v63, 16  ;;  %v7388_v51 = vrot.slane %v7386_v45, 4  ;;  %v8202_v63 = vrot.slane %v8200_v61, 4 }
 0x400   : > { %v5815_v23 = vpop.f32.mrf.mxu2  ;;  %7171 = vmatmul.bf16.gmra.mxu1 %v7039_v20  ;;  %v8185_v43 = vsel %vm11349_vm4, %v8180_v21, %v8184_v5  ;;  %v6891_v21 = vrot.slane %v6890_v56, 4  ;;  %v8431_v5 = vunpack.c.l.b16 %v8175_v29  ;;  %v6908_v56 = vshrl.u32 %v6586_v15, 16 }
 0x401   : > { %15623 = vst [vmem:[#allocation22_spill] sm:$0xff] %v14779_v18  ;;  %v5816_v30 = vadd.f32 %v5815_v23, %v14439_v62  ;;  %8564 = vmatmul.bf16.gmra.mxu0 %v8456_v44  ;;  %v11140_v18 = vld [vmem:[#allocation2 + $0x78] sm:$0xff]  ;;  %v7387_v62 = vsel %vm11554_vm7, %v10663_v38, %v7386_v45  ;;  %v14800_v23 = vrot.slane %v8196_v25, 5  ;;  %v7390_v58 = vsel %vm11554_vm7, %v7388_v51, %v7389_v54 }
 0x402   : > { %v8867_v44 = vunpack.c.l.b16 %v8796_v14  ;;  %v6905_v20 = vrot.slane %v6903_v26, 5  ;;  %v7449_v6 = vunpack.c.l.b16 %v7390_v58  ;;  %v6921_v25 = vshrl.u32 %v14769_v32, 16 }
 0x403   : > { %v14796_v0 = vadd.f32 %v14707_v41, %v5816_v30  ;;  %v8193_v41 = vor.u32 %v8192_v7, %v14771_v33  ;;  %v7448_v61 = vunpack.c.l.b16 %v7387_v62  ;;  %v15626_v30 = vld [vmem:[#allocation12_spill] sm:$0xff]  ;;  %v14820_v7 = vld [vmem:[#allocation2 + $0xac] sm:$0xf]  ;;  %v8432_v32 = vunpack.c.l.b16 %v8185_v43 }
 0x404   : > { %7897 = vmatmul.bf16.gmra.mxu3 %v11140_v18  ;;  %v14810_v45 = vpack.c.b16 %v8868_v28, %v8867_v44  ;;  %v6906_v33 = vsel %vm11349_vm4, %v6901_v4, %v6905_v20  ;;  %v8203_v51 = vor.u32 %v8202_v63, %v14800_v23  ;;  %v6911_v62 = vshll.u32 %v6586_v15, 16 }
 0x405   : > { %7577 = vmatmul.bf16.gmra.mxu2 %v15624_v37  ;;  %v7134_v31 = vpop.f32.mrf.mxu1  ;;  %v14825_v54 = vpack.c.b16 %v7449_v6, %v7448_v61  ;;  %v7021_v4 = vunpack.c.l.b16 %v6906_v33  ;;  %v14831_v58 = vrot.slane %v6917_v42, 5  ;;  %v6923_v44 = vrot.slane %v6921_v25, 4  ;;  %v14833_v37 = vld [vmem:[#allocation2 + $0xb0] sm:$0x1]  ;;  %v14846_v42 = vld [vmem:[#allocation2 + $0xb8] sm:$0xf] }
 0x406   : > { %v6502_v22 = vpop.f32.mrf.mxu0  ;;  %15625 = vst [vmem:[#allocation10_spill] sm:$0xff] %v14810_v45  ;;  %v14813_v38 = vadd.f32 %v7134_v31, %v15626_v30  ;;  %v8802_v29 = vrot.slane %v14820_v7, 5  ;;  %v14839_v20 = vrot.slane %v8193_v41, 4  ;;  %v8457_v43 = vpack.c.b16 %v8432_v32, %v8431_v5  ;;  %v8664_v31 = vld [vmem:[#allocation2 + $0xa8] sm:$0xe]  ;;  %v15628_v5 = vld [vmem:[#allocation16_spill] sm:$0xff] }
 0x407   : > { %v14816_v18 = vadd.f32 %v6502_v22, %v14719_v57  ;;  %v14822_v14 = vpop.f32.mrf.mxu3  ;;  %v6896_v57 = vsel %vm11349_vm4, %v6891_v21, %v14755_v3  ;;  %v8206_v6 = vshll.u32 %v14437_v55, 16  ;;  %v7994_v3 = vld [vmem:[#allocation2 + $0x78] sm:$0xf]  ;;  %v8204_v15 = vrot.slane %v8203_v51, 4  ;;  %v14856_v51 = vld [vmem:[#allocation2 + $0xbc] sm:$0x1] }
 0x408   : > { %v5818_v26 = vpop.f32.mrf.mxu2  ;;  %v8804_v25 = vrot.slane %v8802_v29, 4  ;;  %v6910_v21 = vrot.slane %v6908_v56, 4  ;;  %v6913_v33 = vrot.slane %v6911_v62, 5  ;;  %v6924_v55 = vor.u32 %v6923_v44, %v14831_v58 }
 0x409   : > { %15627 = vst [vmem:[#allocation11_spill] sm:$0xff] %v14816_v18  ;;  %v5819_v28 = vadd.f32 %v5818_v26, %v14474_v46  ;;  %v7020_v46 = vunpack.c.l.b16 %v6896_v57  ;;  %v7243_v26 = vld [vmem:[#allocation2 + $0xb4] sm:$0xe]  ;;  %v10886_v57 = vrot.slane %v8664_v31, 9  ;;  %v8208_v56 = vrot.slane %v8206_v6, 5  ;;  %v11164_v31 = vld [vmem:[%s15471_s3 + $0x200] sm:$0xff] }
 0x40a   : > { %v8211_v62 = vshrl.u32 %v7994_v3, 16  ;;  %v7393_v44 = vrot.slane %v14846_v42, 5  ;;  %v6925_v18 = vrot.slane %v6924_v55, 4  ;;  %8964 = vmatpush.bf16.msra.mxu1 %v11164_v31 }
 0x40b   : > { %v14837_v63 = vadd.f32 %v14746_v52, %v5819_v28  ;;  %v8805_v52 = vrot.slane %v14833_v37, 5  ;;  %v7040_v41 = vpack.c.b16 %v7021_v4, %v7020_v46  ;;  %v8214_v46 = vshll.u32 %v7994_v3, 16 }
 0x40c   : > { %v7395_v6 = vrot.slane %v7393_v44, 4  ;;  %v7396_v3 = vrot.slane %v14856_v51, 5 }
 0x40d   : > { %v7137_v61 = vpop.f32.mrf.mxu1  ;;  %v8806_v22 = vsel %vm11554_vm7, %v8804_v25, %v8805_v52  ;;  %v8803_v25 = vsel %vm11554_vm7, %v10886_v57, %v8802_v29  ;;  %v6914_v52 = vor.u32 %v6913_v33, %v6910_v21  ;;  %v8220_v33 = vshll.u32 %v14483_v47, 16 }
 0x40e   : > { %v6505_v30 = vpop.f32.mrf.mxu0  ;;  %v14851_v32 = vadd.f32 %v7137_v61, %v15628_v5  ;;  %v8870_v5 = vunpack.c.l.b16 %v8806_v22  ;;  %v7397_v29 = vsel %vm11554_vm7, %v7395_v6, %v7396_v3  ;;  %v8869_v21 = vunpack.c.l.b16 %v8803_v25 }
 0x40f   : > { %v14854_v28 = vadd.f32 %v6505_v30, %v14760_v9  ;;  %v14860_v4 = vpop.f32.mrf.mxu3  ;;  %v6927_v9 = vshll.u32 %v14781_v11, 16  ;;  %v10664_v30 = vrot.slane %v7243_v26, 9  ;;  %v6915_v57 = vrot.slane %v6914_v52, 4 }
 0x410   : > { %v5820_v45 = vpop.f32.mrf.mxu2  ;;  %7176 = vmatmul.bf16.gmra.mxu1 %v7040_v41  ;;  %v8216_v41 = vrot.slane %v8214_v46, 5  ;;  %v14883_v46 = vpack.c.b16 %v8870_v5, %v8869_v21  ;;  %v6945_v3 = vshrl.u32 %v14846_v42, 16  ;;  %v14905_v21 = vld [vmem:[#allocation2 + $0xbc] sm:$0x1] }
 0x411   : > { %15629 = vst [vmem:[#allocation28_spill] sm:$0xff] %v14854_v28  ;;  %v5821_v61 = vadd.f32 %v5820_v45, %v14514_v13  ;;  %8569 = vmatmul.bf16.gmra.mxu0 %v8457_v43  ;;  %v11141_v28 = vld [vmem:[#allocation2 + $0x84] sm:$0xff]  ;;  %v8209_v13 = vsel %vm11349_vm4, %v8204_v15, %v8208_v56  ;;  %v7394_v45 = vsel %vm11554_vm7, %v10664_v30, %v7393_v44  ;;  %v8213_v43 = vrot.slane %v8211_v62, 4  ;;  %v6589_v44 = vld [vmem:[#allocation2 + $0xb4] sm:$0xf] }
 0x412   : > { %v6929_v22 = vrot.slane %v6927_v9, 5  ;;  %v8224_v15 = vshrl.u32 %v14483_v47, 16  ;;  %v8434_v56 = vunpack.c.l.b16 %v8209_v13  ;;  %v7450_v62 = vunpack.c.l.b16 %v7394_v45  ;;  %15630 = vst [vmem:[#allocation12_spill] sm:$0xff] %v14883_v46  ;;  %v14894_v9 = vld [vmem:[#allocation2 + $0xb8] sm:$0xf] }
 0x413   : > { %v14874_v11 = vadd.f32 %v14785_v17, %v5821_v61  ;;  %v7451_v17 = vunpack.c.l.b16 %v7397_v29  ;;  %v15631_v61 = vld [vmem:[#allocation17_spill] sm:$0xff]  ;;  %v6941_v47 = vshll.u32 %v14846_v42, 16  ;;  %v8665_v30 = vld [vmem:[#allocation2 + $0xb4] sm:$0xe]  ;;  %v6920_v6 = vsel %vm11349_vm4, %v6915_v57, %v14831_v58 }
 0x414   : > { %7902 = vmatmul.bf16.gmra.mxu3 %v11141_v28  ;;  %v6930_v28 = vsel %vm11349_vm4, %v6925_v18, %v6929_v22  ;;  %v8217_v5 = vor.u32 %v8216_v41, %v8213_v43  ;;  %v6932_v18 = vshrl.u32 %v6589_v44, 16  ;;  %v8222_v45 = vrot.slane %v8220_v33, 5 }
 0x415   : > { %7582 = vmatmul.bf16.gmra.mxu2 %v14391_v2  ;;  %v7139_v55 = vpop.f32.mrf.mxu1  ;;  %v8226_v29 = vrot.slane %v8224_v15, 4  ;;  %v7023_v22 = vunpack.c.l.b16 %v6930_v28  ;;  %v7022_v46 = vunpack.c.l.b16 %v6920_v6  ;;  %v15632_v58 = vsel %vm11349_vm4, %v14839_v20, %v14800_v23  ;;  %v7244_v23 = vld [vmem:[#allocation2 + $0xc0] sm:$0xe] }
 0x416   : > { %v6507_v26 = vpop.f32.mrf.mxu0  ;;  %v14886_v31 = vadd.f32 %v7139_v55, %v15631_v61  ;;  %v6935_v55 = vshll.u32 %v6589_v44, 16  ;;  %v8809_v61 = vrot.slane %v14894_v9, 5  ;;  %v8433_v42 = vunpack.c.l.b16 %v15632_v58 }
 0x417   : > { %v14889_v2 = vadd.f32 %v6507_v26, %v14796_v0  ;;  %v14896_v52 = vpop.f32.mrf.mxu3  ;;  %v14902_v0 = vpack.c.b16 %v7451_v17, %v7450_v62  ;;  %v10887_v26 = vrot.slane %v8665_v30, 9  ;;  %v14913_v43 = vrot.slane %v6941_v47, 5  ;;  %v14922_v30 = vld [vmem:[#allocation2 + $0xc4] sm:$0xf] }
 0x418   : > { %v7543_v25 = vpop.f32.mrf.mxu2  ;;  %v6947_v41 = vrot.slane %v6945_v3, 4  ;;  %v8811_v15 = vrot.slane %v8809_v61, 4  ;;  %v8812_v17 = vrot.slane %v14905_v21, 5  ;;  %v8458_v57 = vpack.c.b16 %v8434_v56, %v8433_v42 }
 0x419   : > { %v7623_v13 = vadd.f32 %v7543_v25, %v14558_v1  ;;  %v8810_v33 = vsel %vm11554_vm7, %v10887_v26, %v8809_v61  ;;  %v8218_v44 = vrot.slane %v8217_v5, 4  ;;  %v8227_v62 = vor.u32 %v8226_v29, %v8222_v45  ;;  %v14932_v5 = vld [vmem:[#allocation2 + $0xc8] sm:$0x1] }
 0x41a   : > { %v8230_v28 = vshll.u32 %v14512_v50, 16  ;;  %v7041_v47 = vpack.c.b16 %v7023_v22, %v7022_v46  ;;  %v6937_v6 = vrot.slane %v6935_v55, 5  ;;  %v8813_v3 = vsel %vm11554_vm7, %v8811_v15, %v8812_v17  ;;  %v14934_v50 = vld [vmem:[#allocation2 + $0xc4] sm:$0xf] }
 0x41b   : > { %v14916_v1 = vadd.f32 %v14822_v14, %v7623_v13  ;;  %v6934_v14 = vrot.slane %v6932_v18, 4  ;;  %v15633_v13 = vld [vmem:[#allocation21_spill] sm:$0xff]  ;;  %v8871_v29 = vunpack.c.l.b16 %v8810_v33  ;;  %v8872_v61 = vunpack.c.l.b16 %v8813_v3 }
 0x41c   : > { %v6948_v18 = vor.u32 %v6947_v41, %v14913_v43  ;;  %v8223_v22 = vsel %vm11349_vm4, %v8218_v44, %v8222_v45  ;;  %v10665_v55 = vrot.slane %v7244_v23, 9  ;;  %v7400_v42 = vrot.slane %v14922_v30, 5  ;;  %v11142_v44 = vld [vmem:[#allocation2 + $0x90] sm:$0xff] }
 0x41d   : > { %v7142_v20 = vpop.f32.mrf.mxu1  ;;  %v6951_v15 = vshll.u32 %v14856_v51, 16  ;;  %v8228_v17 = vrot.slane %v8227_v62, 4  ;;  %v14944_v33 = vpack.c.b16 %v8872_v61, %v8871_v29  ;;  %v7403_v3 = vrot.slane %v14932_v5, 5  ;;  %v14955_v51 = vld [vmem:[#allocation2 + $0xc8] sm:$0x1] }
 0x41e   : > { %v6510_v25 = vpop.f32.mrf.mxu0  ;;  %v14927_v26 = vadd.f32 %v7142_v20, %v15633_v13  ;;  %v8666_v20 = vld [vmem:[#allocation2 + $0xc0] sm:$0xe]  ;;  %v7402_v41 = vrot.slane %v7400_v42, 4  ;;  %v8816_v45 = vrot.slane %v14934_v50, 5  ;;  %v6938_v23 = vor.u32 %v6937_v6, %v6934_v14 }
 0x41f   : > { %v14930_v56 = vadd.f32 %v6510_v25, %v14837_v63  ;;  %v14936_v46 = vpop.f32.mrf.mxu3  ;;  %15634 = vst [vmem:[#allocation16_spill] sm:$0xff] %v14944_v33  ;;  %v7401_v25 = vsel %vm11554_vm7, %v10665_v55, %v7400_v42  ;;  %v8232_v13 = vrot.slane %v8230_v28, 5  ;;  %v6949_v62 = vrot.slane %v6948_v18, 4  ;;  %v7997_v42 = vld [vmem:[#allocation2 + $0x84] sm:$0xf] }
 0x420   : > { %v7545_v58 = vpop.f32.mrf.mxu2  ;;  %7181 = vmatmul.bf16.gmra.mxu1 %v7041_v47  ;;  %v7404_v47 = vsel %vm11554_vm7, %v7402_v41, %v7403_v3  ;;  %v10888_v29 = vrot.slane %v8666_v20, 9  ;;  %v8818_v61 = vrot.slane %v8816_v45, 4  ;;  %v8244_v28 = vshll.u32 %v14555_v12, 16 }
 0x421   : > { %v7624_v63 = vadd.f32 %v7545_v58, %v14604_v27  ;;  %8574 = vmatmul.bf16.gmra.mxu0 %v8458_v57  ;;  %v14950_v27 = vunpack.c.l.b16 %v8223_v22  ;;  %v8233_v14 = vsel %vm11349_vm4, %v8228_v17, %v8232_v13  ;;  %v7452_v6 = vunpack.c.l.b16 %v7401_v25 }
 0x422   : > { %v7453_v58 = vunpack.c.l.b16 %v7404_v47  ;;  %v6953_v55 = vrot.slane %v6951_v15, 5  ;;  %v8248_v18 = vshrl.u32 %v14555_v12, 16  ;;  %v8819_v20 = vrot.slane %v14955_v51, 5 }
 0x423   : > { %v14953_v57 = vadd.f32 %v14860_v4, %v7624_v63  ;;  %v8817_v63 = vsel %vm11554_vm7, %v10888_v29, %v8816_v45  ;;  %v6939_v3 = vrot.slane %v6938_v23, 4  ;;  %v6965_v15 = vshll.u32 %v14922_v30, 16 }
 0x424   : > { %7907 = vmatmul.bf16.gmra.mxu3 %v11142_v44  ;;  %v14973_v25 = vpack.c.b16 %v7453_v58, %v7452_v6  ;;  %v6954_v12 = vsel %vm11349_vm4, %v6949_v62, %v6953_v55  ;;  %v6969_v45 = vshrl.u32 %v14922_v30, 16  ;;  %v8820_v47 = vsel %vm11554_vm7, %v8818_v61, %v8819_v20 }
 0x425   : > { %7587 = vmatmul.bf16.gmra.mxu2 %v14472_v24  ;;  %v7144_v4 = vpop.f32.mrf.mxu1  ;;  %v15635_v24 = vld [vmem:[#allocation24_spill] sm:$0xff]  ;;  %v8873_v23 = vunpack.c.l.b16 %v8817_v63  ;;  %v8874_v6 = vunpack.c.l.b16 %v8820_v47  ;;  %v6944_v58 = vsel %vm11349_vm4, %v6939_v3, %v14913_v43  ;;  %v14987_v62 = vrot.slane %v8244_v28, 5  ;;  %v15637_v28 = vld [vmem:[#allocation26_spill] sm:$0xff] }
 0x426   : > { %v6512_v22 = vpop.f32.mrf.mxu0  ;;  %v14968_v41 = vadd.f32 %v7144_v4, %v15635_v24  ;;  %v8235_v4 = vshrl.u32 %v7997_v42, 16  ;;  %v8238_v24 = vshll.u32 %v7997_v42, 16  ;;  %v7025_v55 = vunpack.c.l.b16 %v6954_v12 }
 0x427   : > { %v14971_v17 = vadd.f32 %v6512_v22, %v14874_v11  ;;  %v14975_v13 = vpop.f32.mrf.mxu3  ;;  %v6592_v11 = vld [vmem:[#allocation2 + $0xc0] sm:$0xf]  ;;  %v8436_v22 = vunpack.c.l.b16 %v8233_v14  ;;  %v8250_v36 = vrot.slane %v8248_v18, 4  ;;  %v14992_v61 = vpack.c.b16 %v8874_v6, %v8873_v23 }
 0x428   : > { %v7548_v44 = vpop.f32.mrf.mxu2  ;;  %v6959_v20 = vshll.u32 %v6592_v11, 16  ;;  %v6971_v63 = vrot.slane %v6969_v45, 4  ;;  %v7024_v47 = vunpack.c.l.b16 %v6944_v58  ;;  %v8237_v14 = vrot.slane %v8235_v4, 4  ;;  %v11143_v4 = vld [vmem:[#allocation2 + $0x9c] sm:$0xff] }
 0x429   : > { %15636 = vst [vmem:[#allocation17_spill] sm:$0xff] %v14971_v17  ;;  %v7625_v29 = vadd.f32 %v7548_v44, %v14635_v39  ;;  %v6956_v39 = vshrl.u32 %v6592_v11, 16  ;;  %v6967_v44 = vrot.slane %v6965_v15, 5  ;;  %v8459_v43 = vpack.c.b16 %v8436_v22, %v14950_v27 }
 0x42a   : > { %v8240_v42 = vrot.slane %v8238_v24, 5  ;;  %v7042_v12 = vpack.c.b16 %v7025_v55, %v7024_v47  ;;  %v8251_v18 = vor.u32 %v8250_v36, %v14987_v62  ;;  %v6961_v45 = vrot.slane %v6959_v20, 5  ;;  %v15638_v20 = vld [vmem:[#allocation30_spill] sm:$0xff] }
 0x42b   : > { %v14990_v30 = vadd.f32 %v14896_v52, %v7625_v29  ;;  %v6958_v15 = vrot.slane %v6956_v39, 4  ;;  %v6972_v23 = vor.u32 %v6971_v63, %v6967_v44  ;;  %v8254_v27 = vshll.u32 %v14564_v49, 16 }
 0x42c   : > { %v8241_v58 = vor.u32 %v8240_v42, %v8237_v14  ;;  %v8252_v22 = vrot.slane %v8251_v18, 4  ;;  %v8268_v42 = vshll.u32 %v14640_v35, 16  ;;  %v8000_v18 = vld [vmem:[#allocation2 + $0x90] sm:$0xf] }
 0x42d   : > { %v7147_v33 = vpop.f32.mrf.mxu1  ;;  %v6973_v36 = vrot.slane %v6972_v23, 4  ;;  %v8256_v24 = vrot.slane %v8254_v27, 5  ;;  %v8262_v27 = vshll.u32 %v8000_v18, 16 }
 0x42e   : > { %v8540_v17 = vpop.f32.mrf.mxu0  ;;  %v14996_v3 = vadd.f32 %v7147_v33, %v15637_v28  ;;  %v6975_v33 = vshll.u32 %v14932_v5, 16  ;;  %v8242_v5 = vrot.slane %v8241_v58, 4  ;;  %v8272_v28 = vshrl.u32 %v14640_v35, 16 }
 0x42f   : > { %v14999_v52 = vadd.f32 %v8540_v17, %v14916_v1  ;;  %v7870_v11 = vpop.f32.mrf.mxu3  ;;  %v6962_v17 = vor.u32 %v6961_v45, %v6958_v15  ;;  %v8257_v47 = vsel %vm11349_vm4, %v8252_v22, %v8256_v24 }
 0x430   : > { %v7550_v29 = vpop.f32.mrf.mxu2  ;;  %7186 = vmatmul.bf16.gmra.mxu1 %v7042_v12  ;;  %v8438_v45 = vunpack.c.l.b16 %v8257_v47  ;;  %v8278_v47 = vshll.u32 %v14660_v16, 16 }
 0x431   : > { %v7626_v6 = vadd.f32 %v7550_v29, %v14668_v48  ;;  %8579 = vmatmul.bf16.gmra.mxu0 %v8459_v43  ;;  %v6977_v48 = vrot.slane %v6975_v33, 5  ;;  %v6963_v14 = vrot.slane %v6962_v17, 4  ;;  %v8247_v29 = vsel %vm11349_vm4, %v8242_v5, %v14987_v62  ;;  %v15639_v17 = vld [vmem:[#allocation32_spill] sm:$0xff] }
 0x432   : > { %v8270_v33 = vrot.slane %v8268_v42, 5  ;;  %v8437_v35 = vunpack.c.l.b16 %v8247_v29 }
 0x433   : > { %v7941_v1 = vadd.f32 %v14936_v46, %v7626_v6  ;;  %v8259_v6 = vshrl.u32 %v8000_v18, 16  ;;  %v8280_v18 = vrot.slane %v8278_v47, 5 }
 0x434   : > { %7912 = vmatmul.bf16.gmra.mxu3 %v11143_v4  ;;  %v8274_v4 = vrot.slane %v8272_v28, 4  ;;  %v8460_v62 = vpack.c.b16 %v8438_v45, %v8437_v35  ;;  %v8292_v45 = vshll.u32 %v14730_v40, 16 }
 0x435   : > { %7592 = vmatmul.bf16.gmra.mxu2 %v14549_v19  ;;  %v7149_v55 = vpop.f32.mrf.mxu1  ;;  %v6978_v19 = vsel %vm11349_vm4, %v6973_v36, %v6977_v48  ;;  %v8261_v48 = vrot.slane %v8259_v6, 4  ;;  %v8296_v6 = vshrl.u32 %v14730_v40, 16 }
 0x436   : > { %v8542_v39 = vpop.f32.mrf.mxu0  ;;  %v15008_v63 = vadd.f32 %v7149_v55, %v15638_v20  ;;  %v7027_v15 = vunpack.c.l.b16 %v6978_v19  ;;  %v8275_v20 = vor.u32 %v8274_v4, %v8270_v33  ;;  %v8003_v4 = vld [vmem:[#allocation2 + $0x9c] sm:$0xf] }
 0x437   : > { %v15011_v49 = vadd.f32 %v8542_v39, %v14953_v57  ;;  %v7873_v43 = vpop.f32.mrf.mxu3  ;;  %v6968_v57 = vsel %vm11349_vm4, %v6963_v14, %v6967_v44 }
 0x438   : > { %v7553_v46 = vpop.f32.mrf.mxu2  ;;  %v7026_v58 = vunpack.c.l.b16 %v6968_v57  ;;  %v8276_v42 = vrot.slane %v8275_v20, 4 }
 0x439   : > { %v7627_v12 = vadd.f32 %v7553_v46, %v14699_v10  ;;  %v11144_v46 = vld [vmem:[#allocation2 + $0xa8] sm:$0xff] }
 0x43a   : > { %v7043_v44 = vpack.c.b16 %v7027_v15, %v7026_v58 }
 0x43b   : > { %v7942_v23 = vadd.f32 %v14975_v13, %v7627_v12  ;;  %v8264_v13 = vrot.slane %v8262_v27, 5 }
 0x43d   : > { %v7152_v22 = vpop.f32.mrf.mxu1  ;;  %v8265_v19 = vor.u32 %v8264_v13, %v8261_v48 }
 0x43e   : > { %v8545_v10 = vpop.f32.mrf.mxu0  ;;  %v15027_v36 = vadd.f32 %v7152_v22, %v15639_v17  ;;  %v8286_v17 = vshll.u32 %v8003_v4, 16 }
 0x43f   : > { %v15030_v24 = vadd.f32 %v8545_v10, %v14990_v30  ;;  %v7875_v39 = vpop.f32.mrf.mxu3  ;;  %v9214_v30 = vld [vmem:[%s15474_s6] sm:$0xff]  ;;  %v8266_v15 = vrot.slane %v8265_v19, 4  ;;  %v8283_v10 = vshrl.u32 %v8003_v4, 16 }
 0x440   : > { %v7555_v55 = vpop.f32.mrf.mxu2  ;;  %7191 = vmatmul.bf16.gmra.mxu1 %v7043_v44  ;;  %9248 = vperm.xlu0 %11200, %v9214_v30   ;;  %v8294_v44 = vrot.slane %v8292_v45, 5  ;;  %v8288_v47 = vrot.slane %v8286_v17, 5  ;;  %v15642_v30 = vld [vmem:[#allocation9_spill] sm:$0xff] }
 0x441   : > { %v7628_v5 = vadd.f32 %v7555_v55, %v14738_v8  ;;  %8584 = vmatmul.bf16.gmra.mxu0 %v8460_v62  ;;  %v15640_v8 = vld [vmem:[#allocation31_spill] sm:$0xff]  ;;  %v8271_v58 = vsel %vm11349_vm4, %v8266_v15, %v8270_v33  ;;  %v8298_v62 = vrot.slane %v8296_v6, 4 }
 0x442   : > { %v8439_v55 = vunpack.c.l.b16 %v8271_v58 }
 0x443   : > { %v7943_v14 = vadd.f32 %v7870_v11, %v7628_v5  ;;  %v8285_v5 = vrot.slane %v8283_v10, 4  ;;  %v8320_v10 = vshrl.u32 %v14820_v7, 16 }
 0x444   : > { %7917 = vmatmul.bf16.gmra.mxu3 %v11144_v46  ;;  %v8299_v46 = vor.u32 %v8298_v62, %v8294_v44  ;;  %v8006_v62 = vld [vmem:[#allocation2 + $0xa8] sm:$0xf] }
 0x445   : > { %7597 = vmatmul.bf16.gmra.mxu2 %v14631_v59  ;;  %v7154_v28 = vpop.f32.mrf.mxu1  ;;  %v8281_v59 = vsel %vm11349_vm4, %v8276_v42, %v8280_v18  ;;  %v15641_v42 = vld [vmem:[#allocation13_spill] sm:$0xff] }
 0x446   : > { %v8547_v12 = vpop.f32.mrf.mxu0  ;;  %v15039_v57 = vadd.f32 %v7154_v28, %v15640_v8  ;;  %v8440_v35 = vunpack.c.l.b16 %v8281_v59  ;;  %v8302_v28 = vshll.u32 %v15642_v30, 16  ;;  %v8300_v8 = vrot.slane %v8299_v46, 4 }
 0x447   : > { %v15041_v29 = vadd.f32 %v8547_v12, %v7941_v1  ;;  %v7878_v11 = vpop.f32.mrf.mxu3  ;;  %v9215_v1 = vld [vmem:[%s15474_s6 + $0x8] sm:$0xff]  ;;  %v11145_v12 = vld [vmem:[#allocation2 + $0xb4] sm:$0xff] }
 0x448   : > { %v7558_v16 = vpop.f32.mrf.mxu2  ;;  %9253 = vperm.xlu0 %11200, %v9215_v1   ;;  %v8461_v33 = vpack.c.b16 %v8440_v35, %v8439_v55  ;;  %v8304_v45 = vrot.slane %v8302_v28, 5  ;;  %v8316_v1 = vshll.u32 %v14820_v7, 16  ;;  %v15645_v7 = vld [vmem:[#allocation34_spill] sm:$0xff] }
 0x449   : > { %v7629_v27 = vadd.f32 %v7558_v16, %v14776_v60  ;;  %v9216_v16 = vld [vmem:[%s15474_s6 + $0x10] sm:$0xff] }
 0x44a   : > { %9258 = vperm.xlu1 %11201, %v9216_v16   ;;  %v8305_v35 = vsel %vm11349_vm4, %v8300_v8, %v8304_v45  ;;  %v8326_v16 = vshll.u32 %v14833_v37, 16  ;;  %v8340_v37 = vshll.u32 %v14894_v9, 16 }
 0x44b   : > { %v7944_v22 = vadd.f32 %v7873_v43, %v7629_v27 }
 0x44d   : > { %v7157_v48 = vpop.f32.mrf.mxu1 }
 0x44e   : > { %v8550_v13 = vpop.f32.mrf.mxu0  ;;  %v15054_v40 = vadd.f32 %v7157_v48, %v14402_v53  ;;  %v8289_v53 = vor.u32 %v8288_v47, %v8285_v5  ;;  %v8442_v48 = vunpack.c.l.b16 %v8305_v35  ;;  %v8318_v5 = vrot.slane %v8316_v1, 5 }
 0x44f   : > { %v15056_v60 = vadd.f32 %v8550_v13, %v7942_v23  ;;  %v15058_v43 = vpop.f32.mrf.mxu3  ;;  %v15643_v23 = vld [vmem:[#allocation8_spill] sm:$0xff]  ;;  %v8322_v47 = vrot.slane %v8320_v10, 4 }
 0x450   : > { %v7560_v20 = vpop.f32.mrf.mxu2  ;;  %8965 = vmatmul.bf16.vlgmr.msra.gmra.mxu1 %v15641_v42  ;;  %v8290_v58 = vrot.slane %v8289_v53, 4 }
 0x451   : > { %v7630_v19 = vadd.f32 %v7560_v20, %v14813_v38  ;;  %8589 = vmatmul.bf16.gmra.mxu0 %v8461_v33  ;;  %v15644_v38 = vld [vmem:[#allocation35_spill] sm:$0xff]  ;;  %v8307_v33 = vshrl.u32 %v8006_v62, 16  ;;  %v8310_v20 = vshll.u32 %v8006_v62, 16  ;;  %v8323_v8 = vor.u32 %v8322_v47, %v8318_v5 }
 0x452   : > { %v8295_v55 = vsel %vm11349_vm4, %v8290_v58, %v8294_v44  ;;  %v15647_v58 = vld [vmem:[#allocation37_spill] sm:$0xff] }
 0x453   : > { %v7945_v18 = vadd.f32 %v7875_v39, %v7630_v19  ;;  %v8441_v46 = vunpack.c.l.b16 %v8295_v55  ;;  %v8312_v53 = vrot.slane %v8310_v20, 5  ;;  %v8324_v45 = vrot.slane %v8323_v8, 4 }
 0x454   : > { %7922 = vmatmul.bf16.gmra.mxu3 %v11145_v12  ;;  %v8309_v12 = vrot.slane %v8307_v33, 4  ;;  %v8344_v55 = vshrl.u32 %v14894_v9, 16 }
 0x455   : > { %7602 = vmatmul.bf16.gmra.mxu2 %v15643_v23  ;;  %v7159_v15 = vpop.f32.mrf.mxu1  ;;  %v8462_v44 = vpack.c.b16 %v8442_v48, %v8441_v46  ;;  %v15646_v23 = vld [vmem:[#allocation15_spill] sm:$0xff] }
 0x456   : > { %v8552_v59 = vpop.f32.mrf.mxu0  ;;  %v15068_v6 = vadd.f32 %v7159_v15, %v15644_v38  ;;  %v11146_v15 = vld [vmem:[#allocation2 + $0xc0] sm:$0xff] }
 0x457   : > { %v15070_v27 = vadd.f32 %v8552_v59, %v7943_v14  ;;  %v7883_v39 = vpop.f32.mrf.mxu3  ;;  %v9217_v14 = vld [vmem:[%s15474_s6 + $0x18] sm:$0xff]  ;;  %v8313_v59 = vor.u32 %v8312_v53, %v8309_v12  ;;  %v15648_v53 = vld [vmem:[#allocation38_spill] sm:$0xff] }
 0x458   : > { %v7563_v4 = vpop.f32.mrf.mxu2  ;;  %9263 = vperm.xlu1 %11201, %v9217_v14   ;;  %v8009_v14 = vld [vmem:[#allocation2 + $0xb4] sm:$0xf] }
 0x459   : > { %v7631_v17 = vadd.f32 %v7563_v4, %v14851_v32  ;;  %v8328_v4 = vrot.slane %v8326_v16, 5  ;;  %v8334_v46 = vshll.u32 %v8009_v14, 16 }
 0x45b   : > { %v7946_v13 = vadd.f32 %v7878_v11, %v7631_v17  ;;  %v8314_v17 = vrot.slane %v8313_v59, 4  ;;  %v8329_v62 = vsel %vm11349_vm4, %v8324_v45, %v8328_v4  ;;  %v15649_v45 = vld [vmem:[#allocation18_spill] sm:$0xff] }
 0x45c   : > { %v8444_v20 = vunpack.c.l.b16 %v8329_v62 }
 0x45d   : > { %v7162_v19 = vpop.f32.mrf.mxu1  ;;  %v8319_v33 = vsel %vm11349_vm4, %v8314_v17, %v8318_v5 }
 0x45e   : > { %v8555_v42 = vpop.f32.mrf.mxu0  ;;  %v15083_v32 = vadd.f32 %v7162_v19, %v15645_v7  ;;  %v8342_v19 = vrot.slane %v8340_v37, 5  ;;  %v8443_v7 = vunpack.c.l.b16 %v8319_v33  ;;  %v15650_v37 = vld [vmem:[#allocation14_spill] sm:$0xff] }
 0x45f   : > { %v15085_v30 = vadd.f32 %v8555_v42, %v7944_v22  ;;  %v7885_v11 = vpop.f32.mrf.mxu3  ;;  %v8346_v42 = vrot.slane %v8344_v55, 4 }
 0x460   : > { %v7565_v28 = vpop.f32.mrf.mxu2  ;;  %8970 = vmatmul.bf16.gmra.mxu1 %v15646_v23 }
 0x461   : > { %8594 = vmatmul.bf16.gmra.mxu0 %v8462_v44  ;;  %v8347_v59 = vor.u32 %v8346_v42, %v8342_v19  ;;  %v7632_v5 = vadd.f32 %v7565_v28, %v14886_v31 }
 0x463   : > { %v8348_v17 = vrot.slane %v8347_v59, 4  ;;  %v7947_v31 = vadd.f32 %v15058_v43, %v7632_v5  ;;  %v15651_v5 = vld [vmem:[#allocation23_spill] sm:$0xff] }
 0x464   : > { %7927 = vmatmul.bf16.gmra.mxu3 %v11146_v15  ;;  %v8336_v15 = vrot.slane %v8334_v46, 5  ;;  %v9221_v46 = vld [vmem:[%s15474_s6 + $0x38] sm:$0xff] }
 0x465   : > { %7607 = vmatmul.bf16.gmra.mxu2 %v14825_v54  ;;  %v7164_v38 = vpop.f32.mrf.mxu1  ;;  %9283 = vperm.xlu1 %11201, %v9221_v46  }
 0x466   : > { %v8557_v22 = vpop.f32.mrf.mxu0  ;;  %v15091_v35 = vadd.f32 %v7164_v38, %v15647_v58  ;;  %v11147_v38 = vld [vmem:[#allocation2 + $0xcc] sm:$0xff] }
 0x467   : > { %v15093_v1 = vadd.f32 %v8557_v22, %v7945_v18  ;;  %v7888_v48 = vpop.f32.mrf.mxu3  ;;  %v8331_v18 = vshrl.u32 %v8009_v14, 16  ;;  %v9220_v22 = vld [vmem:[%s15474_s6 + $0x30] sm:$0xff]  ;;  %v8012_v14 = vld [vmem:[#allocation2 + $0xc0] sm:$0xf] }
 0x468   : > { %v7568_v10 = vpop.f32.mrf.mxu2  ;;  %9278 = vperm.xlu0 %11200, %v9220_v22  }
 0x469   : > { %v7633_v54 = vadd.f32 %v7568_v10, %v14927_v26  ;;  %v8463_v26 = vpack.c.b16 %v8444_v20, %v8443_v7  ;;  %v8333_v16 = vrot.slane %v8331_v18, 4  ;;  %v8364_v20 = vshll.u32 %v14934_v50, 16  ;;  %v9218_v18 = vld [vmem:[%s15474_s6 + $0x20] sm:$0xff] }
 0x46a   : > { %v8355_v7 = vshrl.u32 %v8012_v14, 16  ;;  %9268 = vperm.xlu2 %11202, %v9218_v18  }
 0x46b   : > { %v7948_v47 = vadd.f32 %v7883_v39, %v7633_v54  ;;  %v8337_v10 = vor.u32 %v8336_v15, %v8333_v16 }
 0x46c   : > { %v8357_v59 = vrot.slane %v8355_v7, 4 }
 0x46d   : > { %v7167_v44 = vpop.f32.mrf.mxu1  ;;  %v8338_v33 = vrot.slane %v8337_v10, 4 }
 0x46e   : > { %v8560_v12 = vpop.f32.mrf.mxu0  ;;  %v15103_v8 = vadd.f32 %v7167_v44, %v15648_v53  ;;  %v8358_v53 = vshll.u32 %v8012_v14, 16 }
 0x46f   : > { %v15105_v9 = vadd.f32 %v8560_v12, %v7946_v13  ;;  %v8350_v13 = vshll.u32 %v14905_v21, 16  ;;  %v7890_v4 = vpop.f32.mrf.mxu3  ;;  %v8343_v42 = vsel %vm11349_vm4, %v8338_v33, %v8342_v19 }
 0x470   : > { %v7570_v23 = vpop.f32.mrf.mxu2  ;;  %8975 = vmatmul.bf16.gmra.mxu1 %v15649_v45  ;;  %v8360_v19 = vrot.slane %v8358_v53, 5  ;;  %v9223_v53 = vld [vmem:[%s15474_s6 + $0x48] sm:$0xff] }
 0x471   : > { %v7634_v39 = vadd.f32 %v7570_v23, %v14968_v41  ;;  %8599 = vmatmul.bf16.gmra.mxu0 %v8463_v26  ;;  %v8352_v62 = vrot.slane %v8350_v13, 5  ;;  %v8445_v23 = vunpack.c.l.b16 %v8343_v42  ;;  %9293 = vperm.xlu0 %11200, %v9223_v53  }
 0x473   : > { %v7949_v58 = vadd.f32 %v7885_v11, %v7634_v39  ;;  %v8353_v11 = vsel %vm11349_vm4, %v8348_v17, %v8352_v62  ;;  %v8374_v17 = vshll.u32 %v14955_v51, 16  ;;  %v8015_v62 = vld [vmem:[#allocation2 + $0xcc] sm:$0xf] }
 0x474   : > { %7932 = vmatmul.bf16.gmra.mxu3 %v11147_v38  ;;  %v8446_v44 = vunpack.c.l.b16 %v8353_v11  ;;  %v8379_v33 = vshrl.u32 %v8015_v62, 16  ;;  %v8382_v11 = vshll.u32 %v8015_v62, 16 }
 0x475   : > { %7612 = vmatmul.bf16.gmra.mxu2 %v14902_v0  ;;  %v7169_v41 = vpop.f32.mrf.mxu1  ;;  %v8368_v0 = vshrl.u32 %v14934_v50, 16  ;;  %v8366_v50 = vrot.slane %v8364_v20, 5  ;;  %v8376_v14 = vrot.slane %v8374_v17, 5 }
 0x476   : > { %v8562_v28 = vpop.f32.mrf.mxu0  ;;  %v15117_v55 = vadd.f32 %v7169_v41, %v15650_v37  ;;  %v8464_v38 = vpack.c.b16 %v8446_v44, %v8445_v23  ;;  %v8361_v41 = vor.u32 %v8360_v19, %v8357_v59  ;;  %v8384_v23 = vrot.slane %v8382_v11, 5 }
 0x477   : > { %v15119_v54 = vadd.f32 %v8562_v28, %v7947_v31  ;;  %v8370_v26 = vrot.slane %v8368_v0, 4  ;;  %v9219_v31 = vld [vmem:[%s15474_s6 + $0x28] sm:$0xff] }
 0x478   : > { %v7573_v21 = vpop.f32.mrf.mxu2  ;;  %9273 = vperm.xlu2 %11202, %v9219_v31   ;;  %v8362_v46 = vrot.slane %v8361_v41, 4 }
 0x479   : > { %v7635_v43 = vadd.f32 %v7573_v21, %v14996_v3  ;;  %v7893_v3 = vpop.f32.mrf.mxu3  ;;  %v8371_v13 = vor.u32 %v8370_v26, %v8366_v50  ;;  %v8381_v26 = vrot.slane %v8379_v33, 4 }
 0x47a   : > { %v8367_v44 = vsel %vm11349_vm4, %v8362_v46, %v8366_v50 }
 0x47b   : > { %v7950_v12 = vadd.f32 %v7888_v48, %v7635_v43  ;;  %v15652_v48 = vld [vmem:[#allocation19_spill] sm:$0xff]  ;;  %v8372_v37 = vrot.slane %v8371_v13, 4 }
 0x47c   : > { %v15653_v43 = vld [vmem:[#allocation7_spill] sm:$0xff] }
 0x47d   : > { %v7172_v16 = vpop.f32.mrf.mxu1 }
 0x47e   : > { %v8565_v15 = vpop.f32.mrf.mxu0  ;;  %v15135_v39 = vadd.f32 %v7172_v16, %v15651_v5  ;;  %v15163_v5 = vld [vmem:[#allocation2 + $0xd4] sm:$0x1] }
 0x47f   : > { %v15137_v45 = vadd.f32 %v8565_v15, %v7948_v47  ;;  %v15145_v47 = vld [vmem:[#allocation2 + $0xd0] sm:$0xf]  ;;  %v8398_v50 = vshll.u32 %v15163_v5, 16 }
 0x480   : > { %v7575_v22 = vpop.f32.mrf.mxu2  ;;  %8980 = vmatmul.bf16.gmra.mxu1 %v15652_v48  ;;  %v8388_v51 = vshll.u32 %v15145_v47, 16  ;;  %v8392_v20 = vshrl.u32 %v15145_v47, 16 }
 0x481   : > { %v7636_v10 = vadd.f32 %v7575_v22, %v15008_v63  ;;  %8604 = vmatmul.bf16.gmra.mxu0 %v8464_v38  ;;  %v7895_v0 = vpop.f32.mrf.mxu3  ;;  %v8447_v38 = vunpack.c.l.b16 %v8367_v44  ;;  %v8400_v33 = vrot.slane %v8398_v50, 5 }
 0x482   : > { %v8390_v16 = vrot.slane %v8388_v51, 5  ;;  %v8394_v15 = vrot.slane %v8392_v20, 4 }
 0x483   : > { %v7951_v28 = vadd.f32 %v7890_v4, %v7636_v10  ;;  %v15654_v10 = vld [vmem:[#allocation27_spill] sm:$0xff] }
 0x484   : > { %v8395_v13 = vor.u32 %v8394_v15, %v8390_v16 }
 0x485   : > { %7617 = vmatmul.bf16.gmra.mxu2 %v14973_v25  ;;  %v7174_v63 = vpop.f32.mrf.mxu1  ;;  %v8377_v25 = vsel %vm11349_vm4, %v8372_v37, %v8376_v14  ;;  %v9224_v14 = vld [vmem:[%s15474_s6 + $0x50] sm:$0xff] }
 0x486   : > { %v8567_v21 = vpop.f32.mrf.mxu0  ;;  %v15151_v18 = vadd.f32 %v7174_v63, %v15653_v43  ;;  %9298 = vperm.xlu1 %11201, %v9224_v14   ;;  %v15656_v43 = vld [vmem:[#allocation20_spill] sm:$0xff] }
 0x487   : > { %v15153_v4 = vadd.f32 %v8567_v21, %v7949_v58  ;;  %v8448_v58 = vunpack.c.l.b16 %v8377_v25  ;;  %v8396_v21 = vrot.slane %v8395_v13, 4 }
 0x488   : > { %v7578_v42 = vpop.f32.mrf.mxu2 }
 0x489   : > { %v7637_v7 = vadd.f32 %v7578_v42, %v15027_v36  ;;  %v8385_v36 = vor.u32 %v8384_v23, %v8381_v26  ;;  %v8465_v31 = vpack.c.b16 %v8448_v58, %v8447_v38  ;;  %v7898_v62 = vpop.f32.mrf.mxu3  ;;  %v15657_v58 = vld [vmem:[#allocation22_spill] sm:$0xff] }
 0x48b   : > { %v7952_v59 = vadd.f32 %v7893_v3, %v7637_v7  ;;  %v15655_v3 = vld [vmem:[#allocation25_spill] sm:$0xff]  ;;  %v8386_v63 = vrot.slane %v8385_v36, 4 }
 0x48c   : > { %v9226_v36 = vld [vmem:[%s15474_s6 + $0x60] sm:$0xff] }
 0x48d   : > { %v7177_v19 = vpop.f32.mrf.mxu1  ;;  %v8391_v20 = vsel %vm11349_vm4, %v8386_v63, %v8390_v16  ;;  %9308 = vperm.xlu0 %11200, %v9226_v36  }
 0x48e   : > { %v8570_v22 = vpop.f32.mrf.mxu0  ;;  %v15167_v48 = vadd.f32 %v7177_v19, %v15654_v10  ;;  %v8449_v44 = vunpack.c.l.b16 %v8391_v20 }
 0x48f   : > { %v15169_v17 = vadd.f32 %v8570_v22, %v7950_v12  ;;  %v15658_v22 = vld [vmem:[#allocation33_spill] sm:$0xff] }
 0x490   : > { %v7580_v41 = vpop.f32.mrf.mxu2  ;;  %8985 = vmatmul.bf16.gmra.mxu1 %v15655_v3  ;;  %v9227_v3 = vld [vmem:[%s15474_s6 + $0x68] sm:$0xff] }
 0x491   : > { %v7638_v37 = vadd.f32 %v7580_v41, %v15039_v57  ;;  %8609 = vmatmul.bf16.gmra.mxu0 %v8465_v31  ;;  %v8401_v57 = vsel %vm11349_vm4, %v8396_v21, %v8400_v33  ;;  %v7900_v26 = vpop.f32.mrf.mxu3  ;;  %v15659_v41 = vld [vmem:[#allocation11_spill] sm:$0xff]  ;;  %9313 = vperm.xlu1 %11201, %v9227_v3   ;;  %v15660_v33 = vld [vmem:[#allocation28_spill] sm:$0xff] }
 0x492   : > { %v8450_v53 = vunpack.c.l.b16 %v8401_v57 }
 0x493   : > { %v7953_v11 = vadd.f32 %v7895_v0, %v7638_v37  ;;  %v9222_v0 = vld [vmem:[%s15474_s6 + $0x40] sm:$0xff] }
 0x494   : > { %9288 = vperm.xlu2 %11202, %v9222_v0   ;;  %v8466_v16 = vpack.c.b16 %v8450_v53, %v8449_v44 }
 0x495   : > { %v7179_v51 = vpop.f32.mrf.mxu1 }
 0x496   : > { %v8572_v12 = vpop.f32.mrf.mxu0  ;;  %v15181_v46 = vadd.f32 %v7179_v51, %v15656_v43  ;;  %v15661_v43 = vld [vmem:[#allocation5_spill] sm:$0xff] }
 0x497   : > { %v15183_v42 = vadd.f32 %v8572_v12, %v7951_v28 }
 0x498   : > { %v7583_v25 = vpop.f32.mrf.mxu2 }
 0x499   : > { %v7639_v7 = vadd.f32 %v7583_v25, %v15054_v40  ;;  %v7903_v50 = vpop.f32.mrf.mxu3 }
 0x49b   : > { %v7954_v23 = vadd.f32 %v7898_v62, %v7639_v7 }
 0x49d   : > { %v7182_v34 = vpop.f32.mrf.mxu1 }
 0x49e   : > { %v8575_v15 = vpop.f32.mrf.mxu0  ;;  %v15190_v38 = vadd.f32 %v7182_v34, %v15657_v58 }
 0x49f   : > { %v15192_v28 = vadd.f32 %v8575_v15, %v7952_v59 }
 0x4a0   : > { %v7585_v19 = vpop.f32.mrf.mxu2  ;;  %8990 = vmatmul.bf16.gmra.mxu1 %v15658_v22  ;;  %v9230_v22 = vld [vmem:[%s15474_s6 + $0x80] sm:$0xff] }
 0x4a1   : > { %v7640_v40 = vadd.f32 %v7585_v19, %v15068_v6  ;;  %8614 = vmatmul.bf16.gmra.mxu0 %v8466_v16  ;;  %v7905_v20 = vpop.f32.mrf.mxu3  ;;  %9328 = vperm.xlu1 %11201, %v9230_v22  }
 0x4a3   : > { %v7955_v13 = vadd.f32 %v7900_v26, %v7640_v40 }
 0x4a5   : > { %v7184_v10 = vpop.f32.mrf.mxu1 }
 0x4a6   : > { %v8577_v31 = vpop.f32.mrf.mxu0  ;;  %v15200_v62 = vadd.f32 %v7184_v10, %v15659_v41  ;;  %v9228_v41 = vld [vmem:[%s15474_s6 + $0x70] sm:$0xff] }
 0x4a7   : > { %v15202_v59 = vadd.f32 %v8577_v31, %v7953_v11  ;;  %v9232_v31 = vld [vmem:[%s15474_s6 + $0x90] sm:$0xff] }
 0x4a8   : > { %v7588_v37 = vpop.f32.mrf.mxu2 }
 0x4a9   : > { %v7641_v6 = vadd.f32 %v7588_v37, %v15083_v32  ;;  %v9225_v32 = vld [vmem:[%s15474_s6 + $0x58] sm:$0xff]  ;;  %v7908_v16 = vpop.f32.mrf.mxu3 }
 0x4aa   : > { %9303 = vperm.xlu2 %11202, %v9225_v32   ;;  %v9233_v37 = vld [vmem:[%s15474_s6 + $0x98] sm:$0xff] }
 0x4ab   : > { %v7956_v14 = vadd.f32 %v7903_v50, %v7641_v6  ;;  %v15663_v50 = vld [vmem:[#allocation17_spill] sm:$0xff]  ;;  %v15256_v6 = vld [vmem:[%s15472_s4] ss:$0 sm:$0xff]  ;;  %9343 = vperm.xlu1 %11201, %v9233_v37   ;;  %v11178_v37 = vld [vmem:[%s15475_s7 + $0x30] sm:$0xff] }
 0x4ad   : > { %v7187_v63 = vpop.f32.mrf.mxu1 }
 0x4ae   : > { %v8580_v21 = vpop.f32.mrf.mxu0  ;;  %v15209_v51 = vadd.f32 %v7187_v63, %v15660_v33 }
 0x4af   : > { %v15211_v12 = vadd.f32 %v8580_v21, %v7954_v23 }
 0x4b0   : > { %v7590_v57 = vpop.f32.mrf.mxu2  ;;  %8995 = vmatmul.bf16.gmra.mxu1 %v15661_v43  ;;  %v9236_v43 = vld [vmem:[%s15474_s6 + $0xb0] sm:$0xff] }
 0x4b1   : > { %v7642_v11 = vadd.f32 %v7590_v57, %v15091_v35  ;;  %v9229_v35 = vld [vmem:[%s15474_s6 + $0x78] sm:$0xff]  ;;  %v15266_v57 = vld [vmem:[%s15473_s5] ss:$0 sm:$0xff] }
 0x4b2   : > { %9323 = vperm.xlu0 %11200, %v9229_v35   ;;  %9318 = vperm.xlu2 %11202, %v9228_v41   ;;  %v9238_v35 = vld [vmem:[%s15474_s6 + $0xc0] sm:$0xff] }
 0x4b3   : > { %v7957_v25 = vadd.f32 %v7905_v20, %v7642_v11  ;;  %v15664_v20 = vld [vmem:[#allocation39_spill] sm:$0xff]  ;;  %v9235_v11 = vld [vmem:[%s15474_s6 + $0xa8] sm:$0xff]  ;;  %9358 = vperm.xlu1 %11201, %v9236_v43  }
 0x4b5   : > { %v7189_v7 = vpop.f32.mrf.mxu1 }
 0x4b6   : > { %v8582_v44 = vpop.f32.mrf.mxu0  ;;  %v15219_v53 = vadd.f32 %v7189_v7, %v14889_v2  ;;  %v15662_v2 = vld [vmem:[#allocation36_spill] sm:$0xff] }
 0x4b7   : > { %v15221_v0 = vadd.f32 %v8582_v44, %v7955_v13 }
 0x4b8   : > { %v7593_v26 = vpop.f32.mrf.mxu2 }
 0x4b9   : > { %v7643_v23 = vadd.f32 %v7593_v26, %v15103_v8  ;;  %v11179_v8 = vld [vmem:[%s15475_s7 + $0x38] sm:$0xff] }
 0x4ba   : > { %9541 = vmatpush.bf16.msrb.mxu2 %v11179_v8  ;;  %9338 = vperm.xlu0 %11200, %v9232_v31  }
 0x4bb   : > { %v7958_v34 = vadd.f32 %v7908_v16, %v7643_v23  ;;  %v9239_v16 = vld [vmem:[%s15474_s6 + $0xc8] sm:$0xff] }
 0x4bc   : > { %9373 = vperm.xlu1 %11201, %v9239_v16  }
 0x4bd   : > { %v7192_v15 = vpop.f32.mrf.mxu1 }
 0x4be   : > { %v8585_v58 = vpop.f32.mrf.mxu0  ;;  %v15228_v19 = vadd.f32 %v7192_v15, %v14930_v56  ;;  %9542 = vmatpush.bf16.msrb.mxu2 %v11178_v37 }
 0x4bf   : > { %v15230_v40 = vadd.f32 %v8585_v58, %v7956_v14 }
 0x4c0   : > { %9000 = vmatmul.bf16.gmra.mxu1 %v15662_v2 }
 0x4c2   : > { %9353 = vperm.xlu0 %11200, %v9235_v11  }
 0x4c5   : > { %v7194_v36 = vpop.f32.mrf.mxu1 }
 0x4c6   : > { %v8587_v13 = vpop.f32.mrf.mxu0  ;;  %v15240_v10 = vadd.f32 %v7194_v36, %v15663_v50  ;;  %v15665_v50 = vld [vmem:[#allocation6_spill] sm:$0xff] }
 0x4c7   : > { %v15242_v56 = vadd.f32 %v8587_v13, %v7957_v25 }
 0x4ca   : > { %9368 = vperm.xlu0 %11200, %v9238_v35  }
 0x4cd   : > { %v8966_v3 = vpop.f32.mrf.mxu1 }
 0x4ce   : > { %v8590_v14 = vpop.f32.mrf.mxu0  ;;  %v9046_v63 = vadd.f32 %v8966_v3, %v14999_v52  ;;  %v9249_v52 = vpop.permute.xlu0 %9248  ;;  %v9241_v3 = vld [vmem:[%s15474_s6 + $0xd8] sm:$0xff] }
 0x4cf   : > { %v15259_v21 = vadd.f32 %v8590_v14, %v7958_v34  ;;  %v9259_v14 = vpop.permute.xlu1 %9258 }
 0x4d0   : > { %v9082_v33 = vmul.f32 %v15256_v6, %v9046_v63  ;;  %9005 = vmatmul.bf16.gmra.mxu1 %v15664_v20  ;;  %v9242_v63 = vld [vmem:[%s15474_s6 + $0xe0] sm:$0xff] }
 0x4d1   : > { %9388 = vperm.xlu1 %11201, %v9242_v63  }
 0x4d2   : > { %v9118_v32 = vadd.f32 %v15266_v57, %v9082_v33  ;;  %9383 = vperm.xlu0 %11200, %v9241_v3  }
 0x4d4   : > { %v9150_v26 = vmul.f32 0.2, %v9118_v32 }
 0x4d5   : > { %v8968_v25 = vpop.f32.mrf.mxu1 }
 0x4d6   : > { %v9047_v7 = vadd.f32 %v8968_v25, %v15011_v49  ;;  %v9182_v34 = vmax.f32 %v9118_v32, %v9150_v26  ;;  %v9254_v2 = vpop.permute.xlu0 %9253  ;;  %v9245_v26 = vld [vmem:[%s15474_s6 + $0xf8] sm:$0xff] }
 0x4d8   : > { %v9083_v44 = vmul.f32 %v15256_v6, %v9047_v7  ;;  %v9406_v22 = vmul.f32 %v9249_v52, %v9182_v34 }
 0x4d9   : > { %9403 = vperm.xlu1 %11201, %v9245_v26   ;;  %v11177_v26 = vld [vmem:[%s15475_s7 + $0x28] sm:$0xff] }
 0x4da   : > { %v9119_v23 = vadd.f32 %v15266_v57, %v9083_v44  ;;  %v9244_v44 = vld [vmem:[%s15474_s6 + $0xf0] sm:$0xff]  ;;  %9543 = vmatpush.bf16.msrb.mxu2 %v11177_v26 }
 0x4db   : > { %9398 = vperm.xlu0 %11200, %v9244_v44   ;;  %v9240_v44 = vld [vmem:[%s15474_s6 + $0xd0] sm:$0xff] }
 0x4dc   : > { %v9151_v15 = vmul.f32 0.2, %v9119_v23 }
 0x4dd   : > { %v8971_v58 = vpop.f32.mrf.mxu1 }
 0x4de   : > { %v9048_v49 = vadd.f32 %v8971_v58, %v15030_v24  ;;  %v9183_v8 = vmax.f32 %v9119_v23, %v9151_v15  ;;  %v9231_v24 = vld [vmem:[%s15474_s6 + $0x88] sm:$0xff] }
 0x4df   : > { %9333 = vperm.xlu2 %11202, %v9231_v24  }
 0x4e0   : > { %v9084_v36 = vmul.f32 %v15256_v6, %v9048_v49  ;;  %v9407_v13 = vmul.f32 %v9254_v2, %v9183_v8  ;;  %9010 = vmatmul.bf16.gmra.mxu1 %v15665_v50  ;;  %v15666_v2 = vld [vmem:[#allocation29_spill] sm:$0xff] }
 0x4e2   : > { %v9438_v31 = vadd.f32 %v9407_v13, %v9406_v22  ;;  %v9120_v41 = vadd.f32 %v15266_v57, %v9084_v36  ;;  %v9234_v22 = vld [vmem:[%s15474_s6 + $0xa0] sm:$0xff]  ;;  %v9269_v36 = vpop.permute.xlu2 %9268 }
 0x4e4   : > { %v9152_v33 = vmul.f32 0.2, %v9120_v41 }
 0x4e5   : > { %v8973_v20 = vpop.f32.mrf.mxu1 }
 0x4e6   : > { %v9049_v11 = vadd.f32 %v8973_v20, %v15041_v29  ;;  %v9184_v43 = vmax.f32 %v9120_v41, %v9152_v33  ;;  %v9264_v29 = vpop.permute.xlu1 %9263 }
 0x4e7   : > { %9348 = vperm.xlu2 %11202, %v9234_v22  }
 0x4e8   : > { %v9085_v52 = vmul.f32 %v15256_v6, %v9049_v11  ;;  %v9408_v32 = vmul.f32 %v9259_v14, %v9184_v43  ;;  %v9237_v14 = vld [vmem:[%s15474_s6 + $0xb8] sm:$0xff] }
 0x4ea   : > { %v9439_v25 = vadd.f32 %v9438_v31, %v9408_v32  ;;  %v9121_v7 = vadd.f32 %v15266_v57, %v9085_v52  ;;  %v9274_v20 = vpop.permute.xlu2 %9273  ;;  %v15667_v32 = vld [vmem:[#allocation10_spill] sm:$0xff] }
 0x4ec   : > { %v9153_v23 = vmul.f32 0.2, %v9121_v7 }
 0x4ed   : > { %v8976_v35 = vpop.f32.mrf.mxu1 }
 0x4ee   : > { %v9050_v16 = vadd.f32 %v8976_v35, %v15056_v60  ;;  %v9185_v34 = vmax.f32 %v9121_v7, %v9153_v23  ;;  %v9279_v35 = vpop.permute.xlu0 %9278 }
 0x4ef   : > { %9363 = vperm.xlu2 %11202, %v9237_v14  }
 0x4f0   : > { %v9086_v15 = vmul.f32 %v15256_v6, %v9050_v16  ;;  %v9409_v58 = vmul.f32 %v9264_v29, %v9185_v34  ;;  %9015 = vmatmul.bf16.gmra.mxu1 %v15666_v2 }
 0x4f2   : > { %v9440_v49 = vadd.f32 %v9439_v25, %v9409_v58  ;;  %v9122_v8 = vadd.f32 %v15266_v57, %v9086_v15  ;;  %v9289_v14 = vpop.permute.xlu2 %9288 }
 0x4f4   : > { %v9154_v13 = vmul.f32 0.2, %v9122_v8 }
 0x4f5   : > { %v8978_v50 = vpop.f32.mrf.mxu1 }
 0x4f6   : > { %v9051_v31 = vadd.f32 %v8978_v50, %v15070_v27  ;;  %v9186_v60 = vmax.f32 %v9122_v8, %v9154_v13 }
 0x4f7   : > { %9378 = vperm.xlu2 %11202, %v9240_v44  }
 0x4f8   : > { %v9087_v41 = vmul.f32 %v15256_v6, %v9051_v31  ;;  %v9410_v37 = vmul.f32 %v9269_v36, %v9186_v60  ;;  %v9284_v36 = vpop.permute.xlu1 %9283  ;;  %v15668_v60 = vld [vmem:[#allocation12_spill] sm:$0xff] }
 0x4fa   : > { %v9441_v3 = vadd.f32 %v9440_v49, %v9410_v37  ;;  %v9123_v24 = vadd.f32 %v15266_v57, %v9087_v41  ;;  %v9243_v49 = vld [vmem:[%s15474_s6 + $0xe8] sm:$0xff] }
 0x4fc   : > { %v9155_v63 = vmul.f32 0.2, %v9123_v24 }
 0x4fd   : > { %v8981_v33 = vpop.f32.mrf.mxu1 }
 0x4fe   : > { %v9052_v11 = vadd.f32 %v8981_v33, %v15085_v30  ;;  %v9187_v43 = vmax.f32 %v9123_v24, %v9155_v63 }
 0x4ff   : > { %9393 = vperm.xlu2 %11202, %v9243_v49  }
 0x500   : > { %v9088_v27 = vmul.f32 %v15256_v6, %v9052_v11  ;;  %v9411_v52 = vmul.f32 %v9274_v20, %v9187_v43  ;;  %9020 = vmatmul.bf16.gmra.mxu1 %v15667_v32  ;;  %v9294_v32 = vpop.permute.xlu0 %9293 }
 0x502   : > { %v9442_v25 = vadd.f32 %v9441_v3, %v9411_v52  ;;  %v9124_v7 = vadd.f32 %v15266_v57, %v9088_v27 }
 0x504   : > { %v9156_v23 = vmul.f32 0.2, %v9124_v7 }
 0x505   : > { %v8983_v30 = vpop.f32.mrf.mxu1 }
 0x506   : > { %v9053_v29 = vadd.f32 %v8983_v30, %v15093_v1  ;;  %v9188_v16 = vmax.f32 %v9124_v7, %v9156_v23  ;;  %v15669_v23 = vld [vmem:[#allocation16_spill] sm:$0xff] }
 0x508   : > { %v9089_v34 = vmul.f32 %v15256_v6, %v9053_v29  ;;  %v9412_v15 = vmul.f32 %v9279_v35, %v9188_v16  ;;  %v11176_v35 = vld [vmem:[%s15475_s7 + $0x20] sm:$0xff] }
 0x509   : > { %9544 = vmatpush.bf16.msrb.mxu2 %v11176_v35 }
 0x50a   : > { %v9443_v58 = vadd.f32 %v9442_v25, %v9412_v15  ;;  %v9125_v2 = vadd.f32 %v15266_v57, %v9089_v34  ;;  %v9299_v34 = vpop.permute.xlu1 %9298 }
 0x50c   : > { %v9157_v8 = vmul.f32 0.2, %v9125_v2 }
 0x50d   : > { %v8986_v22 = vpop.f32.mrf.mxu1 }
 0x50e   : > { %v9054_v13 = vadd.f32 %v8986_v22, %v15105_v9  ;;  %v9189_v50 = vmax.f32 %v9125_v2, %v9157_v8 }
 0x510   : > { %v9090_v1 = vmul.f32 %v15256_v6, %v9054_v13  ;;  %v9413_v31 = vmul.f32 %v9284_v36, %v9189_v50  ;;  %9025 = vmatmul.bf16.gmra.mxu1 %v15668_v60  ;;  %v9304_v13 = vpop.permute.xlu2 %9303  ;;  %v8823_v50 = vrot.slane %v15145_v47, 5  ;;  %v8667_v60 = vld [vmem:[#allocation2 + $0xcc] sm:$0xe] }
 0x512   : > { %v9444_v41 = vadd.f32 %v9443_v58, %v9413_v31  ;;  %v9126_v37 = vadd.f32 %v15266_v57, %v9090_v1 }
 0x514   : > { %v9158_v3 = vmul.f32 0.2, %v9126_v37 }
 0x515   : > { %v8988_v24 = vpop.f32.mrf.mxu1 }
 0x516   : > { %v9055_v63 = vadd.f32 %v8988_v24, %v15119_v54  ;;  %v9190_v33 = vmax.f32 %v9126_v37, %v9158_v3  ;;  %v8825_v3 = vrot.slane %v8823_v50, 4  ;;  %v8826_v24 = vrot.slane %v15163_v5, 5 }
 0x518   : > { %v9091_v20 = vmul.f32 %v15256_v6, %v9055_v63  ;;  %v9414_v11 = vmul.f32 %v9289_v14, %v9190_v33 }
 0x51a   : > { %v9445_v43 = vadd.f32 %v9444_v41, %v9414_v11  ;;  %v9127_v9 = vadd.f32 %v15266_v57, %v9091_v20  ;;  %v9309_v11 = vpop.permute.xlu0 %9308 }
 0x51c   : > { %v9159_v27 = vmul.f32 0.2, %v9127_v9 }
 0x51d   : > { %v8991_v52 = vpop.f32.mrf.mxu1 }
 0x51e   : > { %v9056_v25 = vadd.f32 %v8991_v52, %v15137_v45  ;;  %v9191_v7 = vmax.f32 %v9127_v9, %v9159_v27 }
 0x520   : > { %v9092_v44 = vmul.f32 %v15256_v6, %v9056_v25  ;;  %v9415_v26 = vmul.f32 %v9294_v32, %v9191_v7  ;;  %9030 = vmatmul.bf16.gmra.mxu1 %v15669_v23 }
 0x522   : > { %v9446_v30 = vadd.f32 %v9445_v43, %v9415_v26  ;;  %v9128_v54 = vadd.f32 %v15266_v57, %v9092_v44  ;;  %v8827_v43 = vsel %vm11554_vm7, %v8825_v3, %v8826_v24 }
 0x523   : > { %v8876_v5 = vunpack.c.l.b16 %v8827_v43 }
 0x524   : > { %v9160_v29 = vmul.f32 0.2, %v9128_v54 }
 0x525   : > { %v8993_v16 = vpop.f32.mrf.mxu1 }
 0x526   : > { %v9057_v15 = vadd.f32 %v8993_v16, %v15153_v4  ;;  %v9192_v45 = vmax.f32 %v9128_v54, %v9160_v29  ;;  %v10889_v4 = vrot.slane %v8667_v60, 9 }
 0x528   : > { %v9093_v58 = vmul.f32 %v15256_v6, %v9057_v15  ;;  %v9416_v2 = vmul.f32 %v9299_v34, %v9192_v45 }
 0x52a   : > { %v9447_v49 = vadd.f32 %v9446_v30, %v9416_v2  ;;  %v9129_v8 = vadd.f32 %v15266_v57, %v9093_v58  ;;  %v9314_v30 = vpop.permute.xlu1 %9313  ;;  %v9319_v58 = vpop.permute.xlu2 %9318 }
 0x52c   : > { %v9161_v22 = vmul.f32 0.2, %v9129_v8 }
 0x52d   : > { %v8996_v36 = vpop.f32.mrf.mxu1 }
 0x52e   : > { %v9058_v1 = vadd.f32 %v8996_v36, %v15169_v17  ;;  %v9193_v31 = vmax.f32 %v9129_v8, %v9161_v22  ;;  %v8824_v17 = vsel %vm11554_vm7, %v10889_v4, %v8823_v50 }
 0x52f   : > { %v8875_v32 = vunpack.c.l.b16 %v8824_v17 }
 0x530   : > { %v9094_v41 = vmul.f32 %v15256_v6, %v9058_v1  ;;  %v9417_v37 = vmul.f32 %v9304_v13, %v9193_v31  ;;  %9035 = vmatmul.bf16.gmra.mxu1 %v14992_v61  ;;  %v11175_v13 = vld [vmem:[%s15475_s7 + $0x18] sm:$0xff]  ;;  %v9324_v31 = vpop.permute.xlu0 %9323 }
 0x531   : > { %v8892_v26 = vpack.c.b16 %v8876_v5, %v8875_v32  ;;  %9545 = vmatpush.bf16.msrb.mxu2 %v11175_v13 }
 0x532   : > { %v9448_v14 = vadd.f32 %v9447_v49, %v9417_v37  ;;  %v9130_v63 = vadd.f32 %v15266_v57, %v9094_v41 }
 0x534   : > { %v9162_v33 = vmul.f32 0.2, %v9130_v63 }
 0x535   : > { %v8998_v20 = vpop.f32.mrf.mxu1 }
 0x536   : > { %v9059_v9 = vadd.f32 %v8998_v20, %v15183_v42  ;;  %v9194_v27 = vmax.f32 %v9130_v63, %v9162_v33  ;;  %v9329_v63 = vpop.permute.xlu1 %9328 }
 0x538   : > { %v9095_v61 = vmul.f32 %v15256_v6, %v9059_v9  ;;  %v9418_v52 = vmul.f32 %v9309_v11, %v9194_v27  ;;  %v7595_v11 = vpop.f32.mrf.mxu2  ;;  %v11187_v9 = vld [vmem:[%s15477_s9 + $0x38] sm:$0xff]  ;;  %v7910_v27 = vpop.f32.mrf.mxu3 }
 0x539   : > { %9621 = vmatpush.bf16.msrb.mxu3 %v11187_v9  ;;  %v9334_v5 = vpop.permute.xlu2 %9333 }
 0x53a   : > { %v9449_v25 = vadd.f32 %v9448_v14, %v9418_v52  ;;  %v9131_v7 = vadd.f32 %v15266_v57, %v9095_v61  ;;  %v8592_v61 = vpop.f32.mrf.mxu0 }
 0x53c   : > { %v9163_v44 = vmul.f32 0.2, %v9131_v7 }
 0x53d   : > { %v9001_v23 = vpop.f32.mrf.mxu1 }
 0x53e   : > { %v9060_v54 = vadd.f32 %v9001_v23, %v15192_v28  ;;  %v9195_v35 = vmax.f32 %v9131_v7, %v9163_v44 }
 0x540   : > { %v9096_v29 = vmul.f32 %v15256_v6, %v9060_v54  ;;  %v9419_v16 = vmul.f32 %v9314_v30, %v9195_v35  ;;  %9040 = vmatmul.bf16.gmra.mxu1 %v8892_v26  ;;  %v7598_v26 = vpop.f32.mrf.mxu2 }
 0x542   : > { %v9450_v42 = vadd.f32 %v9449_v25, %v9419_v16  ;;  %v9132_v34 = vadd.f32 %v15266_v57, %v9096_v29  ;;  %v7913_v29 = vpop.f32.mrf.mxu3 }
 0x544   : > { %v9164_v15 = vmul.f32 0.2, %v9132_v34 }
 0x545   : > { %v9003_v45 = vpop.f32.mrf.mxu1 }
 0x546   : > { %v9061_v2 = vadd.f32 %v9003_v45, %v15202_v59  ;;  %v9196_v49 = vmax.f32 %v9132_v34, %v9164_v15  ;;  %v8595_v34 = vpop.f32.mrf.mxu0  ;;  %v9339_v15 = vpop.permute.xlu0 %9338 }
 0x548   : > { %v9097_v8 = vmul.f32 %v15256_v6, %v9061_v2  ;;  %v9420_v22 = vmul.f32 %v9319_v58, %v9196_v49  ;;  %v11174_v49 = vld [vmem:[%s15475_s7 + $0x10] sm:$0xff] }
 0x549   : > { %9546 = vmatpush.bf16.msrb.mxu2 %v11174_v49 }
 0x54a   : > { %v9451_v36 = vadd.f32 %v9450_v42, %v9420_v22  ;;  %v9133_v28 = vadd.f32 %v15266_v57, %v9097_v8  ;;  %v7600_v8 = vpop.f32.mrf.mxu2 }
 0x54c   : > { %v9165_v50 = vmul.f32 0.2, %v9133_v28 }
 0x54d   : > { %v9006_v1 = vpop.f32.mrf.mxu1 }
 0x54e   : > { %v9062_v60 = vadd.f32 %v9006_v1, %v15211_v12  ;;  %v9197_v41 = vmax.f32 %v9133_v28, %v9165_v50  ;;  %v7644_v28 = vadd.f32 %v7595_v11, %v15117_v55  ;;  %v9344_v50 = vpop.permute.xlu1 %9343  ;;  %v7915_v1 = vpop.f32.mrf.mxu3 }
 0x54f   : > { %v9349_v11 = vpop.permute.xlu2 %9348 }
 0x550   : > { %v9098_v59 = vmul.f32 %v15256_v6, %v9062_v60  ;;  %v9421_v37 = vmul.f32 %v9324_v31, %v9197_v41  ;;  %v8597_v41 = vpop.f32.mrf.mxu0 }
 0x552   : > { %v9452_v4 = vadd.f32 %v9451_v36, %v9421_v37  ;;  %v9134_v3 = vadd.f32 %v15266_v57, %v9098_v59  ;;  %v7959_v59 = vadd.f32 %v7910_v27, %v7644_v28  ;;  %v11186_v27 = vld [vmem:[%s15477_s9 + $0x30] sm:$0xff] }
 0x553   : > { %9622 = vmatpush.bf16.msrb.mxu3 %v11186_v27 }
 0x554   : > { %v9166_v24 = vmul.f32 0.2, %v9134_v3 }
 0x555   : > { %v9008_v14 = vpop.f32.mrf.mxu1 }
 0x556   : > { %v9063_v33 = vadd.f32 %v9008_v14, %v15221_v0  ;;  %v9198_v20 = vmax.f32 %v9134_v3, %v9166_v24  ;;  %v8641_v3 = vadd.f32 %v8592_v61, %v7959_v59  ;;  %v7603_v14 = vpop.f32.mrf.mxu2 }
 0x558   : > { %v9099_v47 = vmul.f32 %v15256_v6, %v9063_v33  ;;  %v9422_v17 = vmul.f32 %v9329_v63, %v9198_v20  ;;  %v7645_v33 = vadd.f32 %v7598_v26, %v15135_v39  ;;  %v8600_v61 = vpop.f32.mrf.mxu0 }
 0x55a   : > { %v9453_v43 = vadd.f32 %v9452_v4, %v9422_v17  ;;  %v9135_v12 = vadd.f32 %v15266_v57, %v9099_v47  ;;  %v7918_v17 = vpop.f32.mrf.mxu3 }
 0x55c   : > { %v9167_v52 = vmul.f32 0.2, %v9135_v12 }
 0x55d   : > { %v9011_v32 = vpop.f32.mrf.mxu1 }
 0x55e   : > { %v9064_v0 = vadd.f32 %v9011_v32, %v15230_v40  ;;  %v9199_v25 = vmax.f32 %v9135_v12, %v9167_v52 }
 0x560   : > { %v9100_v7 = vmul.f32 %v15256_v6, %v9064_v0  ;;  %v9423_v44 = vmul.f32 %v9334_v5, %v9199_v25  ;;  %v7646_v5 = vadd.f32 %v7600_v8, %v15151_v18 }
 0x562   : > { %v9136_v23 = vadd.f32 %v15266_v57, %v9100_v7  ;;  %v9454_v30 = vadd.f32 %v9453_v43, %v9423_v44  ;;  %v7960_v43 = vadd.f32 %v7913_v29, %v7645_v33  ;;  %v7605_v7 = vpop.f32.mrf.mxu2  ;;  %v9354_v44 = vpop.permute.xlu0 %9353 }
 0x563   : > { %v7920_v29 = vpop.f32.mrf.mxu3 }
 0x564   : > { %v9168_v54 = vmul.f32 0.2, %v9136_v23  ;;  %v8642_v52 = vadd.f32 %v8595_v34, %v7960_v43  ;;  %v8602_v34 = vpop.f32.mrf.mxu0 }
 0x565   : > { %v9013_v35 = vpop.f32.mrf.mxu1 }
 0x566   : > { %v9200_v16 = vmax.f32 %v9136_v23, %v9168_v54  ;;  %v9065_v42 = vadd.f32 %v9013_v35, %v15242_v56 }
 0x568   : > { %v9424_v45 = vmul.f32 %v9339_v15, %v9200_v16  ;;  %v9101_v58 = vmul.f32 %v15256_v6, %v9065_v42 }
 0x56a   : > { %v9455_v40 = vadd.f32 %v9454_v30, %v9424_v45  ;;  %v9137_v2 = vadd.f32 %v15266_v57, %v9101_v58  ;;  %v7961_v30 = vadd.f32 %v7915_v1, %v7646_v5  ;;  %v7647_v45 = vadd.f32 %v7603_v14, %v15167_v48  ;;  %v7608_v8 = vpop.f32.mrf.mxu2 }
 0x56b   : > { %v7923_v48 = vpop.f32.mrf.mxu3 }
 0x56c   : > { %v9169_v22 = vmul.f32 0.2, %v9137_v2  ;;  %v8643_v16 = vadd.f32 %v8597_v41, %v7961_v30  ;;  %v8605_v59 = vpop.f32.mrf.mxu0 }
 0x56d   : > { %v9016_v36 = vpop.f32.mrf.mxu1 }
 0x56e   : > { %v9201_v13 = vmax.f32 %v9137_v2, %v9169_v22  ;;  %v9066_v56 = vadd.f32 %v9016_v36, %v15259_v21  ;;  %v7962_v22 = vadd.f32 %v7918_v17, %v7647_v45 }
 0x570   : > { %v9425_v31 = vmul.f32 %v9344_v50, %v9201_v13  ;;  %v9102_v60 = vmul.f32 %v15256_v6, %v9066_v56  ;;  %v11173_v13 = vld [vmem:[%s15475_s7 + $0x8] sm:$0xff]  ;;  %v8644_v56 = vadd.f32 %v8600_v61, %v7962_v22 }
 0x571   : > { %9547 = vmatpush.bf16.msrb.mxu2 %v11173_v13 }
 0x572   : > { %v9456_v37 = vadd.f32 %v9455_v40, %v9425_v31  ;;  %v9138_v4 = vadd.f32 %v15266_v57, %v9102_v60  ;;  %v9359_v40 = vpop.permute.xlu1 %9358  ;;  %v7648_v31 = vadd.f32 %v7605_v7, %v15181_v46  ;;  %v7610_v33 = vpop.f32.mrf.mxu2 }
 0x573   : > { %v9369_v46 = vpop.permute.xlu0 %9368  ;;  %v7925_v43 = vpop.f32.mrf.mxu3  ;;  %v7650_v7 = vadd.f32 %v7610_v33, %v15200_v62 }
 0x574   : > { %v9170_v24 = vmul.f32 0.2, %v9138_v4  ;;  %v8607_v27 = vpop.f32.mrf.mxu0 }
 0x575   : > { %v9018_v63 = vpop.f32.mrf.mxu1 }
 0x576   : > { %v9202_v55 = vmax.f32 %v9138_v4, %v9170_v24  ;;  %v9067_v20 = vadd.f32 %v9018_v63, %v8641_v3  ;;  %v7963_v24 = vadd.f32 %v7920_v29, %v7648_v31  ;;  %v7965_v29 = vadd.f32 %v7925_v43, %v7650_v7 }
 0x578   : > { %v9426_v21 = vmul.f32 %v9349_v11, %v9202_v55  ;;  %v9103_v47 = vmul.f32 %v15256_v6, %v9067_v20  ;;  %v8645_v55 = vadd.f32 %v8602_v34, %v7963_v24 }
 0x57a   : > { %v9457_v12 = vadd.f32 %v9456_v37, %v9426_v21  ;;  %v9139_v9 = vadd.f32 %v15266_v57, %v9103_v47  ;;  %v9364_v37 = vpop.permute.xlu2 %9363  ;;  %v7649_v21 = vadd.f32 %v7608_v8, %v15190_v38  ;;  %v7613_v38 = vpop.f32.mrf.mxu2 }
 0x57c   : > { %v9171_v32 = vmul.f32 0.2, %v9139_v9  ;;  %v7964_v61 = vadd.f32 %v7923_v48, %v7649_v21  ;;  %v8610_v34 = vpop.f32.mrf.mxu0 }
 0x57d   : > { %v9021_v39 = vpop.f32.mrf.mxu1 }
 0x57e   : > { %v9203_v0 = vmax.f32 %v9139_v9, %v9171_v32  ;;  %v9068_v25 = vadd.f32 %v9021_v39, %v8642_v52  ;;  %v11185_v39 = vld [vmem:[%s15477_s9 + $0x28] sm:$0xff]  ;;  %v8646_v5 = vadd.f32 %v8605_v59, %v7964_v61 }
 0x57f   : > { %9623 = vmatpush.bf16.msrb.mxu3 %v11185_v39 }
 0x580   : > { %v9427_v26 = vmul.f32 %v9354_v44, %v9203_v0  ;;  %v9104_v23 = vmul.f32 %v15256_v6, %v9068_v25 }
 0x582   : > { %v9458_v54 = vadd.f32 %v9457_v12, %v9427_v26  ;;  %v9140_v35 = vadd.f32 %v15266_v57, %v9104_v23  ;;  %v9374_v23 = vpop.permute.xlu1 %9373  ;;  %v7615_v62 = vpop.f32.mrf.mxu2 }
 0x584   : > { %v9172_v42 = vmul.f32 0.2, %v9140_v35 }
 0x585   : > { %v9023_v15 = vpop.f32.mrf.mxu1 }
 0x586   : > { %v9204_v58 = vmax.f32 %v9140_v35, %v9172_v42  ;;  %v9069_v18 = vadd.f32 %v9023_v15, %v8643_v16  ;;  %v7928_v35 = vpop.f32.mrf.mxu3  ;;  %v8647_v15 = vadd.f32 %v8607_v27, %v7965_v29  ;;  %v11184_v27 = vld [vmem:[%s15477_s9 + $0x20] sm:$0xff] }
 0x587   : > { %9624 = vmatpush.bf16.msrb.mxu3 %v11184_v27 }
 0x588   : > { %v9428_v2 = vmul.f32 %v9359_v40, %v9204_v58  ;;  %v9105_v49 = vmul.f32 %v15256_v6, %v9069_v18  ;;  %v7651_v18 = vadd.f32 %v7613_v38, %v15209_v51  ;;  %v8612_v51 = vpop.f32.mrf.mxu0 }
 0x58a   : > { %v9459_v36 = vadd.f32 %v9458_v54, %v9428_v2  ;;  %v9141_v28 = vadd.f32 %v15266_v57, %v9105_v49  ;;  %v9379_v49 = vpop.permute.xlu2 %9378  ;;  %v7618_v24 = vpop.f32.mrf.mxu2 }
 0x58b   : > { %v9389_v43 = vpop.permute.xlu1 %9388 }
 0x58c   : > { %v9173_v50 = vmul.f32 0.2, %v9141_v28 }
 0x58d   : > { %v9026_v1 = vpop.f32.mrf.mxu1 }
 0x58e   : > { %v9205_v60 = vmax.f32 %v9141_v28, %v9173_v50  ;;  %v9070_v41 = vadd.f32 %v9026_v1, %v8644_v56  ;;  %v11172_v56 = vld [vmem:[%s15475_s7] sm:$0xff]  ;;  %v7930_v50 = vpop.f32.mrf.mxu3 }
 0x58f   : > { %9548 = vmatpush.bf16.msrb.mxu2 %v11172_v56 }
 0x590   : > { %v9429_v4 = vmul.f32 %v9364_v37, %v9205_v60  ;;  %v9106_v3 = vmul.f32 %v15256_v6, %v9070_v41  ;;  %v7652_v60 = vadd.f32 %v7615_v62, %v15219_v53  ;;  %v9384_v37 = vpop.permute.xlu0 %9383  ;;  %v8615_v53 = vpop.f32.mrf.mxu0 }
 0x592   : > { %v9460_v14 = vadd.f32 %v9459_v36, %v9429_v4  ;;  %v9142_v63 = vadd.f32 %v15266_v57, %v9106_v3  ;;  %v7966_v36 = vadd.f32 %v7928_v35, %v7651_v18  ;;  %v7620_v39 = vpop.f32.mrf.mxu2 }
 0x593   : > { %v7654_v38 = vadd.f32 %v7620_v39, %v15240_v10  ;;  %v11182_v10 = vld [vmem:[%s15477_s9 + $0x10] sm:$0xff]  ;;  %v9404_v56 = vpop.permute.xlu1 %9403 }
 0x594   : > { %v9174_v20 = vmul.f32 0.2, %v9142_v63  ;;  %v8648_v1 = vadd.f32 %v8610_v34, %v7966_v36 }
 0x595   : > { %v9028_v11 = vpop.f32.mrf.mxu1 }
 0x596   : > { %v9206_v47 = vmax.f32 %v9142_v63, %v9174_v20  ;;  %v9071_v17 = vadd.f32 %v9028_v11, %v8645_v55  ;;  %v7933_v11 = vpop.f32.mrf.mxu3 }
 0x598   : > { %v9430_v12 = vmul.f32 %v9369_v46, %v9206_v47  ;;  %v9107_v9 = vmul.f32 %v15256_v6, %v9071_v17  ;;  %v7653_v47 = vadd.f32 %v7618_v24, %v15228_v19 }
 0x59a   : > { %v9461_v52 = vadd.f32 %v9460_v14, %v9430_v12  ;;  %v9143_v32 = vadd.f32 %v15266_v57, %v9107_v9  ;;  %v7967_v14 = vadd.f32 %v7930_v50, %v7652_v60  ;;  %v7968_v61 = vadd.f32 %v7933_v11, %v7653_v47 }
 0x59c   : > { %v9175_v0 = vmul.f32 0.2, %v9143_v32  ;;  %v8649_v55 = vadd.f32 %v8612_v51, %v7967_v14 }
 0x59d   : > { %v9031_v25 = vpop.f32.mrf.mxu1 }
 0x59e   : > { %v9207_v44 = vmax.f32 %v9143_v32, %v9175_v0  ;;  %v9072_v26 = vadd.f32 %v9031_v25, %v8646_v5  ;;  %v8650_v5 = vadd.f32 %v8615_v53, %v7968_v61 }
 0x5a0   : > { %v9431_v30 = vmul.f32 %v9374_v23, %v9207_v44  ;;  %v9108_v54 = vmul.f32 %v15256_v6, %v9072_v26  ;;  %v7935_v44 = vpop.f32.mrf.mxu3  ;;  %v9394_v26 = vpop.permute.xlu2 %9393 }
 0x5a1   : > { %v7969_v35 = vadd.f32 %v7935_v44, %v7654_v38 }
 0x5a2   : > { %v9462_v16 = vadd.f32 %v9461_v52, %v9431_v30  ;;  %v9144_v42 = vadd.f32 %v15266_v57, %v9108_v54  ;;  %v8617_v54 = vpop.f32.mrf.mxu0 }
 0x5a3   : > { %v8651_v34 = vadd.f32 %v8617_v54, %v7969_v35 }
 0x5a4   : > { %v9176_v45 = vmul.f32 0.2, %v9144_v42 }
 0x5a5   : > { %v9033_v58 = vpop.f32.mrf.mxu1 }
 0x5a6   : > { %v9208_v40 = vmax.f32 %v9144_v42, %v9176_v45  ;;  %v9073_v2 = vadd.f32 %v9033_v58, %v8647_v15  ;;  %v11183_v42 = vld [vmem:[%s15477_s9 + $0x18] sm:$0xff] }
 0x5a7   : > { %9625 = vmatpush.bf16.msrb.mxu3 %v11183_v42 }
 0x5a8   : > { %v9432_v8 = vmul.f32 %v9379_v49, %v9208_v40  ;;  %v9109_v22 = vmul.f32 %v15256_v6, %v9073_v2  ;;  %v9399_v40 = vpop.permute.xlu0 %9398  ;;  %v11181_v49 = vld [vmem:[%s15477_s9 + $0x8] sm:$0xff] }
 0x5aa   : > { %v9463_v28 = vadd.f32 %v9462_v16, %v9432_v8  ;;  %v9145_v13 = vadd.f32 %v15266_v57, %v9109_v22 }
 0x5ab   : > { %9626 = vmatpush.bf16.msrb.mxu3 %v11182_v10 }
 0x5ac   : > { %v9177_v48 = vmul.f32 0.2, %v9145_v13 }
 0x5ad   : > { %v9036_v31 = vpop.f32.mrf.mxu1 }
 0x5ae   : > { %v9209_v41 = vmax.f32 %v9145_v13, %v9177_v48  ;;  %v9074_v59 = vadd.f32 %v9036_v31, %v8648_v1 }
 0x5af   : > { %9627 = vmatpush.bf16.msrb.mxu3 %v11181_v49 }
 0x5b0   : > { %v9433_v4 = vmul.f32 %v9384_v37, %v9209_v41  ;;  %v9110_v3 = vmul.f32 %v15256_v6, %v9074_v59 }
 0x5b2   : > { %v9464_v63 = vadd.f32 %v9463_v28, %v9433_v4  ;;  %v9146_v33 = vadd.f32 %v15266_v57, %v9110_v3  ;;  %v11180_v28 = vld [vmem:[%s15477_s9] sm:$0xff] }
 0x5b3   : > { %9628 = vmatpush.bf16.msrb.mxu3 %v11180_v28 }
 0x5b4   : > { %v9178_v20 = vmul.f32 0.2, %v9146_v33 }
 0x5b5   : > { %v9038_v21 = vpop.f32.mrf.mxu1 }
 0x5b6   : > { %v9210_v17 = vmax.f32 %v9146_v33, %v9178_v20  ;;  %v9075_v46 = vadd.f32 %v9038_v21, %v8649_v55  ;;  %v9634_v33 = vld [vmem:[#allocation3] sm:$0x1] }
 0x5b8   : > { %v9434_v12 = vmul.f32 %v9389_v43, %v9210_v17  ;;  %v9111_v9 = vmul.f32 %v15256_v6, %v9075_v46 }
 0x5ba   : > { %v9465_v52 = vadd.f32 %v9464_v63, %v9434_v12  ;;  %v9147_v32 = vadd.f32 %v15266_v57, %v9111_v9 }
 0x5bc   : > { %v9179_v0 = vmul.f32 0.2, %v9147_v32 }
 0x5bd   : > { %v9041_v19 = vpop.f32.mrf.mxu1 }
 0x5be   : > { %v9211_v25 = vmax.f32 %v9147_v32, %v9179_v0  ;;  %v9076_v7 = vadd.f32 %v9041_v19, %v8650_v5 }
 0x5c0   : > { %v9435_v23 = vmul.f32 %v9394_v26, %v9211_v25  ;;  %v9112_v30 = vmul.f32 %v15256_v6, %v9076_v7 }
 0x5c2   : > { %v9466_v29 = vadd.f32 %v9465_v52, %v9435_v23  ;;  %v9148_v16 = vadd.f32 %v15266_v57, %v9112_v30 }
 0x5c4   : > { %v9180_v15 = vmul.f32 0.2, %v9148_v16 }
 0x5c5   : > { %v9043_v45 = vpop.f32.mrf.mxu1 }
 0x5c6   : > { %v9212_v58 = vmax.f32 %v9148_v16, %v9180_v15  ;;  %v9077_v18 = vadd.f32 %v9043_v45, %v8651_v34 }
 0x5c8   : > { %v9436_v2 = vmul.f32 %v9399_v40, %v9212_v58  ;;  %v9113_v62 = vmul.f32 %v15256_v6, %v9077_v18 }
 0x5ca   : > { %v9467_v8 = vadd.f32 %v9466_v29, %v9436_v2  ;;  %v9149_v22 = vadd.f32 %v15266_v57, %v9113_v62  ;;  %v9492_v57 = vld [vmem:[%s15476_s8] sm:$0x1] }
 0x5cc   : > { %v9181_v36 = vmul.f32 0.2, %v9149_v22 }
 0x5ce   : > { %v9213_v13 = vmax.f32 %v9149_v22, %v9181_v36 }
 0x5d0   : > { %v9437_v50 = vmul.f32 %v9404_v56, %v9213_v13 }
 0x5d2   : > { %v9468_v1 = vadd.f32 %v9467_v8, %v9437_v50 }
 0x5d4   : > { %v9469_v6 = vrot.slane %v9468_v1, 4 }
 0x5d6   : > { %v9470_v48 = vadd.f32 %v9469_v6, %v9468_v1 }
 0x5d8   : > { %v9471_v51 = vrot.slane %v9470_v48, 2 }
 0x5da   : > { %v9472_v31 = vadd.f32 %v9471_v51, %v9470_v48 }
 0x5dc   : > { %v9473_v60 = vrot.slane %v9472_v31, 1 }
 0x5de   : > { %v9474_v41 = vadd.f32 %v9473_v60, %v9472_v31 }
 0x5e0   : > { %v9475_v59 = vpack.c.bf16 %v9474_v41, %v9474_v41 }
 0x5e2   : > { %9549 = vmatmul.bf16.vlgmr.msrb.gmra.mxu2 %v9475_v59 }
 0x665   : > { %v9550_v37 = vpop.f32.mrf.mxu2 }
 0x666   : > { %v9551_v4 = vadd.f32 %v9550_v37, %v9492_v57 }
 0x668   : > { %v9554_v3 = vmul.f32 0.2, %v9551_v4 }
 0x66a   : > { %v9555_v24 = vmax.f32 %v9551_v4, %v9554_v3 }
 0x66c   : > { %v9556_v14 = vpack.c.bf16 %v9555_v24, %v9555_v24 }
 0x66d   : > { %v9552_v63 = vpop.f32.mrf.mxu2 }
 0x66e   : > { %9629 = vmatmul.bf16.vlgmr.msrb.gmra.mxu3 %v9556_v14 }
 0x6f1   : > { %v9630_v55 = vpop.f32.mrf.mxu3 }
 0x6f2   : > { %v9635_v20 = vadd.f32 %v9634_v33, %v9630_v55 }
 0x6f4   : > { %v9636_v11 = vsub.f32 0.0, %v9635_v20 }
 0x6f6   : > { %v9637_v21 = vmul.f32 1.442695, %v9636_v11 }
 0x6f8   : > { %11206 = vpow2.f32 %v9637_v21 }
 0x6f9   : > { %v9632_v47 = vpop.f32.mrf.mxu3 }
 0x6fe   : > { %v11207_v17 = vpop.eup %11206 }
 0x6ff   : > { %v9639_v46 = vadd.f32 1.0, %v11207_v17 }
 0x701   : > { %11208 = vrcp.f32 %v9639_v46 }
 0x707   : > { %v11209_v53 = vpop.eup %11208 }
 0x708   : > { %v9641_v43 = vmax.f32 %v11209_v53, 0.0 }
 0x70a   : > { %v9642_v12 = vmin.f32 %v9641_v43, 1.0 }
 0x70c   : > { %9644 = vst.msk [vmem:[%s384_s30] sm:$0x1] %vm9643_vm15, %v9642_v12 }
 0x70d PF: > { %s23_s19 = sadd.s32 1, %s11233_s19  }
 0x70e   : > { %p20_p4 = scmp.ge.s32.totalorder %s23_s19, 4  }
 0x710   :  { %22 = sbr.rel (!%p20_p4) target bundleno = 3 (0x3), region = 114 }

</bundles_post_ra>
